<compile_context>
chip_gen: v7x
topology: tpu7x:2x2x1
jax: 0.10.0
libtpu: 0.0.40
codegen_flags: <defaults>
</compile_context>

<pallas_src>
import functools

import jax
import jax.numpy as jnp
from jax.experimental import pallas as pl
from jax.experimental.pallas import tpu as pltpu


def _round_up(x, m):
    return ((x + m - 1) // m) * m


def _row_tile(M):
    """Row tiling: >=2 parallel M blocks for bigger layers (v7x has 2 TCs),
    a single full-extent block for small ones."""
    M8 = _round_up(M, 8)
    if M8 >= 1024:
        tm = 512
    elif M8 >= 512:
        tm = 256
    else:
        tm = M8
    return _round_up(M, tm), tm


# ---------------------------------------------------------------------------
# Pallas kernels
# ---------------------------------------------------------------------------
def _matmul_bias_kernel(a_ref, b_ref, bias_ref, o_ref):
    # Full-extent K and N blocks: one MXU matmul per M tile, bias fused.
    o_ref[...] = (jnp.dot(a_ref[...], b_ref[...],
                          preferred_element_type=jnp.float32)
                  + bias_ref[...]).astype(o_ref.dtype)


@functools.lru_cache(maxsize=None)
def _matmul_bias_call(Mp, K, N, TM):
    return pl.pallas_call(
        _matmul_bias_kernel,
        out_shape=jax.ShapeDtypeStruct((Mp, N), jnp.float32),
        grid_spec=pltpu.PrefetchScalarGridSpec(
            num_scalar_prefetch=0,
            grid=(Mp // TM,),
            in_specs=[
                pl.BlockSpec((TM, K), lambda i: (i, 0)),
                pl.BlockSpec((K, N), lambda i: (0, 0)),   # resident across steps
                pl.BlockSpec((1, N), lambda i: (0, 0)),
            ],
            out_specs=pl.BlockSpec((TM, N), lambda i: (i, 0)),
        ),
        compiler_params=pltpu.CompilerParams(
            dimension_semantics=("parallel",)),
    )


def matmul_bias(a, w_bf16, bias):
    """(M,K) @ (K,N) + bias[N]; bf16 MXU inputs, f32 accumulation and output.
    Only the row dim is padded (to the row tile); K/N use full-extent blocks."""
    M, K = a.shape
    _, N = w_bf16.shape
    Mp, TM = _row_tile(M)
    a_p = jnp.pad(a.astype(jnp.bfloat16), ((0, Mp - M), (0, 0)))
    out = _matmul_bias_call(Mp, K, N, TM)(
        a_p, w_bf16.astype(jnp.bfloat16),
        bias.astype(jnp.float32).reshape(1, N))
    return out[:M]


def _make_bn_act_kernel(alpha, with_res):
    # alpha is a compile-time Python float -> no DMA / broadcast per tile.
    if with_res:
        def kernel(x_ref, res_ref, scale_ref, shift_ref, o_ref):
            y = x_ref[...] * scale_ref[...] + shift_ref[...]
            y = jnp.where(y >= 0.0, y, alpha * y)
            o_ref[...] = y + res_ref[...]
    else:
        def kernel(x_ref, scale_ref, shift_ref, o_ref):
            y = x_ref[...] * scale_ref[...] + shift_ref[...]
            o_ref[...] = jnp.where(y >= 0.0, y, alpha * y)
    return kernel


@functools.lru_cache(maxsize=None)
def _bn_act_call(Rp, C, TR, alpha, with_res):
    tile = pl.BlockSpec((TR, C), lambda i: (i, 0))
    vec = pl.BlockSpec((1, C), lambda i: (0, 0))
    in_specs = [tile] + ([tile] if with_res else []) + [vec, vec]
    return pl.pallas_call(
        _make_bn_act_kernel(alpha, with_res),
        out_shape=jax.ShapeDtypeStruct((Rp, C), jnp.float32),
        grid_spec=pltpu.PrefetchScalarGridSpec(
            num_scalar_prefetch=0,
            grid=(Rp // TR,),
            in_specs=in_specs,
            out_specs=pl.BlockSpec((TR, C), lambda i: (i, 0)),
        ),
        compiler_params=pltpu.CompilerParams(
            dimension_semantics=("parallel",)),
    )


def bn_prelu_2d(x, scale, shift, alpha, res=None):
    """Fused y = scale*x + shift -> PReLU(alpha) [-> + res]; f32 elementwise."""
    R, C = x.shape
    Rp, TR = _row_tile(R)
    pad_r = Rp - R
    args = [jnp.pad(x.astype(jnp.float32), ((0, pad_r), (0, 0)))]
    if res is not None:
        args.append(jnp.pad(res.astype(jnp.float32), ((0, pad_r), (0, 0))))
    args += [scale.astype(jnp.float32).reshape(1, C),
             shift.astype(jnp.float32).reshape(1, C)]
    out = _bn_act_call(Rp, C, TR, float(alpha), res is not None)(*args)
    return out[:R]


# ---------------------------------------------------------------------------
# Conv / norm building blocks (im2col + Pallas matmul)
# ---------------------------------------------------------------------------
def conv2d_nhwc(x, u):
    """x: (N,H,W,Cin); u holds a pre-flattened (k*k*Cin, Cout) bf16 weight matrix."""
    N, H, W, Cin = x.shape
    k, stride, pad, Cout = u["k"], u["stride"], u["pad"], u["cout"]
    OH = (H + 2 * pad - k) // stride + 1
    OW = (W + 2 * pad - k) // stride + 1
    xp = jnp.pad(x.astype(jnp.bfloat16), ((0, 0), (pad, pad), (pad, pad), (0, 0)))
    # TODO(synk): im2col patches are assembled with XLA ops under the outer jit;
    # folding the k*k taps into the matmul kernel's grid would avoid materializing
    # the bf16 patches operand entirely.
    cols = []
    for i in range(k):
        for j in range(k):
            cols.append(xp[:, i:i + stride * (OH - 1) + 1:stride,
                            j:j + stride * (OW - 1) + 1:stride, :])
    patches = jnp.concatenate(cols, axis=-1).reshape(N * OH * OW, k * k * Cin)
    y = matmul_bias(patches, u["wm"], u["b"])
    return y.reshape(N, OH, OW, Cout)


_T_TAPS = ((0, 0), (0, 1), (1, 0), (1, 1))


def conv_transpose2d_nhwc(x, up):
    """ConvTranspose2d(k=3, s=2, p=1, output_padding=1) via 4-phase sub-pixel
    decomposition (no zero-dilated input): one combined matmul over 4 taps."""
    N, H, W, Cin = x.shape
    Cout = up["cout"]
    xp = jnp.pad(x.astype(jnp.bfloat16), ((0, 0), (0, 1), (0, 1), (0, 0)))
    cols = [xp[:, dy:dy + H, dx:dx + W, :] for dy, dx in _T_TAPS]
    patches = jnp.concatenate(cols, axis=-1).reshape(N * H * W, 4 * Cin)
    y = matmul_bias(patches, up["wmat"], up["bias4"])          # (N*H*W, 4*Cout)
    y = y.reshape(N, H, W, 2, 2, Cout)                          # (..., ph, pw, C)
    return jnp.transpose(y, (0, 1, 3, 2, 4, 5)).reshape(N, 2 * H, 2 * W, Cout)


def bn_prelu_nhwc(x, gamma, beta, alpha, res=None, eps=1e-5):
    """BatchNorm2d (training mode: batch stats, biased var) + PReLU(alpha),
    optionally fused with a residual add (saves one full HBM pass)."""
    N, H, W, C = x.shape
    x2 = x.reshape(N * H * W, C)
    # TODO(synk): batch statistics use plain-JAX reductions (one fused XLA pass
    # under the outer jit); a partial-sum side output from the matmul kernel
    # would remove this extra read of x.
    mean = jnp.mean(x2, axis=0)
    var = jnp.mean(jnp.square(x2 - mean[None, :]), axis=0)
    scale = gamma / jnp.sqrt(var + eps)
    shift = beta - mean * scale
    res2 = None if res is None else res.reshape(N * H * W, C)
    y = bn_prelu_2d(x2, scale, shift, alpha, res2)
    return y.reshape(N, H, W, C)


# ---------------------------------------------------------------------------
# Deterministic parameter construction (shapes follow MONAI UNet)
# ---------------------------------------------------------------------------
class KeyGen:
    def __init__(self, seed):
        self.key = jax.random.PRNGKey(seed)

    def __call__(self):
        self.key, sub = jax.random.split(self.key)
        return sub


def _conv_unit(kg, cin, cout, k, stride, pad):
    fan_in = cin * k * k
    w = jax.random.normal(kg(), (cout, cin, k, k), jnp.float32) * (1.0 / fan_in) ** 0.5
    b = jax.random.normal(kg(), (cout,), jnp.float32) * 0.01
    wm = jnp.transpose(w, (2, 3, 1, 0)).reshape(k * k * cin, cout).astype(jnp.bfloat16)
    return {"wm": wm, "b": b, "k": k, "stride": stride, "pad": pad, "cout": cout}


def _phase_sel(parity, offset):
    # Kernel row/col index contributing to output parity `parity` from input
    # offset `offset` for ConvTranspose2d(k=3,s=2,p=1,op=1); None = no term.
    return {(0, 0): 1, (1, 0): 2, (1, 1): 0}.get((parity, offset), None)


def _convT_unit(kg, cin, cout):
    fan_in = cin * 9
    w = jax.random.normal(kg(), (cin, cout, 3, 3), jnp.float32) * (1.0 / fan_in) ** 0.5
    b = jax.random.normal(kg(), (cout,), jnp.float32) * 0.01
    # 4-phase combined weight: rows = 4 input taps * Cin, cols = 4 output parities * Cout.
    row_blocks = []
    for dy, dx in _T_TAPS:
        row = []
        for ph in range(2):
            for pw in range(2):
                ki, kj = _phase_sel(ph, dy), _phase_sel(pw, dx)
                if ki is None or kj is None:
                    row.append(jnp.zeros((cin, cout), jnp.float32))
                else:
                    row.append(w[:, :, ki, kj])
        row_blocks.append(jnp.concatenate(row, axis=1))
    wmat = jnp.concatenate(row_blocks, axis=0).astype(jnp.bfloat16)   # (4Cin, 4Cout)
    bias4 = jnp.tile(b, 4)
    return {"wmat": wmat, "bias4": bias4, "cout": cout}


def _bn_params(kg, c):
    gamma = 1.0 + 0.1 * jax.random.normal(kg(), (c,), jnp.float32)
    beta = 0.1 * jax.random.normal(kg(), (c,), jnp.float32)
    return gamma, beta


def make_residual_unit(kg, cin, cout, stride, subunits, last_conv_only):
    units = []
    sch, sst = cin, stride
    for su in range(subunits):
        conv_only = last_conv_only and su == (subunits - 1)
        u = _conv_unit(kg, sch, cout, 3, sst, 1)
        u["conv_only"] = conv_only
        if not conv_only:
            u["gamma"], u["beta"] = _bn_params(kg, cout)
            u["alpha"] = 0.25
        units.append(u)
        sch, sst = cout, 1
    if stride != 1 or cin != cout:
        rk, rp = (3, 1) if stride != 1 else (1, 0)
        residual = _conv_unit(kg, cin, cout, rk, stride, rp)
    else:
        residual = None
    return {"units": units, "residual": residual}


def make_up_layer(kg, cin, cout, stride, is_top):
    tconv = _convT_unit(kg, cin, cout)
    gamma, beta = _bn_params(kg, cout)
    ru = make_residual_unit(kg, cout, cout, 1, 1, last_conv_only=is_top)
    return {"tconv": tconv, "gamma": gamma, "beta": beta, "alpha": 0.25, "ru": ru}


def build_unet(kg, inc, outc, channels, strides, is_top):
    c, s = channels[0], strides[0]
    if len(channels) > 2:
        sub = {"kind": "block",
               "block": build_unet(kg, c, c, channels[1:], strides[1:], False)}
        upc = c * 2
    else:
        sub = {"kind": "ru",
               "ru": make_residual_unit(kg, c, channels[1], 1, 2, False)}
        upc = c + channels[1]
    return {
        "down": make_residual_unit(kg, inc, c, s, 2, False),
        "sub": sub,
        "up": make_up_layer(kg, upc, outc, s, is_top),
    }


# ---------------------------------------------------------------------------
# Forward application
# ---------------------------------------------------------------------------
def apply_residual_unit(x, p):
    if p["residual"] is None:
        res = x
    else:
        res = conv2d_nhwc(x, p["residual"])
    cx = x
    last = len(p["units"]) - 1
    for idx, u in enumerate(p["units"]):
        cx = conv2d_nhwc(cx, u)
        if u["conv_only"]:
            if idx == last:
                cx = cx + res            # fused by XLA under the outer jit
        else:
            cx = bn_prelu_nhwc(cx, u["gamma"], u["beta"], u["alpha"],
                               res=res if idx == last else None)
    return cx


def apply_up_layer(x, p):
    y = conv_transpose2d_nhwc(x, p["tconv"])
    y = bn_prelu_nhwc(y, p["gamma"], p["beta"], p["alpha"])
    return apply_residual_unit(y, p["ru"])


def apply_block(x, blk):
    d = apply_residual_unit(x, blk["down"])
    if blk["sub"]["kind"] == "block":
        s = apply_block(d, blk["sub"]["block"])
    else:
        s = apply_residual_unit(d, blk["sub"]["ru"])
    cat = jnp.concatenate([d, s], axis=-1)           # SkipConnection (channel cat)
    return apply_up_layer(cat, blk["up"])


class MonaiRectifiedFlowPallas:
    def __init__(self, img_size=32, in_channels=1, out_channels=1,
                 features=(32, 64, 128, 256), seed=0):
        self.img_size = img_size
        kg = KeyGen(seed)
        self.unet = build_unet(kg, in_channels + 1, out_channels,
                               list(features), [2, 2, 2], True)
        self._fwd = jax.jit(self._forward)    # whole forward = one XLA program

    def _forward(self, x_nchw, t):
        N, _, H, W = x_nchw.shape
        t_map = jnp.broadcast_to(t.reshape(-1, 1, 1, 1).astype(x_nchw.dtype),
                                 (N, 1, H, W))
        x_t = jnp.concatenate([x_nchw, t_map], axis=1)       # NCHW, Cin+1
        x = jnp.transpose(x_t, (0, 2, 3, 1))                  # -> NHWC
        y = apply_block(x, self.unet)
        return jnp.transpose(y, (0, 3, 1, 2))                 # -> NCHW

    def __call__(self, x_nchw, t):
        return self._fwd(x_nchw, t)


if __name__ == "__main__":
    IMG = 32
    model = MonaiRectifiedFlowPallas(img_size=IMG, in_channels=1, out_channels=1)

    key = jax.random.PRNGKey(0)
    kx, kt = jax.random.split(key)
    x = jax.random.normal(kx, (2, 1, IMG, IMG), jnp.float32)
    t = jax.random.uniform(kt, (2,), jnp.float32)

    out = model(x, t)
    out = jax.block_until_ready(out)
    assert out.shape == (2, 1, IMG, IMG), out.shape
    assert bool(jnp.all(jnp.isfinite(out)))
    print("KERNEL_OK")
</pallas_src>

<mosaic_0001>
module attributes {stable_mosaic.version = 11 : i64} {
  func.func @_matmul_bias_kernel(%arg0: i32, %arg1: memref<256x18xbf16, #tpu.memory_space<vmem>>, %arg2: memref<18x32xbf16, #tpu.memory_space<vmem>>, %arg3: memref<1x32xf32, #tpu.memory_space<vmem>>, %arg4: memref<256x32xf32, #tpu.memory_space<vmem>>) attributes {dimension_semantics = [#tpu.dimension_semantics<parallel>], iteration_bounds = array<i64: 2>, scalar_prefetch = 0 : i64, scratch_operands = 0 : i64, tpu.core_type = #tpu.core_type<tc>, window_params = [{transform_indices = @transform_0, window_bounds = array<i64: 256, 18>}, {pipeline_mode = #tpu.pipeline_mode<synchronous>, transform_indices = @transform_1, window_bounds = array<i64: 18, 32>}, {pipeline_mode = #tpu.pipeline_mode<synchronous>, transform_indices = @transform_2, window_bounds = array<i64: 1, 32>}, {transform_indices = @transform_3, window_bounds = array<i64: 256, 32>}]} {
    %c0 = arith.constant 0 : index
    %c0_0 = arith.constant 0 : index
    %0 = vector.load %arg1[%c0, %c0_0] : memref<256x18xbf16, #tpu.memory_space<vmem>>, vector<256x18xbf16>
    %c0_1 = arith.constant 0 : index
    %c0_2 = arith.constant 0 : index
    %1 = vector.load %arg2[%c0_1, %c0_2] : memref<18x32xbf16, #tpu.memory_space<vmem>>, vector<18x32xbf16>
    %cst = arith.constant dense<0.000000e+00> : vector<256x32xf32>
    %2 = tpu.matmul %0, %1, %cst {dimension_numbers = #tpu.dot_dimension_numbers<[1], [0], [0], [1], [0, 0, 1, 1], [], []>} : vector<256x18xbf16>, vector<18x32xbf16>, vector<256x32xf32> -> vector<256x32xf32>
    %c0_3 = arith.constant 0 : index
    %c0_4 = arith.constant 0 : index
    %3 = vector.load %arg3[%c0_3, %c0_4] : memref<1x32xf32, #tpu.memory_space<vmem>>, vector<1x32xf32>
    %4 = vector.broadcast %3 : vector<1x32xf32> to vector<256x32xf32>
    %5 = arith.addf %2, %4 : vector<256x32xf32>
    %c0_5 = arith.constant 0 : index
    %c0_6 = arith.constant 0 : index
    %6 = vector.load %arg4[%c0_5, %c0_6] : memref<256x32xf32, #tpu.memory_space<vmem>>, vector<256x32xf32>
    tpu.vector_store %arg4[%c0_5, %c0_6], %5 {strides = array<i32>} : memref<256x32xf32, #tpu.memory_space<vmem>>, vector<256x32xf32>,
    return
  }
  func.func @transform_0(%arg0: i32) -> (i32, i32) {
    %c0_i32 = arith.constant 0 : i32
    %c0_i32_0 = arith.constant 0 : i32
    return %arg0, %c0_i32 : i32, i32
  }
  func.func @transform_1(%arg0: i32) -> (i32, i32) {
    %c0_i32 = arith.constant 0 : i32
    %c0_i32_0 = arith.constant 0 : i32
    %c0_i32_1 = arith.constant 0 : i32
    return %c0_i32, %c0_i32_0 : i32, i32
  }
  func.func @transform_2(%arg0: i32) -> (i32, i32) {
    %c0_i32 = arith.constant 0 : i32
    %c0_i32_0 = arith.constant 0 : i32
    %c0_i32_1 = arith.constant 0 : i32
    return %c0_i32, %c0_i32_0 : i32, i32
  }
  func.func @transform_3(%arg0: i32) -> (i32, i32) {
    %c0_i32 = arith.constant 0 : i32
    %c0_i32_0 = arith.constant 0 : i32
    return %arg0, %c0_i32 : i32, i32
  }
}

module attributes {stable_mosaic.version = 11 : i64} {
  func.func @kernel(%arg0: i32, %arg1: memref<256x32xf32, #tpu.memory_space<vmem>>, %arg2: memref<1x32xf32, #tpu.memory_space<vmem>>, %arg3: memref<1x32xf32, #tpu.memory_space<vmem>>, %arg4: memref<256x32xf32, #tpu.memory_space<vmem>>) attributes {dimension_semantics = [#tpu.dimension_semantics<parallel>], iteration_bounds = array<i64: 2>, scalar_prefetch = 0 : i64, scratch_operands = 0 : i64, tpu.core_type = #tpu.core_type<tc>, window_params = [{transform_indices = @transform_0, window_bounds = array<i64: 256, 32>}, {pipeline_mode = #tpu.pipeline_mode<synchronous>, transform_indices = @transform_1, window_bounds = array<i64: 1, 32>}, {pipeline_mode = #tpu.pipeline_mode<synchronous>, transform_indices = @transform_2, window_bounds = array<i64: 1, 32>}, {transform_indices = @transform_3, window_bounds = array<i64: 256, 32>}]} {
    %c0 = arith.constant 0 : index
    %c0_0 = arith.constant 0 : index
    %0 = vector.load %arg1[%c0, %c0_0] : memref<256x32xf32, #tpu.memory_space<vmem>>, vector<256x32xf32>
    %c0_1 = arith.constant 0 : index
    %c0_2 = arith.constant 0 : index
    %1 = vector.load %arg2[%c0_1, %c0_2] : memref<1x32xf32, #tpu.memory_space<vmem>>, vector<1x32xf32>
    %2 = vector.broadcast %1 : vector<1x32xf32> to vector<256x32xf32>
    %3 = arith.mulf %0, %2 : vector<256x32xf32>
    %c0_3 = arith.constant 0 : index
    %c0_4 = arith.constant 0 : index
    %4 = vector.load %arg3[%c0_3, %c0_4] : memref<1x32xf32, #tpu.memory_space<vmem>>, vector<1x32xf32>
    %5 = vector.broadcast %4 : vector<1x32xf32> to vector<256x32xf32>
    %6 = arith.addf %3, %5 : vector<256x32xf32>
    %cst = arith.constant 0.000000e+00 : f32
    %7 = vector.broadcast %cst : f32 to vector<256x32xf32>
    %8 = arith.cmpf oge, %6, %7 : vector<256x32xf32>
    %cst_5 = arith.constant 2.500000e-01 : f32
    %9 = vector.broadcast %cst_5 : f32 to vector<256x32xf32>
    %10 = arith.mulf %9, %6 : vector<256x32xf32>
    %11 = arith.select %8, %6, %10 : vector<256x32xi1>, vector<256x32xf32>
    %c0_6 = arith.constant 0 : index
    %c0_7 = arith.constant 0 : index
    %12 = vector.load %arg4[%c0_6, %c0_7] : memref<256x32xf32, #tpu.memory_space<vmem>>, vector<256x32xf32>
    tpu.vector_store %arg4[%c0_6, %c0_7], %11 {strides = array<i32>} : memref<256x32xf32, #tpu.memory_space<vmem>>, vector<256x32xf32>,
    return
  }
  func.func @transform_0(%arg0: i32) -> (i32, i32) {
    %c0_i32 = arith.constant 0 : i32
    %c0_i32_0 = arith.constant 0 : i32
    return %arg0, %c0_i32 : i32, i32
  }
  func.func @transform_1(%arg0: i32) -> (i32, i32) {
    %c0_i32 = arith.constant 0 : i32
    %c0_i32_0 = arith.constant 0 : i32
    %c0_i32_1 = arith.constant 0 : i32
    return %c0_i32, %c0_i32_0 : i32, i32
  }
  func.func @transform_2(%arg0: i32) -> (i32, i32) {
    %c0_i32 = arith.constant 0 : i32
    %c0_i32_0 = arith.constant 0 : i32
    %c0_i32_1 = arith.constant 0 : i32
    return %c0_i32, %c0_i32_0 : i32, i32
  }
  func.func @transform_3(%arg0: i32) -> (i32, i32) {
    %c0_i32 = arith.constant 0 : i32
    %c0_i32_0 = arith.constant 0 : i32
    return %arg0, %c0_i32 : i32, i32
  }
}

module attributes {stable_mosaic.version = 11 : i64} {
  func.func @_matmul_bias_kernel(%arg0: i32, %arg1: memref<256x288xbf16, #tpu.memory_space<vmem>>, %arg2: memref<288x32xbf16, #tpu.memory_space<vmem>>, %arg3: memref<1x32xf32, #tpu.memory_space<vmem>>, %arg4: memref<256x32xf32, #tpu.memory_space<vmem>>) attributes {dimension_semantics = [#tpu.dimension_semantics<parallel>], iteration_bounds = array<i64: 2>, scalar_prefetch = 0 : i64, scratch_operands = 0 : i64, tpu.core_type = #tpu.core_type<tc>, window_params = [{transform_indices = @transform_0, window_bounds = array<i64: 256, 288>}, {pipeline_mode = #tpu.pipeline_mode<synchronous>, transform_indices = @transform_1, window_bounds = array<i64: 288, 32>}, {pipeline_mode = #tpu.pipeline_mode<synchronous>, transform_indices = @transform_2, window_bounds = array<i64: 1, 32>}, {transform_indices = @transform_3, window_bounds = array<i64: 256, 32>}]} {
    %c0 = arith.constant 0 : index
    %c0_0 = arith.constant 0 : index
    %0 = vector.load %arg1[%c0, %c0_0] : memref<256x288xbf16, #tpu.memory_space<vmem>>, vector<256x288xbf16>
    %c0_1 = arith.constant 0 : index
    %c0_2 = arith.constant 0 : index
    %1 = vector.load %arg2[%c0_1, %c0_2] : memref<288x32xbf16, #tpu.memory_space<vmem>>, vector<288x32xbf16>
    %cst = arith.constant dense<0.000000e+00> : vector<256x32xf32>
    %2 = tpu.matmul %0, %1, %cst {dimension_numbers = #tpu.dot_dimension_numbers<[1], [0], [0], [1], [0, 0, 1, 1], [], []>} : vector<256x288xbf16>, vector<288x32xbf16>, vector<256x32xf32> -> vector<256x32xf32>
    %c0_3 = arith.constant 0 : index
    %c0_4 = arith.constant 0 : index
    %3 = vector.load %arg3[%c0_3, %c0_4] : memref<1x32xf32, #tpu.memory_space<vmem>>, vector<1x32xf32>
    %4 = vector.broadcast %3 : vector<1x32xf32> to vector<256x32xf32>
    %5 = arith.addf %2, %4 : vector<256x32xf32>
    %c0_5 = arith.constant 0 : index
    %c0_6 = arith.constant 0 : index
    %6 = vector.load %arg4[%c0_5, %c0_6] : memref<256x32xf32, #tpu.memory_space<vmem>>, vector<256x32xf32>
    tpu.vector_store %arg4[%c0_5, %c0_6], %5 {strides = array<i32>} : memref<256x32xf32, #tpu.memory_space<vmem>>, vector<256x32xf32>,
    return
  }
  func.func @transform_0(%arg0: i32) -> (i32, i32) {
    %c0_i32 = arith.constant 0 : i32
    %c0_i32_0 = arith.constant 0 : i32
    return %arg0, %c0_i32 : i32, i32
  }
  func.func @transform_1(%arg0: i32) -> (i32, i32) {
    %c0_i32 = arith.constant 0 : i32
    %c0_i32_0 = arith.constant 0 : i32
    %c0_i32_1 = arith.constant 0 : i32
    return %c0_i32, %c0_i32_0 : i32, i32
  }
  func.func @transform_2(%arg0: i32) -> (i32, i32) {
    %c0_i32 = arith.constant 0 : i32
    %c0_i32_0 = arith.constant 0 : i32
    %c0_i32_1 = arith.constant 0 : i32
    return %c0_i32, %c0_i32_0 : i32, i32
  }
  func.func @transform_3(%arg0: i32) -> (i32, i32) {
    %c0_i32 = arith.constant 0 : i32
    %c0_i32_0 = arith.constant 0 : i32
    return %arg0, %c0_i32 : i32, i32
  }
}

module attributes {stable_mosaic.version = 11 : i64} {
  func.func @kernel(%arg0: i32, %arg1: memref<256x32xf32, #tpu.memory_space<vmem>>, %arg2: memref<256x32xf32, #tpu.memory_space<vmem>>, %arg3: memref<1x32xf32, #tpu.memory_space<vmem>>, %arg4: memref<1x32xf32, #tpu.memory_space<vmem>>, %arg5: memref<256x32xf32, #tpu.memory_space<vmem>>) attributes {dimension_semantics = [#tpu.dimension_semantics<parallel>], iteration_bounds = array<i64: 2>, scalar_prefetch = 0 : i64, scratch_operands = 0 : i64, tpu.core_type = #tpu.core_type<tc>, window_params = [{transform_indices = @transform_0, window_bounds = array<i64: 256, 32>}, {transform_indices = @transform_1, window_bounds = array<i64: 256, 32>}, {pipeline_mode = #tpu.pipeline_mode<synchronous>, transform_indices = @transform_2, window_bounds = array<i64: 1, 32>}, {pipeline_mode = #tpu.pipeline_mode<synchronous>, transform_indices = @transform_3, window_bounds = array<i64: 1, 32>}, {transform_indices = @transform_4, window_bounds = array<i64: 256, 32>}]} {
    %c0 = arith.constant 0 : index
    %c0_0 = arith.constant 0 : index
    %0 = vector.load %arg1[%c0, %c0_0] : memref<256x32xf32, #tpu.memory_space<vmem>>, vector<256x32xf32>
    %c0_1 = arith.constant 0 : index
    %c0_2 = arith.constant 0 : index
    %1 = vector.load %arg3[%c0_1, %c0_2] : memref<1x32xf32, #tpu.memory_space<vmem>>, vector<1x32xf32>
    %2 = vector.broadcast %1 : vector<1x32xf32> to vector<256x32xf32>
    %3 = arith.mulf %0, %2 : vector<256x32xf32>
    %c0_3 = arith.constant 0 : index
    %c0_4 = arith.constant 0 : index
    %4 = vector.load %arg4[%c0_3, %c0_4] : memref<1x32xf32, #tpu.memory_space<vmem>>, vector<1x32xf32>
    %5 = vector.broadcast %4 : vector<1x32xf32> to vector<256x32xf32>
    %6 = arith.addf %3, %5 : vector<256x32xf32>
    %cst = arith.constant 0.000000e+00 : f32
    %7 = vector.broadcast %cst : f32 to vector<256x32xf32>
    %8 = arith.cmpf oge, %6, %7 : vector<256x32xf32>
    %cst_5 = arith.constant 2.500000e-01 : f32
    %9 = vector.broadcast %cst_5 : f32 to vector<256x32xf32>
    %10 = arith.mulf %9, %6 : vector<256x32xf32>
    %11 = arith.select %8, %6, %10 : vector<256x32xi1>, vector<256x32xf32>
    %c0_6 = arith.constant 0 : index
    %c0_7 = arith.constant 0 : index
    %12 = vector.load %arg2[%c0_6, %c0_7] : memref<256x32xf32, #tpu.memory_space<vmem>>, vector<256x32xf32>
    %13 = arith.addf %11, %12 : vector<256x32xf32>
    %c0_8 = arith.constant 0 : index
    %c0_9 = arith.constant 0 : index
    %14 = vector.load %arg5[%c0_8, %c0_9] : memref<256x32xf32, #tpu.memory_space<vmem>>, vector<256x32xf32>
    tpu.vector_store %arg5[%c0_8, %c0_9], %13 {strides = array<i32>} : memref<256x32xf32, #tpu.memory_space<vmem>>, vector<256x32xf32>,
    return
  }
  func.func @transform_0(%arg0: i32) -> (i32, i32) {
    %c0_i32 = arith.constant 0 : i32
    %c0_i32_0 = arith.constant 0 : i32
    return %arg0, %c0_i32 : i32, i32
  }
  func.func @transform_1(%arg0: i32) -> (i32, i32) {
    %c0_i32 = arith.constant 0 : i32
    %c0_i32_0 = arith.constant 0 : i32
    return %arg0, %c0_i32 : i32, i32
  }
  func.func @transform_2(%arg0: i32) -> (i32, i32) {
    %c0_i32 = arith.constant 0 : i32
    %c0_i32_0 = arith.constant 0 : i32
    %c0_i32_1 = arith.constant 0 : i32
    return %c0_i32, %c0_i32_0 : i32, i32
  }
  func.func @transform_3(%arg0: i32) -> (i32, i32) {
    %c0_i32 = arith.constant 0 : i32
    %c0_i32_0 = arith.constant 0 : i32
    %c0_i32_1 = arith.constant 0 : i32
    return %c0_i32, %c0_i32_0 : i32, i32
  }
  func.func @transform_4(%arg0: i32) -> (i32, i32) {
    %c0_i32 = arith.constant 0 : i32
    %c0_i32_0 = arith.constant 0 : i32
    return %arg0, %c0_i32 : i32, i32
  }
}

module attributes {stable_mosaic.version = 11 : i64} {
  func.func @_matmul_bias_kernel(%arg0: i32, %arg1: memref<128x288xbf16, #tpu.memory_space<vmem>>, %arg2: memref<288x64xbf16, #tpu.memory_space<vmem>>, %arg3: memref<1x64xf32, #tpu.memory_space<vmem>>, %arg4: memref<128x64xf32, #tpu.memory_space<vmem>>) attributes {dimension_semantics = [#tpu.dimension_semantics<parallel>], iteration_bounds = array<i64: 1>, scalar_prefetch = 0 : i64, scratch_operands = 0 : i64, tpu.core_type = #tpu.core_type<tc>, window_params = [{transform_indices = @transform_0, window_bounds = array<i64: 128, 288>}, {pipeline_mode = #tpu.pipeline_mode<synchronous>, transform_indices = @transform_1, window_bounds = array<i64: 288, 64>}, {pipeline_mode = #tpu.pipeline_mode<synchronous>, transform_indices = @transform_2, window_bounds = array<i64: 1, 64>}, {transform_indices = @transform_3, window_bounds = array<i64: 128, 64>}]} {
    %c0 = arith.constant 0 : index
    %c0_0 = arith.constant 0 : index
    %0 = vector.load %arg1[%c0, %c0_0] : memref<128x288xbf16, #tpu.memory_space<vmem>>, vector<128x288xbf16>
    %c0_1 = arith.constant 0 : index
    %c0_2 = arith.constant 0 : index
    %1 = vector.load %arg2[%c0_1, %c0_2] : memref<288x64xbf16, #tpu.memory_space<vmem>>, vector<288x64xbf16>
    %cst = arith.constant dense<0.000000e+00> : vector<128x64xf32>
    %2 = tpu.matmul %0, %1, %cst {dimension_numbers = #tpu.dot_dimension_numbers<[1], [0], [0], [1], [0, 0, 1, 1], [], []>} : vector<128x288xbf16>, vector<288x64xbf16>, vector<128x64xf32> -> vector<128x64xf32>
    %c0_3 = arith.constant 0 : index
    %c0_4 = arith.constant 0 : index
    %3 = vector.load %arg3[%c0_3, %c0_4] : memref<1x64xf32, #tpu.memory_space<vmem>>, vector<1x64xf32>
    %4 = vector.broadcast %3 : vector<1x64xf32> to vector<128x64xf32>
    %5 = arith.addf %2, %4 : vector<128x64xf32>
    %c0_5 = arith.constant 0 : index
    %c0_6 = arith.constant 0 : index
    %6 = vector.load %arg4[%c0_5, %c0_6] : memref<128x64xf32, #tpu.memory_space<vmem>>, vector<128x64xf32>
    tpu.vector_store %arg4[%c0_5, %c0_6], %5 {strides = array<i32>} : memref<128x64xf32, #tpu.memory_space<vmem>>, vector<128x64xf32>,
    return
  }
  func.func @transform_0(%arg0: i32) -> (i32, i32) {
    %c0_i32 = arith.constant 0 : i32
    %c0_i32_0 = arith.constant 0 : i32
    return %arg0, %c0_i32 : i32, i32
  }
  func.func @transform_1(%arg0: i32) -> (i32, i32) {
    %c0_i32 = arith.constant 0 : i32
    %c0_i32_0 = arith.constant 0 : i32
    %c0_i32_1 = arith.constant 0 : i32
    return %c0_i32, %c0_i32_0 : i32, i32
  }
  func.func @transform_2(%arg0: i32) -> (i32, i32) {
    %c0_i32 = arith.constant 0 : i32
    %c0_i32_0 = arith.constant 0 : i32
    %c0_i32_1 = arith.constant 0 : i32
    return %c0_i32, %c0_i32_0 : i32, i32
  }
  func.func @transform_3(%arg0: i32) -> (i32, i32) {
    %c0_i32 = arith.constant 0 : i32
    %c0_i32_0 = arith.constant 0 : i32
    return %arg0, %c0_i32 : i32, i32
  }
}

module attributes {stable_mosaic.version = 11 : i64} {
  func.func @kernel(%arg0: i32, %arg1: memref<128x64xf32, #tpu.memory_space<vmem>>, %arg2: memref<1x64xf32, #tpu.memory_space<vmem>>, %arg3: memref<1x64xf32, #tpu.memory_space<vmem>>, %arg4: memref<128x64xf32, #tpu.memory_space<vmem>>) attributes {dimension_semantics = [#tpu.dimension_semantics<parallel>], iteration_bounds = array<i64: 1>, scalar_prefetch = 0 : i64, scratch_operands = 0 : i64, tpu.core_type = #tpu.core_type<tc>, window_params = [{transform_indices = @transform_0, window_bounds = array<i64: 128, 64>}, {pipeline_mode = #tpu.pipeline_mode<synchronous>, transform_indices = @transform_1, window_bounds = array<i64: 1, 64>}, {pipeline_mode = #tpu.pipeline_mode<synchronous>, transform_indices = @transform_2, window_bounds = array<i64: 1, 64>}, {transform_indices = @transform_3, window_bounds = array<i64: 128, 64>}]} {
    %c0 = arith.constant 0 : index
    %c0_0 = arith.constant 0 : index
    %0 = vector.load %arg1[%c0, %c0_0] : memref<128x64xf32, #tpu.memory_space<vmem>>, vector<128x64xf32>
    %c0_1 = arith.constant 0 : index
    %c0_2 = arith.constant 0 : index
    %1 = vector.load %arg2[%c0_1, %c0_2] : memref<1x64xf32, #tpu.memory_space<vmem>>, vector<1x64xf32>
    %2 = vector.broadcast %1 : vector<1x64xf32> to vector<128x64xf32>
    %3 = arith.mulf %0, %2 : vector<128x64xf32>
    %c0_3 = arith.constant 0 : index
    %c0_4 = arith.constant 0 : index
    %4 = vector.load %arg3[%c0_3, %c0_4] : memref<1x64xf32, #tpu.memory_space<vmem>>, vector<1x64xf32>
    %5 = vector.broadcast %4 : vector<1x64xf32> to vector<128x64xf32>
    %6 = arith.addf %3, %5 : vector<128x64xf32>
    %cst = arith.constant 0.000000e+00 : f32
    %7 = vector.broadcast %cst : f32 to vector<128x64xf32>
    %8 = arith.cmpf oge, %6, %7 : vector<128x64xf32>
    %cst_5 = arith.constant 2.500000e-01 : f32
    %9 = vector.broadcast %cst_5 : f32 to vector<128x64xf32>
    %10 = arith.mulf %9, %6 : vector<128x64xf32>
    %11 = arith.select %8, %6, %10 : vector<128x64xi1>, vector<128x64xf32>
    %c0_6 = arith.constant 0 : index
    %c0_7 = arith.constant 0 : index
    %12 = vector.load %arg4[%c0_6, %c0_7] : memref<128x64xf32, #tpu.memory_space<vmem>>, vector<128x64xf32>
    tpu.vector_store %arg4[%c0_6, %c0_7], %11 {strides = array<i32>} : memref<128x64xf32, #tpu.memory_space<vmem>>, vector<128x64xf32>,
    return
  }
  func.func @transform_0(%arg0: i32) -> (i32, i32) {
    %c0_i32 = arith.constant 0 : i32
    %c0_i32_0 = arith.constant 0 : i32
    return %arg0, %c0_i32 : i32, i32
  }
  func.func @transform_1(%arg0: i32) -> (i32, i32) {
    %c0_i32 = arith.constant 0 : i32
    %c0_i32_0 = arith.constant 0 : i32
    %c0_i32_1 = arith.constant 0 : i32
    return %c0_i32, %c0_i32_0 : i32, i32
  }
  func.func @transform_2(%arg0: i32) -> (i32, i32) {
    %c0_i32 = arith.constant 0 : i32
    %c0_i32_0 = arith.constant 0 : i32
    %c0_i32_1 = arith.constant 0 : i32
    return %c0_i32, %c0_i32_0 : i32, i32
  }
  func.func @transform_3(%arg0: i32) -> (i32, i32) {
    %c0_i32 = arith.constant 0 : i32
    %c0_i32_0 = arith.constant 0 : i32
    return %arg0, %c0_i32 : i32, i32
  }
}

module attributes {stable_mosaic.version = 11 : i64} {
  func.func @kernel(%arg0: i32, %arg1: memref<128x64xf32, #tpu.memory_space<vmem>>, %arg2: memref<128x64xf32, #tpu.memory_space<vmem>>, %arg3: memref<1x64xf32, #tpu.memory_space<vmem>>, %arg4: memref<1x64xf32, #tpu.memory_space<vmem>>, %arg5: memref<128x64xf32, #tpu.memory_space<vmem>>) attributes {dimension_semantics = [#tpu.dimension_semantics<parallel>], iteration_bounds = array<i64: 1>, scalar_prefetch = 0 : i64, scratch_operands = 0 : i64, tpu.core_type = #tpu.core_type<tc>, window_params = [{transform_indices = @transform_0, window_bounds = array<i64: 128, 64>}, {transform_indices = @transform_1, window_bounds = array<i64: 128, 64>}, {pipeline_mode = #tpu.pipeline_mode<synchronous>, transform_indices = @transform_2, window_bounds = array<i64: 1, 64>}, {pipeline_mode = #tpu.pipeline_mode<synchronous>, transform_indices = @transform_3, window_bounds = array<i64: 1, 64>}, {transform_indices = @transform_4, window_bounds = array<i64: 128, 64>}]} {
    %c0 = arith.constant 0 : index
    %c0_0 = arith.constant 0 : index
    %0 = vector.load %arg1[%c0, %c0_0] : memref<128x64xf32, #tpu.memory_space<vmem>>, vector<128x64xf32>
    %c0_1 = arith.constant 0 : index
    %c0_2 = arith.constant 0 : index
    %1 = vector.load %arg3[%c0_1, %c0_2] : memref<1x64xf32, #tpu.memory_space<vmem>>, vector<1x64xf32>
    %2 = vector.broadcast %1 : vector<1x64xf32> to vector<128x64xf32>
    %3 = arith.mulf %0, %2 : vector<128x64xf32>
    %c0_3 = arith.constant 0 : index
    %c0_4 = arith.constant 0 : index
    %4 = vector.load %arg4[%c0_3, %c0_4] : memref<1x64xf32, #tpu.memory_space<vmem>>, vector<1x64xf32>
    %5 = vector.broadcast %4 : vector<1x64xf32> to vector<128x64xf32>
    %6 = arith.addf %3, %5 : vector<128x64xf32>
    %cst = arith.constant 0.000000e+00 : f32
    %7 = vector.broadcast %cst : f32 to vector<128x64xf32>
    %8 = arith.cmpf oge, %6, %7 : vector<128x64xf32>
    %cst_5 = arith.constant 2.500000e-01 : f32
    %9 = vector.broadcast %cst_5 : f32 to vector<128x64xf32>
    %10 = arith.mulf %9, %6 : vector<128x64xf32>
    %11 = arith.select %8, %6, %10 : vector<128x64xi1>, vector<128x64xf32>
    %c0_6 = arith.constant 0 : index
    %c0_7 = arith.constant 0 : index
    %12 = vector.load %arg2[%c0_6, %c0_7] : memref<128x64xf32, #tpu.memory_space<vmem>>, vector<128x64xf32>
    %13 = arith.addf %11, %12 : vector<128x64xf32>
    %c0_8 = arith.constant 0 : index
    %c0_9 = arith.constant 0 : index
    %14 = vector.load %arg5[%c0_8, %c0_9] : memref<128x64xf32, #tpu.memory_space<vmem>>, vector<128x64xf32>
    tpu.vector_store %arg5[%c0_8, %c0_9], %13 {strides = array<i32>} : memref<128x64xf32, #tpu.memory_space<vmem>>, vector<128x64xf32>,
    return
  }
  func.func @transform_0(%arg0: i32) -> (i32, i32) {
    %c0_i32 = arith.constant 0 : i32
    %c0_i32_0 = arith.constant 0 : i32
    return %arg0, %c0_i32 : i32, i32
  }
  func.func @transform_1(%arg0: i32) -> (i32, i32) {
    %c0_i32 = arith.constant 0 : i32
    %c0_i32_0 = arith.constant 0 : i32
    return %arg0, %c0_i32 : i32, i32
  }
  func.func @transform_2(%arg0: i32) -> (i32, i32) {
    %c0_i32 = arith.constant 0 : i32
    %c0_i32_0 = arith.constant 0 : i32
    %c0_i32_1 = arith.constant 0 : i32
    return %c0_i32, %c0_i32_0 : i32, i32
  }
  func.func @transform_3(%arg0: i32) -> (i32, i32) {
    %c0_i32 = arith.constant 0 : i32
    %c0_i32_0 = arith.constant 0 : i32
    %c0_i32_1 = arith.constant 0 : i32
    return %c0_i32, %c0_i32_0 : i32, i32
  }
  func.func @transform_4(%arg0: i32) -> (i32, i32) {
    %c0_i32 = arith.constant 0 : i32
    %c0_i32_0 = arith.constant 0 : i32
    return %arg0, %c0_i32 : i32, i32
  }
}

module attributes {stable_mosaic.version = 11 : i64} {
  func.func @_matmul_bias_kernel(%arg0: i32, %arg1: memref<128x576xbf16, #tpu.memory_space<vmem>>, %arg2: memref<576x64xbf16, #tpu.memory_space<vmem>>, %arg3: memref<1x64xf32, #tpu.memory_space<vmem>>, %arg4: memref<128x64xf32, #tpu.memory_space<vmem>>) attributes {dimension_semantics = [#tpu.dimension_semantics<parallel>], iteration_bounds = array<i64: 1>, scalar_prefetch = 0 : i64, scratch_operands = 0 : i64, tpu.core_type = #tpu.core_type<tc>, window_params = [{transform_indices = @transform_0, window_bounds = array<i64: 128, 576>}, {pipeline_mode = #tpu.pipeline_mode<synchronous>, transform_indices = @transform_1, window_bounds = array<i64: 576, 64>}, {pipeline_mode = #tpu.pipeline_mode<synchronous>, transform_indices = @transform_2, window_bounds = array<i64: 1, 64>}, {transform_indices = @transform_3, window_bounds = array<i64: 128, 64>}]} {
    %c0 = arith.constant 0 : index
    %c0_0 = arith.constant 0 : index
    %0 = vector.load %arg1[%c0, %c0_0] : memref<128x576xbf16, #tpu.memory_space<vmem>>, vector<128x576xbf16>
    %c0_1 = arith.constant 0 : index
    %c0_2 = arith.constant 0 : index
    %1 = vector.load %arg2[%c0_1, %c0_2] : memref<576x64xbf16, #tpu.memory_space<vmem>>, vector<576x64xbf16>
    %cst = arith.constant dense<0.000000e+00> : vector<128x64xf32>
    %2 = tpu.matmul %0, %1, %cst {dimension_numbers = #tpu.dot_dimension_numbers<[1], [0], [0], [1], [0, 0, 1, 1], [], []>} : vector<128x576xbf16>, vector<576x64xbf16>, vector<128x64xf32> -> vector<128x64xf32>
    %c0_3 = arith.constant 0 : index
    %c0_4 = arith.constant 0 : index
    %3 = vector.load %arg3[%c0_3, %c0_4] : memref<1x64xf32, #tpu.memory_space<vmem>>, vector<1x64xf32>
    %4 = vector.broadcast %3 : vector<1x64xf32> to vector<128x64xf32>
    %5 = arith.addf %2, %4 : vector<128x64xf32>
    %c0_5 = arith.constant 0 : index
    %c0_6 = arith.constant 0 : index
    %6 = vector.load %arg4[%c0_5, %c0_6] : memref<128x64xf32, #tpu.memory_space<vmem>>, vector<128x64xf32>
    tpu.vector_store %arg4[%c0_5, %c0_6], %5 {strides = array<i32>} : memref<128x64xf32, #tpu.memory_space<vmem>>, vector<128x64xf32>,
    return
  }
  func.func @transform_0(%arg0: i32) -> (i32, i32) {
    %c0_i32 = arith.constant 0 : i32
    %c0_i32_0 = arith.constant 0 : i32
    return %arg0, %c0_i32 : i32, i32
  }
  func.func @transform_1(%arg0: i32) -> (i32, i32) {
    %c0_i32 = arith.constant 0 : i32
    %c0_i32_0 = arith.constant 0 : i32
    %c0_i32_1 = arith.constant 0 : i32
    return %c0_i32, %c0_i32_0 : i32, i32
  }
  func.func @transform_2(%arg0: i32) -> (i32, i32) {
    %c0_i32 = arith.constant 0 : i32
    %c0_i32_0 = arith.constant 0 : i32
    %c0_i32_1 = arith.constant 0 : i32
    return %c0_i32, %c0_i32_0 : i32, i32
  }
  func.func @transform_3(%arg0: i32) -> (i32, i32) {
    %c0_i32 = arith.constant 0 : i32
    %c0_i32_0 = arith.constant 0 : i32
    return %arg0, %c0_i32 : i32, i32
  }
}

module attributes {stable_mosaic.version = 11 : i64} {
  func.func @_matmul_bias_kernel(%arg0: i32, %arg1: memref<32x576xbf16, #tpu.memory_space<vmem>>, %arg2: memref<576x128xbf16, #tpu.memory_space<vmem>>, %arg3: memref<1x128xf32, #tpu.memory_space<vmem>>, %arg4: memref<32x128xf32, #tpu.memory_space<vmem>>) attributes {dimension_semantics = [#tpu.dimension_semantics<parallel>], iteration_bounds = array<i64: 1>, scalar_prefetch = 0 : i64, scratch_operands = 0 : i64, tpu.core_type = #tpu.core_type<tc>, window_params = [{transform_indices = @transform_0, window_bounds = array<i64: 32, 576>}, {pipeline_mode = #tpu.pipeline_mode<synchronous>, transform_indices = @transform_1, window_bounds = array<i64: 576, 128>}, {pipeline_mode = #tpu.pipeline_mode<synchronous>, transform_indices = @transform_2, window_bounds = array<i64: 1, 128>}, {transform_indices = @transform_3, window_bounds = array<i64: 32, 128>}]} {
    %c0 = arith.constant 0 : index
    %c0_0 = arith.constant 0 : index
    %0 = vector.load %arg1[%c0, %c0_0] : memref<32x576xbf16, #tpu.memory_space<vmem>>, vector<32x576xbf16>
    %c0_1 = arith.constant 0 : index
    %c0_2 = arith.constant 0 : index
    %1 = vector.load %arg2[%c0_1, %c0_2] : memref<576x128xbf16, #tpu.memory_space<vmem>>, vector<576x128xbf16>
    %cst = arith.constant dense<0.000000e+00> : vector<32x128xf32>
    %2 = tpu.matmul %0, %1, %cst {dimension_numbers = #tpu.dot_dimension_numbers<[1], [0], [0], [1], [0, 0, 1, 1], [], []>} : vector<32x576xbf16>, vector<576x128xbf16>, vector<32x128xf32> -> vector<32x128xf32>
    %c0_3 = arith.constant 0 : index
    %c0_4 = arith.constant 0 : index
    %3 = vector.load %arg3[%c0_3, %c0_4] : memref<1x128xf32, #tpu.memory_space<vmem>>, vector<1x128xf32>
    %4 = vector.broadcast %3 : vector<1x128xf32> to vector<32x128xf32>
    %5 = arith.addf %2, %4 : vector<32x128xf32>
    %c0_5 = arith.constant 0 : index
    %c0_6 = arith.constant 0 : index
    %6 = vector.load %arg4[%c0_5, %c0_6] : memref<32x128xf32, #tpu.memory_space<vmem>>, vector<32x128xf32>
    tpu.vector_store %arg4[%c0_5, %c0_6], %5 {strides = array<i32>} : memref<32x128xf32, #tpu.memory_space<vmem>>, vector<32x128xf32>,
    return
  }
  func.func @transform_0(%arg0: i32) -> (i32, i32) {
    %c0_i32 = arith.constant 0 : i32
    %c0_i32_0 = arith.constant 0 : i32
    return %arg0, %c0_i32 : i32, i32
  }
  func.func @transform_1(%arg0: i32) -> (i32, i32) {
    %c0_i32 = arith.constant 0 : i32
    %c0_i32_0 = arith.constant 0 : i32
    %c0_i32_1 = arith.constant 0 : i32
    return %c0_i32, %c0_i32_0 : i32, i32
  }
  func.func @transform_2(%arg0: i32) -> (i32, i32) {
    %c0_i32 = arith.constant 0 : i32
    %c0_i32_0 = arith.constant 0 : i32
    %c0_i32_1 = arith.constant 0 : i32
    return %c0_i32, %c0_i32_0 : i32, i32
  }
  func.func @transform_3(%arg0: i32) -> (i32, i32) {
    %c0_i32 = arith.constant 0 : i32
    %c0_i32_0 = arith.constant 0 : i32
    return %arg0, %c0_i32 : i32, i32
  }
}

module attributes {stable_mosaic.version = 11 : i64} {
  func.func @kernel(%arg0: i32, %arg1: memref<32x128xf32, #tpu.memory_space<vmem>>, %arg2: memref<1x128xf32, #tpu.memory_space<vmem>>, %arg3: memref<1x128xf32, #tpu.memory_space<vmem>>, %arg4: memref<32x128xf32, #tpu.memory_space<vmem>>) attributes {dimension_semantics = [#tpu.dimension_semantics<parallel>], iteration_bounds = array<i64: 1>, scalar_prefetch = 0 : i64, scratch_operands = 0 : i64, tpu.core_type = #tpu.core_type<tc>, window_params = [{transform_indices = @transform_0, window_bounds = array<i64: 32, 128>}, {pipeline_mode = #tpu.pipeline_mode<synchronous>, transform_indices = @transform_1, window_bounds = array<i64: 1, 128>}, {pipeline_mode = #tpu.pipeline_mode<synchronous>, transform_indices = @transform_2, window_bounds = array<i64: 1, 128>}, {transform_indices = @transform_3, window_bounds = array<i64: 32, 128>}]} {
    %c0 = arith.constant 0 : index
    %c0_0 = arith.constant 0 : index
    %0 = vector.load %arg1[%c0, %c0_0] : memref<32x128xf32, #tpu.memory_space<vmem>>, vector<32x128xf32>
    %c0_1 = arith.constant 0 : index
    %c0_2 = arith.constant 0 : index
    %1 = vector.load %arg2[%c0_1, %c0_2] : memref<1x128xf32, #tpu.memory_space<vmem>>, vector<1x128xf32>
    %2 = vector.broadcast %1 : vector<1x128xf32> to vector<32x128xf32>
    %3 = arith.mulf %0, %2 : vector<32x128xf32>
    %c0_3 = arith.constant 0 : index
    %c0_4 = arith.constant 0 : index
    %4 = vector.load %arg3[%c0_3, %c0_4] : memref<1x128xf32, #tpu.memory_space<vmem>>, vector<1x128xf32>
    %5 = vector.broadcast %4 : vector<1x128xf32> to vector<32x128xf32>
    %6 = arith.addf %3, %5 : vector<32x128xf32>
    %cst = arith.constant 0.000000e+00 : f32
    %7 = vector.broadcast %cst : f32 to vector<32x128xf32>
    %8 = arith.cmpf oge, %6, %7 : vector<32x128xf32>
    %cst_5 = arith.constant 2.500000e-01 : f32
    %9 = vector.broadcast %cst_5 : f32 to vector<32x128xf32>
    %10 = arith.mulf %9, %6 : vector<32x128xf32>
    %11 = arith.select %8, %6, %10 : vector<32x128xi1>, vector<32x128xf32>
    %c0_6 = arith.constant 0 : index
    %c0_7 = arith.constant 0 : index
    %12 = vector.load %arg4[%c0_6, %c0_7] : memref<32x128xf32, #tpu.memory_space<vmem>>, vector<32x128xf32>
    tpu.vector_store %arg4[%c0_6, %c0_7], %11 {strides = array<i32>} : memref<32x128xf32, #tpu.memory_space<vmem>>, vector<32x128xf32>,
    return
  }
  func.func @transform_0(%arg0: i32) -> (i32, i32) {
    %c0_i32 = arith.constant 0 : i32
    %c0_i32_0 = arith.constant 0 : i32
    return %arg0, %c0_i32 : i32, i32
  }
  func.func @transform_1(%arg0: i32) -> (i32, i32) {
    %c0_i32 = arith.constant 0 : i32
    %c0_i32_0 = arith.constant 0 : i32
    %c0_i32_1 = arith.constant 0 : i32
    return %c0_i32, %c0_i32_0 : i32, i32
  }
  func.func @transform_2(%arg0: i32) -> (i32, i32) {
    %c0_i32 = arith.constant 0 : i32
    %c0_i32_0 = arith.constant 0 : i32
    %c0_i32_1 = arith.constant 0 : i32
    return %c0_i32, %c0_i32_0 : i32, i32
  }
  func.func @transform_3(%arg0: i32) -> (i32, i32) {
    %c0_i32 = arith.constant 0 : i32
    %c0_i32_0 = arith.constant 0 : i32
    return %arg0, %c0_i32 : i32, i32
  }
}

module attributes {stable_mosaic.version = 11 : i64} {
  func.func @kernel(%arg0: i32, %arg1: memref<32x128xf32, #tpu.memory_space<vmem>>, %arg2: memref<32x128xf32, #tpu.memory_space<vmem>>, %arg3: memref<1x128xf32, #tpu.memory_space<vmem>>, %arg4: memref<1x128xf32, #tpu.memory_space<vmem>>, %arg5: memref<32x128xf32, #tpu.memory_space<vmem>>) attributes {dimension_semantics = [#tpu.dimension_semantics<parallel>], iteration_bounds = array<i64: 1>, scalar_prefetch = 0 : i64, scratch_operands = 0 : i64, tpu.core_type = #tpu.core_type<tc>, window_params = [{transform_indices = @transform_0, window_bounds = array<i64: 32, 128>}, {transform_indices = @transform_1, window_bounds = array<i64: 32, 128>}, {pipeline_mode = #tpu.pipeline_mode<synchronous>, transform_indices = @transform_2, window_bounds = array<i64: 1, 128>}, {pipeline_mode = #tpu.pipeline_mode<synchronous>, transform_indices = @transform_3, window_bounds = array<i64: 1, 128>}, {transform_indices = @transform_4, window_bounds = array<i64: 32, 128>}]} {
    %c0 = arith.constant 0 : index
    %c0_0 = arith.constant 0 : index
    %0 = vector.load %arg1[%c0, %c0_0] : memref<32x128xf32, #tpu.memory_space<vmem>>, vector<32x128xf32>
    %c0_1 = arith.constant 0 : index
    %c0_2 = arith.constant 0 : index
    %1 = vector.load %arg3[%c0_1, %c0_2] : memref<1x128xf32, #tpu.memory_space<vmem>>, vector<1x128xf32>
    %2 = vector.broadcast %1 : vector<1x128xf32> to vector<32x128xf32>
    %3 = arith.mulf %0, %2 : vector<32x128xf32>
    %c0_3 = arith.constant 0 : index
    %c0_4 = arith.constant 0 : index
    %4 = vector.load %arg4[%c0_3, %c0_4] : memref<1x128xf32, #tpu.memory_space<vmem>>, vector<1x128xf32>
    %5 = vector.broadcast %4 : vector<1x128xf32> to vector<32x128xf32>
    %6 = arith.addf %3, %5 : vector<32x128xf32>
    %cst = arith.constant 0.000000e+00 : f32
    %7 = vector.broadcast %cst : f32 to vector<32x128xf32>
    %8 = arith.cmpf oge, %6, %7 : vector<32x128xf32>
    %cst_5 = arith.constant 2.500000e-01 : f32
    %9 = vector.broadcast %cst_5 : f32 to vector<32x128xf32>
    %10 = arith.mulf %9, %6 : vector<32x128xf32>
    %11 = arith.select %8, %6, %10 : vector<32x128xi1>, vector<32x128xf32>
    %c0_6 = arith.constant 0 : index
    %c0_7 = arith.constant 0 : index
    %12 = vector.load %arg2[%c0_6, %c0_7] : memref<32x128xf32, #tpu.memory_space<vmem>>, vector<32x128xf32>
    %13 = arith.addf %11, %12 : vector<32x128xf32>
    %c0_8 = arith.constant 0 : index
    %c0_9 = arith.constant 0 : index
    %14 = vector.load %arg5[%c0_8, %c0_9] : memref<32x128xf32, #tpu.memory_space<vmem>>, vector<32x128xf32>
    tpu.vector_store %arg5[%c0_8, %c0_9], %13 {strides = array<i32>} : memref<32x128xf32, #tpu.memory_space<vmem>>, vector<32x128xf32>,
    return
  }
  func.func @transform_0(%arg0: i32) -> (i32, i32) {
    %c0_i32 = arith.constant 0 : i32
    %c0_i32_0 = arith.constant 0 : i32
    return %arg0, %c0_i32 : i32, i32
  }
  func.func @transform_1(%arg0: i32) -> (i32, i32) {
    %c0_i32 = arith.constant 0 : i32
    %c0_i32_0 = arith.constant 0 : i32
    return %arg0, %c0_i32 : i32, i32
  }
  func.func @transform_2(%arg0: i32) -> (i32, i32) {
    %c0_i32 = arith.constant 0 : i32
    %c0_i32_0 = arith.constant 0 : i32
    %c0_i32_1 = arith.constant 0 : i32
    return %c0_i32, %c0_i32_0 : i32, i32
  }
  func.func @transform_3(%arg0: i32) -> (i32, i32) {
    %c0_i32 = arith.constant 0 : i32
    %c0_i32_0 = arith.constant 0 : i32
    %c0_i32_1 = arith.constant 0 : i32
    return %c0_i32, %c0_i32_0 : i32, i32
  }
  func.func @transform_4(%arg0: i32) -> (i32, i32) {
    %c0_i32 = arith.constant 0 : i32
    %c0_i32_0 = arith.constant 0 : i32
    return %arg0, %c0_i32 : i32, i32
  }
}

module attributes {stable_mosaic.version = 11 : i64} {
  func.func @_matmul_bias_kernel(%arg0: i32, %arg1: memref<32x1152xbf16, #tpu.memory_space<vmem>>, %arg2: memref<1152x128xbf16, #tpu.memory_space<vmem>>, %arg3: memref<1x128xf32, #tpu.memory_space<vmem>>, %arg4: memref<32x128xf32, #tpu.memory_space<vmem>>) attributes {dimension_semantics = [#tpu.dimension_semantics<parallel>], iteration_bounds = array<i64: 1>, scalar_prefetch = 0 : i64, scratch_operands = 0 : i64, tpu.core_type = #tpu.core_type<tc>, window_params = [{transform_indices = @transform_0, window_bounds = array<i64: 32, 1152>}, {pipeline_mode = #tpu.pipeline_mode<synchronous>, transform_indices = @transform_1, window_bounds = array<i64: 1152, 128>}, {pipeline_mode = #tpu.pipeline_mode<synchronous>, transform_indices = @transform_2, window_bounds = array<i64: 1, 128>}, {transform_indices = @transform_3, window_bounds = array<i64: 32, 128>}]} {
    %c0 = arith.constant 0 : index
    %c0_0 = arith.constant 0 : index
    %0 = vector.load %arg1[%c0, %c0_0] : memref<32x1152xbf16, #tpu.memory_space<vmem>>, vector<32x1152xbf16>
    %c0_1 = arith.constant 0 : index
    %c0_2 = arith.constant 0 : index
    %1 = vector.load %arg2[%c0_1, %c0_2] : memref<1152x128xbf16, #tpu.memory_space<vmem>>, vector<1152x128xbf16>
    %cst = arith.constant dense<0.000000e+00> : vector<32x128xf32>
    %2 = tpu.matmul %0, %1, %cst {dimension_numbers = #tpu.dot_dimension_numbers<[1], [0], [0], [1], [0, 0, 1, 1], [], []>} : vector<32x1152xbf16>, vector<1152x128xbf16>, vector<32x128xf32> -> vector<32x128xf32>
    %c0_3 = arith.constant 0 : index
    %c0_4 = arith.constant 0 : index
    %3 = vector.load %arg3[%c0_3, %c0_4] : memref<1x128xf32, #tpu.memory_space<vmem>>, vector<1x128xf32>
    %4 = vector.broadcast %3 : vector<1x128xf32> to vector<32x128xf32>
    %5 = arith.addf %2, %4 : vector<32x128xf32>
    %c0_5 = arith.constant 0 : index
    %c0_6 = arith.constant 0 : index
    %6 = vector.load %arg4[%c0_5, %c0_6] : memref<32x128xf32, #tpu.memory_space<vmem>>, vector<32x128xf32>
    tpu.vector_store %arg4[%c0_5, %c0_6], %5 {strides = array<i32>} : memref<32x128xf32, #tpu.memory_space<vmem>>, vector<32x128xf32>,
    return
  }
  func.func @transform_0(%arg0: i32) -> (i32, i32) {
    %c0_i32 = arith.constant 0 : i32
    %c0_i32_0 = arith.constant 0 : i32
    return %arg0, %c0_i32 : i32, i32
  }
  func.func @transform_1(%arg0: i32) -> (i32, i32) {
    %c0_i32 = arith.constant 0 : i32
    %c0_i32_0 = arith.constant 0 : i32
    %c0_i32_1 = arith.constant 0 : i32
    return %c0_i32, %c0_i32_0 : i32, i32
  }
  func.func @transform_2(%arg0: i32) -> (i32, i32) {
    %c0_i32 = arith.constant 0 : i32
    %c0_i32_0 = arith.constant 0 : i32
    %c0_i32_1 = arith.constant 0 : i32
    return %c0_i32, %c0_i32_0 : i32, i32
  }
  func.func @transform_3(%arg0: i32) -> (i32, i32) {
    %c0_i32 = arith.constant 0 : i32
    %c0_i32_0 = arith.constant 0 : i32
    return %arg0, %c0_i32 : i32, i32
  }
}

module attributes {stable_mosaic.version = 11 : i64} {
  func.func @_matmul_bias_kernel(%arg0: i32, %arg1: memref<32x128xbf16, #tpu.memory_space<vmem>>, %arg2: memref<128x256xbf16, #tpu.memory_space<vmem>>, %arg3: memref<1x256xf32, #tpu.memory_space<vmem>>, %arg4: memref<32x256xf32, #tpu.memory_space<vmem>>) attributes {dimension_semantics = [#tpu.dimension_semantics<parallel>], iteration_bounds = array<i64: 1>, scalar_prefetch = 0 : i64, scratch_operands = 0 : i64, tpu.core_type = #tpu.core_type<tc>, window_params = [{transform_indices = @transform_0, window_bounds = array<i64: 32, 128>}, {pipeline_mode = #tpu.pipeline_mode<synchronous>, transform_indices = @transform_1, window_bounds = array<i64: 128, 256>}, {pipeline_mode = #tpu.pipeline_mode<synchronous>, transform_indices = @transform_2, window_bounds = array<i64: 1, 256>}, {transform_indices = @transform_3, window_bounds = array<i64: 32, 256>}]} {
    %c0 = arith.constant 0 : index
    %c0_0 = arith.constant 0 : index
    %0 = vector.load %arg1[%c0, %c0_0] : memref<32x128xbf16, #tpu.memory_space<vmem>>, vector<32x128xbf16>
    %c0_1 = arith.constant 0 : index
    %c0_2 = arith.constant 0 : index
    %1 = vector.load %arg2[%c0_1, %c0_2] : memref<128x256xbf16, #tpu.memory_space<vmem>>, vector<128x256xbf16>
    %cst = arith.constant dense<0.000000e+00> : vector<32x256xf32>
    %2 = tpu.matmul %0, %1, %cst {dimension_numbers = #tpu.dot_dimension_numbers<[1], [0], [0], [1], [0, 0, 1, 1], [], []>} : vector<32x128xbf16>, vector<128x256xbf16>, vector<32x256xf32> -> vector<32x256xf32>
    %c0_3 = arith.constant 0 : index
    %c0_4 = arith.constant 0 : index
    %3 = vector.load %arg3[%c0_3, %c0_4] : memref<1x256xf32, #tpu.memory_space<vmem>>, vector<1x256xf32>
    %4 = vector.broadcast %3 : vector<1x256xf32> to vector<32x256xf32>
    %5 = arith.addf %2, %4 : vector<32x256xf32>
    %c0_5 = arith.constant 0 : index
    %c0_6 = arith.constant 0 : index
    %6 = vector.load %arg4[%c0_5, %c0_6] : memref<32x256xf32, #tpu.memory_space<vmem>>, vector<32x256xf32>
    tpu.vector_store %arg4[%c0_5, %c0_6], %5 {strides = array<i32>} : memref<32x256xf32, #tpu.memory_space<vmem>>, vector<32x256xf32>,
    return
  }
  func.func @transform_0(%arg0: i32) -> (i32, i32) {
    %c0_i32 = arith.constant 0 : i32
    %c0_i32_0 = arith.constant 0 : i32
    return %arg0, %c0_i32 : i32, i32
  }
  func.func @transform_1(%arg0: i32) -> (i32, i32) {
    %c0_i32 = arith.constant 0 : i32
    %c0_i32_0 = arith.constant 0 : i32
    %c0_i32_1 = arith.constant 0 : i32
    return %c0_i32, %c0_i32_0 : i32, i32
  }
  func.func @transform_2(%arg0: i32) -> (i32, i32) {
    %c0_i32 = arith.constant 0 : i32
    %c0_i32_0 = arith.constant 0 : i32
    %c0_i32_1 = arith.constant 0 : i32
    return %c0_i32, %c0_i32_0 : i32, i32
  }
  func.func @transform_3(%arg0: i32) -> (i32, i32) {
    %c0_i32 = arith.constant 0 : i32
    %c0_i32_0 = arith.constant 0 : i32
    return %arg0, %c0_i32 : i32, i32
  }
}

module attributes {stable_mosaic.version = 11 : i64} {
  func.func @_matmul_bias_kernel(%arg0: i32, %arg1: memref<32x1152xbf16, #tpu.memory_space<vmem>>, %arg2: memref<1152x256xbf16, #tpu.memory_space<vmem>>, %arg3: memref<1x256xf32, #tpu.memory_space<vmem>>, %arg4: memref<32x256xf32, #tpu.memory_space<vmem>>) attributes {dimension_semantics = [#tpu.dimension_semantics<parallel>], iteration_bounds = array<i64: 1>, scalar_prefetch = 0 : i64, scratch_operands = 0 : i64, tpu.core_type = #tpu.core_type<tc>, window_params = [{transform_indices = @transform_0, window_bounds = array<i64: 32, 1152>}, {pipeline_mode = #tpu.pipeline_mode<synchronous>, transform_indices = @transform_1, window_bounds = array<i64: 1152, 256>}, {pipeline_mode = #tpu.pipeline_mode<synchronous>, transform_indices = @transform_2, window_bounds = array<i64: 1, 256>}, {transform_indices = @transform_3, window_bounds = array<i64: 32, 256>}]} {
    %c0 = arith.constant 0 : index
    %c0_0 = arith.constant 0 : index
    %0 = vector.load %arg1[%c0, %c0_0] : memref<32x1152xbf16, #tpu.memory_space<vmem>>, vector<32x1152xbf16>
    %c0_1 = arith.constant 0 : index
    %c0_2 = arith.constant 0 : index
    %1 = vector.load %arg2[%c0_1, %c0_2] : memref<1152x256xbf16, #tpu.memory_space<vmem>>, vector<1152x256xbf16>
    %cst = arith.constant dense<0.000000e+00> : vector<32x256xf32>
    %2 = tpu.matmul %0, %1, %cst {dimension_numbers = #tpu.dot_dimension_numbers<[1], [0], [0], [1], [0, 0, 1, 1], [], []>} : vector<32x1152xbf16>, vector<1152x256xbf16>, vector<32x256xf32> -> vector<32x256xf32>
    %c0_3 = arith.constant 0 : index
    %c0_4 = arith.constant 0 : index
    %3 = vector.load %arg3[%c0_3, %c0_4] : memref<1x256xf32, #tpu.memory_space<vmem>>, vector<1x256xf32>
    %4 = vector.broadcast %3 : vector<1x256xf32> to vector<32x256xf32>
    %5 = arith.addf %2, %4 : vector<32x256xf32>
    %c0_5 = arith.constant 0 : index
    %c0_6 = arith.constant 0 : index
    %6 = vector.load %arg4[%c0_5, %c0_6] : memref<32x256xf32, #tpu.memory_space<vmem>>, vector<32x256xf32>
    tpu.vector_store %arg4[%c0_5, %c0_6], %5 {strides = array<i32>} : memref<32x256xf32, #tpu.memory_space<vmem>>, vector<32x256xf32>,
    return
  }
  func.func @transform_0(%arg0: i32) -> (i32, i32) {
    %c0_i32 = arith.constant 0 : i32
    %c0_i32_0 = arith.constant 0 : i32
    return %arg0, %c0_i32 : i32, i32
  }
  func.func @transform_1(%arg0: i32) -> (i32, i32) {
    %c0_i32 = arith.constant 0 : i32
    %c0_i32_0 = arith.constant 0 : i32
    %c0_i32_1 = arith.constant 0 : i32
    return %c0_i32, %c0_i32_0 : i32, i32
  }
  func.func @transform_2(%arg0: i32) -> (i32, i32) {
    %c0_i32 = arith.constant 0 : i32
    %c0_i32_0 = arith.constant 0 : i32
    %c0_i32_1 = arith.constant 0 : i32
    return %c0_i32, %c0_i32_0 : i32, i32
  }
  func.func @transform_3(%arg0: i32) -> (i32, i32) {
    %c0_i32 = arith.constant 0 : i32
    %c0_i32_0 = arith.constant 0 : i32
    return %arg0, %c0_i32 : i32, i32
  }
}

module attributes {stable_mosaic.version = 11 : i64} {
  func.func @kernel(%arg0: i32, %arg1: memref<32x256xf32, #tpu.memory_space<vmem>>, %arg2: memref<1x256xf32, #tpu.memory_space<vmem>>, %arg3: memref<1x256xf32, #tpu.memory_space<vmem>>, %arg4: memref<32x256xf32, #tpu.memory_space<vmem>>) attributes {dimension_semantics = [#tpu.dimension_semantics<parallel>], iteration_bounds = array<i64: 1>, scalar_prefetch = 0 : i64, scratch_operands = 0 : i64, tpu.core_type = #tpu.core_type<tc>, window_params = [{transform_indices = @transform_0, window_bounds = array<i64: 32, 256>}, {pipeline_mode = #tpu.pipeline_mode<synchronous>, transform_indices = @transform_1, window_bounds = array<i64: 1, 256>}, {pipeline_mode = #tpu.pipeline_mode<synchronous>, transform_indices = @transform_2, window_bounds = array<i64: 1, 256>}, {transform_indices = @transform_3, window_bounds = array<i64: 32, 256>}]} {
    %c0 = arith.constant 0 : index
    %c0_0 = arith.constant 0 : index
    %0 = vector.load %arg1[%c0, %c0_0] : memref<32x256xf32, #tpu.memory_space<vmem>>, vector<32x256xf32>
    %c0_1 = arith.constant 0 : index
    %c0_2 = arith.constant 0 : index
    %1 = vector.load %arg2[%c0_1, %c0_2] : memref<1x256xf32, #tpu.memory_space<vmem>>, vector<1x256xf32>
    %2 = vector.broadcast %1 : vector<1x256xf32> to vector<32x256xf32>
    %3 = arith.mulf %0, %2 : vector<32x256xf32>
    %c0_3 = arith.constant 0 : index
    %c0_4 = arith.constant 0 : index
    %4 = vector.load %arg3[%c0_3, %c0_4] : memref<1x256xf32, #tpu.memory_space<vmem>>, vector<1x256xf32>
    %5 = vector.broadcast %4 : vector<1x256xf32> to vector<32x256xf32>
    %6 = arith.addf %3, %5 : vector<32x256xf32>
    %cst = arith.constant 0.000000e+00 : f32
    %7 = vector.broadcast %cst : f32 to vector<32x256xf32>
    %8 = arith.cmpf oge, %6, %7 : vector<32x256xf32>
    %cst_5 = arith.constant 2.500000e-01 : f32
    %9 = vector.broadcast %cst_5 : f32 to vector<32x256xf32>
    %10 = arith.mulf %9, %6 : vector<32x256xf32>
    %11 = arith.select %8, %6, %10 : vector<32x256xi1>, vector<32x256xf32>
    %c0_6 = arith.constant 0 : index
    %c0_7 = arith.constant 0 : index
    %12 = vector.load %arg4[%c0_6, %c0_7] : memref<32x256xf32, #tpu.memory_space<vmem>>, vector<32x256xf32>
    tpu.vector_store %arg4[%c0_6, %c0_7], %11 {strides = array<i32>} : memref<32x256xf32, #tpu.memory_space<vmem>>, vector<32x256xf32>,
    return
  }
  func.func @transform_0(%arg0: i32) -> (i32, i32) {
    %c0_i32 = arith.constant 0 : i32
    %c0_i32_0 = arith.constant 0 : i32
    return %arg0, %c0_i32 : i32, i32
  }
  func.func @transform_1(%arg0: i32) -> (i32, i32) {
    %c0_i32 = arith.constant 0 : i32
    %c0_i32_0 = arith.constant 0 : i32
    %c0_i32_1 = arith.constant 0 : i32
    return %c0_i32, %c0_i32_0 : i32, i32
  }
  func.func @transform_2(%arg0: i32) -> (i32, i32) {
    %c0_i32 = arith.constant 0 : i32
    %c0_i32_0 = arith.constant 0 : i32
    %c0_i32_1 = arith.constant 0 : i32
    return %c0_i32, %c0_i32_0 : i32, i32
  }
  func.func @transform_3(%arg0: i32) -> (i32, i32) {
    %c0_i32 = arith.constant 0 : i32
    %c0_i32_0 = arith.constant 0 : i32
    return %arg0, %c0_i32 : i32, i32
  }
}

module attributes {stable_mosaic.version = 11 : i64} {
  func.func @_matmul_bias_kernel(%arg0: i32, %arg1: memref<32x2304xbf16, #tpu.memory_space<vmem>>, %arg2: memref<2304x256xbf16, #tpu.memory_space<vmem>>, %arg3: memref<1x256xf32, #tpu.memory_space<vmem>>, %arg4: memref<32x256xf32, #tpu.memory_space<vmem>>) attributes {dimension_semantics = [#tpu.dimension_semantics<parallel>], iteration_bounds = array<i64: 1>, scalar_prefetch = 0 : i64, scratch_operands = 0 : i64, tpu.core_type = #tpu.core_type<tc>, window_params = [{transform_indices = @transform_0, window_bounds = array<i64: 32, 2304>}, {pipeline_mode = #tpu.pipeline_mode<synchronous>, transform_indices = @transform_1, window_bounds = array<i64: 2304, 256>}, {pipeline_mode = #tpu.pipeline_mode<synchronous>, transform_indices = @transform_2, window_bounds = array<i64: 1, 256>}, {transform_indices = @transform_3, window_bounds = array<i64: 32, 256>}]} {
    %c0 = arith.constant 0 : index
    %c0_0 = arith.constant 0 : index
    %0 = vector.load %arg1[%c0, %c0_0] : memref<32x2304xbf16, #tpu.memory_space<vmem>>, vector<32x2304xbf16>
    %c0_1 = arith.constant 0 : index
    %c0_2 = arith.constant 0 : index
    %1 = vector.load %arg2[%c0_1, %c0_2] : memref<2304x256xbf16, #tpu.memory_space<vmem>>, vector<2304x256xbf16>
    %cst = arith.constant dense<0.000000e+00> : vector<32x256xf32>
    %2 = tpu.matmul %0, %1, %cst {dimension_numbers = #tpu.dot_dimension_numbers<[1], [0], [0], [1], [0, 0, 1, 1], [], []>} : vector<32x2304xbf16>, vector<2304x256xbf16>, vector<32x256xf32> -> vector<32x256xf32>
    %c0_3 = arith.constant 0 : index
    %c0_4 = arith.constant 0 : index
    %3 = vector.load %arg3[%c0_3, %c0_4] : memref<1x256xf32, #tpu.memory_space<vmem>>, vector<1x256xf32>
    %4 = vector.broadcast %3 : vector<1x256xf32> to vector<32x256xf32>
    %5 = arith.addf %2, %4 : vector<32x256xf32>
    %c0_5 = arith.constant 0 : index
    %c0_6 = arith.constant 0 : index
    %6 = vector.load %arg4[%c0_5, %c0_6] : memref<32x256xf32, #tpu.memory_space<vmem>>, vector<32x256xf32>
    tpu.vector_store %arg4[%c0_5, %c0_6], %5 {strides = array<i32>} : memref<32x256xf32, #tpu.memory_space<vmem>>, vector<32x256xf32>,
    return
  }
  func.func @transform_0(%arg0: i32) -> (i32, i32) {
    %c0_i32 = arith.constant 0 : i32
    %c0_i32_0 = arith.constant 0 : i32
    return %arg0, %c0_i32 : i32, i32
  }
  func.func @transform_1(%arg0: i32) -> (i32, i32) {
    %c0_i32 = arith.constant 0 : i32
    %c0_i32_0 = arith.constant 0 : i32
    %c0_i32_1 = arith.constant 0 : i32
    return %c0_i32, %c0_i32_0 : i32, i32
  }
  func.func @transform_2(%arg0: i32) -> (i32, i32) {
    %c0_i32 = arith.constant 0 : i32
    %c0_i32_0 = arith.constant 0 : i32
    %c0_i32_1 = arith.constant 0 : i32
    return %c0_i32, %c0_i32_0 : i32, i32
  }
  func.func @transform_3(%arg0: i32) -> (i32, i32) {
    %c0_i32 = arith.constant 0 : i32
    %c0_i32_0 = arith.constant 0 : i32
    return %arg0, %c0_i32 : i32, i32
  }
}

module attributes {stable_mosaic.version = 11 : i64} {
  func.func @kernel(%arg0: i32, %arg1: memref<32x256xf32, #tpu.memory_space<vmem>>, %arg2: memref<32x256xf32, #tpu.memory_space<vmem>>, %arg3: memref<1x256xf32, #tpu.memory_space<vmem>>, %arg4: memref<1x256xf32, #tpu.memory_space<vmem>>, %arg5: memref<32x256xf32, #tpu.memory_space<vmem>>) attributes {dimension_semantics = [#tpu.dimension_semantics<parallel>], iteration_bounds = array<i64: 1>, scalar_prefetch = 0 : i64, scratch_operands = 0 : i64, tpu.core_type = #tpu.core_type<tc>, window_params = [{transform_indices = @transform_0, window_bounds = array<i64: 32, 256>}, {transform_indices = @transform_1, window_bounds = array<i64: 32, 256>}, {pipeline_mode = #tpu.pipeline_mode<synchronous>, transform_indices = @transform_2, window_bounds = array<i64: 1, 256>}, {pipeline_mode = #tpu.pipeline_mode<synchronous>, transform_indices = @transform_3, window_bounds = array<i64: 1, 256>}, {transform_indices = @transform_4, window_bounds = array<i64: 32, 256>}]} {
    %c0 = arith.constant 0 : index
    %c0_0 = arith.constant 0 : index
    %0 = vector.load %arg1[%c0, %c0_0] : memref<32x256xf32, #tpu.memory_space<vmem>>, vector<32x256xf32>
    %c0_1 = arith.constant 0 : index
    %c0_2 = arith.constant 0 : index
    %1 = vector.load %arg3[%c0_1, %c0_2] : memref<1x256xf32, #tpu.memory_space<vmem>>, vector<1x256xf32>
    %2 = vector.broadcast %1 : vector<1x256xf32> to vector<32x256xf32>
    %3 = arith.mulf %0, %2 : vector<32x256xf32>
    %c0_3 = arith.constant 0 : index
    %c0_4 = arith.constant 0 : index
    %4 = vector.load %arg4[%c0_3, %c0_4] : memref<1x256xf32, #tpu.memory_space<vmem>>, vector<1x256xf32>
    %5 = vector.broadcast %4 : vector<1x256xf32> to vector<32x256xf32>
    %6 = arith.addf %3, %5 : vector<32x256xf32>
    %cst = arith.constant 0.000000e+00 : f32
    %7 = vector.broadcast %cst : f32 to vector<32x256xf32>
    %8 = arith.cmpf oge, %6, %7 : vector<32x256xf32>
    %cst_5 = arith.constant 2.500000e-01 : f32
    %9 = vector.broadcast %cst_5 : f32 to vector<32x256xf32>
    %10 = arith.mulf %9, %6 : vector<32x256xf32>
    %11 = arith.select %8, %6, %10 : vector<32x256xi1>, vector<32x256xf32>
    %c0_6 = arith.constant 0 : index
    %c0_7 = arith.constant 0 : index
    %12 = vector.load %arg2[%c0_6, %c0_7] : memref<32x256xf32, #tpu.memory_space<vmem>>, vector<32x256xf32>
    %13 = arith.addf %11, %12 : vector<32x256xf32>
    %c0_8 = arith.constant 0 : index
    %c0_9 = arith.constant 0 : index
    %14 = vector.load %arg5[%c0_8, %c0_9] : memref<32x256xf32, #tpu.memory_space<vmem>>, vector<32x256xf32>
    tpu.vector_store %arg5[%c0_8, %c0_9], %13 {strides = array<i32>} : memref<32x256xf32, #tpu.memory_space<vmem>>, vector<32x256xf32>,
    return
  }
  func.func @transform_0(%arg0: i32) -> (i32, i32) {
    %c0_i32 = arith.constant 0 : i32
    %c0_i32_0 = arith.constant 0 : i32
    return %arg0, %c0_i32 : i32, i32
  }
  func.func @transform_1(%arg0: i32) -> (i32, i32) {
    %c0_i32 = arith.constant 0 : i32
    %c0_i32_0 = arith.constant 0 : i32
    return %arg0, %c0_i32 : i32, i32
  }
  func.func @transform_2(%arg0: i32) -> (i32, i32) {
    %c0_i32 = arith.constant 0 : i32
    %c0_i32_0 = arith.constant 0 : i32
    %c0_i32_1 = arith.constant 0 : i32
    return %c0_i32, %c0_i32_0 : i32, i32
  }
  func.func @transform_3(%arg0: i32) -> (i32, i32) {
    %c0_i32 = arith.constant 0 : i32
    %c0_i32_0 = arith.constant 0 : i32
    %c0_i32_1 = arith.constant 0 : i32
    return %c0_i32, %c0_i32_0 : i32, i32
  }
  func.func @transform_4(%arg0: i32) -> (i32, i32) {
    %c0_i32 = arith.constant 0 : i32
    %c0_i32_0 = arith.constant 0 : i32
    return %arg0, %c0_i32 : i32, i32
  }
}

module attributes {stable_mosaic.version = 11 : i64} {
  func.func @_matmul_bias_kernel(%arg0: i32, %arg1: memref<32x1536xbf16, #tpu.memory_space<vmem>>, %arg2: memref<1536x256xbf16, #tpu.memory_space<vmem>>, %arg3: memref<1x256xf32, #tpu.memory_space<vmem>>, %arg4: memref<32x256xf32, #tpu.memory_space<vmem>>) attributes {dimension_semantics = [#tpu.dimension_semantics<parallel>], iteration_bounds = array<i64: 1>, scalar_prefetch = 0 : i64, scratch_operands = 0 : i64, tpu.core_type = #tpu.core_type<tc>, window_params = [{transform_indices = @transform_0, window_bounds = array<i64: 32, 1536>}, {pipeline_mode = #tpu.pipeline_mode<synchronous>, transform_indices = @transform_1, window_bounds = array<i64: 1536, 256>}, {pipeline_mode = #tpu.pipeline_mode<synchronous>, transform_indices = @transform_2, window_bounds = array<i64: 1, 256>}, {transform_indices = @transform_3, window_bounds = array<i64: 32, 256>}]} {
    %c0 = arith.constant 0 : index
    %c0_0 = arith.constant 0 : index
    %0 = vector.load %arg1[%c0, %c0_0] : memref<32x1536xbf16, #tpu.memory_space<vmem>>, vector<32x1536xbf16>
    %c0_1 = arith.constant 0 : index
    %c0_2 = arith.constant 0 : index
    %1 = vector.load %arg2[%c0_1, %c0_2] : memref<1536x256xbf16, #tpu.memory_space<vmem>>, vector<1536x256xbf16>
    %cst = arith.constant dense<0.000000e+00> : vector<32x256xf32>
    %2 = tpu.matmul %0, %1, %cst {dimension_numbers = #tpu.dot_dimension_numbers<[1], [0], [0], [1], [0, 0, 1, 1], [], []>} : vector<32x1536xbf16>, vector<1536x256xbf16>, vector<32x256xf32> -> vector<32x256xf32>
    %c0_3 = arith.constant 0 : index
    %c0_4 = arith.constant 0 : index
    %3 = vector.load %arg3[%c0_3, %c0_4] : memref<1x256xf32, #tpu.memory_space<vmem>>, vector<1x256xf32>
    %4 = vector.broadcast %3 : vector<1x256xf32> to vector<32x256xf32>
    %5 = arith.addf %2, %4 : vector<32x256xf32>
    %c0_5 = arith.constant 0 : index
    %c0_6 = arith.constant 0 : index
    %6 = vector.load %arg4[%c0_5, %c0_6] : memref<32x256xf32, #tpu.memory_space<vmem>>, vector<32x256xf32>
    tpu.vector_store %arg4[%c0_5, %c0_6], %5 {strides = array<i32>} : memref<32x256xf32, #tpu.memory_space<vmem>>, vector<32x256xf32>,
    return
  }
  func.func @transform_0(%arg0: i32) -> (i32, i32) {
    %c0_i32 = arith.constant 0 : i32
    %c0_i32_0 = arith.constant 0 : i32
    return %arg0, %c0_i32 : i32, i32
  }
  func.func @transform_1(%arg0: i32) -> (i32, i32) {
    %c0_i32 = arith.constant 0 : i32
    %c0_i32_0 = arith.constant 0 : i32
    %c0_i32_1 = arith.constant 0 : i32
    return %c0_i32, %c0_i32_0 : i32, i32
  }
  func.func @transform_2(%arg0: i32) -> (i32, i32) {
    %c0_i32 = arith.constant 0 : i32
    %c0_i32_0 = arith.constant 0 : i32
    %c0_i32_1 = arith.constant 0 : i32
    return %c0_i32, %c0_i32_0 : i32, i32
  }
  func.func @transform_3(%arg0: i32) -> (i32, i32) {
    %c0_i32 = arith.constant 0 : i32
    %c0_i32_0 = arith.constant 0 : i32
    return %arg0, %c0_i32 : i32, i32
  }
}

module attributes {stable_mosaic.version = 11 : i64} {
  func.func @_matmul_bias_kernel(%arg0: i32, %arg1: memref<128x512xbf16, #tpu.memory_space<vmem>>, %arg2: memref<512x128xbf16, #tpu.memory_space<vmem>>, %arg3: memref<1x128xf32, #tpu.memory_space<vmem>>, %arg4: memref<128x128xf32, #tpu.memory_space<vmem>>) attributes {dimension_semantics = [#tpu.dimension_semantics<parallel>], iteration_bounds = array<i64: 1>, scalar_prefetch = 0 : i64, scratch_operands = 0 : i64, tpu.core_type = #tpu.core_type<tc>, window_params = [{transform_indices = @transform_0, window_bounds = array<i64: 128, 512>}, {pipeline_mode = #tpu.pipeline_mode<synchronous>, transform_indices = @transform_1, window_bounds = array<i64: 512, 128>}, {pipeline_mode = #tpu.pipeline_mode<synchronous>, transform_indices = @transform_2, window_bounds = array<i64: 1, 128>}, {transform_indices = @transform_3, window_bounds = array<i64: 128, 128>}]} {
    %c0 = arith.constant 0 : index
    %c0_0 = arith.constant 0 : index
    %0 = vector.load %arg1[%c0, %c0_0] : memref<128x512xbf16, #tpu.memory_space<vmem>>, vector<128x512xbf16>
    %c0_1 = arith.constant 0 : index
    %c0_2 = arith.constant 0 : index
    %1 = vector.load %arg2[%c0_1, %c0_2] : memref<512x128xbf16, #tpu.memory_space<vmem>>, vector<512x128xbf16>
    %cst = arith.constant dense<0.000000e+00> : vector<128x128xf32>
    %2 = tpu.matmul %0, %1, %cst {dimension_numbers = #tpu.dot_dimension_numbers<[1], [0], [0], [1], [0, 0, 1, 1], [], []>} : vector<128x512xbf16>, vector<512x128xbf16>, vector<128x128xf32> -> vector<128x128xf32>
    %c0_3 = arith.constant 0 : index
    %c0_4 = arith.constant 0 : index
    %3 = vector.load %arg3[%c0_3, %c0_4] : memref<1x128xf32, #tpu.memory_space<vmem>>, vector<1x128xf32>
    %4 = vector.broadcast %3 : vector<1x128xf32> to vector<128x128xf32>
    %5 = arith.addf %2, %4 : vector<128x128xf32>
    %c0_5 = arith.constant 0 : index
    %c0_6 = arith.constant 0 : index
    %6 = vector.load %arg4[%c0_5, %c0_6] : memref<128x128xf32, #tpu.memory_space<vmem>>, vector<128x128xf32>
    tpu.vector_store %arg4[%c0_5, %c0_6], %5 {strides = array<i32>} : memref<128x128xf32, #tpu.memory_space<vmem>>, vector<128x128xf32>,
    return
  }
  func.func @transform_0(%arg0: i32) -> (i32, i32) {
    %c0_i32 = arith.constant 0 : i32
    %c0_i32_0 = arith.constant 0 : i32
    return %arg0, %c0_i32 : i32, i32
  }
  func.func @transform_1(%arg0: i32) -> (i32, i32) {
    %c0_i32 = arith.constant 0 : i32
    %c0_i32_0 = arith.constant 0 : i32
    %c0_i32_1 = arith.constant 0 : i32
    return %c0_i32, %c0_i32_0 : i32, i32
  }
  func.func @transform_2(%arg0: i32) -> (i32, i32) {
    %c0_i32 = arith.constant 0 : i32
    %c0_i32_0 = arith.constant 0 : i32
    %c0_i32_1 = arith.constant 0 : i32
    return %c0_i32, %c0_i32_0 : i32, i32
  }
  func.func @transform_3(%arg0: i32) -> (i32, i32) {
    %c0_i32 = arith.constant 0 : i32
    %c0_i32_0 = arith.constant 0 : i32
    return %arg0, %c0_i32 : i32, i32
  }
}

module attributes {stable_mosaic.version = 11 : i64} {
  func.func @_matmul_bias_kernel(%arg0: i32, %arg1: memref<256x256xbf16, #tpu.memory_space<vmem>>, %arg2: memref<256x4xbf16, #tpu.memory_space<vmem>>, %arg3: memref<1x4xf32, #tpu.memory_space<vmem>>, %arg4: memref<256x4xf32, #tpu.memory_space<vmem>>) attributes {dimension_semantics = [#tpu.dimension_semantics<parallel>], iteration_bounds = array<i64: 2>, scalar_prefetch = 0 : i64, scratch_operands = 0 : i64, tpu.core_type = #tpu.core_type<tc>, window_params = [{transform_indices = @transform_0, window_bounds = array<i64: 256, 256>}, {pipeline_mode = #tpu.pipeline_mode<synchronous>, transform_indices = @transform_1, window_bounds = array<i64: 256, 4>}, {pipeline_mode = #tpu.pipeline_mode<synchronous>, transform_indices = @transform_2, window_bounds = array<i64: 1, 4>}, {transform_indices = @transform_3, window_bounds = array<i64: 256, 4>}]} {
    %c0 = arith.constant 0 : index
    %c0_0 = arith.constant 0 : index
    %0 = vector.load %arg1[%c0, %c0_0] : memref<256x256xbf16, #tpu.memory_space<vmem>>, vector<256x256xbf16>
    %c0_1 = arith.constant 0 : index
    %c0_2 = arith.constant 0 : index
    %1 = vector.load %arg2[%c0_1, %c0_2] : memref<256x4xbf16, #tpu.memory_space<vmem>>, vector<256x4xbf16>
    %cst = arith.constant dense<0.000000e+00> : vector<256x4xf32>
    %2 = tpu.matmul %0, %1, %cst {dimension_numbers = #tpu.dot_dimension_numbers<[1], [0], [0], [1], [0, 0, 1, 1], [], []>} : vector<256x256xbf16>, vector<256x4xbf16>, vector<256x4xf32> -> vector<256x4xf32>
    %c0_3 = arith.constant 0 : index
    %c0_4 = arith.constant 0 : index
    %3 = vector.load %arg3[%c0_3, %c0_4] : memref<1x4xf32, #tpu.memory_space<vmem>>, vector<1x4xf32>
    %4 = vector.broadcast %3 : vector<1x4xf32> to vector<256x4xf32>
    %5 = arith.addf %2, %4 : vector<256x4xf32>
    %c0_5 = arith.constant 0 : index
    %c0_6 = arith.constant 0 : index
    %6 = vector.load %arg4[%c0_5, %c0_6] : memref<256x4xf32, #tpu.memory_space<vmem>>, vector<256x4xf32>
    tpu.vector_store %arg4[%c0_5, %c0_6], %5 {strides = array<i32>} : memref<256x4xf32, #tpu.memory_space<vmem>>, vector<256x4xf32>,
    return
  }
  func.func @transform_0(%arg0: i32) -> (i32, i32) {
    %c0_i32 = arith.constant 0 : i32
    %c0_i32_0 = arith.constant 0 : i32
    return %arg0, %c0_i32 : i32, i32
  }
  func.func @transform_1(%arg0: i32) -> (i32, i32) {
    %c0_i32 = arith.constant 0 : i32
    %c0_i32_0 = arith.constant 0 : i32
    %c0_i32_1 = arith.constant 0 : i32
    return %c0_i32, %c0_i32_0 : i32, i32
  }
  func.func @transform_2(%arg0: i32) -> (i32, i32) {
    %c0_i32 = arith.constant 0 : i32
    %c0_i32_0 = arith.constant 0 : i32
    %c0_i32_1 = arith.constant 0 : i32
    return %c0_i32, %c0_i32_0 : i32, i32
  }
  func.func @transform_3(%arg0: i32) -> (i32, i32) {
    %c0_i32 = arith.constant 0 : i32
    %c0_i32_0 = arith.constant 0 : i32
    return %arg0, %c0_i32 : i32, i32
  }
}

module attributes {stable_mosaic.version = 11 : i64} {
  func.func @kernel(%arg0: i32, %arg1: memref<512x1xf32, #tpu.memory_space<vmem>>, %arg2: memref<1x1xf32, #tpu.memory_space<vmem>>, %arg3: memref<1x1xf32, #tpu.memory_space<vmem>>, %arg4: memref<512x1xf32, #tpu.memory_space<vmem>>) attributes {dimension_semantics = [#tpu.dimension_semantics<parallel>], iteration_bounds = array<i64: 4>, scalar_prefetch = 0 : i64, scratch_operands = 0 : i64, tpu.core_type = #tpu.core_type<tc>, window_params = [{transform_indices = @transform_0, window_bounds = array<i64: 512, 1>}, {pipeline_mode = #tpu.pipeline_mode<synchronous>, transform_indices = @transform_1, window_bounds = array<i64: 1, 1>}, {pipeline_mode = #tpu.pipeline_mode<synchronous>, transform_indices = @transform_2, window_bounds = array<i64: 1, 1>}, {transform_indices = @transform_3, window_bounds = array<i64: 512, 1>}]} {
    %c0 = arith.constant 0 : index
    %c0_0 = arith.constant 0 : index
    %0 = vector.load %arg1[%c0, %c0_0] : memref<512x1xf32, #tpu.memory_space<vmem>>, vector<512x1xf32>
    %c0_1 = arith.constant 0 : index
    %c0_2 = arith.constant 0 : index
    %1 = vector.load %arg2[%c0_1, %c0_2] : memref<1x1xf32, #tpu.memory_space<vmem>>, vector<1x1xf32>
    %2 = vector.broadcast %1 : vector<1x1xf32> to vector<512x1xf32>
    %3 = arith.mulf %0, %2 : vector<512x1xf32>
    %c0_3 = arith.constant 0 : index
    %c0_4 = arith.constant 0 : index
    %4 = vector.load %arg3[%c0_3, %c0_4] : memref<1x1xf32, #tpu.memory_space<vmem>>, vector<1x1xf32>
    %5 = vector.broadcast %4 : vector<1x1xf32> to vector<512x1xf32>
    %6 = arith.addf %3, %5 : vector<512x1xf32>
    %cst = arith.constant 0.000000e+00 : f32
    %7 = vector.broadcast %cst : f32 to vector<512x1xf32>
    %8 = arith.cmpf oge, %6, %7 : vector<512x1xf32>
    %cst_5 = arith.constant 2.500000e-01 : f32
    %9 = vector.broadcast %cst_5 : f32 to vector<512x1xf32>
    %10 = arith.mulf %9, %6 : vector<512x1xf32>
    %11 = arith.select %8, %6, %10 : vector<512x1xi1>, vector<512x1xf32>
    %c0_6 = arith.constant 0 : index
    %c0_7 = arith.constant 0 : index
    %12 = vector.load %arg4[%c0_6, %c0_7] : memref<512x1xf32, #tpu.memory_space<vmem>>, vector<512x1xf32>
    tpu.vector_store %arg4[%c0_6, %c0_7], %11 {strides = array<i32>} : memref<512x1xf32, #tpu.memory_space<vmem>>, vector<512x1xf32>,
    return
  }
  func.func @transform_0(%arg0: i32) -> (i32, i32) {
    %c0_i32 = arith.constant 0 : i32
    %c0_i32_0 = arith.constant 0 : i32
    return %arg0, %c0_i32 : i32, i32
  }
  func.func @transform_1(%arg0: i32) -> (i32, i32) {
    %c0_i32 = arith.constant 0 : i32
    %c0_i32_0 = arith.constant 0 : i32
    %c0_i32_1 = arith.constant 0 : i32
    return %c0_i32, %c0_i32_0 : i32, i32
  }
  func.func @transform_2(%arg0: i32) -> (i32, i32) {
    %c0_i32 = arith.constant 0 : i32
    %c0_i32_0 = arith.constant 0 : i32
    %c0_i32_1 = arith.constant 0 : i32
    return %c0_i32, %c0_i32_0 : i32, i32
  }
  func.func @transform_3(%arg0: i32) -> (i32, i32) {
    %c0_i32 = arith.constant 0 : i32
    %c0_i32_0 = arith.constant 0 : i32
    return %arg0, %c0_i32 : i32, i32
  }
}

module attributes {stable_mosaic.version = 11 : i64} {
  func.func @_matmul_bias_kernel(%arg0: i32, %arg1: memref<512x9xbf16, #tpu.memory_space<vmem>>, %arg2: memref<9x1xbf16, #tpu.memory_space<vmem>>, %arg3: memref<1x1xf32, #tpu.memory_space<vmem>>, %arg4: memref<512x1xf32, #tpu.memory_space<vmem>>) attributes {dimension_semantics = [#tpu.dimension_semantics<parallel>], iteration_bounds = array<i64: 4>, scalar_prefetch = 0 : i64, scratch_operands = 0 : i64, tpu.core_type = #tpu.core_type<tc>, window_params = [{transform_indices = @transform_0, window_bounds = array<i64: 512, 9>}, {pipeline_mode = #tpu.pipeline_mode<synchronous>, transform_indices = @transform_1, window_bounds = array<i64: 9, 1>}, {pipeline_mode = #tpu.pipeline_mode<synchronous>, transform_indices = @transform_2, window_bounds = array<i64: 1, 1>}, {transform_indices = @transform_3, window_bounds = array<i64: 512, 1>}]} {
    %c0 = arith.constant 0 : index
    %c0_0 = arith.constant 0 : index
    %0 = vector.load %arg1[%c0, %c0_0] : memref<512x9xbf16, #tpu.memory_space<vmem>>, vector<512x9xbf16>
    %c0_1 = arith.constant 0 : index
    %c0_2 = arith.constant 0 : index
    %1 = vector.load %arg2[%c0_1, %c0_2] : memref<9x1xbf16, #tpu.memory_space<vmem>>, vector<9x1xbf16>
    %cst = arith.constant dense<0.000000e+00> : vector<512x1xf32>
    %2 = tpu.matmul %0, %1, %cst {dimension_numbers = #tpu.dot_dimension_numbers<[1], [0], [0], [1], [0, 0, 1, 1], [], []>} : vector<512x9xbf16>, vector<9x1xbf16>, vector<512x1xf32> -> vector<512x1xf32>
    %c0_3 = arith.constant 0 : index
    %c0_4 = arith.constant 0 : index
    %3 = vector.load %arg3[%c0_3, %c0_4] : memref<1x1xf32, #tpu.memory_space<vmem>>, vector<1x1xf32>
    %4 = vector.broadcast %3 : vector<1x1xf32> to vector<512x1xf32>
    %5 = arith.addf %2, %4 : vector<512x1xf32>
    %c0_5 = arith.constant 0 : index
    %c0_6 = arith.constant 0 : index
    %6 = vector.load %arg4[%c0_5, %c0_6] : memref<512x1xf32, #tpu.memory_space<vmem>>, vector<512x1xf32>
    tpu.vector_store %arg4[%c0_5, %c0_6], %5 {strides = array<i32>} : memref<512x1xf32, #tpu.memory_space<vmem>>, vector<512x1xf32>,
    return
  }
  func.func @transform_0(%arg0: i32) -> (i32, i32) {
    %c0_i32 = arith.constant 0 : i32
    %c0_i32_0 = arith.constant 0 : i32
    return %arg0, %c0_i32 : i32, i32
  }
  func.func @transform_1(%arg0: i32) -> (i32, i32) {
    %c0_i32 = arith.constant 0 : i32
    %c0_i32_0 = arith.constant 0 : i32
    %c0_i32_1 = arith.constant 0 : i32
    return %c0_i32, %c0_i32_0 : i32, i32
  }
  func.func @transform_2(%arg0: i32) -> (i32, i32) {
    %c0_i32 = arith.constant 0 : i32
    %c0_i32_0 = arith.constant 0 : i32
    %c0_i32_1 = arith.constant 0 : i32
    return %c0_i32, %c0_i32_0 : i32, i32
  }
  func.func @transform_3(%arg0: i32) -> (i32, i32) {
    %c0_i32 = arith.constant 0 : i32
    %c0_i32_0 = arith.constant 0 : i32
    return %arg0, %c0_i32 : i32, i32
  }
}

</mosaic_0001>

<bundles_post_ra>
// kernel: _forward.33
= control target key start
LH: loop header
LB: loop body
LE: loop exit
PB: predicated region body
PF: predicated region fallthrough
CT: control target
= control target key end

     0   :  { %s518_s12 = smov 0   ;;  %s712_s0 = inlined_call_operand.vmem [shape: f32[512,32], index: 0, kind: input, shape index: {}]   ;;  %s713_s1 = inlined_call_operand.vmem [shape: f32[1,32], index: 1, kind: input, shape index: {}]   ;;  %s714_s2 = inlined_call_operand.vmem [shape: f32[1,32], index: 2, kind: input, shape index: {}]   ;;  %s715_s3 = inlined_call_operand.vmem [shape: f32[512,32], index: 3, kind: output, shape index: {}]  }
   0x1 LB: > { %s469_s13 = sadd.s32 4294967295, %s496_s12   ;;  %p473_p0 = scmp.ge.s32.totalorder %s496_s12, 1  ;;  %s496_s12 = sphi %s518_s12, %s13_s12  }
   0x2   : > { %p138_p1 = scmp.lt.s32.totalorder %s496_s12, 3 }
   0x4   : > { %p139_p2 = pnand %p473_p0, %p138_p1 }
   0x5   : > { %s474_s14 = sshll.u32 (!%p139_p2), %s469_s13, 5  ;;  %v532_v0 = vld [vmem:[%s713_s1] ss:$0 sm:$0xff] (!%p139_p2)  ;;  %vm380_vm0 = vcmask (!%p139_p2), 261120  }
   0x6   : > { %142 = sbr.rel (%p139_p2) target bundleno = 62 (0x3e), region = 32  ;;  %p163_p3 = scmp.lt.s32.totalorder (!%p139_p2), %s474_s14, 63  ;;  %v542_v1 = vld [vmem:[%s714_s2] ss:$0 sm:$0xff] (!%p139_p2) }
   0xd   : > { %s717_s14 = smov (!%p163_p3, %s474_s14), 63 }
   0xe   : > { %s475_s15 = sshll.u32 %s717_s14, 3 }
   0xf   : > { %s537_s20 = scalar_lea.vmem %s712_s0, %s475_s15  ;;  %s569_s25 = scalar_lea.vmem %s715_s3, %s475_s15 }
  0x10   : > { %v174_v2 = vld [vmem:[%s537_s20] sm:$0xff]  ;;  %v175_v3 = vld [vmem:[%s537_s20 + $0x8] sm:$0xff]  ;;  %v176_v4 = vld [vmem:[%s537_s20 + $0x10] sm:$0xff] }
  0x11   : > { %v213_v5 = vmul.f32 %v532_v0, %v174_v2  ;;  %v214_v6 = vmul.f32 %v532_v0, %v175_v3  ;;  %v215_v7 = vmul.f32 %v532_v0, %v176_v4  ;;  %v177_v8 = vld [vmem:[%s537_s20 + $0x18] sm:$0xff]  ;;  %v178_v9 = vld [vmem:[%s537_s20 + $0x20] sm:$0xff]  ;;  %v179_v10 = vld [vmem:[%s537_s20 + $0x28] sm:$0xff] }
  0x12   : > { %v216_v11 = vmul.f32 %v532_v0, %v177_v8  ;;  %v217_v12 = vmul.f32 %v532_v0, %v178_v9  ;;  %v218_v13 = vmul.f32 %v532_v0, %v179_v10  ;;  %v180_v14 = vld [vmem:[%s537_s20 + $0x30] sm:$0xff]  ;;  %v181_v15 = vld [vmem:[%s537_s20 + $0x38] sm:$0xff]  ;;  %v182_v28 = vld [vmem:[%s537_s20 + $0x40] sm:$0xff] }
  0x13   : > { %v252_v16 = vadd.f32 %v542_v1, %v213_v5  ;;  %v253_v17 = vadd.f32 %v542_v1, %v214_v6  ;;  %v254_v18 = vadd.f32 %v542_v1, %v215_v7  ;;  %v219_v19 = vmul.f32 %v532_v0, %v180_v14  ;;  %v183_v32 = vld [vmem:[%s537_s20 + $0x48] sm:$0xff]  ;;  %v184_v33 = vld [vmem:[%s537_s20 + $0x50] sm:$0xff]  ;;  %v185_v34 = vld [vmem:[%s537_s20 + $0x58] sm:$0xff] }
  0x14   : > { %v255_v20 = vadd.f32 %v542_v1, %v216_v11  ;;  %v256_v21 = vadd.f32 %v542_v1, %v217_v12  ;;  %v257_v22 = vadd.f32 %v542_v1, %v218_v13  ;;  %v220_v23 = vmul.f32 %v532_v0, %v181_v15  ;;  %v186_v46 = vld [vmem:[%s537_s20 + $0x60] sm:$0xff]  ;;  %v187_v47 = vld [vmem:[%s537_s20 + $0x68] sm:$0xff]  ;;  %v188_v60 = vld [vmem:[%s537_s20 + $0x70] sm:$0xff] }
  0x15   : > { %vm284_vm1 = vcmp.ge.f32.partialorder %v252_v16, 0.0  ;;  %v316_v24 = vmul.f32 0.25, %v252_v16  ;;  %vm285_vm2 = vcmp.ge.f32.partialorder %v253_v17, 0.0  ;;  %v317_v25 = vmul.f32 0.25, %v253_v17  ;;  %v189_v61 = vld [vmem:[%s537_s20 + $0x78] sm:$0xff]  ;;  %v190_v6 = vld [vmem:[%s537_s20 + $0x80] sm:$0xff] }
  0x16   : > { %vm286_vm3 = vcmp.ge.f32.partialorder %v254_v18, 0.0  ;;  %v318_v26 = vmul.f32 0.25, %v254_v18  ;;  %vm287_vm4 = vcmp.ge.f32.partialorder %v255_v20, 0.0  ;;  %v319_v27 = vmul.f32 0.25, %v255_v20  ;;  %v191_v7 = vld [vmem:[%s537_s20 + $0x88] sm:$0xff]  ;;  %v192_v12 = vld [vmem:[%s537_s20 + $0x90] sm:$0xff] }
  0x17   : > { %v348_v29 = vsel %vm284_vm1, %v252_v16, %v316_v24  ;;  %v349_v30 = vsel %vm285_vm2, %v253_v17, %v317_v25  ;;  %vm288_vm5 = vcmp.ge.f32.partialorder %v256_v21, 0.0  ;;  %v320_v31 = vmul.f32 0.25, %v256_v21  ;;  %v193_v13 = vld [vmem:[%s537_s20 + $0x98] sm:$0xff]  ;;  %v194_v24 = vld [vmem:[%s537_s20 + $0xa0] sm:$0xff]  ;;  %v195_v25 = vld [vmem:[%s537_s20 + $0xa8] sm:$0xff] }
  0x18   : > { %381 = vst.msk [vmem:[%s569_s25] sm:$0xff] %vm380_vm0, %v348_v29  ;;  %382 = vst.msk [vmem:[%s569_s25 + $0x8] sm:$0xff] %vm380_vm0, %v349_v30  ;;  %v350_v35 = vsel %vm286_vm3, %v254_v18, %v318_v26  ;;  %v351_v36 = vsel %vm287_vm4, %v255_v20, %v319_v27  ;;  %vm289_vm6 = vcmp.ge.f32.partialorder %v257_v22, 0.0  ;;  %v321_v37 = vmul.f32 0.25, %v257_v22 }
  0x19   : > { %383 = vst.msk [vmem:[%s569_s25 + $0x10] sm:$0xff] %vm380_vm0, %v350_v35  ;;  %384 = vst.msk [vmem:[%s569_s25 + $0x18] sm:$0xff] %vm380_vm0, %v351_v36  ;;  %v352_v38 = vsel %vm288_vm5, %v256_v21, %v320_v31  ;;  %v258_v39 = vadd.f32 %v542_v1, %v219_v19  ;;  %v259_v40 = vadd.f32 %v542_v1, %v220_v23 }
  0x1a   : > { %v221_v41 = vmul.f32 %v532_v0, %v182_v28  ;;  %385 = vst.msk [vmem:[%s569_s25 + $0x20] sm:$0xff] %vm380_vm0, %v352_v38  ;;  %v353_v42 = vsel %vm289_vm6, %v257_v22, %v321_v37  ;;  %v222_v43 = vmul.f32 %v532_v0, %v183_v32  ;;  %v223_v44 = vmul.f32 %v532_v0, %v184_v33  ;;  %v196_v38 = vld [vmem:[%s537_s20 + $0xb0] sm:$0xff] }
  0x1b   : > { %v224_v45 = vmul.f32 %v532_v0, %v185_v34  ;;  %386 = vst.msk [vmem:[%s569_s25 + $0x28] sm:$0xff] %vm380_vm0, %v353_v42  ;;  %vm290_vm7 = vcmp.ge.f32.partialorder %v258_v39, 0.0  ;;  %v322_v48 = vmul.f32 0.25, %v258_v39  ;;  %vm291_vm8 = vcmp.ge.f32.partialorder %v259_v40, 0.0 }
  0x1c   : > { %v323_v49 = vmul.f32 0.25, %v259_v40  ;;  %v260_v50 = vadd.f32 %v542_v1, %v221_v41  ;;  %v261_v51 = vadd.f32 %v542_v1, %v222_v43  ;;  %v262_v52 = vadd.f32 %v542_v1, %v223_v44 }
  0x1d   : > { %v263_v53 = vadd.f32 %v542_v1, %v224_v45  ;;  %v354_v54 = vsel %vm290_vm7, %v258_v39, %v322_v48  ;;  %v225_v56 = vmul.f32 %v532_v0, %v186_v46  ;;  %v226_v57 = vmul.f32 %v532_v0, %v187_v47  ;;  %v197_v39 = vld [vmem:[%s537_s20 + $0xb8] sm:$0xff]  ;;  %v198_v46 = vld [vmem:[%s537_s20 + $0xc0] sm:$0xff]  ;;  %v199_v47 = vld [vmem:[%s537_s20 + $0xc8] sm:$0xff] }
  0x1e   : > { %v355_v55 = vsel %vm291_vm8, %v259_v40, %v323_v49  ;;  %387 = vst.msk [vmem:[%s569_s25 + $0x30] sm:$0xff] %vm380_vm0, %v354_v54  ;;  %vm292_vm9 = vcmp.ge.f32.partialorder %v260_v50, 0.0  ;;  %v324_v58 = vmul.f32 0.25, %v260_v50  ;;  %vm293_vm10 = vcmp.ge.f32.partialorder %v261_v51, 0.0 }
  0x1f   : > { %388 = vst.msk [vmem:[%s569_s25 + $0x38] sm:$0xff] %vm380_vm0, %v355_v55  ;;  %v325_v59 = vmul.f32 0.25, %v261_v51  ;;  %vm294_vm11 = vcmp.ge.f32.partialorder %v262_v52, 0.0  ;;  %v326_v62 = vmul.f32 0.25, %v262_v52  ;;  %vm295_vm12 = vcmp.ge.f32.partialorder %v263_v53, 0.0 }
  0x20   : > { %v327_v63 = vmul.f32 0.25, %v263_v53  ;;  %v356_v2 = vsel %vm292_vm9, %v260_v50, %v324_v58  ;;  %v264_v4 = vadd.f32 %v542_v1, %v225_v56  ;;  %v265_v5 = vadd.f32 %v542_v1, %v226_v57 }
  0x21   : > { %v357_v3 = vsel %vm293_vm10, %v261_v51, %v325_v59  ;;  %389 = vst.msk [vmem:[%s569_s25 + $0x40] sm:$0xff] %vm380_vm0, %v356_v2  ;;  %v358_v8 = vsel %vm294_vm11, %v262_v52, %v326_v62  ;;  %v227_v10 = vmul.f32 %v532_v0, %v188_v60  ;;  %v228_v11 = vmul.f32 %v532_v0, %v189_v61  ;;  %v200_v52 = vld [vmem:[%s537_s20 + $0xd0] sm:$0xff]  ;;  %v202_v2 = vld [vmem:[%s537_s20 + $0xe0] sm:$0xff] }
  0x22   : > { %390 = vst.msk [vmem:[%s569_s25 + $0x48] sm:$0xff] %vm380_vm0, %v357_v3  ;;  %v359_v9 = vsel %vm295_vm12, %v263_v53, %v327_v63  ;;  %391 = vst.msk [vmem:[%s569_s25 + $0x50] sm:$0xff] %vm380_vm0, %v358_v8  ;;  %vm296_vm13 = vcmp.ge.f32.partialorder %v264_v4, 0.0  ;;  %v328_v14 = vmul.f32 0.25, %v264_v4  ;;  %vm297_vm14 = vcmp.ge.f32.partialorder %v265_v5, 0.0  ;;  %v201_v53 = vld [vmem:[%s537_s20 + $0xd8] sm:$0xff] }
  0x23   : > { %392 = vst.msk [vmem:[%s569_s25 + $0x58] sm:$0xff] %vm380_vm0, %v359_v9  ;;  %v329_v15 = vmul.f32 0.25, %v265_v5  ;;  %v266_v16 = vadd.f32 %v542_v1, %v227_v10  ;;  %v267_v17 = vadd.f32 %v542_v1, %v228_v11  ;;  %v229_v18 = vmul.f32 %v532_v0, %v190_v6  ;;  %v203_v3 = vld [vmem:[%s537_s20 + $0xe8] sm:$0xff] }
  0x24   : > { %v230_v19 = vmul.f32 %v532_v0, %v191_v7  ;;  %v360_v20 = vsel %vm296_vm13, %v264_v4, %v328_v14  ;;  %v231_v22 = vmul.f32 %v532_v0, %v192_v12  ;;  %v232_v23 = vmul.f32 %v532_v0, %v193_v13 }
  0x25   : > { %v361_v21 = vsel %vm297_vm14, %v265_v5, %v329_v15  ;;  %393 = vst.msk [vmem:[%s569_s25 + $0x60] sm:$0xff] %vm380_vm0, %v360_v20  ;;  %vm298_vm15 = vcmp.ge.f32.partialorder %v266_v16, 0.0  ;;  %v330_v26 = vmul.f32 0.25, %v266_v16  ;;  %vm299_vm1 = vcmp.ge.f32.partialorder %v267_v17, 0.0 }
  0x26   : > { %394 = vst.msk [vmem:[%s569_s25 + $0x68] sm:$0xff] %vm380_vm0, %v361_v21  ;;  %v331_v27 = vmul.f32 0.25, %v267_v17  ;;  %v268_v28 = vadd.f32 %v542_v1, %v229_v18  ;;  %v269_v29 = vadd.f32 %v542_v1, %v230_v19  ;;  %v270_v30 = vadd.f32 %v542_v1, %v231_v22 }
  0x27   : > { %v271_v31 = vadd.f32 %v542_v1, %v232_v23  ;;  %v362_v32 = vsel %vm298_vm15, %v266_v16, %v330_v26  ;;  %v233_v34 = vmul.f32 %v532_v0, %v194_v24  ;;  %v234_v35 = vmul.f32 %v532_v0, %v195_v25  ;;  %v204_v16 = vld [vmem:[%s537_s20 + $0xf0] sm:$0xff] }
  0x28   : > { %v363_v33 = vsel %vm299_vm1, %v267_v17, %v331_v27  ;;  %395 = vst.msk [vmem:[%s569_s25 + $0x70] sm:$0xff] %vm380_vm0, %v362_v32  ;;  %vm300_vm2 = vcmp.ge.f32.partialorder %v268_v28, 0.0  ;;  %v332_v36 = vmul.f32 0.25, %v268_v28  ;;  %vm301_vm3 = vcmp.ge.f32.partialorder %v269_v29, 0.0  ;;  %v205_v17 = vld [vmem:[%s537_s20 + $0xf8] sm:$0xff] }
  0x29   : > { %396 = vst.msk [vmem:[%s569_s25 + $0x78] sm:$0xff] %vm380_vm0, %v363_v33  ;;  %v333_v37 = vmul.f32 0.25, %v269_v29  ;;  %vm302_vm4 = vcmp.ge.f32.partialorder %v270_v30, 0.0  ;;  %v334_v40 = vmul.f32 0.25, %v270_v30  ;;  %vm303_vm5 = vcmp.ge.f32.partialorder %v271_v31, 0.0 }
  0x2a   : > { %v335_v41 = vmul.f32 0.25, %v271_v31  ;;  %v364_v42 = vsel %vm300_vm2, %v268_v28, %v332_v36  ;;  %v272_v44 = vadd.f32 %v542_v1, %v233_v34  ;;  %v273_v45 = vadd.f32 %v542_v1, %v234_v35 }
  0x2b   : > { %v365_v43 = vsel %vm301_vm3, %v269_v29, %v333_v37  ;;  %397 = vst.msk [vmem:[%s569_s25 + $0x80] sm:$0xff] %vm380_vm0, %v364_v42  ;;  %v366_v48 = vsel %vm302_vm4, %v270_v30, %v334_v40  ;;  %v235_v50 = vmul.f32 %v532_v0, %v196_v38  ;;  %v236_v51 = vmul.f32 %v532_v0, %v197_v39 }
  0x2c   : > { %398 = vst.msk [vmem:[%s569_s25 + $0x88] sm:$0xff] %vm380_vm0, %v365_v43  ;;  %v367_v49 = vsel %vm303_vm5, %v271_v31, %v335_v41  ;;  %399 = vst.msk [vmem:[%s569_s25 + $0x90] sm:$0xff] %vm380_vm0, %v366_v48  ;;  %vm304_vm6 = vcmp.ge.f32.partialorder %v272_v44, 0.0  ;;  %v336_v54 = vmul.f32 0.25, %v272_v44  ;;  %vm305_vm7 = vcmp.ge.f32.partialorder %v273_v45, 0.0 }
  0x2d   : > { %400 = vst.msk [vmem:[%s569_s25 + $0x98] sm:$0xff] %vm380_vm0, %v367_v49  ;;  %v337_v55 = vmul.f32 0.25, %v273_v45  ;;  %v274_v56 = vadd.f32 %v542_v1, %v235_v50  ;;  %v275_v57 = vadd.f32 %v542_v1, %v236_v51  ;;  %v237_v58 = vmul.f32 %v532_v0, %v198_v46 }
  0x2e   : > { %v238_v59 = vmul.f32 %v532_v0, %v199_v47  ;;  %v368_v60 = vsel %vm304_vm6, %v272_v44, %v336_v54  ;;  %v239_v62 = vmul.f32 %v532_v0, %v200_v52  ;;  %v240_v63 = vmul.f32 %v532_v0, %v201_v53 }
  0x2f   : > { %v369_v61 = vsel %vm305_vm7, %v273_v45, %v337_v55  ;;  %401 = vst.msk [vmem:[%s569_s25 + $0xa0] sm:$0xff] %vm380_vm0, %v368_v60  ;;  %vm306_vm8 = vcmp.ge.f32.partialorder %v274_v56, 0.0  ;;  %v338_v4 = vmul.f32 0.25, %v274_v56  ;;  %vm307_vm9 = vcmp.ge.f32.partialorder %v275_v57, 0.0 }
  0x30   : > { %402 = vst.msk [vmem:[%s569_s25 + $0xa8] sm:$0xff] %vm380_vm0, %v369_v61  ;;  %v339_v5 = vmul.f32 0.25, %v275_v57  ;;  %v276_v6 = vadd.f32 %v542_v1, %v237_v58  ;;  %v277_v7 = vadd.f32 %v542_v1, %v238_v59  ;;  %v278_v8 = vadd.f32 %v542_v1, %v239_v62 }
  0x31   : > { %v279_v9 = vadd.f32 %v542_v1, %v240_v63  ;;  %v370_v10 = vsel %vm306_vm8, %v274_v56, %v338_v4  ;;  %v241_v12 = vmul.f32 %v532_v0, %v202_v2  ;;  %v242_v13 = vmul.f32 %v532_v0, %v203_v3 }
  0x32   : > { %v371_v11 = vsel %vm307_vm9, %v275_v57, %v339_v5  ;;  %403 = vst.msk [vmem:[%s569_s25 + $0xb0] sm:$0xff] %vm380_vm0, %v370_v10  ;;  %vm308_vm10 = vcmp.ge.f32.partialorder %v276_v6, 0.0  ;;  %v340_v14 = vmul.f32 0.25, %v276_v6  ;;  %vm309_vm11 = vcmp.ge.f32.partialorder %v277_v7, 0.0 }
  0x33   : > { %404 = vst.msk [vmem:[%s569_s25 + $0xb8] sm:$0xff] %vm380_vm0, %v371_v11  ;;  %v341_v15 = vmul.f32 0.25, %v277_v7  ;;  %vm310_vm12 = vcmp.ge.f32.partialorder %v278_v8, 0.0  ;;  %v342_v18 = vmul.f32 0.25, %v278_v8  ;;  %vm311_vm13 = vcmp.ge.f32.partialorder %v279_v9, 0.0 }
  0x34   : > { %v343_v19 = vmul.f32 0.25, %v279_v9  ;;  %v372_v20 = vsel %vm308_vm10, %v276_v6, %v340_v14  ;;  %v280_v22 = vadd.f32 %v542_v1, %v241_v12  ;;  %v281_v23 = vadd.f32 %v542_v1, %v242_v13 }
  0x35   : > { %v373_v21 = vsel %vm309_vm11, %v277_v7, %v341_v15  ;;  %405 = vst.msk [vmem:[%s569_s25 + $0xc0] sm:$0xff] %vm380_vm0, %v372_v20  ;;  %v374_v24 = vsel %vm310_vm12, %v278_v8, %v342_v18  ;;  %v243_v26 = vmul.f32 %v532_v0, %v204_v16  ;;  %v244_v27 = vmul.f32 %v532_v0, %v205_v17 }
  0x36   : > { %406 = vst.msk [vmem:[%s569_s25 + $0xc8] sm:$0xff] %vm380_vm0, %v373_v21  ;;  %v375_v25 = vsel %vm311_vm13, %v279_v9, %v343_v19  ;;  %407 = vst.msk [vmem:[%s569_s25 + $0xd0] sm:$0xff] %vm380_vm0, %v374_v24  ;;  %vm312_vm14 = vcmp.ge.f32.partialorder %v280_v22, 0.0  ;;  %v344_v28 = vmul.f32 0.25, %v280_v22  ;;  %vm313_vm15 = vcmp.ge.f32.partialorder %v281_v23, 0.0 }
  0x37   : > { %408 = vst.msk [vmem:[%s569_s25 + $0xd8] sm:$0xff] %vm380_vm0, %v375_v25  ;;  %v345_v29 = vmul.f32 0.25, %v281_v23  ;;  %v282_v30 = vadd.f32 %v542_v1, %v243_v26  ;;  %v283_v31 = vadd.f32 %v542_v1, %v244_v27 }
  0x38   : > { %v376_v32 = vsel %vm312_vm14, %v280_v22, %v344_v28 }
  0x39   : > { %v377_v33 = vsel %vm313_vm15, %v281_v23, %v345_v29  ;;  %409 = vst.msk [vmem:[%s569_s25 + $0xe0] sm:$0xff] %vm380_vm0, %v376_v32  ;;  %vm314_vm1 = vcmp.ge.f32.partialorder %v282_v30, 0.0  ;;  %v346_v0 = vmul.f32 0.25, %v282_v30  ;;  %vm315_vm2 = vcmp.ge.f32.partialorder %v283_v31, 0.0 }
  0x3a   : > { %410 = vst.msk [vmem:[%s569_s25 + $0xe8] sm:$0xff] %vm380_vm0, %v377_v33  ;;  %v347_v34 = vmul.f32 0.25, %v283_v31 }
  0x3b   : > { %v378_v35 = vsel %vm314_vm1, %v282_v30, %v346_v0 }
  0x3c   : > { %v379_v36 = vsel %vm315_vm2, %v283_v31, %v347_v34  ;;  %411 = vst.msk [vmem:[%s569_s25 + $0xf0] sm:$0xff] %vm380_vm0, %v378_v35 }
  0x3d   : > { %412 = vst.msk [vmem:[%s569_s25 + $0xf8] sm:$0xff] %vm380_vm0, %v379_v36 }
  0x3e PF: > { %s13_s12 = sadd.s32 1, %s496_s12  }
  0x3f   : > { %p10_p4 = scmp.ge.s32.totalorder %s13_s12, 4  }
  0x41   :  { %12 = sbr.rel (!%p10_p4) target bundleno = 1 (0x1), region = 62 }

// kernel: _forward.32
= control target key start
LH: loop header
LB: loop body
LE: loop exit
PB: predicated region body
PF: predicated region fallthrough
CT: control target
= control target key end

     0   :  { %s769_s12 = smov 0   ;;  %s933_s0 = inlined_call_operand.vmem [shape: bf16[512,18], index: 0, kind: input, shape index: {}]   ;;  %s934_s1 = inlined_call_operand.vmem [shape: bf16[18,32], index: 1, kind: input, shape index: {}]   ;;  %s935_s2 = inlined_call_operand.vmem [shape: f32[1,32], index: 2, kind: input, shape index: {}]   ;;  %s936_s3 = inlined_call_operand.vmem [shape: f32[512,32], index: 3, kind: output, shape index: {}]  }
   0x1 LB: > { %s609_s13 = sadd.s32 4294967295, %s747_s12   ;;  %p613_p0 = scmp.ge.s32.totalorder %s747_s12, 1  ;;  %s747_s12 = sphi %s769_s12, %s13_s12  }
   0x2   : > { %p138_p1 = scmp.lt.s32.totalorder %s747_s12, 3 }
   0x4   : > { %p139_p2 = pnand %p613_p0, %p138_p1 }
   0x5   : > { %v723_v0 = vld [vmem:[%s934_s1] sm:$0xff] (!%p139_p2)   ;;  %vm355_vm0 = vcmask (!%p139_p2), 1040384   ;;  %v724_v1 = vld [vmem:[%s934_s1 + $0x8] ss:$0 sps:$4 sm:$0x11] (!%p139_p2)   ;;  %s614_s18 = sshll.u32 (!%p139_p2), %s609_s13, 5 }
   0x6   : > { %142 = sbr.rel (%p139_p2) target bundleno = 261 (0x105), region = 32  ;;  %673 = vmatprep.subr.bf16.mxu0 (!%p139_p2), %v723_v0  ;;  %709 = vmatprep.subr.bf16.mxu1 (!%p139_p2), %v723_v0  ;;  %p163_p3 = scmp.lt.s32.totalorder (!%p139_p2), %s614_s18, 63  ;;  %v357_v2 = vsel (!%p139_p2), %vm355_vm0, %v724_v1, 0  ;;  %vm306_vm1 = vcmask (!%p139_p2), 146432   ;;  %v827_v19 = vld [vmem:[%s935_s2] ss:$0 sm:$0xff] (!%p139_p2) }
   0x7   : > { %674 = vmatpush3.bf16.msra.mxu0 (!%p139_p2), %v723_v0  ;;  %711 = vmatpush3.bf16.msra.mxu1 (!%p139_p2), %v723_v0  ;;  %vm520_vm2 = vcmask (!%p139_p2), 261120  }
   0x8   : > { %713 = vmatprep.subr.msk.bf16.mxu0 (!%p139_p2), %vm355_vm0, %v724_v1  ;;  %714 = vmatprep.subr.msk.bf16.mxu1 (!%p139_p2), %vm355_vm0, %v724_v1 }
   0xb   : > { %676 = vmatpush3.bf16.msra.mxu0 (!%p139_p2), %v357_v2  ;;  %712 = vmatpush3.bf16.msra.mxu1 (!%p139_p2), %v357_v2 }
   0xd   : > { %s938_s18 = smov (!%p163_p3, %s614_s18), 63 }
   0xe   : > { %s615_s19 = sshll.u32 %s938_s18, 2  ;;  %s617_s23 = sshll.u32 %s938_s18, 3 }
   0xf   : > { %s789_s22 = scalar_lea.vmem %s933_s0, %s615_s19  ;;  %s832_s28 = scalar_lea.vmem %s936_s3, %s617_s23 }
  0x10   : > { %v725_v3 = vld [vmem:[%s789_s22] sm:$0xff]   ;;  %v727_v5 = vld [vmem:[%s789_s22 + $0x8] sm:$0xff]   ;;  %v729_v7 = vld [vmem:[%s789_s22 + $0x10] sm:$0xff]  }
  0x11   : > { %v726_v4 = vld [vmem:[%s789_s22 + $0x40] sm:$0xff]   ;;  %677 = vmatprep.mubr.msk.bf16.mxu0 %vm306_vm1, %v725_v3  ;;  %v728_v6 = vld [vmem:[%s789_s22 + $0x48] sm:$0xff]   ;;  %v730_v8 = vld [vmem:[%s789_s22 + $0x50] sm:$0xff]  }
  0x12   : > { %693 = vmatprep.mubr.msk.bf16.mxu1 %vm306_vm1, %v726_v4  ;;  %678 = vmatmul.mubr.msk.bf16.vlgmr.msra.gmra.mrb[0].mxu0 %vm306_vm1, %v727_v5  ;;  %v731_v9 = vld [vmem:[%s789_s22 + $0x18] sm:$0xff]   ;;  %v733_v11 = vld [vmem:[%s789_s22 + $0x20] sm:$0xff]   ;;  %v735_v13 = vld [vmem:[%s789_s22 + $0x28] sm:$0xff]  }
  0x13   : > { %694 = vmatmul.mubr.msk.bf16.vlgmr.msra.gmra.mrb[0].mxu1 %vm306_vm1, %v728_v6  ;;  %681 = vmatprep.mubr.msk.bf16.mxu0 %vm306_vm1, %v729_v7  ;;  %v732_v10 = vld [vmem:[%s789_s22 + $0x58] sm:$0xff]   ;;  %v734_v12 = vld [vmem:[%s789_s22 + $0x60] sm:$0xff]   ;;  %v736_v14 = vld [vmem:[%s789_s22 + $0x68] sm:$0xff]  }
  0x14   : > { %697 = vmatprep.mubr.msk.bf16.mxu1 %vm306_vm1, %v730_v8  ;;  %v737_v15 = vld [vmem:[%s789_s22 + $0x30] sm:$0xff]   ;;  %v739_v17 = vld [vmem:[%s789_s22 + $0x38] sm:$0xff]  }
  0x15   : > { %v738_v16 = vld [vmem:[%s789_s22 + $0x70] sm:$0xff]   ;;  %v740_v18 = vld [vmem:[%s789_s22 + $0x78] sm:$0xff]  }
  0x1a   : > { %682 = vmatmul.mubr.msk.bf16.gmra.mrb[4].mxu0 %vm306_vm1, %v731_v9 }
  0x1b   : > { %698 = vmatmul.mubr.msk.bf16.gmra.mrb[4].mxu1 %vm306_vm1, %v732_v10  ;;  %685 = vmatprep.mubr.msk.bf16.mxu0 %vm306_vm1, %v733_v11 }
  0x1c   : > { %701 = vmatprep.mubr.msk.bf16.mxu1 %vm306_vm1, %v734_v12 }
  0x22   : > { %686 = vmatmul.mubr.msk.bf16.gmra.mrb[8].mxu0 %vm306_vm1, %v735_v13 }
  0x23   : > { %702 = vmatmul.mubr.msk.bf16.gmra.mrb[8].mxu1 %vm306_vm1, %v736_v14  ;;  %689 = vmatprep.mubr.msk.bf16.mxu0 %vm306_vm1, %v737_v15 }
  0x24   : > { %705 = vmatprep.mubr.msk.bf16.mxu1 %vm306_vm1, %v738_v16 }
  0x2a   : > { %690 = vmatmul.mubr.msk.bf16.gmra.mrb[12].mxu0 %vm306_vm1, %v739_v17 }
  0x2b   : > { %706 = vmatmul.mubr.msk.bf16.gmra.mrb[12].mxu1 %vm306_vm1, %v740_v18 }
  0xe5   : > { %v679_v20 = vpop.f32.mrb[0].mxu0 }
  0xe6   : > { %v402_v21 = vadd.f32 %v679_v20, %v827_v19  ;;  %v695_v22 = vpop.f32.mrb[0].mxu1  ;;  %v393_v23 = vpop.f32.mrb[1].mxu0 }
  0xe7   : > { %v466_v24 = vadd.f32 %v695_v22, %v827_v19  ;;  %v394_v25 = vadd.f32 %v827_v19, %v393_v23  ;;  %v457_v26 = vpop.f32.mrb[1].mxu1  ;;  %v680_v27 = vpop.f32.mrb[2].mxu0 }
  0xe8   : > { %523 = vst.msk [vmem:[%s832_s28 + $0x10] sm:$0xff] %vm520_vm2, %v402_v21  ;;  %v458_v28 = vadd.f32 %v827_v19, %v457_v26  ;;  %v405_v29 = vadd.f32 %v680_v27, %v827_v19  ;;  %v696_v30 = vpop.f32.mrb[2].mxu1  ;;  %v396_v31 = vpop.f32.mrb[3].mxu0 }
  0xe9   : > { %539 = vst.msk [vmem:[%s832_s28 + $0x90] sm:$0xff] %vm520_vm2, %v466_v24  ;;  %521 = vst.msk [vmem:[%s832_s28] sm:$0xff] %vm520_vm2, %v394_v25  ;;  %v469_v32 = vadd.f32 %v696_v30, %v827_v19  ;;  %v397_v33 = vadd.f32 %v827_v19, %v396_v31  ;;  %v460_v34 = vpop.f32.mrb[3].mxu1 }
  0xea   : > { %537 = vst.msk [vmem:[%s832_s28 + $0x80] sm:$0xff] %vm520_vm2, %v458_v28  ;;  %524 = vst.msk [vmem:[%s832_s28 + $0x18] sm:$0xff] %vm520_vm2, %v405_v29  ;;  %v461_v35 = vadd.f32 %v827_v19, %v460_v34 }
  0xeb   : > { %540 = vst.msk [vmem:[%s832_s28 + $0x98] sm:$0xff] %vm520_vm2, %v469_v32  ;;  %522 = vst.msk [vmem:[%s832_s28 + $0x8] sm:$0xff] %vm520_vm2, %v397_v33 }
  0xec   : > { %538 = vst.msk [vmem:[%s832_s28 + $0x88] sm:$0xff] %vm520_vm2, %v461_v35 }
  0xed   : > { %v683_v36 = vpop.f32.mrb[4].mxu0 }
  0xee   : > { %v418_v37 = vadd.f32 %v683_v36, %v827_v19  ;;  %v699_v38 = vpop.f32.mrb[4].mxu1  ;;  %v409_v39 = vpop.f32.mrb[5].mxu0 }
  0xef   : > { %v482_v40 = vadd.f32 %v699_v38, %v827_v19  ;;  %v410_v41 = vadd.f32 %v827_v19, %v409_v39  ;;  %v473_v42 = vpop.f32.mrb[5].mxu1  ;;  %v684_v43 = vpop.f32.mrb[6].mxu0 }
  0xf0   : > { %527 = vst.msk [vmem:[%s832_s28 + $0x30] sm:$0xff] %vm520_vm2, %v418_v37  ;;  %v474_v44 = vadd.f32 %v827_v19, %v473_v42  ;;  %v421_v45 = vadd.f32 %v684_v43, %v827_v19  ;;  %v700_v46 = vpop.f32.mrb[6].mxu1  ;;  %v412_v47 = vpop.f32.mrb[7].mxu0 }
  0xf1   : > { %543 = vst.msk [vmem:[%s832_s28 + $0xb0] sm:$0xff] %vm520_vm2, %v482_v40  ;;  %525 = vst.msk [vmem:[%s832_s28 + $0x20] sm:$0xff] %vm520_vm2, %v410_v41  ;;  %v485_v48 = vadd.f32 %v700_v46, %v827_v19  ;;  %v413_v49 = vadd.f32 %v827_v19, %v412_v47  ;;  %v476_v50 = vpop.f32.mrb[7].mxu1 }
  0xf2   : > { %541 = vst.msk [vmem:[%s832_s28 + $0xa0] sm:$0xff] %vm520_vm2, %v474_v44  ;;  %528 = vst.msk [vmem:[%s832_s28 + $0x38] sm:$0xff] %vm520_vm2, %v421_v45  ;;  %v477_v51 = vadd.f32 %v827_v19, %v476_v50 }
  0xf3   : > { %544 = vst.msk [vmem:[%s832_s28 + $0xb8] sm:$0xff] %vm520_vm2, %v485_v48  ;;  %526 = vst.msk [vmem:[%s832_s28 + $0x28] sm:$0xff] %vm520_vm2, %v413_v49 }
  0xf4   : > { %542 = vst.msk [vmem:[%s832_s28 + $0xa8] sm:$0xff] %vm520_vm2, %v477_v51 }
  0xf5   : > { %v687_v52 = vpop.f32.mrb[8].mxu0 }
  0xf6   : > { %v434_v53 = vadd.f32 %v687_v52, %v827_v19  ;;  %v703_v54 = vpop.f32.mrb[8].mxu1  ;;  %v425_v55 = vpop.f32.mrb[9].mxu0 }
  0xf7   : > { %v498_v56 = vadd.f32 %v703_v54, %v827_v19  ;;  %v426_v57 = vadd.f32 %v827_v19, %v425_v55  ;;  %v489_v58 = vpop.f32.mrb[9].mxu1  ;;  %v688_v59 = vpop.f32.mrb[10].mxu0 }
  0xf8   : > { %531 = vst.msk [vmem:[%s832_s28 + $0x50] sm:$0xff] %vm520_vm2, %v434_v53  ;;  %v490_v60 = vadd.f32 %v827_v19, %v489_v58  ;;  %v437_v61 = vadd.f32 %v688_v59, %v827_v19  ;;  %v704_v62 = vpop.f32.mrb[10].mxu1  ;;  %v428_v63 = vpop.f32.mrb[11].mxu0 }
  0xf9   : > { %547 = vst.msk [vmem:[%s832_s28 + $0xd0] sm:$0xff] %vm520_vm2, %v498_v56  ;;  %529 = vst.msk [vmem:[%s832_s28 + $0x40] sm:$0xff] %vm520_vm2, %v426_v57  ;;  %v501_v0 = vadd.f32 %v704_v62, %v827_v19  ;;  %v429_v1 = vadd.f32 %v827_v19, %v428_v63  ;;  %v492_v2 = vpop.f32.mrb[11].mxu1 }
  0xfa   : > { %545 = vst.msk [vmem:[%s832_s28 + $0xc0] sm:$0xff] %vm520_vm2, %v490_v60  ;;  %532 = vst.msk [vmem:[%s832_s28 + $0x58] sm:$0xff] %vm520_vm2, %v437_v61  ;;  %v493_v3 = vadd.f32 %v827_v19, %v492_v2 }
  0xfb   : > { %548 = vst.msk [vmem:[%s832_s28 + $0xd8] sm:$0xff] %vm520_vm2, %v501_v0  ;;  %530 = vst.msk [vmem:[%s832_s28 + $0x48] sm:$0xff] %vm520_vm2, %v429_v1 }
  0xfc   : > { %546 = vst.msk [vmem:[%s832_s28 + $0xc8] sm:$0xff] %vm520_vm2, %v493_v3 }
  0xfd   : > { %v691_v4 = vpop.f32.mrb[12].mxu0 }
  0xfe   : > { %v450_v5 = vadd.f32 %v691_v4, %v827_v19  ;;  %v707_v6 = vpop.f32.mrb[12].mxu1  ;;  %v441_v7 = vpop.f32.mrb[13].mxu0 }
  0xff   : > { %v514_v8 = vadd.f32 %v707_v6, %v827_v19  ;;  %v442_v9 = vadd.f32 %v827_v19, %v441_v7  ;;  %v505_v10 = vpop.f32.mrb[13].mxu1  ;;  %v692_v11 = vpop.f32.mrb[14].mxu0 }
 0x100   : > { %535 = vst.msk [vmem:[%s832_s28 + $0x70] sm:$0xff] %vm520_vm2, %v450_v5  ;;  %v506_v12 = vadd.f32 %v827_v19, %v505_v10  ;;  %v453_v13 = vadd.f32 %v692_v11, %v827_v19  ;;  %v708_v14 = vpop.f32.mrb[14].mxu1  ;;  %v444_v15 = vpop.f32.mrb[15].mxu0 }
 0x101   : > { %551 = vst.msk [vmem:[%s832_s28 + $0xf0] sm:$0xff] %vm520_vm2, %v514_v8  ;;  %533 = vst.msk [vmem:[%s832_s28 + $0x60] sm:$0xff] %vm520_vm2, %v442_v9  ;;  %v517_v16 = vadd.f32 %v708_v14, %v827_v19  ;;  %v445_v17 = vadd.f32 %v827_v19, %v444_v15  ;;  %v508_v18 = vpop.f32.mrb[15].mxu1 }
 0x102   : > { %549 = vst.msk [vmem:[%s832_s28 + $0xe0] sm:$0xff] %vm520_vm2, %v506_v12  ;;  %536 = vst.msk [vmem:[%s832_s28 + $0x78] sm:$0xff] %vm520_vm2, %v453_v13  ;;  %v509_v20 = vadd.f32 %v827_v19, %v508_v18 }
 0x103   : > { %552 = vst.msk [vmem:[%s832_s28 + $0xf8] sm:$0xff] %vm520_vm2, %v517_v16  ;;  %534 = vst.msk [vmem:[%s832_s28 + $0x68] sm:$0xff] %vm520_vm2, %v445_v17 }
 0x104   : > { %550 = vst.msk [vmem:[%s832_s28 + $0xe8] sm:$0xff] %vm520_vm2, %v509_v20 }
 0x105 PF: > { %s13_s12 = sadd.s32 1, %s747_s12  }
 0x106   : > { %p10_p4 = scmp.ge.s32.totalorder %s13_s12, 4  }
 0x108   :  { %12 = sbr.rel (!%p10_p4) target bundleno = 1 (0x1), region = 62 }

// kernel: _forward.35
= control target key start
LH: loop header
LB: loop body
LE: loop exit
PB: predicated region body
PF: predicated region fallthrough
CT: control target
= control target key end

     0   :  { %s650_s15 = smov 0   ;;  %s887_s0 = inlined_call_operand.vmem [shape: f32[512,32], index: 0, kind: input, shape index: {}]   ;;  %s888_s1 = inlined_call_operand.vmem [shape: f32[512,32], index: 1, kind: input, shape index: {}]   ;;  %s889_s2 = inlined_call_operand.vmem [shape: f32[1,32], index: 2, kind: input, shape index: {}]   ;;  %s890_s3 = inlined_call_operand.vmem [shape: f32[1,32], index: 3, kind: input, shape index: {}]   ;;  %s891_s4 = inlined_call_operand.vmem [shape: f32[512,32], index: 4, kind: output, shape index: {}]  }
   0x1 LB: > { %s594_s16 = sadd.s32 4294967295, %s623_s15   ;;  %p598_p0 = scmp.ge.s32.totalorder %s623_s15, 1  ;;  %s623_s15 = sphi %s650_s15, %s14_s15  }
   0x2   : > { %p174_p1 = scmp.lt.s32.totalorder %s623_s15, 3 }
   0x4   : > { %p175_p2 = pnand %p598_p0, %p174_p1 }
   0x5   : > { %s599_s17 = sshll.u32 (!%p175_p2), %s594_s16, 5  ;;  %v663_v0 = vld [vmem:[%s889_s2] ss:$0 sm:$0xff] (!%p175_p2)  ;;  %vm493_vm0 = vcmask (!%p175_p2), 261120  }
   0x6   : > { %178 = sbr.rel (%p175_p2) target bundleno = 72 (0x48), region = 36  ;;  %p206_p3 = scmp.lt.s32.totalorder (!%p175_p2), %s599_s17, 63  ;;  %v675_v2 = vld [vmem:[%s890_s3] ss:$0 sm:$0xff] (!%p175_p2) }
   0xd   : > { %s893_s17 = smov (!%p206_p3, %s599_s17), 63 }
   0xe   : > { %s658_s18 = sshll.u32 %s893_s17, 3 }
   0xf   : > { %s669_s23 = scalar_lea.vmem %s887_s0, %s658_s18  ;;  %s685_s28 = scalar_lea.vmem %s888_s1, %s658_s18 }
  0x10   : > { %v223_v1 = vld [vmem:[%s669_s23] sm:$0xff]  ;;  %v224_v3 = vld [vmem:[%s669_s23 + $0x8] sm:$0xff]  ;;  %v225_v6 = vld [vmem:[%s669_s23 + $0x10] sm:$0xff]  ;;  %s707_s5 = scalar_lea.vmem %s891_s4, %s658_s18 }
  0x11   : > { %v262_v4 = vmul.f32 %v663_v0, %v223_v1  ;;  %v263_v5 = vmul.f32 %v663_v0, %v224_v3  ;;  %v264_v7 = vmul.f32 %v663_v0, %v225_v6  ;;  %v226_v8 = vld [vmem:[%s669_s23 + $0x18] sm:$0xff]  ;;  %v227_v9 = vld [vmem:[%s669_s23 + $0x20] sm:$0xff]  ;;  %v228_v14 = vld [vmem:[%s669_s23 + $0x28] sm:$0xff] }
  0x12   : > { %v265_v12 = vmul.f32 %v663_v0, %v226_v8  ;;  %v266_v13 = vmul.f32 %v663_v0, %v227_v9  ;;  %v267_v16 = vmul.f32 %v663_v0, %v228_v14  ;;  %v229_v17 = vld [vmem:[%s669_s23 + $0x30] sm:$0xff]  ;;  %v429_v19 = vld [vmem:[%s685_s28] sm:$0xff]  ;;  %v430_v21 = vld [vmem:[%s685_s28 + $0x8] sm:$0xff] }
  0x13   : > { %v301_v10 = vadd.f32 %v675_v2, %v262_v4  ;;  %v302_v11 = vadd.f32 %v675_v2, %v263_v5  ;;  %v303_v15 = vadd.f32 %v675_v2, %v264_v7  ;;  %v431_v23 = vld [vmem:[%s685_s28 + $0x10] sm:$0xff]  ;;  %v268_v29 = vmul.f32 %v663_v0, %v229_v17  ;;  %v230_v30 = vld [vmem:[%s669_s23 + $0x38] sm:$0xff]  ;;  %v231_v34 = vld [vmem:[%s669_s23 + $0x40] sm:$0xff] }
  0x14   : > { %v304_v24 = vadd.f32 %v675_v2, %v265_v12  ;;  %v305_v25 = vadd.f32 %v675_v2, %v266_v13  ;;  %v306_v28 = vadd.f32 %v675_v2, %v267_v16  ;;  %v232_v35 = vld [vmem:[%s669_s23 + $0x48] sm:$0xff]  ;;  %v432_v38 = vld [vmem:[%s685_s28 + $0x18] sm:$0xff]  ;;  %v433_v40 = vld [vmem:[%s685_s28 + $0x20] sm:$0xff]  ;;  %v269_v44 = vmul.f32 %v663_v0, %v230_v30 }
  0x15   : > { %vm333_vm1 = vcmp.ge.f32.partialorder %v301_v10, 0.0  ;;  %v365_v18 = vmul.f32 0.25, %v301_v10  ;;  %vm334_vm2 = vcmp.ge.f32.partialorder %v302_v11, 0.0  ;;  %v366_v20 = vmul.f32 0.25, %v302_v11  ;;  %v434_v42 = vld [vmem:[%s685_s28 + $0x28] sm:$0xff]  ;;  %v233_v49 = vld [vmem:[%s669_s23 + $0x50] sm:$0xff] }
  0x16   : > { %vm335_vm3 = vcmp.ge.f32.partialorder %v303_v15, 0.0  ;;  %v367_v22 = vmul.f32 0.25, %v303_v15  ;;  %vm336_vm4 = vcmp.ge.f32.partialorder %v304_v24, 0.0  ;;  %v368_v37 = vmul.f32 0.25, %v304_v24  ;;  %v234_v50 = vld [vmem:[%s669_s23 + $0x58] sm:$0xff]  ;;  %v235_v51 = vld [vmem:[%s669_s23 + $0x60] sm:$0xff] }
  0x17   : > { %v397_v26 = vsel %vm333_vm1, %v301_v10, %v365_v18  ;;  %v398_v27 = vsel %vm334_vm2, %v302_v11, %v366_v20  ;;  %vm337_vm5 = vcmp.ge.f32.partialorder %v305_v25, 0.0  ;;  %v369_v39 = vmul.f32 0.25, %v305_v25  ;;  %v435_v57 = vld [vmem:[%s685_s28 + $0x30] sm:$0xff]  ;;  %v436_v4 = vld [vmem:[%s685_s28 + $0x38] sm:$0xff]  ;;  %v236_v5 = vld [vmem:[%s669_s23 + $0x68] sm:$0xff] }
  0x18   : > { %v461_v31 = vadd.f32 %v429_v19, %v397_v26  ;;  %v462_v32 = vadd.f32 %v430_v21, %v398_v27  ;;  %v399_v33 = vsel %vm335_vm3, %v303_v15, %v367_v22  ;;  %vm338_vm6 = vcmp.ge.f32.partialorder %v306_v28, 0.0  ;;  %v437_v8 = vld [vmem:[%s685_s28 + $0x40] sm:$0xff]  ;;  %v438_v10 = vld [vmem:[%s685_s28 + $0x48] sm:$0xff]  ;;  %v237_v19 = vld [vmem:[%s669_s23 + $0x70] sm:$0xff] }
  0x19   : > { %v463_v36 = vadd.f32 %v431_v23, %v399_v33  ;;  %v370_v41 = vmul.f32 0.25, %v306_v28  ;;  %v307_v43 = vadd.f32 %v675_v2, %v268_v29  ;;  %v400_v45 = vsel %vm336_vm4, %v304_v24, %v368_v37  ;;  %v238_v20 = vld [vmem:[%s669_s23 + $0x78] sm:$0xff]  ;;  %v439_v24 = vld [vmem:[%s685_s28 + $0x50] sm:$0xff]  ;;  %v441_v29 = vld [vmem:[%s685_s28 + $0x60] sm:$0xff] }
  0x1a   : > { %494 = vst.msk [vmem:[%s707_s5] sm:$0xff] %vm493_vm0, %v461_v31  ;;  %495 = vst.msk [vmem:[%s707_s5 + $0x8] sm:$0xff] %vm493_vm0, %v462_v32  ;;  %v401_v46 = vsel %vm337_vm5, %v305_v25, %v369_v39  ;;  %v270_v47 = vmul.f32 %v663_v0, %v231_v34  ;;  %v271_v48 = vmul.f32 %v663_v0, %v232_v35  ;;  %v239_v25 = vld [vmem:[%s669_s23 + $0x80] sm:$0xff]  ;;  %v440_v27 = vld [vmem:[%s685_s28 + $0x58] sm:$0xff] }
  0x1b   : > { %496 = vst.msk [vmem:[%s707_s5 + $0x10] sm:$0xff] %vm493_vm0, %v463_v36  ;;  %v464_v52 = vadd.f32 %v432_v38, %v400_v45  ;;  %v465_v53 = vadd.f32 %v433_v40, %v401_v46  ;;  %v402_v54 = vsel %vm338_vm6, %v306_v28, %v370_v41  ;;  %vm339_vm7 = vcmp.ge.f32.partialorder %v307_v43, 0.0  ;;  %v240_v34 = vld [vmem:[%s669_s23 + $0x88] sm:$0xff]  ;;  %v241_v39 = vld [vmem:[%s669_s23 + $0x90] sm:$0xff]  ;;  %v242_v40 = vld [vmem:[%s669_s23 + $0x98] sm:$0xff] }
  0x1c   : > { %v466_v55 = vadd.f32 %v434_v42, %v402_v54  ;;  %v371_v56 = vmul.f32 0.25, %v307_v43  ;;  %v308_v58 = vadd.f32 %v675_v2, %v269_v44  ;;  %v309_v59 = vadd.f32 %v675_v2, %v270_v47  ;;  %v243_v41 = vld [vmem:[%s669_s23 + $0xa0] sm:$0xff]  ;;  %v442_v45 = vld [vmem:[%s685_s28 + $0x68] sm:$0xff] }
  0x1d   : > { %497 = vst.msk [vmem:[%s707_s5 + $0x18] sm:$0xff] %vm493_vm0, %v464_v52  ;;  %498 = vst.msk [vmem:[%s707_s5 + $0x20] sm:$0xff] %vm493_vm0, %v465_v53  ;;  %v310_v60 = vadd.f32 %v675_v2, %v271_v48  ;;  %v272_v61 = vmul.f32 %v663_v0, %v233_v49  ;;  %v273_v62 = vmul.f32 %v663_v0, %v234_v50 }
  0x1e   : > { %v274_v63 = vmul.f32 %v663_v0, %v235_v51  ;;  %499 = vst.msk [vmem:[%s707_s5 + $0x28] sm:$0xff] %vm493_vm0, %v466_v55  ;;  %v403_v1 = vsel %vm339_vm7, %v307_v43, %v371_v56  ;;  %vm340_vm8 = vcmp.ge.f32.partialorder %v308_v58, 0.0  ;;  %v372_v3 = vmul.f32 0.25, %v308_v58  ;;  %v443_v56 = vld [vmem:[%s685_s28 + $0x70] sm:$0xff] }
  0x1f   : > { %vm341_vm9 = vcmp.ge.f32.partialorder %v309_v59, 0.0  ;;  %v467_v6 = vadd.f32 %v435_v57, %v403_v1  ;;  %v373_v7 = vmul.f32 0.25, %v309_v59  ;;  %vm342_vm10 = vcmp.ge.f32.partialorder %v310_v60, 0.0 }
  0x20   : > { %v374_v9 = vmul.f32 0.25, %v310_v60  ;;  %v404_v11 = vsel %vm340_vm8, %v308_v58, %v372_v3  ;;  %v311_v12 = vadd.f32 %v675_v2, %v272_v61  ;;  %v312_v13 = vadd.f32 %v675_v2, %v273_v62  ;;  %v444_v58 = vld [vmem:[%s685_s28 + $0x78] sm:$0xff] }
  0x21   : > { %v313_v14 = vadd.f32 %v675_v2, %v274_v63  ;;  %500 = vst.msk [vmem:[%s707_s5 + $0x30] sm:$0xff] %vm493_vm0, %v467_v6  ;;  %v468_v15 = vadd.f32 %v436_v4, %v404_v11  ;;  %v405_v16 = vsel %vm341_vm9, %v309_v59, %v373_v7  ;;  %v275_v18 = vmul.f32 %v663_v0, %v236_v5  ;;  %v244_v7 = vld [vmem:[%s669_s23 + $0xa8] sm:$0xff] }
  0x22   : > { %v406_v17 = vsel %vm342_vm10, %v310_v60, %v374_v9  ;;  %v469_v21 = vadd.f32 %v437_v8, %v405_v16  ;;  %vm343_vm11 = vcmp.ge.f32.partialorder %v311_v12, 0.0  ;;  %v375_v23 = vmul.f32 0.25, %v311_v12  ;;  %v445_v60 = vld [vmem:[%s685_s28 + $0x80] sm:$0xff]  ;;  %v245_v8 = vld [vmem:[%s669_s23 + $0xb0] sm:$0xff] }
  0x23   : > { %v470_v22 = vadd.f32 %v438_v10, %v406_v17  ;;  %501 = vst.msk [vmem:[%s707_s5 + $0x38] sm:$0xff] %vm493_vm0, %v468_v15  ;;  %vm344_vm12 = vcmp.ge.f32.partialorder %v312_v13, 0.0  ;;  %v376_v26 = vmul.f32 0.25, %v312_v13  ;;  %vm345_vm13 = vcmp.ge.f32.partialorder %v313_v14, 0.0  ;;  %v447_v15 = vld [vmem:[%s685_s28 + $0x90] sm:$0xff]  ;;  %v448_v17 = vld [vmem:[%s685_s28 + $0x98] sm:$0xff] }
  0x24   : > { %v377_v28 = vmul.f32 0.25, %v313_v14  ;;  %502 = vst.msk [vmem:[%s707_s5 + $0x40] sm:$0xff] %vm493_vm0, %v469_v21  ;;  %v407_v30 = vsel %vm343_vm11, %v311_v12, %v375_v23  ;;  %v314_v31 = vadd.f32 %v675_v2, %v275_v18  ;;  %v276_v32 = vmul.f32 %v663_v0, %v237_v19  ;;  %v446_v12 = vld [vmem:[%s685_s28 + $0x88] sm:$0xff]  ;;  %v247_v23 = vld [vmem:[%s669_s23 + $0xc0] sm:$0xff] }
  0x25   : > { %503 = vst.msk [vmem:[%s707_s5 + $0x48] sm:$0xff] %vm493_vm0, %v470_v22  ;;  %v277_v33 = vmul.f32 %v663_v0, %v238_v20  ;;  %v471_v35 = vadd.f32 %v439_v24, %v407_v30  ;;  %v408_v36 = vsel %vm344_vm12, %v312_v13, %v376_v26  ;;  %v278_v38 = vmul.f32 %v663_v0, %v239_v25  ;;  %v246_v13 = vld [vmem:[%s669_s23 + $0xb8] sm:$0xff]  ;;  %v449_v20 = vld [vmem:[%s685_s28 + $0xa0] sm:$0xff] }
  0x26   : > { %v409_v37 = vsel %vm345_vm13, %v313_v14, %v377_v28  ;;  %v472_v42 = vadd.f32 %v440_v27, %v408_v36  ;;  %vm346_vm14 = vcmp.ge.f32.partialorder %v314_v31, 0.0  ;;  %v378_v44 = vmul.f32 0.25, %v314_v31  ;;  %v248_v28 = vld [vmem:[%s669_s23 + $0xc8] sm:$0xff] }
  0x27   : > { %v473_v43 = vadd.f32 %v441_v29, %v409_v37  ;;  %504 = vst.msk [vmem:[%s707_s5 + $0x50] sm:$0xff] %vm493_vm0, %v471_v35  ;;  %v315_v46 = vadd.f32 %v675_v2, %v276_v32  ;;  %v316_v47 = vadd.f32 %v675_v2, %v277_v33  ;;  %v317_v48 = vadd.f32 %v675_v2, %v278_v38  ;;  %v249_v29 = vld [vmem:[%s669_s23 + $0xd0] sm:$0xff] }
  0x28   : > { %v279_v49 = vmul.f32 %v663_v0, %v240_v34  ;;  %505 = vst.msk [vmem:[%s707_s5 + $0x58] sm:$0xff] %vm493_vm0, %v472_v42  ;;  %v410_v50 = vsel %vm346_vm14, %v314_v31, %v378_v44  ;;  %v280_v51 = vmul.f32 %v663_v0, %v241_v39  ;;  %v281_v52 = vmul.f32 %v663_v0, %v242_v40  ;;  %v450_v39 = vld [vmem:[%s685_s28 + $0xa8] sm:$0xff]  ;;  %v250_v42 = vld [vmem:[%s669_s23 + $0xd8] sm:$0xff]  ;;  %v451_v44 = vld [vmem:[%s685_s28 + $0xb0] sm:$0xff] }
  0x29   : > { %506 = vst.msk [vmem:[%s707_s5 + $0x60] sm:$0xff] %vm493_vm0, %v473_v43  ;;  %v282_v53 = vmul.f32 %v663_v0, %v243_v41  ;;  %v474_v54 = vadd.f32 %v442_v45, %v410_v50  ;;  %vm347_vm15 = vcmp.ge.f32.partialorder %v315_v46, 0.0  ;;  %v379_v55 = vmul.f32 0.25, %v315_v46 }
  0x2a   : > { %vm348_vm1 = vcmp.ge.f32.partialorder %v316_v47, 0.0  ;;  %v380_v57 = vmul.f32 0.25, %v316_v47  ;;  %vm349_vm2 = vcmp.ge.f32.partialorder %v317_v48, 0.0  ;;  %v381_v59 = vmul.f32 0.25, %v317_v48 }
  0x2b   : > { %v318_v61 = vadd.f32 %v675_v2, %v279_v49  ;;  %507 = vst.msk [vmem:[%s707_s5 + $0x68] sm:$0xff] %vm493_vm0, %v474_v54  ;;  %v411_v62 = vsel %vm347_vm15, %v315_v46, %v379_v55  ;;  %v319_v63 = vadd.f32 %v675_v2, %v280_v51  ;;  %v320_v1 = vadd.f32 %v675_v2, %v281_v52  ;;  %v452_v46 = vld [vmem:[%s685_s28 + $0xb8] sm:$0xff]  ;;  %v251_v55 = vld [vmem:[%s669_s23 + $0xe0] sm:$0xff] }
  0x2c   : > { %v321_v3 = vadd.f32 %v675_v2, %v282_v53  ;;  %v475_v4 = vadd.f32 %v443_v56, %v411_v62  ;;  %v412_v5 = vsel %vm348_vm1, %v316_v47, %v380_v57  ;;  %v413_v6 = vsel %vm349_vm2, %v317_v48, %v381_v59  ;;  %v252_v56 = vld [vmem:[%s669_s23 + $0xe8] sm:$0xff] }
  0x2d   : > { %vm350_vm3 = vcmp.ge.f32.partialorder %v318_v61, 0.0  ;;  %v476_v9 = vadd.f32 %v444_v58, %v412_v5  ;;  %v477_v10 = vadd.f32 %v445_v60, %v413_v6  ;;  %v382_v11 = vmul.f32 0.25, %v318_v61  ;;  %v453_v60 = vld [vmem:[%s685_s28 + $0xc0] sm:$0xff] }
  0x2e   : > { %vm351_vm4 = vcmp.ge.f32.partialorder %v319_v63, 0.0  ;;  %508 = vst.msk [vmem:[%s707_s5 + $0x70] sm:$0xff] %vm493_vm0, %v475_v4  ;;  %v383_v14 = vmul.f32 0.25, %v319_v63  ;;  %vm352_vm5 = vcmp.ge.f32.partialorder %v320_v1, 0.0  ;;  %v384_v16 = vmul.f32 0.25, %v320_v1 }
  0x2f   : > { %vm353_vm6 = vcmp.ge.f32.partialorder %v321_v3, 0.0  ;;  %509 = vst.msk [vmem:[%s707_s5 + $0x78] sm:$0xff] %vm493_vm0, %v476_v9  ;;  %510 = vst.msk [vmem:[%s707_s5 + $0x80] sm:$0xff] %vm493_vm0, %v477_v10  ;;  %v414_v18 = vsel %vm350_vm3, %v318_v61, %v382_v11  ;;  %v385_v19 = vmul.f32 0.25, %v321_v3  ;;  %v283_v21 = vmul.f32 %v663_v0, %v244_v7  ;;  %v253_v61 = vld [vmem:[%s669_s23 + $0xf0] sm:$0xff] }
  0x30   : > { %v284_v22 = vmul.f32 %v663_v0, %v245_v8  ;;  %v478_v24 = vadd.f32 %v446_v12, %v414_v18  ;;  %v415_v25 = vsel %vm351_vm4, %v319_v63, %v383_v14  ;;  %v416_v26 = vsel %vm352_vm5, %v320_v1, %v384_v16  ;;  %v454_v63 = vld [vmem:[%s685_s28 + $0xc8] sm:$0xff]  ;;  %v254_v8 = vld [vmem:[%s669_s23 + $0xf8] sm:$0xff] }
  0x31   : > { %v285_v27 = vmul.f32 %v663_v0, %v246_v13  ;;  %v479_v30 = vadd.f32 %v447_v15, %v415_v25  ;;  %v480_v31 = vadd.f32 %v448_v17, %v416_v26  ;;  %v417_v32 = vsel %vm353_vm6, %v321_v3, %v385_v19  ;;  %v455_v3 = vld [vmem:[%s685_s28 + $0xd0] sm:$0xff]  ;;  %v456_v16 = vld [vmem:[%s685_s28 + $0xd8] sm:$0xff]  ;;  %v458_v26 = vld [vmem:[%s685_s28 + $0xe8] sm:$0xff] }
  0x32   : > { %v322_v33 = vadd.f32 %v675_v2, %v283_v21  ;;  %511 = vst.msk [vmem:[%s707_s5 + $0x88] sm:$0xff] %vm493_vm0, %v478_v24  ;;  %v481_v34 = vadd.f32 %v449_v20, %v417_v32  ;;  %v323_v35 = vadd.f32 %v675_v2, %v284_v22  ;;  %v286_v37 = vmul.f32 %v663_v0, %v247_v23  ;;  %v457_v24 = vld [vmem:[%s685_s28 + $0xe0] sm:$0xff] }
  0x33   : > { %v324_v36 = vadd.f32 %v675_v2, %v285_v27  ;;  %512 = vst.msk [vmem:[%s707_s5 + $0x90] sm:$0xff] %vm493_vm0, %v479_v30  ;;  %513 = vst.msk [vmem:[%s707_s5 + $0x98] sm:$0xff] %vm493_vm0, %v480_v31  ;;  %v287_v40 = vmul.f32 %v663_v0, %v248_v28  ;;  %v288_v41 = vmul.f32 %v663_v0, %v249_v29  ;;  %v459_v28 = vld [vmem:[%s685_s28 + $0xf0] sm:$0xff] }
  0x34   : > { %vm354_vm7 = vcmp.ge.f32.partialorder %v322_v33, 0.0  ;;  %v386_v38 = vmul.f32 0.25, %v322_v33  ;;  %514 = vst.msk [vmem:[%s707_s5 + $0xa0] sm:$0xff] %vm493_vm0, %v481_v34  ;;  %vm355_vm8 = vcmp.ge.f32.partialorder %v323_v35, 0.0  ;;  %v387_v43 = vmul.f32 0.25, %v323_v35 }
  0x35   : > { %vm356_vm9 = vcmp.ge.f32.partialorder %v324_v36, 0.0  ;;  %v388_v45 = vmul.f32 0.25, %v324_v36  ;;  %v325_v48 = vadd.f32 %v675_v2, %v286_v37  ;;  %v326_v49 = vadd.f32 %v675_v2, %v287_v40 }
  0x36   : > { %v418_v47 = vsel %vm354_vm7, %v322_v33, %v386_v38  ;;  %v327_v50 = vadd.f32 %v675_v2, %v288_v41  ;;  %v419_v52 = vsel %vm355_vm8, %v323_v35, %v387_v43  ;;  %v289_v54 = vmul.f32 %v663_v0, %v250_v42 }
  0x37   : > { %v482_v51 = vadd.f32 %v450_v39, %v418_v47  ;;  %v420_v53 = vsel %vm356_vm9, %v324_v36, %v388_v45  ;;  %v483_v57 = vadd.f32 %v451_v44, %v419_v52  ;;  %vm357_vm10 = vcmp.ge.f32.partialorder %v325_v48, 0.0  ;;  %v460_v36 = vld [vmem:[%s685_s28 + $0xf8] sm:$0xff] }
  0x38   : > { %v484_v58 = vadd.f32 %v452_v46, %v420_v53  ;;  %v389_v59 = vmul.f32 0.25, %v325_v48  ;;  %vm358_vm11 = vcmp.ge.f32.partialorder %v326_v49, 0.0  ;;  %v390_v62 = vmul.f32 0.25, %v326_v49 }
  0x39   : > { %515 = vst.msk [vmem:[%s707_s5 + $0xa8] sm:$0xff] %vm493_vm0, %v482_v51  ;;  %vm359_vm12 = vcmp.ge.f32.partialorder %v327_v50, 0.0  ;;  %v391_v1 = vmul.f32 0.25, %v327_v50  ;;  %516 = vst.msk [vmem:[%s707_s5 + $0xb0] sm:$0xff] %vm493_vm0, %v483_v57  ;;  %v328_v5 = vadd.f32 %v675_v2, %v289_v54  ;;  %v290_v6 = vmul.f32 %v663_v0, %v251_v55 }
  0x3a   : > { %517 = vst.msk [vmem:[%s707_s5 + $0xb8] sm:$0xff] %vm493_vm0, %v484_v58  ;;  %v421_v4 = vsel %vm357_vm10, %v325_v48, %v389_v59  ;;  %v291_v7 = vmul.f32 %v663_v0, %v252_v56  ;;  %v422_v10 = vsel %vm358_vm11, %v326_v49, %v390_v62  ;;  %v292_v12 = vmul.f32 %v663_v0, %v253_v61 }
  0x3b   : > { %v485_v9 = vadd.f32 %v453_v60, %v421_v4  ;;  %v423_v11 = vsel %vm359_vm12, %v327_v50, %v391_v1  ;;  %v486_v13 = vadd.f32 %v454_v63, %v422_v10  ;;  %vm360_vm13 = vcmp.ge.f32.partialorder %v328_v5, 0.0 }
  0x3c   : > { %v487_v14 = vadd.f32 %v455_v3, %v423_v11  ;;  %v392_v15 = vmul.f32 0.25, %v328_v5  ;;  %v329_v17 = vadd.f32 %v675_v2, %v290_v6  ;;  %v330_v18 = vadd.f32 %v675_v2, %v291_v7 }
  0x3d   : > { %518 = vst.msk [vmem:[%s707_s5 + $0xc0] sm:$0xff] %vm493_vm0, %v485_v9  ;;  %v331_v19 = vadd.f32 %v675_v2, %v292_v12  ;;  %v293_v20 = vmul.f32 %v663_v0, %v254_v8  ;;  %519 = vst.msk [vmem:[%s707_s5 + $0xc8] sm:$0xff] %vm493_vm0, %v486_v13 }
  0x3e   : > { %520 = vst.msk [vmem:[%s707_s5 + $0xd0] sm:$0xff] %vm493_vm0, %v487_v14  ;;  %v424_v21 = vsel %vm360_vm13, %v328_v5, %v392_v15  ;;  %vm361_vm14 = vcmp.ge.f32.partialorder %v329_v17, 0.0  ;;  %v393_v23 = vmul.f32 0.25, %v329_v17  ;;  %vm362_vm15 = vcmp.ge.f32.partialorder %v330_v18, 0.0 }
  0x3f   : > { %v488_v22 = vadd.f32 %v456_v16, %v424_v21  ;;  %v394_v25 = vmul.f32 0.25, %v330_v18  ;;  %vm363_vm1 = vcmp.ge.f32.partialorder %v331_v19, 0.0  ;;  %v395_v27 = vmul.f32 0.25, %v331_v19 }
  0x40   : > { %v332_v0 = vadd.f32 %v675_v2, %v293_v20  ;;  %v425_v29 = vsel %vm361_vm14, %v329_v17, %v393_v23 }
  0x41   : > { %521 = vst.msk [vmem:[%s707_s5 + $0xd8] sm:$0xff] %vm493_vm0, %v488_v22  ;;  %v489_v30 = vadd.f32 %v457_v24, %v425_v29  ;;  %v426_v31 = vsel %vm362_vm15, %v330_v18, %v394_v25  ;;  %v427_v32 = vsel %vm363_vm1, %v331_v19, %v395_v27 }
  0x42   : > { %vm364_vm2 = vcmp.ge.f32.partialorder %v332_v0, 0.0  ;;  %v490_v33 = vadd.f32 %v458_v26, %v426_v31  ;;  %v491_v34 = vadd.f32 %v459_v28, %v427_v32  ;;  %v396_v35 = vmul.f32 0.25, %v332_v0 }
  0x43   : > { %522 = vst.msk [vmem:[%s707_s5 + $0xe0] sm:$0xff] %vm493_vm0, %v489_v30 }
  0x44   : > { %523 = vst.msk [vmem:[%s707_s5 + $0xe8] sm:$0xff] %vm493_vm0, %v490_v33  ;;  %524 = vst.msk [vmem:[%s707_s5 + $0xf0] sm:$0xff] %vm493_vm0, %v491_v34  ;;  %v428_v37 = vsel %vm364_vm2, %v332_v0, %v396_v35 }
  0x45   : > { %v492_v2 = vadd.f32 %v460_v36, %v428_v37 }
  0x47   : > { %525 = vst.msk [vmem:[%s707_s5 + $0xf8] sm:$0xff] %vm493_vm0, %v492_v2 }
  0x48 PF: > { %s14_s15 = sadd.s32 1, %s623_s15  }
  0x49   : > { %p11_p4 = scmp.ge.s32.totalorder %s14_s15, 4  }
  0x4b   :  { %13 = sbr.rel (!%p11_p4) target bundleno = 1 (0x1), region = 69 }

// kernel: _forward.34
= control target key start
LH: loop header
LB: loop body
LE: loop exit
PB: predicated region body
PF: predicated region fallthrough
CT: control target
= control target key end

     0   :  { %s1487_s12 = smov 0   ;;  %s1761_s0 = inlined_call_operand.vmem [shape: bf16[512,288], index: 0, kind: input, shape index: {}]   ;;  %s1762_s1 = inlined_call_operand.vmem [shape: bf16[288,32], index: 1, kind: input, shape index: {}]   ;;  %s1763_s2 = inlined_call_operand.vmem [shape: f32[1,32], index: 2, kind: input, shape index: {}]   ;;  %s1764_s3 = inlined_call_operand.vmem [shape: f32[512,32], index: 3, kind: output, shape index: {}]  }
   0x1 LB: > { %s1092_s13 = sadd.s32 4294967295, %s1465_s12   ;;  %p1096_p0 = scmp.ge.s32.totalorder %s1465_s12, 1  ;;  %s1465_s12 = sphi %s1487_s12, %s13_s12  }
   0x2   : > { %p139_p1 = scmp.lt.s32.totalorder %s1465_s12, 3 }
   0x4   : > { %p140_p2 = pnand %p1096_p0, %p139_p1 }
   0x5   : > { %v1377_v0 = vld [vmem:[%s1762_s1 + $0x40] sm:$0xff] (!%p140_p2)   ;;  %s1097_s16 = sshll.u32 (!%p140_p2), %s1092_s13, 5  ;;  %v1379_v2 = vld [vmem:[%s1762_s1 + $0x48] sm:$0xff] (!%p140_p2)   ;;  %v1381_v4 = vld [vmem:[%s1762_s1 + $0x50] sm:$0xff] (!%p140_p2)   ;;  %vm633_vm0 = vcmask (!%p140_p2), 261120  }
   0x6   : > { %143 = sbr.rel (%p140_p2) target bundleno = 348 (0x15c), region = 32  ;;  %v1378_v1 = vld [vmem:[%s1762_s1] sm:$0xff] (!%p140_p2)   ;;  %1186 = vmatprep.subr.bf16.mxu0 (!%p140_p2), %v1377_v0  ;;  %1352 = vmatprep.subr.bf16.mxu1 (!%p140_p2), %v1377_v0  ;;  %p165_p3 = scmp.lt.s32.totalorder (!%p140_p2), %s1097_s16, 63  ;;  %v1380_v3 = vld [vmem:[%s1762_s1 + $0x8] sm:$0xff] (!%p140_p2)   ;;  %v1382_v5 = vld [vmem:[%s1762_s1 + $0x10] sm:$0xff] (!%p140_p2)  }
   0x7   : > { %1187 = vmatpush3.bf16.msra.mxu0 (!%p140_p2), %v1378_v1  ;;  %1360 = vmatpush3.bf16.msra.mxu1 (!%p140_p2), %v1378_v1  ;;  %v1383_v6 = vld [vmem:[%s1762_s1 + $0x58] sm:$0xff] (!%p140_p2)   ;;  %v1385_v8 = vld [vmem:[%s1762_s1 + $0x60] sm:$0xff] (!%p140_p2)   ;;  %v1387_v10 = vld [vmem:[%s1762_s1 + $0x68] sm:$0xff] (!%p140_p2)  }
   0x8   : > { %1188 = vmatprep.subr.bf16.mxu0 (!%p140_p2), %v1379_v2  ;;  %1353 = vmatprep.subr.bf16.mxu1 (!%p140_p2), %v1379_v2  ;;  %v1384_v7 = vld [vmem:[%s1762_s1 + $0x18] sm:$0xff] (!%p140_p2)   ;;  %v1386_v9 = vld [vmem:[%s1762_s1 + $0x20] sm:$0xff] (!%p140_p2)   ;;  %v1388_v13 = vld [vmem:[%s1762_s1 + $0x28] sm:$0xff] (!%p140_p2)  }
   0x9   : > { %v1389_v14 = vld [vmem:[%s1762_s1 + $0x70] sm:$0xff] (!%p140_p2)   ;;  %v1391_v16 = vld [vmem:[%s1762_s1 + $0x78] sm:$0xff] (!%p140_p2)   ;;  %v1399_v18 = vld [vmem:[%s1762_s1 + $0x80] sm:$0xff] (!%p140_p2)  }
   0xa   : > { %v1390_v15 = vld [vmem:[%s1762_s1 + $0x30] sm:$0xff] (!%p140_p2)   ;;  %v1392_v17 = vld [vmem:[%s1762_s1 + $0x38] sm:$0xff] (!%p140_p2)   ;;  %v1412_v23 = vld [vmem:[%s1762_s1 + $0x88] sm:$0xff] (!%p140_p2)  }
   0xb   : > { %1189 = vmatpush3.bf16.msra.mxu0 (!%p140_p2), %v1380_v3  ;;  %1361 = vmatpush3.bf16.msra.mxu1 (!%p140_p2), %v1380_v3 }
   0xc   : > { %1190 = vmatprep.subr.bf16.mxu0 (!%p140_p2), %v1381_v4  ;;  %1354 = vmatprep.subr.bf16.mxu1 (!%p140_p2), %v1381_v4 }
   0xd   : > { %s1766_s16 = smov (!%p165_p3, %s1097_s16), 63 }
   0xe   : > { %s1368_s29 = smul.u32 12, %s1766_s16  ;;  %s1100_s30 = sshll.u32 %s1766_s16, 3 }
   0xf   : > { %1191 = vmatpush3.bf16.msra.mxu0 %v1382_v5  ;;  %1362 = vmatpush3.bf16.msra.mxu1 %v1382_v5  ;;  %s1647_s8 = scalar_lea.vmem %s1764_s3, %s1100_s30 }
  0x10   : > { %1192 = vmatprep.subr.bf16.mxu0 %v1383_v6  ;;  %1355 = vmatprep.subr.bf16.mxu1 %v1383_v6  ;;  %s1528_s9 = scalar_lea.vmem %s1761_s0, %s1368_s29 }
  0x11   : > { %v1395_v11 = vld [vmem:[%s1528_s9 + $0x4] ss:$12 sps:$4 sm:$0xff]   ;;  %v1393_v19 = vld [vmem:[%s1528_s9] ss:$12 sps:$4 sm:$0xff]   ;;  %v1400_v21 = vld [vmem:[%s1528_s9 + $0x1c] ss:$12 sps:$4 sm:$0xff]  }
  0x12   : > { %v1398_v12 = vld [vmem:[%s1528_s9 + $0x124] ss:$12 sps:$4 sm:$0xff]   ;;  %714 = vmatprep.mubr.bf16.mxu0 %v1395_v11  ;;  %v1396_v20 = vld [vmem:[%s1528_s9 + $0x120] ss:$12 sps:$4 sm:$0xff]   ;;  %v1402_v22 = vld [vmem:[%s1528_s9 + $0x13c] ss:$12 sps:$4 sm:$0xff]  }
  0x13   : > { %1193 = vmatpush3.bf16.msra.mxu0 %v1384_v7  ;;  %1363 = vmatpush3.bf16.msra.mxu1 %v1384_v7  ;;  %v1404_v24 = vld [vmem:[%s1528_s9 + $0x18] ss:$12 sps:$4 sm:$0xff]   ;;  %v1406_v26 = vld [vmem:[%s1528_s9 + $0x34] ss:$12 sps:$4 sm:$0xff]   ;;  %v1410_v28 = vld [vmem:[%s1528_s9 + $0x30] ss:$12 sps:$4 sm:$0xff]  }
  0x14   : > { %1194 = vmatprep.subr.bf16.mxu0 %v1385_v8  ;;  %1356 = vmatprep.subr.bf16.mxu1 %v1385_v8  ;;  %v1405_v25 = vld [vmem:[%s1528_s9 + $0x138] ss:$12 sps:$4 sm:$0xff]   ;;  %v1408_v27 = vld [vmem:[%s1528_s9 + $0x154] ss:$12 sps:$4 sm:$0xff]   ;;  %v1411_v29 = vld [vmem:[%s1528_s9 + $0x150] ss:$12 sps:$4 sm:$0xff]  }
  0x15   : > { %810 = vmatprep.mubr.bf16.mxu1 %v1398_v12  ;;  %v1413_v30 = vld [vmem:[%s1528_s9 + $0x4c] ss:$12 sps:$4 sm:$0xff]   ;;  %v1417_v32 = vld [vmem:[%s1528_s9 + $0x48] ss:$12 sps:$4 sm:$0xff]   ;;  %v1419_v34 = vld [vmem:[%s1528_s9 + $0x64] ss:$12 sps:$4 sm:$0xff]  }
  0x16   : > { %v1415_v31 = vld [vmem:[%s1528_s9 + $0x16c] ss:$12 sps:$4 sm:$0xff]   ;;  %v1418_v33 = vld [vmem:[%s1528_s9 + $0x168] ss:$12 sps:$4 sm:$0xff]   ;;  %v1428_v41 = vld [vmem:[%s1528_s9 + $0x50] ss:$12 sps:$4 sm:$0xff]  }
  0x17   : > { %1195 = vmatpush3.bf16.msra.mxu0 %v1386_v9  ;;  %1364 = vmatpush3.bf16.msra.mxu1 %v1386_v9  ;;  %v1421_v35 = vld [vmem:[%s1528_s9 + $0x8] ss:$12 sps:$4 sm:$0xff]   ;;  %v1422_v36 = vld [vmem:[%s1528_s9 + $0x60] ss:$12 sps:$4 sm:$0xff]   ;;  %v1426_v39 = vld [vmem:[%s1528_s9 + $0x38] ss:$12 sps:$4 sm:$0xff]  }
  0x18   : > { %1196 = vmatprep.subr.bf16.mxu0 %v1387_v10  ;;  %1357 = vmatprep.subr.bf16.mxu1 %v1387_v10  ;;  %v1423_v37 = vld [vmem:[%s1528_s9 + $0x20] ss:$12 sps:$4 sm:$0xff]   ;;  %v1424_v38 = vld [vmem:[%s1528_s9 + $0x7c] ss:$12 sps:$4 sm:$0xff]   ;;  %v1427_v40 = vld [vmem:[%s1528_s9 + $0x78] ss:$12 sps:$4 sm:$0xff]  }
  0x19   : > { %v1429_v42 = vld [vmem:[%s1528_s9 + $0x94] ss:$12 sps:$4 sm:$0xff]   ;;  %v1432_v44 = vld [vmem:[%s1528_s9 + $0x90] ss:$12 sps:$4 sm:$0xff]   ;;  %v1434_v46 = vld [vmem:[%s1528_s9 + $0xac] ss:$12 sps:$4 sm:$0xff]  }
  0x1a   : > { %v1431_v43 = vld [vmem:[%s1528_s9 + $0x68] ss:$12 sps:$4 sm:$0xff]   ;;  %v1433_v45 = vld [vmem:[%s1528_s9 + $0x80] ss:$12 sps:$4 sm:$0xff]   ;;  %v1436_v47 = vld [vmem:[%s1528_s9 + $0x98] ss:$12 sps:$4 sm:$0xff]  }
  0x1b   : > { %1197 = vmatpush3.bf16.msra.mxu0 %v1388_v13  ;;  %1365 = vmatpush3.bf16.msra.mxu1 %v1388_v13  ;;  %v1437_v48 = vld [vmem:[%s1528_s9 + $0xa8] ss:$12 sps:$4 sm:$0xff]   ;;  %v1438_v49 = vld [vmem:[%s1528_s9 + $0xb0] ss:$12 sps:$4 sm:$0xff]   ;;  %v1442_v52 = vld [vmem:[%s1528_s9 + $0xc0] ss:$12 sps:$4 sm:$0xff]  }
  0x1c   : > { %1198 = vmatprep.subr.bf16.mxu0 %v1389_v14  ;;  %1358 = vmatprep.subr.bf16.mxu1 %v1389_v14  ;;  %v1439_v50 = vld [vmem:[%s1528_s9 + $0xc4] ss:$12 sps:$4 sm:$0xff]   ;;  %v1441_v51 = vld [vmem:[%s1528_s9 + $0xc8] ss:$12 sps:$4 sm:$0xff]   ;;  %v1443_v53 = vld [vmem:[%s1528_s9 + $0xe0] ss:$12 sps:$4 sm:$0xff]  }
  0x1d   : > { %v1444_v54 = vld [vmem:[%s1528_s9 + $0xdc] ss:$12 sps:$4 sm:$0xff]   ;;  %v1446_v55 = vld [vmem:[%s1528_s9 + $0xf8] ss:$12 sps:$4 sm:$0xff]   ;;  %v1449_v58 = vld [vmem:[%s1528_s9 + $0xf4] ss:$12 sps:$4 sm:$0xff]  }
  0x1e   : > { %v1447_v56 = vld [vmem:[%s1528_s9 + $0xd8] ss:$12 sps:$4 sm:$0xff]   ;;  %v1448_v57 = vld [vmem:[%s1528_s9 + $0x110] ss:$12 sps:$4 sm:$0xff]   ;;  %v1451_v59 = vld [vmem:[%s1528_s9 + $0x128] ss:$12 sps:$4 sm:$0xff]  }
  0x1f   : > { %1199 = vmatpush3.bf16.msra.mxu0 %v1390_v15  ;;  %1366 = vmatpush3.bf16.msra.mxu1 %v1390_v15  ;;  %v1452_v60 = vld [vmem:[%s1528_s9 + $0xf0] ss:$12 sps:$4 sm:$0xff]   ;;  %v1453_v61 = vld [vmem:[%s1528_s9 + $0x140] ss:$12 sps:$4 sm:$0xff]   ;;  %v1456_v63 = vld [vmem:[%s1528_s9 + $0x158] ss:$12 sps:$4 sm:$0xff]  }
  0x20   : > { %1200 = vmatprep.subr.bf16.mxu0 %v1391_v16  ;;  %1359 = vmatprep.subr.bf16.mxu1 %v1391_v16  ;;  %v1454_v62 = vld [vmem:[%s1528_s9 + $0x10c] ss:$12 sps:$4 sm:$0xff]   ;;  %v1457_v0 = vld [vmem:[%s1528_s9 + $0x108] ss:$12 sps:$4 sm:$0xff]   ;;  %v1458_v1 = vld [vmem:[%s1528_s9 + $0x170] ss:$12 sps:$4 sm:$0xff]  }
  0x23   : > { %1201 = vmatpush3.bf16.msra.mxu0 %v1392_v17  ;;  %1367 = vmatpush3.bf16.msra.mxu1 %v1392_v17 }
  0x24   : > { %1316 = vmatprep.subr.bf16.mxu1 %v1399_v18 }
  0x26   : > { %715 = vmatmul.mubr.bf16.vlgmr.msra.gmra.mrb[0].mxu0 %v1393_v19  ;;  %811 = vmatmul.mubr.bf16.vlgmr.msra.gmra.mrb[0].mxu1 %v1396_v20 }
  0x27   : > { %1317 = vmatpush3.bf16.msra.mxu1 %v1399_v18  ;;  %722 = vmatprep.mubr.bf16.mxu0 %v1400_v21 }
  0x28   : > { %818 = vmatprep.mubr.bf16.mxu1 %v1402_v22  ;;  %1318 = vmatprep.subr.bf16.mxu1 %v1412_v23 }
  0x2b   : > { %1319 = vmatpush3.bf16.msra.mxu1 %v1412_v23 }
  0x2e   : > { %723 = vmatmul.mubr.bf16.gmra.mrb[4].mxu0 %v1404_v24  ;;  %819 = vmatmul.mubr.bf16.gmra.mrb[4].mxu1 %v1405_v25 }
  0x2f   : > { %730 = vmatprep.mubr.bf16.mxu0 %v1406_v26  ;;  %826 = vmatprep.mubr.bf16.mxu1 %v1408_v27 }
  0x36   : > { %731 = vmatmul.mubr.bf16.gmra.mrb[8].mxu0 %v1410_v28  ;;  %827 = vmatmul.mubr.bf16.gmra.mrb[8].mxu1 %v1411_v29 }
  0x37   : > { %738 = vmatprep.mubr.bf16.mxu0 %v1413_v30  ;;  %834 = vmatprep.mubr.bf16.mxu1 %v1415_v31 }
  0x3e   : > { %739 = vmatmul.mubr.bf16.gmra.mrb[12].mxu0 %v1417_v32  ;;  %835 = vmatmul.mubr.bf16.gmra.mrb[12].mxu1 %v1418_v33 }
  0x3f   : > { %746 = vmatprep.mubr.bf16.mxu0 %v1419_v34  ;;  %1320 = vmatprep.mubr.msk.bf16.mxu1 %vm633_vm0, %v1421_v35 }
  0x46   : > { %747 = vmatmul.mubr.bf16.gmra.mrb[16].mxu0 %v1422_v36  ;;  %1321 = vmatmul.mubr.msk.bf16.vlgmr.msra.gmra.mrb[16].mxu1 %vm633_vm0, %v1423_v37 }
  0x47   : > { %754 = vmatprep.mubr.bf16.mxu0 %v1424_v38  ;;  %1324 = vmatprep.mubr.msk.bf16.mxu1 %vm633_vm0, %v1426_v39 }
  0x4e   : > { %755 = vmatmul.mubr.bf16.gmra.mrb[20].mxu0 %v1427_v40  ;;  %1325 = vmatmul.mubr.msk.bf16.gmra.mrb[20].mxu1 %vm633_vm0, %v1428_v41 }
  0x4f   : > { %762 = vmatprep.mubr.bf16.mxu0 %v1429_v42  ;;  %1328 = vmatprep.mubr.msk.bf16.mxu1 %vm633_vm0, %v1431_v43 }
  0x56   : > { %763 = vmatmul.mubr.bf16.gmra.mrb[24].mxu0 %v1432_v44  ;;  %1329 = vmatmul.mubr.msk.bf16.gmra.mrb[24].mxu1 %vm633_vm0, %v1433_v45 }
  0x57   : > { %770 = vmatprep.mubr.bf16.mxu0 %v1434_v46  ;;  %1332 = vmatprep.mubr.msk.bf16.mxu1 %vm633_vm0, %v1436_v47 }
  0x5e   : > { %771 = vmatmul.mubr.bf16.gmra.mrb[28].mxu0 %v1437_v48  ;;  %1333 = vmatmul.mubr.msk.bf16.gmra.mrb[28].mxu1 %vm633_vm0, %v1438_v49 }
  0x5f   : > { %778 = vmatprep.mubr.bf16.mxu0 %v1439_v50  ;;  %1336 = vmatprep.mubr.msk.bf16.mxu1 %vm633_vm0, %v1441_v51  ;;  %v1641_v50 = vld [vmem:[%s1763_s2] ss:$0 sm:$0xff] }
  0x66   : > { %779 = vmatmul.mubr.bf16.gmra.mrb[32].mxu0 %v1442_v52  ;;  %1337 = vmatmul.mubr.msk.bf16.gmra.mrb[32].mxu1 %vm633_vm0, %v1443_v53 }
  0x67   : > { %786 = vmatprep.mubr.bf16.mxu0 %v1444_v54  ;;  %1340 = vmatprep.mubr.msk.bf16.mxu1 %vm633_vm0, %v1446_v55 }
  0x6e   : > { %787 = vmatmul.mubr.bf16.gmra.mrb[36].mxu0 %v1447_v56  ;;  %1341 = vmatmul.mubr.msk.bf16.gmra.mrb[36].mxu1 %vm633_vm0, %v1448_v57 }
  0x6f   : > { %794 = vmatprep.mubr.bf16.mxu0 %v1449_v58  ;;  %1344 = vmatprep.mubr.msk.bf16.mxu1 %vm633_vm0, %v1451_v59 }
  0x76   : > { %795 = vmatmul.mubr.bf16.gmra.mrb[40].mxu0 %v1452_v60  ;;  %1345 = vmatmul.mubr.msk.bf16.gmra.mrb[40].mxu1 %vm633_vm0, %v1453_v61 }
  0x77   : > { %802 = vmatprep.mubr.bf16.mxu0 %v1454_v62  ;;  %1348 = vmatprep.mubr.msk.bf16.mxu1 %vm633_vm0, %v1456_v63 }
  0x7e   : > { %803 = vmatmul.mubr.bf16.gmra.mrb[44].mxu0 %v1457_v0  ;;  %1349 = vmatmul.mubr.msk.bf16.gmra.mrb[44].mxu1 %vm633_vm0, %v1458_v1 }
  0xf9   : > { %v1202_v2 = vpop.f32.mrb[0].mxu0  ;;  %v1274_v3 = vpop.f32.mrb[0].mxu1 }
  0xfa   : > { %v1203_v4 = vpop.f32.mrb[1].mxu0  ;;  %v1275_v5 = vpop.f32.mrb[1].mxu1 }
  0xfb   : > { %v1204_v6 = vadd.f32 %v1203_v4, %v1202_v2  ;;  %v1205_v7 = vpop.f32.mrb[2].mxu0  ;;  %v1621_v8 = vadd.f32 %v1275_v5, %v1274_v3  ;;  %v1277_v9 = vpop.f32.mrb[2].mxu1 }
  0xfc   : > { %v1206_v10 = vpop.f32.mrb[3].mxu0  ;;  %v1278_v11 = vpop.f32.mrb[3].mxu1 }
  0xfd   : > { %v1207_v12 = vadd.f32 %v1206_v10, %v1205_v7  ;;  %v1623_v13 = vadd.f32 %v1278_v11, %v1277_v9  ;;  %v717_v54 = vadd.f32 %v1204_v6, %v1641_v50 }
  0xff   : > { %v720_v63 = vadd.f32 %v1207_v12, %v1641_v50 }
 0x101   : > { %v1208_v14 = vpop.f32.mrb[4].mxu0  ;;  %v1280_v15 = vpop.f32.mrb[4].mxu1 }
 0x102   : > { %v1209_v16 = vpop.f32.mrb[5].mxu0  ;;  %v1281_v17 = vpop.f32.mrb[5].mxu1 }
 0x103   : > { %v1210_v18 = vadd.f32 %v1209_v16, %v1208_v14  ;;  %v1211_v19 = vpop.f32.mrb[6].mxu0  ;;  %v1625_v20 = vadd.f32 %v1281_v17, %v1280_v15  ;;  %v1283_v21 = vpop.f32.mrb[6].mxu1 }
 0x104   : > { %v1212_v22 = vpop.f32.mrb[7].mxu0  ;;  %v1284_v23 = vpop.f32.mrb[7].mxu1 }
 0x105   : > { %v1213_v24 = vadd.f32 %v1212_v22, %v1211_v19  ;;  %v1627_v25 = vadd.f32 %v1284_v23, %v1283_v21  ;;  %v725_v51 = vadd.f32 %v1210_v18, %v1641_v50 }
 0x107   : > { %v728_v58 = vadd.f32 %v1213_v24, %v1641_v50 }
 0x109   : > { %v1214_v26 = vpop.f32.mrb[8].mxu0  ;;  %v1286_v27 = vpop.f32.mrb[8].mxu1 }
 0x10a   : > { %v1215_v28 = vpop.f32.mrb[9].mxu0  ;;  %v1287_v29 = vpop.f32.mrb[9].mxu1 }
 0x10b   : > { %v1216_v30 = vadd.f32 %v1215_v28, %v1214_v26  ;;  %v1217_v31 = vpop.f32.mrb[10].mxu0  ;;  %v1629_v32 = vadd.f32 %v1287_v29, %v1286_v27  ;;  %v1289_v33 = vpop.f32.mrb[10].mxu1 }
 0x10c   : > { %v1218_v34 = vpop.f32.mrb[11].mxu0  ;;  %v1290_v35 = vpop.f32.mrb[11].mxu1 }
 0x10d   : > { %v1219_v36 = vadd.f32 %v1218_v34, %v1217_v31  ;;  %v1631_v37 = vadd.f32 %v1290_v35, %v1289_v33  ;;  %v733_v9 = vadd.f32 %v1216_v30, %v1641_v50 }
 0x10f   : > { %v736_v19 = vadd.f32 %v1219_v36, %v1641_v50 }
 0x111   : > { %v1220_v38 = vpop.f32.mrb[12].mxu0  ;;  %v1292_v39 = vpop.f32.mrb[12].mxu1 }
 0x112   : > { %v1221_v40 = vpop.f32.mrb[13].mxu0  ;;  %v1293_v41 = vpop.f32.mrb[13].mxu1 }
 0x113   : > { %v1222_v42 = vadd.f32 %v1221_v40, %v1220_v38  ;;  %v1223_v43 = vpop.f32.mrb[14].mxu0  ;;  %v1633_v44 = vadd.f32 %v1293_v41, %v1292_v39  ;;  %v1295_v45 = vpop.f32.mrb[14].mxu1 }
 0x114   : > { %v1224_v46 = vpop.f32.mrb[15].mxu0  ;;  %v1296_v47 = vpop.f32.mrb[15].mxu1 }
 0x115   : > { %v1225_v48 = vadd.f32 %v1224_v46, %v1223_v43  ;;  %v1635_v49 = vadd.f32 %v1296_v47, %v1295_v45  ;;  %v741_v5 = vadd.f32 %v1222_v42, %v1641_v50 }
 0x117   : > { %v744_v14 = vadd.f32 %v1225_v48, %v1641_v50 }
 0x119   : > { %v1226_v52 = vpop.f32.mrb[16].mxu0  ;;  %v1322_v53 = vpop.f32.mrb[16].mxu1 }
 0x11a   : > { %v886_v55 = vadd.f32 %v1322_v53, %v725_v51  ;;  %v1227_v56 = vpop.f32.mrb[17].mxu0  ;;  %v877_v57 = vpop.f32.mrb[17].mxu1 }
 0x11b   : > { %v1228_v59 = vadd.f32 %v1227_v56, %v1226_v52  ;;  %v878_v60 = vadd.f32 %v877_v57, %v717_v54  ;;  %v1229_v61 = vpop.f32.mrb[18].mxu0  ;;  %v1323_v62 = vpop.f32.mrb[18].mxu1 }
 0x11c   : > { %1006 = vst.msk [vmem:[%s1647_s8 + $0x10] sm:$0xff] %vm633_vm0, %v886_v55  ;;  %v889_v0 = vadd.f32 %v1323_v62, %v728_v58  ;;  %v1230_v1 = vpop.f32.mrb[19].mxu0  ;;  %v880_v2 = vpop.f32.mrb[19].mxu1 }
 0x11d   : > { %1004 = vst.msk [vmem:[%s1647_s8] sm:$0xff] %vm633_vm0, %v878_v60  ;;  %v1231_v3 = vadd.f32 %v1230_v1, %v1229_v61  ;;  %v881_v4 = vadd.f32 %v880_v2, %v720_v63  ;;  %v749_v30 = vadd.f32 %v1228_v59, %v1641_v50 }
 0x11e   : > { %1007 = vst.msk [vmem:[%s1647_s8 + $0x18] sm:$0xff] %vm633_vm0, %v889_v0 }
 0x11f   : > { %1005 = vst.msk [vmem:[%s1647_s8 + $0x8] sm:$0xff] %vm633_vm0, %v881_v4  ;;  %v752_v41 = vadd.f32 %v1231_v3, %v1641_v50 }
 0x121   : > { %v1232_v6 = vpop.f32.mrb[20].mxu0  ;;  %v1326_v7 = vpop.f32.mrb[20].mxu1 }
 0x122   : > { %v902_v10 = vadd.f32 %v1326_v7, %v741_v5  ;;  %v1233_v11 = vpop.f32.mrb[21].mxu0  ;;  %v893_v12 = vpop.f32.mrb[21].mxu1 }
 0x123   : > { %v1234_v15 = vadd.f32 %v1233_v11, %v1232_v6  ;;  %v894_v16 = vadd.f32 %v893_v12, %v733_v9  ;;  %v1235_v17 = vpop.f32.mrb[22].mxu0  ;;  %v1327_v18 = vpop.f32.mrb[22].mxu1 }
 0x124   : > { %1010 = vst.msk [vmem:[%s1647_s8 + $0x30] sm:$0xff] %vm633_vm0, %v902_v10  ;;  %v905_v21 = vadd.f32 %v1327_v18, %v744_v14  ;;  %v1236_v22 = vpop.f32.mrb[23].mxu0  ;;  %v896_v23 = vpop.f32.mrb[23].mxu1 }
 0x125   : > { %1008 = vst.msk [vmem:[%s1647_s8 + $0x20] sm:$0xff] %vm633_vm0, %v894_v16  ;;  %v1237_v24 = vadd.f32 %v1236_v22, %v1235_v17  ;;  %v897_v26 = vadd.f32 %v896_v23, %v736_v19  ;;  %v757_v27 = vadd.f32 %v1234_v15, %v1641_v50 }
 0x126   : > { %1011 = vst.msk [vmem:[%s1647_s8 + $0x38] sm:$0xff] %vm633_vm0, %v905_v21 }
 0x127   : > { %1009 = vst.msk [vmem:[%s1647_s8 + $0x28] sm:$0xff] %vm633_vm0, %v897_v26  ;;  %v760_v35 = vadd.f32 %v1237_v24, %v1641_v50 }
 0x129   : > { %v1238_v28 = vpop.f32.mrb[24].mxu0  ;;  %v1330_v29 = vpop.f32.mrb[24].mxu1 }
 0x12a   : > { %v918_v31 = vadd.f32 %v1330_v29, %v757_v27  ;;  %v1239_v33 = vpop.f32.mrb[25].mxu0  ;;  %v909_v34 = vpop.f32.mrb[25].mxu1 }
 0x12b   : > { %v1240_v36 = vadd.f32 %v1239_v33, %v1238_v28  ;;  %v910_v38 = vadd.f32 %v909_v34, %v749_v30  ;;  %v1241_v39 = vpop.f32.mrb[26].mxu0  ;;  %v1331_v40 = vpop.f32.mrb[26].mxu1 }
 0x12c   : > { %1014 = vst.msk [vmem:[%s1647_s8 + $0x50] sm:$0xff] %vm633_vm0, %v918_v31  ;;  %v921_v42 = vadd.f32 %v1331_v40, %v760_v35  ;;  %v1242_v43 = vpop.f32.mrb[27].mxu0  ;;  %v912_v45 = vpop.f32.mrb[27].mxu1 }
 0x12d   : > { %1012 = vst.msk [vmem:[%s1647_s8 + $0x40] sm:$0xff] %vm633_vm0, %v910_v38  ;;  %v1243_v46 = vadd.f32 %v1242_v43, %v1241_v39  ;;  %v913_v47 = vadd.f32 %v912_v45, %v752_v41  ;;  %v765_v52 = vadd.f32 %v1240_v36, %v1641_v50  ;;  %v821_v36 = vadd.f32 %v1625_v20, %v1641_v50 }
 0x12e   : > { %1015 = vst.msk [vmem:[%s1647_s8 + $0x58] sm:$0xff] %vm633_vm0, %v921_v42  ;;  %v813_v41 = vadd.f32 %v1621_v8, %v1641_v50 }
 0x12f   : > { %1013 = vst.msk [vmem:[%s1647_s8 + $0x48] sm:$0xff] %vm633_vm0, %v913_v47  ;;  %v768_v59 = vadd.f32 %v1243_v46, %v1641_v50  ;;  %v824_v46 = vadd.f32 %v1627_v25, %v1641_v50 }
 0x131   : > { %v1244_v48 = vpop.f32.mrb[28].mxu0  ;;  %v1334_v51 = vpop.f32.mrb[28].mxu1 }
 0x132   : > { %v1245_v53 = vpop.f32.mrb[29].mxu0  ;;  %v925_v54 = vpop.f32.mrb[29].mxu1 }
 0x133   : > { %v1246_v55 = vadd.f32 %v1245_v53, %v1244_v48  ;;  %v926_v56 = vadd.f32 %v925_v54, %v765_v52  ;;  %v1247_v57 = vpop.f32.mrb[30].mxu0  ;;  %v1335_v58 = vpop.f32.mrb[30].mxu1  ;;  %v816_v52 = vadd.f32 %v1623_v13, %v1641_v50  ;;  %v837_v13 = vadd.f32 %v1633_v44, %v1641_v50 }
 0x134   : > { %v1248_v60 = vpop.f32.mrb[31].mxu0  ;;  %v928_v61 = vpop.f32.mrb[31].mxu1 }
 0x135   : > { %v773_v62 = vadd.f32 %v1246_v55, %v1641_v50  ;;  %1016 = vst.msk [vmem:[%s1647_s8 + $0x60] sm:$0xff] %vm633_vm0, %v926_v56  ;;  %v1249_v63 = vadd.f32 %v1248_v60, %v1247_v57  ;;  %v929_v0 = vadd.f32 %v928_v61, %v768_v59 }
 0x137   : > { %v934_v1 = vadd.f32 %v1334_v51, %v773_v62  ;;  %v776_v2 = vadd.f32 %v1249_v63, %v1641_v50  ;;  %1017 = vst.msk [vmem:[%s1647_s8 + $0x68] sm:$0xff] %vm633_vm0, %v929_v0  ;;  %v829_v62 = vadd.f32 %v1629_v32, %v1641_v50  ;;  %v832_v32 = vadd.f32 %v1631_v37, %v1641_v50 }
 0x139   : > { %1018 = vst.msk [vmem:[%s1647_s8 + $0x70] sm:$0xff] %vm633_vm0, %v934_v1  ;;  %v937_v3 = vadd.f32 %v1335_v58, %v776_v2  ;;  %v1250_v4 = vpop.f32.mrb[32].mxu0  ;;  %v1338_v5 = vpop.f32.mrb[32].mxu1  ;;  %v840_v2 = vadd.f32 %v1635_v49, %v1641_v50 }
 0x13a   : > { %v1251_v6 = vpop.f32.mrb[33].mxu0  ;;  %v941_v7 = vpop.f32.mrb[33].mxu1 }
 0x13b   : > { %1019 = vst.msk [vmem:[%s1647_s8 + $0x78] sm:$0xff] %vm633_vm0, %v937_v3  ;;  %v1252_v9 = vadd.f32 %v1251_v6, %v1250_v4  ;;  %v1253_v10 = vpop.f32.mrb[34].mxu0  ;;  %v1339_v11 = vpop.f32.mrb[34].mxu1 }
 0x13c   : > { %v1254_v12 = vpop.f32.mrb[35].mxu0  ;;  %v944_v14 = vpop.f32.mrb[35].mxu1 }
 0x13d   : > { %v781_v15 = vadd.f32 %v1252_v9, %v1641_v50  ;;  %v1255_v16 = vadd.f32 %v1254_v12, %v1253_v10 }
 0x13f   : > { %v942_v17 = vadd.f32 %v941_v7, %v781_v15  ;;  %v784_v18 = vadd.f32 %v1255_v16, %v1641_v50 }
 0x141   : > { %1020 = vst.msk [vmem:[%s1647_s8 + $0x80] sm:$0xff] %vm633_vm0, %v942_v17  ;;  %v945_v19 = vadd.f32 %v944_v14, %v784_v18  ;;  %v1256_v21 = vpop.f32.mrb[36].mxu0  ;;  %v1700_v22 = vpop.f32.mrb[36].mxu1 }
 0x142   : > { %v1257_v23 = vpop.f32.mrb[37].mxu0  ;;  %v957_v24 = vpop.f32.mrb[37].mxu1 }
 0x143   : > { %1021 = vst.msk [vmem:[%s1647_s8 + $0x88] sm:$0xff] %vm633_vm0, %v945_v19  ;;  %v1258_v26 = vadd.f32 %v1257_v23, %v1256_v21  ;;  %v1259_v27 = vpop.f32.mrb[38].mxu0  ;;  %v1704_v28 = vpop.f32.mrb[38].mxu1 }
 0x144   : > { %v1260_v29 = vpop.f32.mrb[39].mxu0  ;;  %v960_v30 = vpop.f32.mrb[39].mxu1 }
 0x145   : > { %v789_v31 = vadd.f32 %v1258_v26, %v1641_v50  ;;  %v1261_v33 = vadd.f32 %v1260_v29, %v1259_v27 }
 0x147   : > { %v950_v34 = vadd.f32 %v1338_v5, %v789_v31  ;;  %v792_v35 = vadd.f32 %v1261_v33, %v1641_v50 }
 0x149   : > { %1022 = vst.msk [vmem:[%s1647_s8 + $0x90] sm:$0xff] %vm633_vm0, %v950_v34  ;;  %v953_v38 = vadd.f32 %v1339_v11, %v792_v35  ;;  %v1262_v39 = vpop.f32.mrb[40].mxu0  ;;  %v1346_v40 = vpop.f32.mrb[40].mxu1 }
 0x14a   : > { %v982_v42 = vadd.f32 %v1346_v40, %v821_v36  ;;  %v1263_v43 = vpop.f32.mrb[41].mxu0  ;;  %v973_v45 = vpop.f32.mrb[41].mxu1 }
 0x14b   : > { %1023 = vst.msk [vmem:[%s1647_s8 + $0x98] sm:$0xff] %vm633_vm0, %v953_v38  ;;  %v1264_v20 = vadd.f32 %v1263_v43, %v1262_v39  ;;  %v974_v47 = vadd.f32 %v973_v45, %v813_v41  ;;  %v1265_v48 = vpop.f32.mrb[42].mxu0  ;;  %v1347_v51 = vpop.f32.mrb[42].mxu1 }
 0x14c   : > { %1030 = vst.msk [vmem:[%s1647_s8 + $0xd0] sm:$0xff] %vm633_vm0, %v982_v42  ;;  %v985_v8 = vadd.f32 %v1347_v51, %v824_v46  ;;  %v1266_v53 = vpop.f32.mrb[43].mxu0  ;;  %v976_v54 = vpop.f32.mrb[43].mxu1 }
 0x14d   : > { %v797_v55 = vadd.f32 %v1264_v20, %v1641_v50  ;;  %1028 = vst.msk [vmem:[%s1647_s8 + $0xc0] sm:$0xff] %vm633_vm0, %v974_v47  ;;  %v1267_v25 = vadd.f32 %v1266_v53, %v1265_v48  ;;  %v977_v56 = vadd.f32 %v976_v54, %v816_v52 }
 0x14e   : > { %1031 = vst.msk [vmem:[%s1647_s8 + $0xd8] sm:$0xff] %vm633_vm0, %v985_v8 }
 0x14f   : > { %v958_v57 = vadd.f32 %v957_v24, %v797_v55  ;;  %v800_v58 = vadd.f32 %v1267_v25, %v1641_v50  ;;  %1029 = vst.msk [vmem:[%s1647_s8 + $0xc8] sm:$0xff] %vm633_vm0, %v977_v56 }
 0x151   : > { %1024 = vst.msk [vmem:[%s1647_s8 + $0xa0] sm:$0xff] %vm633_vm0, %v958_v57  ;;  %v961_v59 = vadd.f32 %v960_v30, %v800_v58  ;;  %v1268_v60 = vpop.f32.mrb[44].mxu0  ;;  %v1350_v61 = vpop.f32.mrb[44].mxu1 }
 0x152   : > { %v998_v63 = vadd.f32 %v1350_v61, %v837_v13  ;;  %v1269_v0 = vpop.f32.mrb[45].mxu0  ;;  %v989_v1 = vpop.f32.mrb[45].mxu1 }
 0x153   : > { %1025 = vst.msk [vmem:[%s1647_s8 + $0xa8] sm:$0xff] %vm633_vm0, %v961_v59  ;;  %v1270_v44 = vadd.f32 %v1269_v0, %v1268_v60  ;;  %v990_v3 = vadd.f32 %v989_v1, %v829_v62  ;;  %v1271_v4 = vpop.f32.mrb[46].mxu0  ;;  %v1351_v5 = vpop.f32.mrb[46].mxu1 }
 0x154   : > { %1034 = vst.msk [vmem:[%s1647_s8 + $0xf0] sm:$0xff] %vm633_vm0, %v998_v63  ;;  %v1001_v6 = vadd.f32 %v1351_v5, %v840_v2  ;;  %v1272_v7 = vpop.f32.mrb[47].mxu0  ;;  %v992_v9 = vpop.f32.mrb[47].mxu1 }
 0x155   : > { %v805_v10 = vadd.f32 %v1270_v44, %v1641_v50  ;;  %1032 = vst.msk [vmem:[%s1647_s8 + $0xe0] sm:$0xff] %vm633_vm0, %v990_v3  ;;  %v1273_v49 = vadd.f32 %v1272_v7, %v1271_v4  ;;  %v993_v11 = vadd.f32 %v992_v9, %v832_v32 }
 0x156   : > { %1035 = vst.msk [vmem:[%s1647_s8 + $0xf8] sm:$0xff] %vm633_vm0, %v1001_v6 }
 0x157   : > { %v966_v12 = vadd.f32 %v1700_v22, %v805_v10  ;;  %v808_v14 = vadd.f32 %v1273_v49, %v1641_v50  ;;  %1033 = vst.msk [vmem:[%s1647_s8 + $0xe8] sm:$0xff] %vm633_vm0, %v993_v11 }
 0x159   : > { %1026 = vst.msk [vmem:[%s1647_s8 + $0xb0] sm:$0xff] %vm633_vm0, %v966_v12  ;;  %v969_v37 = vadd.f32 %v1704_v28, %v808_v14 }
 0x15b   : > { %1027 = vst.msk [vmem:[%s1647_s8 + $0xb8] sm:$0xff] %vm633_vm0, %v969_v37 }
 0x15c PF: > { %s13_s12 = sadd.s32 1, %s1465_s12  }
 0x15d   : > { %p10_p4 = scmp.ge.s32.totalorder %s13_s12, 4  }
 0x15f   :  { %12 = sbr.rel (!%p10_p4) target bundleno = 1 (0x1), region = 62 }

// kernel: _forward.37
= control target key start
LH: loop header
LB: loop body
LE: loop exit
PB: predicated region body
PF: predicated region fallthrough
CT: control target
= control target key end

     0   :  { %vm318_vm0 = vcmask 261120   ;;  %vm537_vm1 = vcmask 523264   ;;  %s1020_s1 = inlined_call_operand.vmem [shape: bf16[288,64], index: 1, kind: input, shape index: {}]   ;;  %s1021_s0 = inlined_call_operand.vmem [shape: bf16[128,288], index: 0, kind: input, shape index: {}]   ;;  %s1022_s2 = inlined_call_operand.vmem [shape: f32[1,64], index: 2, kind: input, shape index: {}]   ;;  %s1023_s3 = inlined_call_operand.vmem [shape: f32[128,64], index: 3, kind: output, shape index: {}]  }
   0x1   :  { %v719_v0 = vld [vmem:[%s1020_s1 + $0x40] sm:$0xff]   ;;  %v721_v2 = vld [vmem:[%s1020_s1 + $0x48] sm:$0xff]   ;;  %v723_v4 = vld [vmem:[%s1020_s1 + $0x50] sm:$0xff]  }
   0x2   :  { %v720_v1 = vld [vmem:[%s1020_s1] sm:$0xff]   ;;  %609 = vmatprep.subr.bf16.mxu0 %v719_v0  ;;  %703 = vmatprep.subr.bf16.mxu1 %v719_v0  ;;  %v722_v3 = vld [vmem:[%s1020_s1 + $0x8] sm:$0xff]   ;;  %v724_v5 = vld [vmem:[%s1020_s1 + $0x10] sm:$0xff]  }
   0x3   :  { %610 = vmatpush3.bf16.msra.mxu0 %v720_v1  ;;  %711 = vmatpush3.bf16.msra.mxu1 %v720_v1  ;;  %v725_v6 = vld [vmem:[%s1020_s1 + $0x58] sm:$0xff]   ;;  %v727_v8 = vld [vmem:[%s1020_s1 + $0x60] sm:$0xff]   ;;  %v729_v10 = vld [vmem:[%s1020_s1 + $0x68] sm:$0xff]  }
   0x4   :  { %611 = vmatprep.subr.bf16.mxu0 %v721_v2  ;;  %704 = vmatprep.subr.bf16.mxu1 %v721_v2  ;;  %v726_v7 = vld [vmem:[%s1020_s1 + $0x18] sm:$0xff]   ;;  %v728_v9 = vld [vmem:[%s1020_s1 + $0x20] sm:$0xff]   ;;  %v730_v13 = vld [vmem:[%s1020_s1 + $0x28] sm:$0xff]  }
   0x5   :  { %v737_v11 = vld [vmem:[%s1021_s0 + $0x4] ss:$12 sps:$4 sm:$0xff]   ;;  %v740_v12 = vld [vmem:[%s1021_s0 + $0x94] ss:$12 sps:$4 sm:$0xff]   ;;  %v733_v16 = vld [vmem:[%s1020_s1 + $0x78] sm:$0xff]  }
   0x6   :  { %v731_v14 = vld [vmem:[%s1020_s1 + $0x70] sm:$0xff]   ;;  %375 = vmatprep.mubr.bf16.mxu0 %v737_v11  ;;  %423 = vmatprep.mubr.bf16.mxu1 %v740_v12  ;;  %v734_v17 = vld [vmem:[%s1020_s1 + $0x38] sm:$0xff]   ;;  %v735_v18 = vld [vmem:[%s1021_s0] ss:$12 sps:$4 sm:$0xff]  }
   0x7   :  { %612 = vmatpush3.bf16.msra.mxu0 %v722_v3  ;;  %712 = vmatpush3.bf16.msra.mxu1 %v722_v3  ;;  %v732_v15 = vld [vmem:[%s1020_s1 + $0x30] sm:$0xff]   ;;  %v741_v19 = vld [vmem:[%s1020_s1 + $0x80] sm:$0xff]   ;;  %v742_v21 = vld [vmem:[%s1021_s0 + $0x1c] ss:$12 sps:$4 sm:$0xff]  }
   0x8   :  { %613 = vmatprep.subr.bf16.mxu0 %v723_v4  ;;  %705 = vmatprep.subr.bf16.mxu1 %v723_v4  ;;  %v738_v20 = vld [vmem:[%s1021_s0 + $0x90] ss:$12 sps:$4 sm:$0xff]   ;;  %v744_v22 = vld [vmem:[%s1021_s0 + $0xac] ss:$12 sps:$4 sm:$0xff]   ;;  %v747_v25 = vld [vmem:[%s1021_s0 + $0xa8] ss:$12 sps:$4 sm:$0xff]  }
   0x9   :  { %v748_v23 = vld [vmem:[%s1020_s1 + $0x88] sm:$0xff]   ;;  %v746_v24 = vld [vmem:[%s1021_s0 + $0x18] ss:$12 sps:$4 sm:$0xff]   ;;  %v749_v26 = vld [vmem:[%s1021_s0 + $0x34] ss:$12 sps:$4 sm:$0xff]  }
   0xa   :  { %v751_v27 = vld [vmem:[%s1021_s0 + $0x8] ss:$12 sps:$4 sm:$0xff]   ;;  %v752_v28 = vld [vmem:[%s1021_s0 + $0x30] ss:$12 sps:$4 sm:$0xff]   ;;  %v753_v29 = vld [vmem:[%s1021_s0 + $0x20] ss:$12 sps:$4 sm:$0xff]  }
   0xb   :  { %614 = vmatpush3.bf16.msra.mxu0 %v724_v5  ;;  %713 = vmatpush3.bf16.msra.mxu1 %v724_v5  ;;  %v754_v30 = vld [vmem:[%s1021_s0 + $0x4c] ss:$12 sps:$4 sm:$0xff]   ;;  %v757_v32 = vld [vmem:[%s1021_s0 + $0x48] ss:$12 sps:$4 sm:$0xff]   ;;  %v758_v33 = vld [vmem:[%s1021_s0 + $0x50] ss:$12 sps:$4 sm:$0xff]  }
   0xc   :  { %615 = vmatprep.subr.bf16.mxu0 %v725_v6  ;;  %706 = vmatprep.subr.bf16.mxu1 %v725_v6  ;;  %v756_v31 = vld [vmem:[%s1021_s0 + $0x38] ss:$12 sps:$4 sm:$0xff]   ;;  %v761_v35 = vld [vmem:[%s1021_s0 + $0x68] ss:$12 sps:$4 sm:$0xff]   ;;  %v762_v36 = vld [vmem:[%s1021_s0 + $0x60] ss:$12 sps:$4 sm:$0xff]  }
   0xd   :  { %v759_v34 = vld [vmem:[%s1021_s0 + $0x64] ss:$12 sps:$4 sm:$0xff]   ;;  %v763_v37 = vld [vmem:[%s1021_s0 + $0x80] ss:$12 sps:$4 sm:$0xff]   ;;  %v764_v38 = vld [vmem:[%s1021_s0 + $0x7c] ss:$12 sps:$4 sm:$0xff]  }
   0xe   :  { %v766_v39 = vld [vmem:[%s1021_s0 + $0x98] ss:$12 sps:$4 sm:$0xff]   ;;  %v768_v41 = vld [vmem:[%s1021_s0 + $0xb0] ss:$12 sps:$4 sm:$0xff]   ;;  %v934_v2 = vld [vmem:[%s1022_s2] ss:$0 sm:$0xff] }
   0xf   :  { %616 = vmatpush3.bf16.msra.mxu0 %v726_v7  ;;  %714 = vmatpush3.bf16.msra.mxu1 %v726_v7  ;;  %v767_v40 = vld [vmem:[%s1021_s0 + $0x78] ss:$12 sps:$4 sm:$0xff]  }
  0x10   :  { %617 = vmatprep.subr.bf16.mxu0 %v727_v8  ;;  %707 = vmatprep.subr.bf16.mxu1 %v727_v8 }
  0x13   :  { %618 = vmatpush3.bf16.msra.mxu0 %v728_v9  ;;  %715 = vmatpush3.bf16.msra.mxu1 %v728_v9 }
  0x14   :  { %619 = vmatprep.subr.bf16.mxu0 %v729_v10  ;;  %708 = vmatprep.subr.bf16.mxu1 %v729_v10 }
  0x17   :  { %620 = vmatpush3.bf16.msra.mxu0 %v730_v13  ;;  %716 = vmatpush3.bf16.msra.mxu1 %v730_v13 }
  0x18   :  { %621 = vmatprep.subr.bf16.mxu0 %v731_v14  ;;  %709 = vmatprep.subr.bf16.mxu1 %v731_v14 }
  0x1b   :  { %622 = vmatpush3.bf16.msra.mxu0 %v732_v15  ;;  %717 = vmatpush3.bf16.msra.mxu1 %v732_v15 }
  0x1c   :  { %623 = vmatprep.subr.bf16.mxu0 %v733_v16  ;;  %710 = vmatprep.subr.bf16.mxu1 %v733_v16 }
  0x1f   :  { %624 = vmatpush3.bf16.msra.mxu0 %v734_v17  ;;  %718 = vmatpush3.bf16.msra.mxu1 %v734_v17 }
  0x20   :  { %683 = vmatprep.subr.bf16.mxu1 %v741_v19 }
  0x22   :  { %376 = vmatmul.mubr.bf16.vlgmr.msra.gmra.mrb[0].mxu0 %v735_v18  ;;  %424 = vmatmul.mubr.bf16.vlgmr.msra.gmra.mrb[0].mxu1 %v738_v20 }
  0x23   :  { %684 = vmatpush3.bf16.msra.mxu1 %v741_v19  ;;  %383 = vmatprep.mubr.bf16.mxu0 %v742_v21 }
  0x24   :  { %431 = vmatprep.mubr.bf16.mxu1 %v744_v22  ;;  %685 = vmatprep.subr.bf16.mxu1 %v748_v23 }
  0x27   :  { %686 = vmatpush3.bf16.msra.mxu1 %v748_v23 }
  0x2a   :  { %384 = vmatmul.mubr.bf16.gmra.mrb[4].mxu0 %v746_v24  ;;  %432 = vmatmul.mubr.bf16.gmra.mrb[4].mxu1 %v747_v25 }
  0x2b   :  { %391 = vmatprep.mubr.bf16.mxu0 %v749_v26  ;;  %687 = vmatprep.mubr.msk.bf16.mxu1 %vm318_vm0, %v751_v27 }
  0x32   :  { %392 = vmatmul.mubr.bf16.gmra.mrb[8].mxu0 %v752_v28  ;;  %688 = vmatmul.mubr.msk.bf16.vlgmr.msra.gmra.mrb[8].mxu1 %vm318_vm0, %v753_v29 }
  0x33   :  { %399 = vmatprep.mubr.bf16.mxu0 %v754_v30  ;;  %691 = vmatprep.mubr.msk.bf16.mxu1 %vm318_vm0, %v756_v31 }
  0x3a   :  { %400 = vmatmul.mubr.bf16.gmra.mrb[12].mxu0 %v757_v32  ;;  %692 = vmatmul.mubr.msk.bf16.gmra.mrb[12].mxu1 %vm318_vm0, %v758_v33 }
  0x3b   :  { %407 = vmatprep.mubr.bf16.mxu0 %v759_v34  ;;  %695 = vmatprep.mubr.msk.bf16.mxu1 %vm318_vm0, %v761_v35 }
  0x42   :  { %408 = vmatmul.mubr.bf16.gmra.mrb[16].mxu0 %v762_v36  ;;  %696 = vmatmul.mubr.msk.bf16.gmra.mrb[16].mxu1 %vm318_vm0, %v763_v37 }
  0x43   :  { %415 = vmatprep.mubr.bf16.mxu0 %v764_v38  ;;  %699 = vmatprep.mubr.msk.bf16.mxu1 %vm318_vm0, %v766_v39 }
  0x4a   :  { %416 = vmatmul.mubr.bf16.gmra.mrb[20].mxu0 %v767_v40  ;;  %700 = vmatmul.mubr.msk.bf16.gmra.mrb[20].mxu1 %vm318_vm0, %v768_v41 }
  0xf5   :  { %v625_v42 = vpop.f32.mrb[0].mxu0  ;;  %v661_v43 = vpop.f32.mrb[0].mxu1 }
  0xf6   :  { %v626_v44 = vpop.f32.mrb[1].mxu0  ;;  %v662_v45 = vpop.f32.mrb[1].mxu1 }
  0xf7   :  { %v627_v46 = vadd.f32 %v626_v44, %v625_v42  ;;  %v628_v47 = vpop.f32.mrb[2].mxu0  ;;  %v923_v48 = vadd.f32 %v662_v45, %v661_v43  ;;  %v664_v49 = vpop.f32.mrb[2].mxu1 }
  0xf8   :  { %v629_v50 = vpop.f32.mrb[3].mxu0  ;;  %v665_v51 = vpop.f32.mrb[3].mxu1 }
  0xf9   :  { %v630_v52 = vadd.f32 %v629_v50, %v628_v47  ;;  %v925_v53 = vadd.f32 %v665_v51, %v664_v49  ;;  %v378_v6 = vadd.f32 %v627_v46, %v934_v2 }
  0xfb   :  { %v381_v15 = vadd.f32 %v630_v52, %v934_v2 }
  0xfd   :  { %v631_v54 = vpop.f32.mrb[4].mxu0  ;;  %v667_v55 = vpop.f32.mrb[4].mxu1 }
  0xfe   :  { %v632_v56 = vpop.f32.mrb[5].mxu0  ;;  %v668_v57 = vpop.f32.mrb[5].mxu1 }
  0xff   :  { %v633_v58 = vadd.f32 %v632_v56, %v631_v54  ;;  %v634_v59 = vpop.f32.mrb[6].mxu0  ;;  %v927_v60 = vadd.f32 %v668_v57, %v667_v55  ;;  %v670_v61 = vpop.f32.mrb[6].mxu1 }
 0x100   :  { %v635_v62 = vpop.f32.mrb[7].mxu0  ;;  %v671_v63 = vpop.f32.mrb[7].mxu1 }
 0x101   :  { %v636_v0 = vadd.f32 %v635_v62, %v634_v59  ;;  %v929_v1 = vadd.f32 %v671_v63, %v670_v61  ;;  %v386_v3 = vadd.f32 %v633_v58, %v934_v2  ;;  %v434_v54 = vadd.f32 %v927_v60, %v934_v2 }
 0x102   :  { %v426_v58 = vadd.f32 %v923_v48, %v934_v2 }
 0x103   :  { %v389_v10 = vadd.f32 %v636_v0, %v934_v2  ;;  %v437_v63 = vadd.f32 %v929_v1, %v934_v2 }
 0x105   :  { %v637_v4 = vpop.f32.mrb[8].mxu0  ;;  %v689_v5 = vpop.f32.mrb[8].mxu1 }
 0x106   :  { %v483_v7 = vadd.f32 %v689_v5, %v386_v3  ;;  %v638_v8 = vpop.f32.mrb[9].mxu0  ;;  %v474_v9 = vpop.f32.mrb[9].mxu1  ;;  %v429_v5 = vadd.f32 %v925_v53, %v934_v2 }
 0x107   :  { %v639_v11 = vadd.f32 %v638_v8, %v637_v4  ;;  %v475_v12 = vadd.f32 %v474_v9, %v378_v6  ;;  %v640_v13 = vpop.f32.mrb[10].mxu0  ;;  %v690_v14 = vpop.f32.mrb[10].mxu1 }
 0x108   :  { %540 = vst.msk [vmem:[%s1023_s3 + $0x10] sm:$0xff] %vm537_vm1, %v483_v7  ;;  %v486_v16 = vadd.f32 %v690_v14, %v389_v10  ;;  %v641_v17 = vpop.f32.mrb[11].mxu0  ;;  %v477_v18 = vpop.f32.mrb[11].mxu1 }
 0x109   :  { %538 = vst.msk [vmem:[%s1023_s3] sm:$0xff] %vm537_vm1, %v475_v12  ;;  %v642_v19 = vadd.f32 %v641_v17, %v640_v13  ;;  %v478_v20 = vadd.f32 %v477_v18, %v381_v15  ;;  %v394_v23 = vadd.f32 %v639_v11, %v934_v2 }
 0x10a   :  { %541 = vst.msk [vmem:[%s1023_s3 + $0x18] sm:$0xff] %vm537_vm1, %v486_v16 }
 0x10b   :  { %539 = vst.msk [vmem:[%s1023_s3 + $0x8] sm:$0xff] %vm537_vm1, %v478_v20  ;;  %v397_v30 = vadd.f32 %v642_v19, %v934_v2 }
 0x10d   :  { %v643_v21 = vpop.f32.mrb[12].mxu0  ;;  %v693_v22 = vpop.f32.mrb[12].mxu1 }
 0x10e   :  { %v644_v24 = vpop.f32.mrb[13].mxu0  ;;  %v490_v25 = vpop.f32.mrb[13].mxu1 }
 0x10f   :  { %v645_v26 = vadd.f32 %v644_v24, %v643_v21  ;;  %v491_v27 = vadd.f32 %v490_v25, %v394_v23  ;;  %v646_v28 = vpop.f32.mrb[14].mxu0  ;;  %v694_v29 = vpop.f32.mrb[14].mxu1 }
 0x110   :  { %v647_v31 = vpop.f32.mrb[15].mxu0  ;;  %v493_v32 = vpop.f32.mrb[15].mxu1 }
 0x111   :  { %v402_v33 = vadd.f32 %v645_v26, %v934_v2  ;;  %542 = vst.msk [vmem:[%s1023_s3 + $0x20] sm:$0xff] %vm537_vm1, %v491_v27  ;;  %v648_v34 = vadd.f32 %v647_v31, %v646_v28  ;;  %v494_v35 = vadd.f32 %v493_v32, %v397_v30 }
 0x113   :  { %v499_v36 = vadd.f32 %v693_v22, %v402_v33  ;;  %v405_v37 = vadd.f32 %v648_v34, %v934_v2  ;;  %543 = vst.msk [vmem:[%s1023_s3 + $0x28] sm:$0xff] %vm537_vm1, %v494_v35 }
 0x115   :  { %544 = vst.msk [vmem:[%s1023_s3 + $0x30] sm:$0xff] %vm537_vm1, %v499_v36  ;;  %v502_v38 = vadd.f32 %v694_v29, %v405_v37  ;;  %v649_v39 = vpop.f32.mrb[16].mxu0  ;;  %v697_v40 = vpop.f32.mrb[16].mxu1 }
 0x116   :  { %v650_v41 = vpop.f32.mrb[17].mxu0  ;;  %v506_v42 = vpop.f32.mrb[17].mxu1 }
 0x117   :  { %545 = vst.msk [vmem:[%s1023_s3 + $0x38] sm:$0xff] %vm537_vm1, %v502_v38  ;;  %v651_v43 = vadd.f32 %v650_v41, %v649_v39  ;;  %v652_v44 = vpop.f32.mrb[18].mxu0  ;;  %v698_v45 = vpop.f32.mrb[18].mxu1 }
 0x118   :  { %v653_v46 = vpop.f32.mrb[19].mxu0  ;;  %v509_v47 = vpop.f32.mrb[19].mxu1 }
 0x119   :  { %v410_v49 = vadd.f32 %v651_v43, %v934_v2  ;;  %v654_v50 = vadd.f32 %v653_v46, %v652_v44 }
 0x11b   :  { %v507_v51 = vadd.f32 %v506_v42, %v410_v49  ;;  %v413_v52 = vadd.f32 %v654_v50, %v934_v2 }
 0x11d   :  { %546 = vst.msk [vmem:[%s1023_s3 + $0x40] sm:$0xff] %vm537_vm1, %v507_v51  ;;  %v510_v55 = vadd.f32 %v509_v47, %v413_v52  ;;  %v655_v56 = vpop.f32.mrb[20].mxu0  ;;  %v701_v57 = vpop.f32.mrb[20].mxu1 }
 0x11e   :  { %v531_v59 = vadd.f32 %v701_v57, %v434_v54  ;;  %v656_v61 = vpop.f32.mrb[21].mxu0  ;;  %v522_v62 = vpop.f32.mrb[21].mxu1 }
 0x11f   :  { %547 = vst.msk [vmem:[%s1023_s3 + $0x48] sm:$0xff] %vm537_vm1, %v510_v55  ;;  %v657_v60 = vadd.f32 %v656_v61, %v655_v56  ;;  %v523_v0 = vadd.f32 %v522_v62, %v426_v58  ;;  %v658_v3 = vpop.f32.mrb[22].mxu0  ;;  %v702_v4 = vpop.f32.mrb[22].mxu1 }
 0x120   :  { %552 = vst.msk [vmem:[%s1023_s3 + $0x70] sm:$0xff] %vm537_vm1, %v531_v59  ;;  %v534_v48 = vadd.f32 %v702_v4, %v437_v63  ;;  %v659_v6 = vpop.f32.mrb[23].mxu0  ;;  %v525_v1 = vpop.f32.mrb[23].mxu1 }
 0x121   :  { %v418_v7 = vadd.f32 %v657_v60, %v934_v2  ;;  %550 = vst.msk [vmem:[%s1023_s3 + $0x60] sm:$0xff] %vm537_vm1, %v523_v0  ;;  %v660_v8 = vadd.f32 %v659_v6, %v658_v3  ;;  %v526_v9 = vadd.f32 %v525_v1, %v429_v5 }
 0x122   :  { %553 = vst.msk [vmem:[%s1023_s3 + $0x78] sm:$0xff] %vm537_vm1, %v534_v48 }
 0x123   :  { %v515_v53 = vadd.f32 %v697_v40, %v418_v7  ;;  %v421_v10 = vadd.f32 %v660_v8, %v934_v2  ;;  %551 = vst.msk [vmem:[%s1023_s3 + $0x68] sm:$0xff] %vm537_vm1, %v526_v9 }
 0x125   :  { %548 = vst.msk [vmem:[%s1023_s3 + $0x50] sm:$0xff] %vm537_vm1, %v515_v53  ;;  %v518_v11 = vadd.f32 %v698_v45, %v421_v10 }
 0x127   :  { %549 = vst.msk [vmem:[%s1023_s3 + $0x58] sm:$0xff] %vm537_vm1, %v518_v11 }

// kernel: _forward.38
= control target key start
LH: loop header
LB: loop body
LE: loop exit
PB: predicated region body
PF: predicated region fallthrough
CT: control target
= control target key end

     0   :  { %vm124_vm0 = vcmask 523264   ;;  %s323_s0 = inlined_call_operand.vmem [shape: f32[128,64], index: 0, kind: input, shape index: {}]   ;;  %s324_s1 = inlined_call_operand.vmem [shape: f32[1,64], index: 1, kind: input, shape index: {}]   ;;  %s325_s2 = inlined_call_operand.vmem [shape: f32[1,64], index: 2, kind: input, shape index: {}]   ;;  %s326_s3 = inlined_call_operand.vmem [shape: f32[128,64], index: 3, kind: output, shape index: {}]  }
   0x1   :  { %v14_v0 = vld [vmem:[%s323_s0] sm:$0xff]  ;;  %v15_v4 = vld [vmem:[%s323_s0 + $0x8] sm:$0xff]  ;;  %v16_v5 = vld [vmem:[%s323_s0 + $0x10] sm:$0xff] }
   0x2   :  { %v173_v1 = vld [vmem:[%s324_s1] ss:$0 sm:$0xff]  ;;  %v17_v6 = vld [vmem:[%s323_s0 + $0x18] sm:$0xff]  ;;  %v19_v11 = vld [vmem:[%s323_s0 + $0x28] sm:$0xff] }
   0x3   :  { %v178_v2 = vld [vmem:[%s325_s2] ss:$0 sm:$0xff]  ;;  %v37_v3 = vmul.f32 %v173_v1, %v14_v0  ;;  %v38_v7 = vmul.f32 %v173_v1, %v15_v4  ;;  %v39_v8 = vmul.f32 %v173_v1, %v16_v5  ;;  %v40_v9 = vmul.f32 %v173_v1, %v17_v6  ;;  %v20_v12 = vld [vmem:[%s323_s0 + $0x30] sm:$0xff]  ;;  %v21_v17 = vld [vmem:[%s323_s0 + $0x38] sm:$0xff] }
   0x4   :  { %v18_v10 = vld [vmem:[%s323_s0 + $0x20] sm:$0xff]  ;;  %v42_v15 = vmul.f32 %v173_v1, %v19_v11  ;;  %v43_v16 = vmul.f32 %v173_v1, %v20_v12  ;;  %v44_v21 = vmul.f32 %v173_v1, %v21_v17  ;;  %v23_v30 = vld [vmem:[%s323_s0 + $0x48] sm:$0xff]  ;;  %v24_v31 = vld [vmem:[%s323_s0 + $0x50] sm:$0xff] }
   0x5   :  { %v60_v13 = vadd.f32 %v178_v2, %v37_v3  ;;  %v41_v14 = vmul.f32 %v173_v1, %v18_v10  ;;  %v61_v18 = vadd.f32 %v178_v2, %v38_v7  ;;  %v62_v19 = vadd.f32 %v178_v2, %v39_v8  ;;  %v22_v29 = vld [vmem:[%s323_s0 + $0x40] sm:$0xff]  ;;  %v25_v43 = vld [vmem:[%s323_s0 + $0x58] sm:$0xff]  ;;  %v27_v45 = vld [vmem:[%s323_s0 + $0x68] sm:$0xff] }
   0x6   :  { %v63_v20 = vadd.f32 %v178_v2, %v40_v9  ;;  %v65_v24 = vadd.f32 %v178_v2, %v42_v15  ;;  %v66_v37 = vadd.f32 %v178_v2, %v43_v16  ;;  %v67_v38 = vadd.f32 %v178_v2, %v44_v21  ;;  %v26_v44 = vld [vmem:[%s323_s0 + $0x60] sm:$0xff]  ;;  %v28_v56 = vld [vmem:[%s323_s0 + $0x70] sm:$0xff]  ;;  %v29_v4 = vld [vmem:[%s323_s0 + $0x78] sm:$0xff] }
   0x7   :  { %vm76_vm1 = vcmp.ge.f32.partialorder %v60_v13, 0.0  ;;  %v92_v22 = vmul.f32 0.25, %v60_v13  ;;  %v64_v23 = vadd.f32 %v178_v2, %v41_v14  ;;  %vm77_vm2 = vcmp.ge.f32.partialorder %v61_v18, 0.0 }
   0x8   :  { %v93_v25 = vmul.f32 0.25, %v61_v18  ;;  %vm78_vm3 = vcmp.ge.f32.partialorder %v62_v19, 0.0  ;;  %v94_v26 = vmul.f32 0.25, %v62_v19  ;;  %vm79_vm4 = vcmp.ge.f32.partialorder %v63_v20, 0.0 }
   0x9   :  { %v108_v27 = vsel %vm76_vm1, %v60_v13, %v92_v22  ;;  %v95_v28 = vmul.f32 0.25, %v63_v20  ;;  %vm80_vm5 = vcmp.ge.f32.partialorder %v64_v23, 0.0  ;;  %v96_v34 = vmul.f32 0.25, %v64_v23 }
   0xa   :  { %125 = vst.msk [vmem:[%s326_s3] sm:$0xff] %vm124_vm0, %v108_v27  ;;  %v109_v32 = vsel %vm77_vm2, %v61_v18, %v93_v25  ;;  %v110_v33 = vsel %vm78_vm3, %v62_v19, %v94_v26  ;;  %vm81_vm6 = vcmp.ge.f32.partialorder %v65_v24, 0.0  ;;  %v97_v36 = vmul.f32 0.25, %v65_v24 }
   0xb   :  { %126 = vst.msk [vmem:[%s326_s3 + $0x8] sm:$0xff] %vm124_vm0, %v109_v32  ;;  %127 = vst.msk [vmem:[%s326_s3 + $0x10] sm:$0xff] %vm124_vm0, %v110_v33  ;;  %v111_v35 = vsel %vm79_vm4, %v63_v20, %v95_v28  ;;  %v112_v39 = vsel %vm80_vm5, %v64_v23, %v96_v34  ;;  %v45_v40 = vmul.f32 %v173_v1, %v22_v29  ;;  %vm82_vm7 = vcmp.ge.f32.partialorder %v66_v37, 0.0 }
   0xc   :  { %128 = vst.msk [vmem:[%s326_s3 + $0x18] sm:$0xff] %vm124_vm0, %v111_v35  ;;  %v46_v41 = vmul.f32 %v173_v1, %v23_v30  ;;  %v47_v42 = vmul.f32 %v173_v1, %v24_v31  ;;  %129 = vst.msk [vmem:[%s326_s3 + $0x20] sm:$0xff] %vm124_vm0, %v112_v39  ;;  %v113_v46 = vsel %vm81_vm6, %v65_v24, %v97_v36  ;;  %v98_v47 = vmul.f32 0.25, %v66_v37 }
   0xd   :  { %vm83_vm8 = vcmp.ge.f32.partialorder %v67_v38, 0.0  ;;  %130 = vst.msk [vmem:[%s326_s3 + $0x28] sm:$0xff] %vm124_vm0, %v113_v46  ;;  %v99_v48 = vmul.f32 0.25, %v67_v38  ;;  %v68_v49 = vadd.f32 %v178_v2, %v45_v40  ;;  %v48_v53 = vmul.f32 %v173_v1, %v25_v43 }
   0xe   :  { %v69_v50 = vadd.f32 %v178_v2, %v46_v41  ;;  %v70_v51 = vadd.f32 %v178_v2, %v47_v42  ;;  %v114_v52 = vsel %vm82_vm7, %v66_v37, %v98_v47  ;;  %v49_v54 = vmul.f32 %v173_v1, %v26_v44 }
   0xf   :  { %v50_v55 = vmul.f32 %v173_v1, %v27_v45  ;;  %131 = vst.msk [vmem:[%s326_s3 + $0x30] sm:$0xff] %vm124_vm0, %v114_v52  ;;  %v115_v57 = vsel %vm83_vm8, %v67_v38, %v99_v48  ;;  %vm84_vm9 = vcmp.ge.f32.partialorder %v68_v49, 0.0  ;;  %v100_v58 = vmul.f32 0.25, %v68_v49 }
  0x10   :  { %vm85_vm10 = vcmp.ge.f32.partialorder %v69_v50, 0.0  ;;  %132 = vst.msk [vmem:[%s326_s3 + $0x38] sm:$0xff] %vm124_vm0, %v115_v57  ;;  %v101_v59 = vmul.f32 0.25, %v69_v50  ;;  %vm86_vm11 = vcmp.ge.f32.partialorder %v70_v51, 0.0  ;;  %v102_v60 = vmul.f32 0.25, %v70_v51 }
  0x11   :  { %v71_v61 = vadd.f32 %v178_v2, %v48_v53  ;;  %v116_v62 = vsel %vm84_vm9, %v68_v49, %v100_v58  ;;  %v72_v63 = vadd.f32 %v178_v2, %v49_v54  ;;  %v73_v0 = vadd.f32 %v178_v2, %v50_v55 }
  0x12   :  { %v51_v3 = vmul.f32 %v173_v1, %v28_v56  ;;  %133 = vst.msk [vmem:[%s326_s3 + $0x40] sm:$0xff] %vm124_vm0, %v116_v62  ;;  %v117_v5 = vsel %vm85_vm10, %v69_v50, %v101_v59  ;;  %v118_v6 = vsel %vm86_vm11, %v70_v51, %v102_v60  ;;  %v52_v12 = vmul.f32 %v173_v1, %v29_v4 }
  0x13   :  { %vm87_vm12 = vcmp.ge.f32.partialorder %v71_v61, 0.0  ;;  %v103_v7 = vmul.f32 0.25, %v71_v61  ;;  %134 = vst.msk [vmem:[%s326_s3 + $0x48] sm:$0xff] %vm124_vm0, %v117_v5  ;;  %135 = vst.msk [vmem:[%s326_s3 + $0x50] sm:$0xff] %vm124_vm0, %v118_v6  ;;  %vm88_vm13 = vcmp.ge.f32.partialorder %v72_v63, 0.0  ;;  %v104_v8 = vmul.f32 0.25, %v72_v63 }
  0x14   :  { %vm89_vm14 = vcmp.ge.f32.partialorder %v73_v0, 0.0  ;;  %v105_v9 = vmul.f32 0.25, %v73_v0  ;;  %v74_v11 = vadd.f32 %v178_v2, %v51_v3  ;;  %v75_v1 = vadd.f32 %v178_v2, %v52_v12 }
  0x15   :  { %v119_v10 = vsel %vm87_vm12, %v71_v61, %v103_v7  ;;  %v120_v13 = vsel %vm88_vm13, %v72_v63, %v104_v8 }
  0x16   :  { %136 = vst.msk [vmem:[%s326_s3 + $0x58] sm:$0xff] %vm124_vm0, %v119_v10  ;;  %v121_v14 = vsel %vm89_vm14, %v73_v0, %v105_v9  ;;  %137 = vst.msk [vmem:[%s326_s3 + $0x60] sm:$0xff] %vm124_vm0, %v120_v13  ;;  %vm90_vm15 = vcmp.ge.f32.partialorder %v74_v11, 0.0  ;;  %v106_v15 = vmul.f32 0.25, %v74_v11  ;;  %vm91_vm1 = vcmp.ge.f32.partialorder %v75_v1, 0.0 }
  0x17   :  { %138 = vst.msk [vmem:[%s326_s3 + $0x68] sm:$0xff] %vm124_vm0, %v121_v14  ;;  %v107_v17 = vmul.f32 0.25, %v75_v1 }
  0x18   :  { %v122_v16 = vsel %vm90_vm15, %v74_v11, %v106_v15 }
  0x19   :  { %139 = vst.msk [vmem:[%s326_s3 + $0x70] sm:$0xff] %vm124_vm0, %v122_v16  ;;  %v123_v18 = vsel %vm91_vm1, %v75_v1, %v107_v17 }
  0x1a   :  { %140 = vst.msk [vmem:[%s326_s3 + $0x78] sm:$0xff] %vm124_vm0, %v123_v18 }

// kernel: _forward.40
= control target key start
LH: loop header
LB: loop body
LE: loop exit
PB: predicated region body
PF: predicated region fallthrough
CT: control target
= control target key end

     0   :  { %vm159_vm0 = vcmask 523264   ;;  %s412_s0 = inlined_call_operand.vmem [shape: f32[128,64], index: 0, kind: input, shape index: {}]   ;;  %s413_s2 = inlined_call_operand.vmem [shape: f32[1,64], index: 2, kind: input, shape index: {}]   ;;  %s414_s3 = inlined_call_operand.vmem [shape: f32[1,64], index: 3, kind: input, shape index: {}]   ;;  %s415_s1 = inlined_call_operand.vmem [shape: f32[128,64], index: 1, kind: input, shape index: {}]   ;;  %s416_s4 = inlined_call_operand.vmem [shape: f32[128,64], index: 4, kind: output, shape index: {}]  }
   0x1   :  { %v17_v0 = vld [vmem:[%s412_s0] sm:$0xff]  ;;  %v18_v4 = vld [vmem:[%s412_s0 + $0x8] sm:$0xff]  ;;  %v19_v6 = vld [vmem:[%s412_s0 + $0x10] sm:$0xff] }
   0x2   :  { %v213_v1 = vld [vmem:[%s413_s2] ss:$0 sm:$0xff]  ;;  %v20_v7 = vld [vmem:[%s412_s0 + $0x18] sm:$0xff]  ;;  %v22_v14 = vld [vmem:[%s412_s0 + $0x28] sm:$0xff] }
   0x3   :  { %v218_v2 = vld [vmem:[%s414_s3] ss:$0 sm:$0xff]  ;;  %v40_v3 = vmul.f32 %v213_v1, %v17_v0  ;;  %v41_v5 = vmul.f32 %v213_v1, %v18_v4  ;;  %v42_v9 = vmul.f32 %v213_v1, %v19_v6  ;;  %v43_v10 = vmul.f32 %v213_v1, %v20_v7  ;;  %v128_v20 = vld [vmem:[%s415_s1 + $0x8] sm:$0xff]  ;;  %v129_v25 = vld [vmem:[%s415_s1 + $0x10] sm:$0xff] }
   0x4   :  { %v21_v11 = vld [vmem:[%s412_s0 + $0x20] sm:$0xff]  ;;  %v45_v22 = vmul.f32 %v213_v1, %v22_v14  ;;  %v23_v26 = vld [vmem:[%s412_s0 + $0x30] sm:$0xff]  ;;  %v24_v27 = vld [vmem:[%s412_s0 + $0x38] sm:$0xff] }
   0x5   :  { %v63_v8 = vadd.f32 %v218_v2, %v40_v3  ;;  %v64_v12 = vadd.f32 %v218_v2, %v41_v5  ;;  %v44_v13 = vmul.f32 %v213_v1, %v21_v11  ;;  %v127_v16 = vld [vmem:[%s415_s1] sm:$0xff]  ;;  %v65_v17 = vadd.f32 %v218_v2, %v42_v9  ;;  %v130_v31 = vld [vmem:[%s415_s1 + $0x18] sm:$0xff]  ;;  %v26_v42 = vld [vmem:[%s412_s0 + $0x48] sm:$0xff] }
   0x6   :  { %v66_v18 = vadd.f32 %v218_v2, %v43_v10  ;;  %v131_v35 = vld [vmem:[%s415_s1 + $0x20] sm:$0xff]  ;;  %v68_v36 = vadd.f32 %v218_v2, %v45_v22  ;;  %v46_v40 = vmul.f32 %v213_v1, %v23_v26  ;;  %v47_v41 = vmul.f32 %v213_v1, %v24_v27  ;;  %v27_v43 = vld [vmem:[%s412_s0 + $0x50] sm:$0xff]  ;;  %v28_v44 = vld [vmem:[%s412_s0 + $0x58] sm:$0xff] }
   0x7   :  { %vm79_vm1 = vcmp.ge.f32.partialorder %v63_v8, 0.0  ;;  %v95_v15 = vmul.f32 0.25, %v63_v8  ;;  %vm80_vm2 = vcmp.ge.f32.partialorder %v64_v12, 0.0  ;;  %v96_v19 = vmul.f32 0.25, %v64_v12  ;;  %v25_v37 = vld [vmem:[%s412_s0 + $0x40] sm:$0xff]  ;;  %v132_v48 = vld [vmem:[%s415_s1 + $0x28] sm:$0xff] }
   0x8   :  { %v67_v21 = vadd.f32 %v218_v2, %v44_v13  ;;  %vm81_vm3 = vcmp.ge.f32.partialorder %v65_v17, 0.0  ;;  %v97_v24 = vmul.f32 0.25, %v65_v17  ;;  %vm82_vm4 = vcmp.ge.f32.partialorder %v66_v18, 0.0  ;;  %v29_v57 = vld [vmem:[%s412_s0 + $0x60] sm:$0xff]  ;;  %v30_v58 = vld [vmem:[%s412_s0 + $0x68] sm:$0xff]  ;;  %v133_v61 = vld [vmem:[%s415_s1 + $0x30] sm:$0xff] }
   0x9   :  { %v111_v23 = vsel %vm79_vm1, %v63_v8, %v95_v15  ;;  %v112_v29 = vsel %vm80_vm2, %v64_v12, %v96_v19  ;;  %v98_v30 = vmul.f32 0.25, %v66_v18  ;;  %vm84_vm6 = vcmp.ge.f32.partialorder %v68_v36, 0.0  ;;  %v134_v63 = vld [vmem:[%s415_s1 + $0x38] sm:$0xff]  ;;  %v135_v12 = vld [vmem:[%s415_s1 + $0x40] sm:$0xff]  ;;  %v136_v15 = vld [vmem:[%s415_s1 + $0x48] sm:$0xff] }
   0xa   :  { %v143_v28 = vadd.f32 %v127_v16, %v111_v23  ;;  %vm83_vm5 = vcmp.ge.f32.partialorder %v67_v21, 0.0  ;;  %v144_v32 = vadd.f32 %v128_v20, %v112_v29  ;;  %v113_v33 = vsel %vm81_vm3, %v65_v17, %v97_v24  ;;  %v31_v16 = vld [vmem:[%s412_s0 + $0x70] sm:$0xff]  ;;  %v32_v26 = vld [vmem:[%s412_s0 + $0x78] sm:$0xff] }
   0xb   :  { %v99_v34 = vmul.f32 0.25, %v67_v21  ;;  %v145_v38 = vadd.f32 %v129_v25, %v113_v33  ;;  %v114_v39 = vsel %vm82_vm4, %v66_v18, %v98_v30  ;;  %v100_v47 = vmul.f32 0.25, %v68_v36  ;;  %v137_v19 = vld [vmem:[%s415_s1 + $0x50] sm:$0xff] }
   0xc   :  { %160 = vst.msk [vmem:[%s416_s4] sm:$0xff] %vm159_vm0, %v143_v28  ;;  %161 = vst.msk [vmem:[%s416_s4 + $0x8] sm:$0xff] %vm159_vm0, %v144_v32  ;;  %v146_v45 = vadd.f32 %v130_v31, %v114_v39  ;;  %v69_v50 = vadd.f32 %v218_v2, %v46_v40  ;;  %v70_v51 = vadd.f32 %v218_v2, %v47_v41 }
   0xd   :  { %v115_v46 = vsel %vm83_vm5, %v67_v21, %v99_v34  ;;  %162 = vst.msk [vmem:[%s416_s4 + $0x10] sm:$0xff] %vm159_vm0, %v145_v38  ;;  %v48_v52 = vmul.f32 %v213_v1, %v25_v37  ;;  %v116_v53 = vsel %vm84_vm6, %v68_v36, %v100_v47  ;;  %v49_v54 = vmul.f32 %v213_v1, %v26_v42  ;;  %v138_v21 = vld [vmem:[%s415_s1 + $0x58] sm:$0xff]  ;;  %v139_v34 = vld [vmem:[%s415_s1 + $0x60] sm:$0xff]  ;;  %v140_v36 = vld [vmem:[%s415_s1 + $0x68] sm:$0xff] }
   0xe   :  { %v147_v49 = vadd.f32 %v131_v35, %v115_v46  ;;  %163 = vst.msk [vmem:[%s416_s4 + $0x18] sm:$0xff] %vm159_vm0, %v146_v45  ;;  %v50_v55 = vmul.f32 %v213_v1, %v27_v43  ;;  %v51_v56 = vmul.f32 %v213_v1, %v28_v44  ;;  %v148_v59 = vadd.f32 %v132_v48, %v116_v53  ;;  %v141_v43 = vld [vmem:[%s415_s1 + $0x70] sm:$0xff]  ;;  %v142_v48 = vld [vmem:[%s415_s1 + $0x78] sm:$0xff] }
   0xf   :  { %vm85_vm7 = vcmp.ge.f32.partialorder %v69_v50, 0.0  ;;  %v101_v60 = vmul.f32 0.25, %v69_v50  ;;  %vm86_vm8 = vcmp.ge.f32.partialorder %v70_v51, 0.0  ;;  %v102_v62 = vmul.f32 0.25, %v70_v51 }
  0x10   :  { %164 = vst.msk [vmem:[%s416_s4 + $0x20] sm:$0xff] %vm159_vm0, %v147_v49  ;;  %v71_v0 = vadd.f32 %v218_v2, %v48_v52  ;;  %v72_v3 = vadd.f32 %v218_v2, %v49_v54  ;;  %v73_v4 = vadd.f32 %v218_v2, %v50_v55  ;;  %165 = vst.msk [vmem:[%s416_s4 + $0x28] sm:$0xff] %vm159_vm0, %v148_v59 }
  0x11   :  { %v117_v5 = vsel %vm85_vm7, %v69_v50, %v101_v60  ;;  %v74_v6 = vadd.f32 %v218_v2, %v51_v56  ;;  %v52_v7 = vmul.f32 %v213_v1, %v29_v57  ;;  %v53_v8 = vmul.f32 %v213_v1, %v30_v58 }
  0x12   :  { %v149_v9 = vadd.f32 %v133_v61, %v117_v5  ;;  %v118_v10 = vsel %vm86_vm8, %v70_v51, %v102_v62  ;;  %vm87_vm9 = vcmp.ge.f32.partialorder %v71_v0, 0.0  ;;  %v103_v11 = vmul.f32 0.25, %v71_v0 }
  0x13   :  { %v150_v13 = vadd.f32 %v134_v63, %v118_v10  ;;  %vm88_vm10 = vcmp.ge.f32.partialorder %v72_v3, 0.0  ;;  %v104_v14 = vmul.f32 0.25, %v72_v3  ;;  %vm89_vm11 = vcmp.ge.f32.partialorder %v73_v4, 0.0 }
  0x14   :  { %166 = vst.msk [vmem:[%s416_s4 + $0x30] sm:$0xff] %vm159_vm0, %v149_v9  ;;  %v119_v17 = vsel %vm87_vm9, %v71_v0, %v103_v11  ;;  %v105_v18 = vmul.f32 0.25, %v73_v4  ;;  %vm90_vm12 = vcmp.ge.f32.partialorder %v74_v6, 0.0  ;;  %v106_v20 = vmul.f32 0.25, %v74_v6 }
  0x15   :  { %167 = vst.msk [vmem:[%s416_s4 + $0x38] sm:$0xff] %vm159_vm0, %v150_v13  ;;  %v151_v22 = vadd.f32 %v135_v12, %v119_v17  ;;  %v120_v23 = vsel %vm88_vm10, %v72_v3, %v104_v14  ;;  %v75_v24 = vadd.f32 %v218_v2, %v52_v7  ;;  %v76_v25 = vadd.f32 %v218_v2, %v53_v8 }
  0x16   :  { %v152_v27 = vadd.f32 %v136_v15, %v120_v23  ;;  %v121_v28 = vsel %vm89_vm11, %v73_v4, %v105_v18  ;;  %v122_v29 = vsel %vm90_vm12, %v74_v6, %v106_v20  ;;  %v54_v30 = vmul.f32 %v213_v1, %v31_v16 }
  0x17   :  { %168 = vst.msk [vmem:[%s416_s4 + $0x40] sm:$0xff] %vm159_vm0, %v151_v22  ;;  %v153_v31 = vadd.f32 %v137_v19, %v121_v28  ;;  %v154_v32 = vadd.f32 %v138_v21, %v122_v29  ;;  %vm91_vm13 = vcmp.ge.f32.partialorder %v75_v24, 0.0  ;;  %v107_v33 = vmul.f32 0.25, %v75_v24 }
  0x18   :  { %169 = vst.msk [vmem:[%s416_s4 + $0x48] sm:$0xff] %vm159_vm0, %v152_v27  ;;  %vm92_vm14 = vcmp.ge.f32.partialorder %v76_v25, 0.0  ;;  %v108_v35 = vmul.f32 0.25, %v76_v25  ;;  %v77_v37 = vadd.f32 %v218_v2, %v54_v30  ;;  %v55_v38 = vmul.f32 %v213_v1, %v32_v26 }
  0x19   :  { %170 = vst.msk [vmem:[%s416_s4 + $0x50] sm:$0xff] %vm159_vm0, %v153_v31  ;;  %171 = vst.msk [vmem:[%s416_s4 + $0x58] sm:$0xff] %vm159_vm0, %v154_v32  ;;  %v123_v39 = vsel %vm91_vm13, %v75_v24, %v107_v33 }
  0x1a   :  { %v155_v40 = vadd.f32 %v139_v34, %v123_v39  ;;  %v124_v41 = vsel %vm92_vm14, %v76_v25, %v108_v35  ;;  %vm93_vm15 = vcmp.ge.f32.partialorder %v77_v37, 0.0  ;;  %v109_v42 = vmul.f32 0.25, %v77_v37 }
  0x1b   :  { %v156_v1 = vadd.f32 %v140_v36, %v124_v41  ;;  %v78_v44 = vadd.f32 %v218_v2, %v55_v38 }
  0x1c   :  { %172 = vst.msk [vmem:[%s416_s4 + $0x60] sm:$0xff] %vm159_vm0, %v155_v40  ;;  %v125_v45 = vsel %vm93_vm15, %v77_v37, %v109_v42 }
  0x1d   :  { %173 = vst.msk [vmem:[%s416_s4 + $0x68] sm:$0xff] %vm159_vm0, %v156_v1  ;;  %v157_v46 = vadd.f32 %v141_v43, %v125_v45  ;;  %vm94_vm1 = vcmp.ge.f32.partialorder %v78_v44, 0.0  ;;  %v110_v47 = vmul.f32 0.25, %v78_v44 }
  0x1f   :  { %174 = vst.msk [vmem:[%s416_s4 + $0x70] sm:$0xff] %vm159_vm0, %v157_v46  ;;  %v126_v2 = vsel %vm94_vm1, %v78_v44, %v110_v47 }
  0x20   :  { %v158_v49 = vadd.f32 %v142_v48, %v126_v2 }
  0x22   :  { %175 = vst.msk [vmem:[%s416_s4 + $0x78] sm:$0xff] %vm159_vm0, %v158_v49 }

// kernel: _forward.39
= control target key start
LH: loop header
LB: loop body
LE: loop exit
PB: predicated region body
PF: predicated region fallthrough
CT: control target
= control target key end

     0   :  { %vm558_vm0 = vcmask 523264   ;;  %s1611_s1 = inlined_call_operand.vmem [shape: bf16[576,64], index: 1, kind: input, shape index: {}]   ;;  %s1612_s0 = inlined_call_operand.vmem [shape: bf16[128,576], index: 0, kind: input, shape index: {}]   ;;  %s1613_s2 = inlined_call_operand.vmem [shape: f32[1,64], index: 2, kind: input, shape index: {}]   ;;  %s1614_s3 = inlined_call_operand.vmem [shape: f32[128,64], index: 3, kind: output, shape index: {}]  }
   0x1   :  { %v1151_v0 = vld [vmem:[%s1611_s1 + $0x40] sm:$0xff]   ;;  %v1155_v4 = vld [vmem:[%s1611_s1 + $0x48] sm:$0xff]   ;;  %v1159_v8 = vld [vmem:[%s1611_s1 + $0x50] sm:$0xff]  }
   0x2   :  { %v1152_v1 = vld [vmem:[%s1611_s1 + $0xc0] sm:$0xff]   ;;  %979 = vmatprep.subr.bf16.mxu0 %v1151_v0  ;;  %v1156_v5 = vld [vmem:[%s1611_s1 + $0xc8] sm:$0xff]   ;;  %v1160_v9 = vld [vmem:[%s1611_s1 + $0xd0] sm:$0xff]  }
   0x3   :  { %v1153_v2 = vld [vmem:[%s1611_s1] sm:$0xff]   ;;  %1043 = vmatprep.subr.bf16.mxu1 %v1152_v1  ;;  %v1157_v6 = vld [vmem:[%s1611_s1 + $0x8] sm:$0xff]   ;;  %v1161_v10 = vld [vmem:[%s1611_s1 + $0x10] sm:$0xff]  }
   0x4   :  { %v1154_v3 = vld [vmem:[%s1611_s1 + $0x80] sm:$0xff]   ;;  %980 = vmatpush3.bf16.msra.mxu0 %v1153_v2  ;;  %v1158_v7 = vld [vmem:[%s1611_s1 + $0x88] sm:$0xff]   ;;  %v1162_v11 = vld [vmem:[%s1611_s1 + $0x90] sm:$0xff]  }
   0x5   :  { %1044 = vmatpush3.bf16.msra.mxu1 %v1154_v3  ;;  %981 = vmatprep.subr.bf16.mxu0 %v1155_v4  ;;  %v1163_v12 = vld [vmem:[%s1611_s1 + $0x58] sm:$0xff]   ;;  %v1167_v16 = vld [vmem:[%s1611_s1 + $0x60] sm:$0xff]   ;;  %v1171_v20 = vld [vmem:[%s1611_s1 + $0x68] sm:$0xff]  }
   0x6   :  { %1045 = vmatprep.subr.bf16.mxu1 %v1156_v5  ;;  %v1164_v13 = vld [vmem:[%s1611_s1 + $0xd8] sm:$0xff]   ;;  %v1168_v17 = vld [vmem:[%s1611_s1 + $0xe0] sm:$0xff]   ;;  %v1172_v21 = vld [vmem:[%s1611_s1 + $0xe8] sm:$0xff]  }
   0x7   :  { %v1165_v14 = vld [vmem:[%s1611_s1 + $0x18] sm:$0xff]   ;;  %v1169_v18 = vld [vmem:[%s1611_s1 + $0x20] sm:$0xff]   ;;  %v1173_v22 = vld [vmem:[%s1611_s1 + $0x28] sm:$0xff]  }
   0x8   :  { %982 = vmatpush3.bf16.msra.mxu0 %v1157_v6  ;;  %v1166_v15 = vld [vmem:[%s1611_s1 + $0x98] sm:$0xff]   ;;  %v1170_v19 = vld [vmem:[%s1611_s1 + $0xa0] sm:$0xff]   ;;  %v1174_v23 = vld [vmem:[%s1611_s1 + $0xa8] sm:$0xff]  }
   0x9   :  { %1046 = vmatpush3.bf16.msra.mxu1 %v1158_v7  ;;  %983 = vmatprep.subr.bf16.mxu0 %v1159_v8  ;;  %v1175_v24 = vld [vmem:[%s1611_s1 + $0x70] sm:$0xff]   ;;  %v1179_v28 = vld [vmem:[%s1611_s1 + $0x78] sm:$0xff]   ;;  %v1188_v35 = vld [vmem:[%s1612_s0 + $0xc] ss:$20 sps:$4 sm:$0xff]  }
   0xa   :  { %1047 = vmatprep.subr.bf16.mxu1 %v1160_v9  ;;  %v1176_v25 = vld [vmem:[%s1611_s1 + $0xf0] sm:$0xff]   ;;  %v1180_v29 = vld [vmem:[%s1611_s1 + $0xf8] sm:$0xff]   ;;  %v1189_v36 = vld [vmem:[%s1611_s1 + $0x100] sm:$0xff]   ;;  %712 = vmatprep.mubr.bf16.mxu1 %v1188_v35 }
   0xb   :  { %v1177_v26 = vld [vmem:[%s1611_s1 + $0x30] sm:$0xff]   ;;  %v1181_v30 = vld [vmem:[%s1611_s1 + $0x38] sm:$0xff]   ;;  %v1190_v37 = vld [vmem:[%s1612_s0 + $0x2c] ss:$20 sps:$4 sm:$0xff]  }
   0xc   :  { %984 = vmatpush3.bf16.msra.mxu0 %v1161_v10  ;;  %v1178_v27 = vld [vmem:[%s1611_s1 + $0xb0] sm:$0xff]   ;;  %v1182_v31 = vld [vmem:[%s1611_s1 + $0xb8] sm:$0xff]   ;;  %v1202_v42 = vld [vmem:[%s1611_s1 + $0x108] sm:$0xff]  }
   0xd   :  { %1048 = vmatpush3.bf16.msra.mxu1 %v1162_v11  ;;  %985 = vmatprep.subr.bf16.mxu0 %v1163_v12  ;;  %v1183_v32 = vld [vmem:[%s1612_s0] ss:$20 sps:$4 sm:$0xff]   ;;  %v1185_v33 = vld [vmem:[%s1612_s0 + $0x4] ss:$20 sps:$4 sm:$0xff]   ;;  %v1186_v34 = vld [vmem:[%s1612_s0 + $0x8] ss:$20 sps:$4 sm:$0xff]  }
   0xe   :  { %1049 = vmatprep.subr.bf16.mxu1 %v1164_v13  ;;  %615 = vmatprep.mubr.bf16.mxu0 %v1185_v33  ;;  %v1192_v38 = vld [vmem:[%s1612_s0 + $0x34] ss:$20 sps:$4 sm:$0xff]   ;;  %v1195_v40 = vld [vmem:[%s1612_s0 + $0x30] ss:$20 sps:$4 sm:$0xff]   ;;  %v1201_v45 = vld [vmem:[%s1612_s0 + $0x58] ss:$20 sps:$4 sm:$0xff]  }
   0xf   :  { %v1194_v39 = vld [vmem:[%s1612_s0 + $0x28] ss:$20 sps:$4 sm:$0xff]   ;;  %v1200_v44 = vld [vmem:[%s1612_s0 + $0x50] ss:$20 sps:$4 sm:$0xff]   ;;  %v1207_v50 = vld [vmem:[%s1612_s0 + $0x78] ss:$20 sps:$4 sm:$0xff]  }
  0x10   :  { %986 = vmatpush3.bf16.msra.mxu0 %v1165_v14  ;;  %v1196_v41 = vld [vmem:[%s1612_s0 + $0x54] ss:$20 sps:$4 sm:$0xff]   ;;  %v1198_v43 = vld [vmem:[%s1612_s0 + $0x5c] ss:$20 sps:$4 sm:$0xff]   ;;  %v1205_v48 = vld [vmem:[%s1612_s0 + $0x84] ss:$20 sps:$4 sm:$0xff]  }
  0x11   :  { %1050 = vmatpush3.bf16.msra.mxu1 %v1166_v15  ;;  %987 = vmatprep.subr.bf16.mxu0 %v1167_v16  ;;  %v1215_v46 = vld [vmem:[%s1611_s1 + $0x110] sm:$0xff]   ;;  %v1228_v49 = vld [vmem:[%s1611_s1 + $0x118] sm:$0xff]   ;;  %v1211_v53 = vld [vmem:[%s1612_s0 + $0xac] ss:$20 sps:$4 sm:$0xff]  }
  0x12   :  { %1051 = vmatprep.subr.bf16.mxu1 %v1168_v17  ;;  %v1203_v47 = vld [vmem:[%s1612_s0 + $0x7c] ss:$20 sps:$4 sm:$0xff]   ;;  %v1208_v51 = vld [vmem:[%s1612_s0 + $0x80] ss:$20 sps:$4 sm:$0xff]   ;;  %v1209_v52 = vld [vmem:[%s1612_s0 + $0xa4] ss:$20 sps:$4 sm:$0xff]  }
  0x13   :  { %v1213_v54 = vld [vmem:[%s1612_s0 + $0xa0] ss:$20 sps:$4 sm:$0xff]   ;;  %v1214_v55 = vld [vmem:[%s1612_s0 + $0xa8] ss:$20 sps:$4 sm:$0xff]   ;;  %v1221_v59 = vld [vmem:[%s1612_s0 + $0xd0] ss:$20 sps:$4 sm:$0xff]  }
  0x14   :  { %988 = vmatpush3.bf16.msra.mxu0 %v1169_v18  ;;  %v1216_v56 = vld [vmem:[%s1612_s0 + $0xcc] ss:$20 sps:$4 sm:$0xff]   ;;  %v1218_v57 = vld [vmem:[%s1612_s0 + $0xd4] ss:$20 sps:$4 sm:$0xff]   ;;  %v1224_v61 = vld [vmem:[%s1612_s0 + $0xfc] ss:$20 sps:$4 sm:$0xff]  }
  0x15   :  { %1052 = vmatpush3.bf16.msra.mxu1 %v1170_v19  ;;  %989 = vmatprep.subr.bf16.mxu0 %v1171_v20  ;;  %v1220_v58 = vld [vmem:[%s1612_s0 + $0xc8] ss:$20 sps:$4 sm:$0xff]   ;;  %v1226_v62 = vld [vmem:[%s1612_s0 + $0xf0] ss:$20 sps:$4 sm:$0xff]   ;;  %v1227_v63 = vld [vmem:[%s1612_s0 + $0xf8] ss:$20 sps:$4 sm:$0xff]  }
  0x16   :  { %1053 = vmatprep.subr.bf16.mxu1 %v1172_v21  ;;  %v1222_v60 = vld [vmem:[%s1612_s0 + $0xf4] ss:$20 sps:$4 sm:$0xff]   ;;  %v1229_v0 = vld [vmem:[%s1612_s0 + $0x11c] ss:$20 sps:$4 sm:$0xff]   ;;  %v1231_v1 = vld [vmem:[%s1612_s0 + $0x124] ss:$20 sps:$4 sm:$0xff]  }
  0x17   :  { %v1233_v2 = vld [vmem:[%s1612_s0 + $0x118] ss:$20 sps:$4 sm:$0xff]   ;;  %v1234_v3 = vld [vmem:[%s1612_s0 + $0x120] ss:$20 sps:$4 sm:$0xff]   ;;  %v1235_v4 = vld [vmem:[%s1612_s0 + $0x10] ss:$20 sps:$4 sm:$0xff]  }
  0x18   :  { %990 = vmatpush3.bf16.msra.mxu0 %v1173_v22  ;;  %v1236_v5 = vld [vmem:[%s1612_s0 + $0xb0] ss:$20 sps:$4 sm:$0xff]   ;;  %v1237_v6 = vld [vmem:[%s1612_s0 + $0x38] ss:$20 sps:$4 sm:$0xff]   ;;  %v1239_v8 = vld [vmem:[%s1612_s0 + $0x60] ss:$20 sps:$4 sm:$0xff]  }
  0x19   :  { %1054 = vmatpush3.bf16.msra.mxu1 %v1174_v23  ;;  %991 = vmatprep.subr.bf16.mxu0 %v1175_v24  ;;  %v1238_v7 = vld [vmem:[%s1612_s0 + $0xd8] ss:$20 sps:$4 sm:$0xff]   ;;  %v1240_v9 = vld [vmem:[%s1612_s0 + $0x100] ss:$20 sps:$4 sm:$0xff]   ;;  %v1241_v10 = vld [vmem:[%s1612_s0 + $0x88] ss:$20 sps:$4 sm:$0xff]  }
  0x1a   :  { %1055 = vmatprep.subr.bf16.mxu1 %v1176_v25  ;;  %v1242_v11 = vld [vmem:[%s1612_s0 + $0x128] ss:$20 sps:$4 sm:$0xff]   ;;  %v1502_v14 = vld [vmem:[%s1613_s2] ss:$0 sm:$0xff] }
  0x1c   :  { %992 = vmatpush3.bf16.msra.mxu0 %v1177_v26 }
  0x1d   :  { %1056 = vmatpush3.bf16.msra.mxu1 %v1178_v27  ;;  %993 = vmatprep.subr.bf16.mxu0 %v1179_v28 }
  0x1e   :  { %1057 = vmatprep.subr.bf16.mxu1 %v1180_v29 }
  0x20   :  { %994 = vmatpush3.bf16.msra.mxu0 %v1181_v30 }
  0x21   :  { %1058 = vmatpush3.bf16.msra.mxu1 %v1182_v31  ;;  %1119 = vmatprep.subr.bf16.mxu0 %v1189_v36 }
  0x22   :  { %1143 = vmatprep.subr.bf16.mxu1 %v1189_v36 }
  0x23   :  { %616 = vmatmul.mubr.bf16.vlgmr.msra.gmra.mrb[0].mxu0 %v1183_v32 }
  0x24   :  { %713 = vmatmul.mubr.bf16.vlgmr.msra.gmra.mrb[0].mxu1 %v1186_v34  ;;  %1120 = vmatpush3.bf16.msra.mxu0 %v1189_v36 }
  0x25   :  { %1147 = vmatpush3.bf16.msra.mxu1 %v1189_v36  ;;  %623 = vmatprep.mubr.bf16.mxu0 %v1190_v37 }
  0x26   :  { %720 = vmatprep.mubr.bf16.mxu1 %v1192_v38  ;;  %1121 = vmatprep.subr.bf16.mxu0 %v1202_v42 }
  0x27   :  { %1144 = vmatprep.subr.bf16.mxu1 %v1202_v42 }
  0x28   :  { %1122 = vmatpush3.bf16.msra.mxu0 %v1202_v42 }
  0x29   :  { %1148 = vmatpush3.bf16.msra.mxu1 %v1202_v42  ;;  %1123 = vmatprep.subr.bf16.mxu0 %v1215_v46 }
  0x2a   :  { %1145 = vmatprep.subr.bf16.mxu1 %v1215_v46 }
  0x2b   :  { %624 = vmatmul.mubr.bf16.gmra.mrb[4].mxu0 %v1194_v39 }
  0x2c   :  { %721 = vmatmul.mubr.bf16.gmra.mrb[4].mxu1 %v1195_v40  ;;  %631 = vmatprep.mubr.bf16.mxu0 %v1196_v41 }
  0x2d   :  { %728 = vmatprep.mubr.bf16.mxu1 %v1198_v43  ;;  %1124 = vmatpush3.bf16.msra.mxu0 %v1215_v46 }
  0x2e   :  { %1149 = vmatpush3.bf16.msra.mxu1 %v1215_v46  ;;  %1125 = vmatprep.subr.bf16.mxu0 %v1228_v49 }
  0x2f   :  { %1146 = vmatprep.subr.bf16.mxu1 %v1228_v49 }
  0x31   :  { %1126 = vmatpush3.bf16.msra.mxu0 %v1228_v49 }
  0x32   :  { %1150 = vmatpush3.bf16.msra.mxu1 %v1228_v49 }
  0x33   :  { %632 = vmatmul.mubr.bf16.gmra.mrb[8].mxu0 %v1200_v44 }
  0x34   :  { %729 = vmatmul.mubr.bf16.gmra.mrb[8].mxu1 %v1201_v45  ;;  %639 = vmatprep.mubr.bf16.mxu0 %v1203_v47 }
  0x35   :  { %736 = vmatprep.mubr.bf16.mxu1 %v1205_v48 }
  0x3b   :  { %640 = vmatmul.mubr.bf16.gmra.mrb[12].mxu0 %v1207_v50 }
  0x3c   :  { %737 = vmatmul.mubr.bf16.gmra.mrb[12].mxu1 %v1208_v51  ;;  %647 = vmatprep.mubr.bf16.mxu0 %v1209_v52 }
  0x3d   :  { %744 = vmatprep.mubr.bf16.mxu1 %v1211_v53 }
  0x43   :  { %648 = vmatmul.mubr.bf16.gmra.mrb[16].mxu0 %v1213_v54 }
  0x44   :  { %745 = vmatmul.mubr.bf16.gmra.mrb[16].mxu1 %v1214_v55  ;;  %655 = vmatprep.mubr.bf16.mxu0 %v1216_v56 }
  0x45   :  { %752 = vmatprep.mubr.bf16.mxu1 %v1218_v57 }
  0x4b   :  { %656 = vmatmul.mubr.bf16.gmra.mrb[20].mxu0 %v1220_v58 }
  0x4c   :  { %753 = vmatmul.mubr.bf16.gmra.mrb[20].mxu1 %v1221_v59  ;;  %663 = vmatprep.mubr.bf16.mxu0 %v1222_v60 }
  0x4d   :  { %760 = vmatprep.mubr.bf16.mxu1 %v1224_v61 }
  0x53   :  { %664 = vmatmul.mubr.bf16.gmra.mrb[24].mxu0 %v1226_v62 }
  0x54   :  { %761 = vmatmul.mubr.bf16.gmra.mrb[24].mxu1 %v1227_v63  ;;  %671 = vmatprep.mubr.bf16.mxu0 %v1229_v0 }
  0x55   :  { %768 = vmatprep.mubr.bf16.mxu1 %v1231_v1 }
  0x5b   :  { %672 = vmatmul.mubr.bf16.gmra.mrb[28].mxu0 %v1233_v2 }
  0x5c   :  { %769 = vmatmul.mubr.bf16.gmra.mrb[28].mxu1 %v1234_v3  ;;  %1127 = vmatprep.mubr.msk.bf16.mxu0 %vm558_vm0, %v1235_v4 }
  0x5d   :  { %1135 = vmatprep.mubr.msk.bf16.mxu1 %vm558_vm0, %v1236_v5 }
  0x63   :  { %1128 = vmatmul.mubr.msk.bf16.vlgmr.msra.gmra.mrb[32].mxu0 %vm558_vm0, %v1237_v6 }
  0x64   :  { %1136 = vmatmul.mubr.msk.bf16.vlgmr.msra.gmra.mrb[32].mxu1 %vm558_vm0, %v1238_v7  ;;  %1131 = vmatprep.mubr.msk.bf16.mxu0 %vm558_vm0, %v1239_v8 }
  0x65   :  { %1139 = vmatprep.mubr.msk.bf16.mxu1 %vm558_vm0, %v1240_v9 }
  0x6b   :  { %1132 = vmatmul.mubr.msk.bf16.gmra.mrb[36].mxu0 %vm558_vm0, %v1241_v10 }
  0x6c   :  { %1140 = vmatmul.mubr.msk.bf16.gmra.mrb[36].mxu1 %vm558_vm0, %v1242_v11 }
  0xf6   :  { %v995_v12 = vpop.f32.mrb[0].mxu0 }
  0xf7   :  { %v1059_v13 = vpop.f32.mrb[0].mxu1  ;;  %v996_v15 = vpop.f32.mrb[1].mxu0 }
  0xf8   :  { %v997_v16 = vadd.f32 %v996_v15, %v995_v12  ;;  %v1060_v17 = vpop.f32.mrb[1].mxu1  ;;  %v998_v18 = vpop.f32.mrb[2].mxu0 }
  0xf9   :  { %v1061_v19 = vadd.f32 %v1060_v17, %v1059_v13  ;;  %v1062_v20 = vpop.f32.mrb[2].mxu1  ;;  %v999_v21 = vpop.f32.mrb[3].mxu0 }
  0xfa   :  { %v618_v22 = vadd.f32 %v997_v16, %v1502_v14  ;;  %v1000_v23 = vadd.f32 %v999_v21, %v998_v18  ;;  %v1063_v24 = vpop.f32.mrb[3].mxu1 }
  0xfb   :  { %v1064_v25 = vadd.f32 %v1063_v24, %v1062_v20 }
  0xfc   :  { %v621_v26 = vadd.f32 %v1000_v23, %v1502_v14  ;;  %v1506_v27 = vadd.f32 %v1061_v19, %v618_v22 }
  0xfe   :  { %v1001_v28 = vpop.f32.mrb[4].mxu0  ;;  %v1508_v29 = vadd.f32 %v1064_v25, %v621_v26 }
  0xff   :  { %v1065_v30 = vpop.f32.mrb[4].mxu1  ;;  %v1002_v31 = vpop.f32.mrb[5].mxu0 }
 0x100   :  { %v1003_v32 = vadd.f32 %v1002_v31, %v1001_v28  ;;  %v1066_v33 = vpop.f32.mrb[5].mxu1  ;;  %v1004_v34 = vpop.f32.mrb[6].mxu0 }
 0x101   :  { %v1067_v35 = vadd.f32 %v1066_v33, %v1065_v30  ;;  %v1068_v36 = vpop.f32.mrb[6].mxu1  ;;  %v1005_v37 = vpop.f32.mrb[7].mxu0 }
 0x102   :  { %v626_v38 = vadd.f32 %v1003_v32, %v1502_v14  ;;  %v1006_v39 = vadd.f32 %v1005_v37, %v1004_v34  ;;  %v1069_v40 = vpop.f32.mrb[7].mxu1 }
 0x103   :  { %v1070_v41 = vadd.f32 %v1069_v40, %v1068_v36 }
 0x104   :  { %v629_v42 = vadd.f32 %v1006_v39, %v1502_v14  ;;  %v1512_v43 = vadd.f32 %v1067_v35, %v626_v38 }
 0x106   :  { %v1007_v44 = vpop.f32.mrb[8].mxu0  ;;  %v1514_v45 = vadd.f32 %v1070_v41, %v629_v42 }
 0x107   :  { %v1071_v46 = vpop.f32.mrb[8].mxu1  ;;  %v1008_v47 = vpop.f32.mrb[9].mxu0 }
 0x108   :  { %v1009_v48 = vadd.f32 %v1008_v47, %v1007_v44  ;;  %v1072_v49 = vpop.f32.mrb[9].mxu1  ;;  %v1010_v50 = vpop.f32.mrb[10].mxu0 }
 0x109   :  { %v1073_v51 = vadd.f32 %v1072_v49, %v1071_v46  ;;  %v1074_v52 = vpop.f32.mrb[10].mxu1  ;;  %v1011_v53 = vpop.f32.mrb[11].mxu0 }
 0x10a   :  { %v634_v54 = vadd.f32 %v1009_v48, %v1502_v14  ;;  %v1012_v55 = vadd.f32 %v1011_v53, %v1010_v50  ;;  %v1075_v56 = vpop.f32.mrb[11].mxu1 }
 0x10b   :  { %v1076_v57 = vadd.f32 %v1075_v56, %v1074_v52 }
 0x10c   :  { %v637_v58 = vadd.f32 %v1012_v55, %v1502_v14  ;;  %v1518_v59 = vadd.f32 %v1073_v51, %v634_v54 }
 0x10e   :  { %v1013_v60 = vpop.f32.mrb[12].mxu0  ;;  %v1520_v61 = vadd.f32 %v1076_v57, %v637_v58 }
 0x10f   :  { %v1077_v62 = vpop.f32.mrb[12].mxu1  ;;  %v1014_v63 = vpop.f32.mrb[13].mxu0 }
 0x110   :  { %v1015_v0 = vadd.f32 %v1014_v63, %v1013_v60  ;;  %v1078_v1 = vpop.f32.mrb[13].mxu1  ;;  %v1016_v2 = vpop.f32.mrb[14].mxu0 }
 0x111   :  { %v1079_v3 = vadd.f32 %v1078_v1, %v1077_v62  ;;  %v1080_v4 = vpop.f32.mrb[14].mxu1  ;;  %v1017_v5 = vpop.f32.mrb[15].mxu0 }
 0x112   :  { %v642_v6 = vadd.f32 %v1015_v0, %v1502_v14  ;;  %v1018_v7 = vadd.f32 %v1017_v5, %v1016_v2  ;;  %v1081_v8 = vpop.f32.mrb[15].mxu1 }
 0x113   :  { %v1082_v9 = vadd.f32 %v1081_v8, %v1080_v4 }
 0x114   :  { %v645_v10 = vadd.f32 %v1018_v7, %v1502_v14  ;;  %v1524_v11 = vadd.f32 %v1079_v3, %v642_v6 }
 0x116   :  { %v1019_v12 = vpop.f32.mrb[16].mxu0  ;;  %v1526_v13 = vadd.f32 %v1082_v9, %v645_v10 }
 0x117   :  { %v1083_v15 = vpop.f32.mrb[16].mxu1  ;;  %v1020_v16 = vpop.f32.mrb[17].mxu0 }
 0x118   :  { %v1021_v17 = vadd.f32 %v1020_v16, %v1019_v12  ;;  %v1084_v18 = vpop.f32.mrb[17].mxu1  ;;  %v1022_v19 = vpop.f32.mrb[18].mxu0 }
 0x119   :  { %v1085_v20 = vadd.f32 %v1084_v18, %v1083_v15  ;;  %v1086_v21 = vpop.f32.mrb[18].mxu1  ;;  %v1023_v22 = vpop.f32.mrb[19].mxu0 }
 0x11a   :  { %v650_v23 = vadd.f32 %v1021_v17, %v1502_v14  ;;  %v1024_v24 = vadd.f32 %v1023_v22, %v1022_v19  ;;  %v1087_v25 = vpop.f32.mrb[19].mxu1 }
 0x11b   :  { %v1088_v26 = vadd.f32 %v1087_v25, %v1086_v21 }
 0x11c   :  { %v653_v28 = vadd.f32 %v1024_v24, %v1502_v14  ;;  %v747_v30 = vadd.f32 %v1085_v20, %v650_v23 }
 0x11e   :  { %v1025_v31 = vpop.f32.mrb[20].mxu0  ;;  %v1530_v32 = vadd.f32 %v1088_v26, %v653_v28 }
 0x11f   :  { %v1089_v33 = vpop.f32.mrb[20].mxu1  ;;  %v1026_v34 = vpop.f32.mrb[21].mxu0 }
 0x120   :  { %v1027_v35 = vadd.f32 %v1026_v34, %v1025_v31  ;;  %v1090_v36 = vpop.f32.mrb[21].mxu1  ;;  %v1028_v37 = vpop.f32.mrb[22].mxu0 }
 0x121   :  { %v1091_v38 = vadd.f32 %v1090_v36, %v1089_v33  ;;  %v1092_v39 = vpop.f32.mrb[22].mxu1  ;;  %v1029_v40 = vpop.f32.mrb[23].mxu0 }
 0x122   :  { %v658_v41 = vadd.f32 %v1027_v35, %v1502_v14  ;;  %v1030_v42 = vadd.f32 %v1029_v40, %v1028_v37  ;;  %v1093_v44 = vpop.f32.mrb[23].mxu1 }
 0x123   :  { %v1094_v46 = vadd.f32 %v1093_v44, %v1092_v39 }
 0x124   :  { %v661_v47 = vadd.f32 %v1030_v42, %v1502_v14  ;;  %v755_v48 = vadd.f32 %v1091_v38, %v658_v41 }
 0x126   :  { %v1031_v49 = vpop.f32.mrb[24].mxu0  ;;  %v758_v50 = vadd.f32 %v1094_v46, %v661_v47 }
 0x127   :  { %v1095_v51 = vpop.f32.mrb[24].mxu1  ;;  %v1032_v52 = vpop.f32.mrb[25].mxu0 }
 0x128   :  { %v1033_v53 = vadd.f32 %v1032_v52, %v1031_v49  ;;  %v1096_v54 = vpop.f32.mrb[25].mxu1  ;;  %v1034_v55 = vpop.f32.mrb[26].mxu0 }
 0x129   :  { %v1097_v56 = vadd.f32 %v1096_v54, %v1095_v51  ;;  %v1098_v57 = vpop.f32.mrb[26].mxu1  ;;  %v1035_v58 = vpop.f32.mrb[27].mxu0 }
 0x12a   :  { %v666_v60 = vadd.f32 %v1033_v53, %v1502_v14  ;;  %v1036_v62 = vadd.f32 %v1035_v58, %v1034_v55  ;;  %v1099_v63 = vpop.f32.mrb[27].mxu1 }
 0x12b   :  { %v1100_v0 = vadd.f32 %v1099_v63, %v1098_v57 }
 0x12c   :  { %v669_v1 = vadd.f32 %v1036_v62, %v1502_v14  ;;  %v763_v2 = vadd.f32 %v1097_v56, %v666_v60 }
 0x12e   :  { %v1037_v3 = vpop.f32.mrb[28].mxu0  ;;  %v766_v4 = vadd.f32 %v1100_v0, %v669_v1 }
 0x12f   :  { %v1101_v5 = vpop.f32.mrb[28].mxu1  ;;  %v1038_v6 = vpop.f32.mrb[29].mxu0 }
 0x130   :  { %v1039_v7 = vadd.f32 %v1038_v6, %v1037_v3  ;;  %v1102_v8 = vpop.f32.mrb[29].mxu1  ;;  %v1040_v9 = vpop.f32.mrb[30].mxu0 }
 0x131   :  { %v1103_v10 = vadd.f32 %v1102_v8, %v1101_v5  ;;  %v1104_v12 = vpop.f32.mrb[30].mxu1  ;;  %v1041_v15 = vpop.f32.mrb[31].mxu0 }
 0x132   :  { %v674_v16 = vadd.f32 %v1039_v7, %v1502_v14  ;;  %v1042_v17 = vadd.f32 %v1041_v15, %v1040_v9  ;;  %v1105_v18 = vpop.f32.mrb[31].mxu1 }
 0x133   :  { %v1106_v19 = vadd.f32 %v1105_v18, %v1104_v12 }
 0x134   :  { %v677_v20 = vadd.f32 %v1042_v17, %v1502_v14  ;;  %v771_v21 = vadd.f32 %v1103_v10, %v674_v16 }
 0x136   :  { %v1129_v22 = vpop.f32.mrb[32].mxu0  ;;  %v774_v23 = vadd.f32 %v1106_v19, %v677_v20 }
 0x137   :  { %v820_v24 = vadd.f32 %v1129_v22, %v1512_v43  ;;  %v1137_v25 = vpop.f32.mrb[32].mxu1  ;;  %v811_v26 = vpop.f32.mrb[33].mxu0 }
 0x138   :  { %v852_v28 = vadd.f32 %v1137_v25, %v755_v48  ;;  %v812_v31 = vadd.f32 %v811_v26, %v1506_v27  ;;  %v843_v33 = vpop.f32.mrb[33].mxu1  ;;  %v1130_v34 = vpop.f32.mrb[34].mxu0 }
 0x139   :  { %876 = vst.msk [vmem:[%s1614_s3 + $0x10] sm:$0xff] %vm558_vm0, %v820_v24  ;;  %v844_v35 = vadd.f32 %v843_v33, %v747_v30  ;;  %v823_v14 = vadd.f32 %v1130_v34, %v1514_v45  ;;  %v1138_v36 = vpop.f32.mrb[34].mxu1  ;;  %v814_v37 = vpop.f32.mrb[35].mxu0 }
 0x13a   :  { %884 = vst.msk [vmem:[%s1614_s3 + $0x50] sm:$0xff] %vm558_vm0, %v852_v28  ;;  %874 = vst.msk [vmem:[%s1614_s3] sm:$0xff] %vm558_vm0, %v812_v31  ;;  %v855_v27 = vadd.f32 %v1138_v36, %v758_v50  ;;  %v815_v43 = vadd.f32 %v814_v37, %v1508_v29  ;;  %v846_v38 = vpop.f32.mrb[35].mxu1 }
 0x13b   :  { %882 = vst.msk [vmem:[%s1614_s3 + $0x40] sm:$0xff] %vm558_vm0, %v844_v35  ;;  %877 = vst.msk [vmem:[%s1614_s3 + $0x18] sm:$0xff] %vm558_vm0, %v823_v14  ;;  %v847_v45 = vadd.f32 %v846_v38, %v1530_v32 }
 0x13c   :  { %885 = vst.msk [vmem:[%s1614_s3 + $0x58] sm:$0xff] %vm558_vm0, %v855_v27  ;;  %875 = vst.msk [vmem:[%s1614_s3 + $0x8] sm:$0xff] %vm558_vm0, %v815_v43 }
 0x13d   :  { %883 = vst.msk [vmem:[%s1614_s3 + $0x48] sm:$0xff] %vm558_vm0, %v847_v45 }
 0x13e   :  { %v1133_v29 = vpop.f32.mrb[36].mxu0 }
 0x13f   :  { %v836_v30 = vadd.f32 %v1133_v29, %v1524_v11  ;;  %v1141_v39 = vpop.f32.mrb[36].mxu1  ;;  %v827_v32 = vpop.f32.mrb[37].mxu0 }
 0x140   :  { %v868_v40 = vadd.f32 %v1141_v39, %v771_v21  ;;  %v828_v41 = vadd.f32 %v827_v32, %v1518_v59  ;;  %v859_v42 = vpop.f32.mrb[37].mxu1  ;;  %v1134_v44 = vpop.f32.mrb[38].mxu0 }
 0x141   :  { %880 = vst.msk [vmem:[%s1614_s3 + $0x30] sm:$0xff] %vm558_vm0, %v836_v30  ;;  %v860_v46 = vadd.f32 %v859_v42, %v763_v2  ;;  %v839_v47 = vadd.f32 %v1134_v44, %v1526_v13  ;;  %v1142_v48 = vpop.f32.mrb[38].mxu1  ;;  %v830_v49 = vpop.f32.mrb[39].mxu0 }
 0x142   :  { %888 = vst.msk [vmem:[%s1614_s3 + $0x70] sm:$0xff] %vm558_vm0, %v868_v40  ;;  %878 = vst.msk [vmem:[%s1614_s3 + $0x20] sm:$0xff] %vm558_vm0, %v828_v41  ;;  %v871_v59 = vadd.f32 %v1142_v48, %v774_v23  ;;  %v831_v11 = vadd.f32 %v830_v49, %v1520_v61  ;;  %v862_v50 = vpop.f32.mrb[39].mxu1 }
 0x143   :  { %886 = vst.msk [vmem:[%s1614_s3 + $0x60] sm:$0xff] %vm558_vm0, %v860_v46  ;;  %881 = vst.msk [vmem:[%s1614_s3 + $0x38] sm:$0xff] %vm558_vm0, %v839_v47  ;;  %v863_v13 = vadd.f32 %v862_v50, %v766_v4 }
 0x144   :  { %889 = vst.msk [vmem:[%s1614_s3 + $0x78] sm:$0xff] %vm558_vm0, %v871_v59  ;;  %879 = vst.msk [vmem:[%s1614_s3 + $0x28] sm:$0xff] %vm558_vm0, %v831_v11 }
 0x145   :  { %887 = vst.msk [vmem:[%s1614_s3 + $0x68] sm:$0xff] %vm558_vm0, %v863_v13 }

// kernel: _forward.43
= control target key start
LH: loop header
LB: loop body
LE: loop exit
PB: predicated region body
PF: predicated region fallthrough
CT: control target
= control target key end

     0   :  { %s112_s0 = inlined_call_operand.vmem [shape: f32[32,128], index: 0, kind: input, shape index: {}]   ;;  %s113_s1 = inlined_call_operand.vmem [shape: f32[1,128], index: 1, kind: input, shape index: {}]   ;;  %s114_s2 = inlined_call_operand.vmem [shape: f32[1,128], index: 2, kind: input, shape index: {}]   ;;  %s115_s3 = inlined_call_operand.vmem [shape: f32[32,128], index: 3, kind: output, shape index: {}]  }
   0x1   :  { %v14_v0 = vld [vmem:[%s112_s0] sm:$0xff]  ;;  %v15_v4 = vld [vmem:[%s112_s0 + $0x8] sm:$0xff]  ;;  %v16_v5 = vld [vmem:[%s112_s0 + $0x10] sm:$0xff] }
   0x2   :  { %v60_v1 = vld [vmem:[%s113_s1] ss:$0 sm:$0xff]  ;;  %v17_v6 = vld [vmem:[%s112_s0 + $0x18] sm:$0xff] }
   0x3   :  { %v61_v2 = vld [vmem:[%s114_s2] ss:$0 sm:$0xff]  ;;  %v25_v3 = vmul.f32 %v60_v1, %v14_v0  ;;  %v26_v7 = vmul.f32 %v60_v1, %v15_v4  ;;  %v27_v8 = vmul.f32 %v60_v1, %v16_v5  ;;  %v28_v9 = vmul.f32 %v60_v1, %v17_v6 }
   0x5   :  { %v36_v10 = vadd.f32 %v61_v2, %v25_v3  ;;  %v37_v11 = vadd.f32 %v61_v2, %v26_v7  ;;  %v38_v12 = vadd.f32 %v61_v2, %v27_v8  ;;  %v39_v13 = vadd.f32 %v61_v2, %v28_v9 }
   0x7   :  { %vm40_vm0 = vcmp.ge.f32.partialorder %v36_v10, 0.0  ;;  %v44_v14 = vmul.f32 0.25, %v36_v10  ;;  %vm41_vm1 = vcmp.ge.f32.partialorder %v37_v11, 0.0  ;;  %v45_v15 = vmul.f32 0.25, %v37_v11 }
   0x8   :  { %vm42_vm2 = vcmp.ge.f32.partialorder %v38_v12, 0.0  ;;  %v46_v16 = vmul.f32 0.25, %v38_v12  ;;  %vm43_vm3 = vcmp.ge.f32.partialorder %v39_v13, 0.0  ;;  %v47_v18 = vmul.f32 0.25, %v39_v13 }
   0x9   :  { %v48_v17 = vsel %vm40_vm0, %v36_v10, %v44_v14  ;;  %v49_v19 = vsel %vm41_vm1, %v37_v11, %v45_v15 }
   0xa   :  { %52 = vst [vmem:[%s115_s3] sm:$0xff] %v48_v17  ;;  %v50_v20 = vsel %vm42_vm2, %v38_v12, %v46_v16  ;;  %53 = vst [vmem:[%s115_s3 + $0x8] sm:$0xff] %v49_v19  ;;  %v51_v21 = vsel %vm43_vm3, %v39_v13, %v47_v18 }
   0xb   :  { %54 = vst [vmem:[%s115_s3 + $0x10] sm:$0xff] %v50_v20  ;;  %55 = vst [vmem:[%s115_s3 + $0x18] sm:$0xff] %v51_v21 }

// kernel: _forward.42
= control target key start
LH: loop header
LB: loop body
LE: loop exit
PB: predicated region body
PF: predicated region fallthrough
CT: control target
= control target key end

     0   :  { %vm372_vm0 = vcmask 523264   ;;  %s880_s1 = inlined_call_operand.vmem [shape: bf16[576,128], index: 1, kind: input, shape index: {}]   ;;  %s881_s0 = inlined_call_operand.vmem [shape: bf16[32,576], index: 0, kind: input, shape index: {}]   ;;  %s882_s2 = inlined_call_operand.vmem [shape: f32[1,128], index: 2, kind: input, shape index: {}]   ;;  %s883_s3 = inlined_call_operand.vmem [shape: f32[32,128], index: 3, kind: output, shape index: {}]  }
   0x1   :  { %v657_v0 = vld [vmem:[%s880_s1 + $0x40] sm:$0xff]   ;;  %v661_v4 = vld [vmem:[%s880_s1 + $0x48] sm:$0xff]   ;;  %v665_v8 = vld [vmem:[%s880_s1 + $0x50] sm:$0xff]  }
   0x2   :  { %v658_v1 = vld [vmem:[%s880_s1] sm:$0xff]   ;;  %583 = vmatprep.subr.bf16.mxu0 %v657_v0  ;;  %v662_v5 = vld [vmem:[%s880_s1 + $0x8] sm:$0xff]   ;;  %v666_v9 = vld [vmem:[%s880_s1 + $0x10] sm:$0xff]  }
   0x3   :  { %v659_v2 = vld [vmem:[%s880_s1 + $0xc0] sm:$0xff]   ;;  %584 = vmatpush3.bf16.msra.mxu0 %v658_v1  ;;  %v663_v6 = vld [vmem:[%s880_s1 + $0xc8] sm:$0xff]   ;;  %v667_v10 = vld [vmem:[%s880_s1 + $0xd0] sm:$0xff]  }
   0x4   :  { %v660_v3 = vld [vmem:[%s880_s1 + $0x80] sm:$0xff]   ;;  %611 = vmatprep.subr.bf16.mxu1 %v659_v2  ;;  %585 = vmatprep.subr.bf16.mxu0 %v661_v4  ;;  %v664_v7 = vld [vmem:[%s880_s1 + $0x88] sm:$0xff]   ;;  %v668_v11 = vld [vmem:[%s880_s1 + $0x90] sm:$0xff]  }
   0x5   :  { %612 = vmatpush3.bf16.msra.mxu1 %v660_v3  ;;  %v669_v12 = vld [vmem:[%s880_s1 + $0x58] sm:$0xff]   ;;  %v673_v16 = vld [vmem:[%s880_s1 + $0x60] sm:$0xff]   ;;  %v677_v20 = vld [vmem:[%s880_s1 + $0x68] sm:$0xff]  }
   0x6   :  { %613 = vmatprep.subr.bf16.mxu1 %v663_v6  ;;  %v670_v13 = vld [vmem:[%s880_s1 + $0x18] sm:$0xff]   ;;  %v674_v17 = vld [vmem:[%s880_s1 + $0x20] sm:$0xff]   ;;  %v678_v21 = vld [vmem:[%s880_s1 + $0x28] sm:$0xff]  }
   0x7   :  { %586 = vmatpush3.bf16.msra.mxu0 %v662_v5  ;;  %v671_v14 = vld [vmem:[%s880_s1 + $0xd8] sm:$0xff]   ;;  %v675_v18 = vld [vmem:[%s880_s1 + $0xe0] sm:$0xff]   ;;  %v679_v22 = vld [vmem:[%s880_s1 + $0xe8] sm:$0xff]  }
   0x8   :  { %587 = vmatprep.subr.bf16.mxu0 %v665_v8  ;;  %v672_v15 = vld [vmem:[%s880_s1 + $0x98] sm:$0xff]   ;;  %v676_v19 = vld [vmem:[%s880_s1 + $0xa0] sm:$0xff]   ;;  %v680_v23 = vld [vmem:[%s880_s1 + $0xa8] sm:$0xff]  }
   0x9   :  { %614 = vmatpush3.bf16.msra.mxu1 %v664_v7  ;;  %v681_v24 = vld [vmem:[%s880_s1 + $0x70] sm:$0xff]   ;;  %v685_v28 = vld [vmem:[%s880_s1 + $0x78] sm:$0xff]   ;;  %v692_v34 = vld [vmem:[%s880_s1 + $0x100] sm:$0xff]  }
   0xa   :  { %615 = vmatprep.subr.bf16.mxu1 %v667_v10  ;;  %v682_v25 = vld [vmem:[%s880_s1 + $0x30] sm:$0xff]   ;;  %v686_v29 = vld [vmem:[%s880_s1 + $0x38] sm:$0xff]   ;;  %v695_v36 = vld [vmem:[%s881_s0 + $0xc] ss:$20 sps:$4 sm:$0xff]  }
   0xb   :  { %588 = vmatpush3.bf16.msra.mxu0 %v666_v9  ;;  %v683_v26 = vld [vmem:[%s880_s1 + $0xf0] sm:$0xff]   ;;  %v687_v30 = vld [vmem:[%s880_s1 + $0xf8] sm:$0xff]   ;;  %v696_v37 = vld [vmem:[%s880_s1 + $0x108] sm:$0xff]   ;;  %460 = vmatprep.mubr.bf16.mxu1 %v695_v36 }
   0xc   :  { %589 = vmatprep.subr.bf16.mxu0 %v669_v12  ;;  %v684_v27 = vld [vmem:[%s880_s1 + $0xb0] sm:$0xff]   ;;  %v690_v32 = vld [vmem:[%s881_s0 + $0x4] ss:$20 sps:$4 sm:$0xff]   ;;  %v693_v35 = vld [vmem:[%s881_s0 + $0x8] ss:$20 sps:$4 sm:$0xff]  }
   0xd   :  { %616 = vmatpush3.bf16.msra.mxu1 %v668_v11  ;;  %v688_v31 = vld [vmem:[%s881_s0] ss:$20 sps:$4 sm:$0xff]   ;;  %v691_v33 = vld [vmem:[%s880_s1 + $0xb8] sm:$0xff]   ;;  %411 = vmatprep.mubr.bf16.mxu0 %v690_v32  ;;  %v703_v42 = vld [vmem:[%s881_s0 + $0x30] ss:$20 sps:$4 sm:$0xff]  }
   0xe   :  { %617 = vmatprep.subr.bf16.mxu1 %v671_v14  ;;  %v697_v38 = vld [vmem:[%s881_s0 + $0x2c] ss:$20 sps:$4 sm:$0xff]   ;;  %v699_v39 = vld [vmem:[%s881_s0 + $0x28] ss:$20 sps:$4 sm:$0xff]   ;;  %v700_v40 = vld [vmem:[%s880_s1 + $0x110] sm:$0xff]  }
   0xf   :  { %590 = vmatpush3.bf16.msra.mxu0 %v670_v13  ;;  %v701_v41 = vld [vmem:[%s881_s0 + $0x34] ss:$20 sps:$4 sm:$0xff]   ;;  %v704_v43 = vld [vmem:[%s880_s1 + $0x118] sm:$0xff]   ;;  %v705_v44 = vld [vmem:[%s881_s0 + $0x10] ss:$20 sps:$4 sm:$0xff]  }
  0x10   :  { %591 = vmatprep.subr.bf16.mxu0 %v673_v16  ;;  %v706_v45 = vld [vmem:[%s881_s0 + $0x38] ss:$20 sps:$4 sm:$0xff]   ;;  %v534_v47 = vld [vmem:[%s882_s2] ss:$0 sm:$0xff] }
  0x11   :  { %618 = vmatpush3.bf16.msra.mxu1 %v672_v15 }
  0x12   :  { %619 = vmatprep.subr.bf16.mxu1 %v675_v18 }
  0x13   :  { %592 = vmatpush3.bf16.msra.mxu0 %v674_v17 }
  0x14   :  { %593 = vmatprep.subr.bf16.mxu0 %v677_v20 }
  0x15   :  { %620 = vmatpush3.bf16.msra.mxu1 %v676_v19 }
  0x16   :  { %621 = vmatprep.subr.bf16.mxu1 %v679_v22 }
  0x17   :  { %594 = vmatpush3.bf16.msra.mxu0 %v678_v21 }
  0x18   :  { %595 = vmatprep.subr.bf16.mxu0 %v681_v24 }
  0x19   :  { %622 = vmatpush3.bf16.msra.mxu1 %v680_v23 }
  0x1a   :  { %623 = vmatprep.subr.bf16.mxu1 %v683_v26 }
  0x1b   :  { %596 = vmatpush3.bf16.msra.mxu0 %v682_v25 }
  0x1c   :  { %597 = vmatprep.subr.bf16.mxu0 %v685_v28 }
  0x1d   :  { %624 = vmatpush3.bf16.msra.mxu1 %v684_v27 }
  0x1e   :  { %625 = vmatprep.subr.bf16.mxu1 %v687_v30 }
  0x1f   :  { %598 = vmatpush3.bf16.msra.mxu0 %v686_v29 }
  0x20   :  { %645 = vmatprep.subr.bf16.mxu0 %v692_v34 }
  0x21   :  { %626 = vmatpush3.bf16.msra.mxu1 %v691_v33 }
  0x22   :  { %412 = vmatmul.mubr.bf16.vlgmr.msra.gmra.mrb[0].mxu0 %v688_v31 }
  0x23   :  { %646 = vmatpush3.bf16.msra.mxu0 %v692_v34  ;;  %419 = vmatprep.mubr.bf16.mxu0 %v697_v38 }
  0x24   :  { %461 = vmatmul.mubr.bf16.vlgmr.msra.gmra.mrb[0].mxu1 %v693_v35  ;;  %647 = vmatprep.subr.bf16.mxu0 %v696_v37 }
  0x25   :  { %468 = vmatprep.mubr.bf16.mxu1 %v701_v41 }
  0x27   :  { %648 = vmatpush3.bf16.msra.mxu0 %v696_v37 }
  0x28   :  { %649 = vmatprep.subr.bf16.mxu0 %v700_v40 }
  0x2a   :  { %420 = vmatmul.mubr.bf16.gmra.mrb[4].mxu0 %v699_v39 }
  0x2b   :  { %653 = vmatprep.mubr.msk.bf16.mxu0 %vm372_vm0, %v705_v44  ;;  %650 = vmatpush3.bf16.msra.mxu0 %v700_v40 }
  0x2c   :  { %469 = vmatmul.mubr.bf16.gmra.mrb[4].mxu1 %v703_v42  ;;  %651 = vmatprep.subr.bf16.mxu0 %v704_v43 }
  0x2f   :  { %652 = vmatpush3.bf16.msra.mxu0 %v704_v43 }
  0x32   :  { %654 = vmatmul.mubr.msk.bf16.vlgmr.msra.gmra.mrb[8].mxu0 %vm372_vm0, %v706_v45 }
  0xf5   :  { %v599_v46 = vpop.f32.mrb[0].mxu0 }
  0xf6   :  { %v600_v48 = vpop.f32.mrb[1].mxu0 }
  0xf7   :  { %v601_v49 = vadd.f32 %v600_v48, %v599_v46  ;;  %v602_v50 = vpop.f32.mrb[2].mxu0  ;;  %v627_v51 = vpop.f32.mrb[0].mxu1 }
  0xf8   :  { %v603_v52 = vpop.f32.mrb[3].mxu0  ;;  %v628_v55 = vpop.f32.mrb[1].mxu1 }
  0xf9   :  { %v414_v53 = vadd.f32 %v601_v49, %v534_v47  ;;  %v604_v54 = vadd.f32 %v603_v52, %v602_v50  ;;  %v629_v56 = vadd.f32 %v628_v55, %v627_v51  ;;  %v630_v57 = vpop.f32.mrb[2].mxu1 }
  0xfa   :  { %v631_v59 = vpop.f32.mrb[3].mxu1 }
  0xfb   :  { %v417_v58 = vadd.f32 %v604_v54, %v534_v47  ;;  %v632_v60 = vadd.f32 %v631_v59, %v630_v57  ;;  %v463_v61 = vadd.f32 %v629_v56, %v414_v53 }
  0xfd   :  { %v605_v62 = vpop.f32.mrb[4].mxu0  ;;  %v466_v0 = vadd.f32 %v632_v60, %v417_v58 }
  0xfe   :  { %v606_v63 = vpop.f32.mrb[5].mxu0 }
  0xff   :  { %v607_v1 = vadd.f32 %v606_v63, %v605_v62  ;;  %v608_v2 = vpop.f32.mrb[6].mxu0  ;;  %v633_v3 = vpop.f32.mrb[4].mxu1 }
 0x100   :  { %v609_v4 = vpop.f32.mrb[7].mxu0  ;;  %v634_v7 = vpop.f32.mrb[5].mxu1 }
 0x101   :  { %v422_v5 = vadd.f32 %v607_v1, %v534_v47  ;;  %v610_v6 = vadd.f32 %v609_v4, %v608_v2  ;;  %v635_v8 = vadd.f32 %v634_v7, %v633_v3  ;;  %v636_v9 = vpop.f32.mrb[6].mxu1 }
 0x102   :  { %v637_v11 = vpop.f32.mrb[7].mxu1 }
 0x103   :  { %v425_v10 = vadd.f32 %v610_v6, %v534_v47  ;;  %v638_v12 = vadd.f32 %v637_v11, %v636_v9  ;;  %v471_v13 = vadd.f32 %v635_v8, %v422_v5 }
 0x105   :  { %v655_v14 = vpop.f32.mrb[8].mxu0  ;;  %v474_v15 = vadd.f32 %v638_v12, %v425_v10 }
 0x106   :  { %v520_v16 = vadd.f32 %v655_v14, %v471_v13  ;;  %v511_v17 = vpop.f32.mrb[9].mxu0 }
 0x107   :  { %v512_v18 = vadd.f32 %v511_v17, %v463_v61  ;;  %v656_v19 = vpop.f32.mrb[10].mxu0 }
 0x108   :  { %528 = vst [vmem:[%s883_s3 + $0x10] sm:$0xff] %v520_v16  ;;  %v523_v20 = vadd.f32 %v656_v19, %v474_v15  ;;  %v514_v21 = vpop.f32.mrb[11].mxu0 }
 0x109   :  { %526 = vst [vmem:[%s883_s3] sm:$0xff] %v512_v18  ;;  %v515_v22 = vadd.f32 %v514_v21, %v466_v0 }
 0x10a   :  { %529 = vst [vmem:[%s883_s3 + $0x18] sm:$0xff] %v523_v20 }
 0x10b   :  { %527 = vst [vmem:[%s883_s3 + $0x8] sm:$0xff] %v515_v22 }

// kernel: _forward.45
= control target key start
LH: loop header
LB: loop body
LE: loop exit
PB: predicated region body
PF: predicated region fallthrough
CT: control target
= control target key end

     0   :  { %s140_s0 = inlined_call_operand.vmem [shape: f32[32,128], index: 0, kind: input, shape index: {}]   ;;  %s141_s2 = inlined_call_operand.vmem [shape: f32[1,128], index: 2, kind: input, shape index: {}]   ;;  %s142_s3 = inlined_call_operand.vmem [shape: f32[1,128], index: 3, kind: input, shape index: {}]   ;;  %s143_s1 = inlined_call_operand.vmem [shape: f32[32,128], index: 1, kind: input, shape index: {}]   ;;  %s144_s4 = inlined_call_operand.vmem [shape: f32[32,128], index: 4, kind: output, shape index: {}]  }
   0x1   :  { %v17_v0 = vld [vmem:[%s140_s0] sm:$0xff]  ;;  %v18_v4 = vld [vmem:[%s140_s0 + $0x8] sm:$0xff]  ;;  %v19_v6 = vld [vmem:[%s140_s0 + $0x10] sm:$0xff] }
   0x2   :  { %v71_v1 = vld [vmem:[%s141_s2] ss:$0 sm:$0xff]  ;;  %v20_v7 = vld [vmem:[%s140_s0 + $0x18] sm:$0xff]  ;;  %v56_v17 = vld [vmem:[%s143_s1 + $0x8] sm:$0xff] }
   0x3   :  { %v72_v2 = vld [vmem:[%s142_s3] ss:$0 sm:$0xff]  ;;  %v28_v3 = vmul.f32 %v71_v1, %v17_v0  ;;  %v29_v5 = vmul.f32 %v71_v1, %v18_v4  ;;  %v30_v9 = vmul.f32 %v71_v1, %v19_v6  ;;  %v31_v10 = vmul.f32 %v71_v1, %v20_v7  ;;  %v57_v20 = vld [vmem:[%s143_s1 + $0x10] sm:$0xff]  ;;  %v58_v24 = vld [vmem:[%s143_s1 + $0x18] sm:$0xff] }
   0x4   :  { %v55_v13 = vld [vmem:[%s143_s1] sm:$0xff] }
   0x5   :  { %v39_v8 = vadd.f32 %v72_v2, %v28_v3  ;;  %v40_v11 = vadd.f32 %v72_v2, %v29_v5  ;;  %v41_v14 = vadd.f32 %v72_v2, %v30_v9  ;;  %v42_v15 = vadd.f32 %v72_v2, %v31_v10 }
   0x7   :  { %vm43_vm0 = vcmp.ge.f32.partialorder %v39_v8, 0.0  ;;  %v47_v12 = vmul.f32 0.25, %v39_v8  ;;  %vm44_vm1 = vcmp.ge.f32.partialorder %v40_v11, 0.0  ;;  %v48_v16 = vmul.f32 0.25, %v40_v11 }
   0x8   :  { %vm45_vm2 = vcmp.ge.f32.partialorder %v41_v14, 0.0  ;;  %v49_v19 = vmul.f32 0.25, %v41_v14  ;;  %vm46_vm3 = vcmp.ge.f32.partialorder %v42_v15, 0.0  ;;  %v50_v23 = vmul.f32 0.25, %v42_v15 }
   0x9   :  { %v51_v18 = vsel %vm43_vm0, %v39_v8, %v47_v12  ;;  %v52_v22 = vsel %vm44_vm1, %v40_v11, %v48_v16 }
   0xa   :  { %v59_v21 = vadd.f32 %v55_v13, %v51_v18  ;;  %v60_v25 = vadd.f32 %v56_v17, %v52_v22  ;;  %v53_v26 = vsel %vm45_vm2, %v41_v14, %v49_v19  ;;  %v54_v28 = vsel %vm46_vm3, %v42_v15, %v50_v23 }
   0xb   :  { %v61_v27 = vadd.f32 %v57_v20, %v53_v26  ;;  %v62_v29 = vadd.f32 %v58_v24, %v54_v28 }
   0xc   :  { %63 = vst [vmem:[%s144_s4] sm:$0xff] %v59_v21  ;;  %64 = vst [vmem:[%s144_s4 + $0x8] sm:$0xff] %v60_v25 }
   0xd   :  { %65 = vst [vmem:[%s144_s4 + $0x10] sm:$0xff] %v61_v27  ;;  %66 = vst [vmem:[%s144_s4 + $0x18] sm:$0xff] %v62_v29 }

// kernel: _forward.46
= control target key start
LH: loop header
LB: loop body
LE: loop exit
PB: predicated region body
PF: predicated region fallthrough
CT: control target
= control target key end

     0   :  { %v265_v1 = vmov 0   ;;  %v37_v19 = vlaneseq  ;;  %s367_s1 = inlined_call_operand.vmem [shape: bf16[128,256], index: 1, kind: input, shape index: {}]   ;;  %s368_s0 = inlined_call_operand.vmem [shape: bf16[32,128], index: 0, kind: input, shape index: {}]   ;;  %s369_s2 = inlined_call_operand.vmem [shape: f32[1,256], index: 2, kind: input, shape index: {}]   ;;  %s370_s3 = inlined_call_operand.vmem [shape: f32[32,256], index: 3, kind: output, shape index: {}]  }
   0x1   :  { %v239_v0 = vld [vmem:[%s367_s1 + $0x4] ss:$8 sps:$4 sm:$0xff]   ;;  %171 = vmatprep.mubr.bf16.mxu0 %v265_v1  ;;  %181 = vmatprep.mubr.bf16.mxu1 %v265_v1  ;;  %v241_v2 = vld [vmem:[%s367_s1] ss:$8 sps:$4 sm:$0xff]   ;;  %v242_v3 = vld [vmem:[%s367_s1 + $0x14] ss:$8 sps:$4 sm:$0xff]  }
   0x2   :  { %139 = vmatprep.subr.bf16.mxu0 %v239_v0  ;;  %222 = vmatprep.subr.bf16.mxu1 %v239_v0  ;;  %v244_v4 = vld [vmem:[%s367_s1 + $0x10] ss:$8 sps:$4 sm:$0xff]   ;;  %v245_v5 = vld [vmem:[%s367_s1 + $0x24] ss:$8 sps:$4 sm:$0xff]   ;;  %v247_v6 = vld [vmem:[%s367_s1 + $0x20] ss:$8 sps:$4 sm:$0xff]  }
   0x3   :  { %140 = vmatpush1.bf16.msra.mxu0 %v241_v2  ;;  %230 = vmatpush1.bf16.msra.mxu1 %v241_v2  ;;  %v248_v7 = vld [vmem:[%s367_s1 + $0x34] ss:$8 sps:$4 sm:$0xff]   ;;  %v250_v8 = vld [vmem:[%s367_s1 + $0x30] ss:$8 sps:$4 sm:$0xff]   ;;  %v251_v9 = vld [vmem:[%s367_s1 + $0x44] ss:$8 sps:$4 sm:$0xff]  }
   0x4   :  { %141 = vmatprep.subr.bf16.mxu0 %v242_v3  ;;  %223 = vmatprep.subr.bf16.mxu1 %v242_v3  ;;  %v253_v10 = vld [vmem:[%s367_s1 + $0x40] ss:$8 sps:$4 sm:$0xff]   ;;  %v254_v11 = vld [vmem:[%s367_s1 + $0x54] ss:$8 sps:$4 sm:$0xff]   ;;  %v256_v12 = vld [vmem:[%s367_s1 + $0x50] ss:$8 sps:$4 sm:$0xff]  }
   0x5   :  { %v257_v13 = vld [vmem:[%s367_s1 + $0x64] ss:$8 sps:$4 sm:$0xff]   ;;  %v259_v14 = vld [vmem:[%s367_s1 + $0x60] ss:$8 sps:$4 sm:$0xff]   ;;  %v260_v15 = vld [vmem:[%s367_s1 + $0x74] ss:$8 sps:$4 sm:$0xff]  }
   0x6   :  { %v262_v16 = vld [vmem:[%s367_s1 + $0x70] ss:$8 sps:$4 sm:$0xff]   ;;  %v263_v17 = vld [vmem:[%s368_s0] sm:$0xff]   ;;  %v264_v18 = vld [vmem:[%s368_s0 + $0x8] sm:$0xff]   ;;  %v38_v20 = vshrl.u32 %v37_v19, 7 }
   0x7   :  { %142 = vmatpush1.bf16.msra.mxu0 %v244_v4  ;;  %231 = vmatpush1.bf16.msra.mxu1 %v244_v4  ;;  %v35_v22 = vld [vmem:[%s369_s2] sm:$0x3] }
   0x8   :  { %143 = vmatprep.subr.bf16.mxu0 %v245_v5  ;;  %224 = vmatprep.subr.bf16.mxu1 %v245_v5  ;;  %v39_v21 = vsub.s32 0, %v38_v20  ;;  %v43_v23 = vsub.s32 1, %v38_v20 }
   0xa   :  { %v40_v24 = vrot.slane %v35_v22, %v39_v21  ;;  %v44_v25 = vrot.slane %v35_v22, %v43_v23 }
   0xb   :  { %144 = vmatpush1.bf16.msra.mxu0 %v247_v6  ;;  %232 = vmatpush1.bf16.msra.mxu1 %v247_v6 }
   0xc   :  { %145 = vmatprep.subr.bf16.mxu0 %v248_v7  ;;  %225 = vmatprep.subr.bf16.mxu1 %v248_v7 }
   0xf   :  { %146 = vmatpush1.bf16.msra.mxu0 %v250_v8  ;;  %233 = vmatpush1.bf16.msra.mxu1 %v250_v8 }
  0x10   :  { %147 = vmatprep.subr.bf16.mxu0 %v251_v9  ;;  %226 = vmatprep.subr.bf16.mxu1 %v251_v9 }
  0x13   :  { %148 = vmatpush1.bf16.msra.mxu0 %v253_v10  ;;  %234 = vmatpush1.bf16.msra.mxu1 %v253_v10 }
  0x14   :  { %149 = vmatprep.subr.bf16.mxu0 %v254_v11  ;;  %227 = vmatprep.subr.bf16.mxu1 %v254_v11 }
  0x17   :  { %150 = vmatpush1.bf16.msra.mxu0 %v256_v12  ;;  %235 = vmatpush1.bf16.msra.mxu1 %v256_v12 }
  0x18   :  { %151 = vmatprep.subr.bf16.mxu0 %v257_v13  ;;  %228 = vmatprep.subr.bf16.mxu1 %v257_v13 }
  0x1b   :  { %152 = vmatpush1.bf16.msra.mxu0 %v259_v14  ;;  %236 = vmatpush1.bf16.msra.mxu1 %v259_v14 }
  0x1c   :  { %153 = vmatprep.subr.bf16.mxu0 %v260_v15  ;;  %229 = vmatprep.subr.bf16.mxu1 %v260_v15 }
  0x1f   :  { %154 = vmatpush1.bf16.msra.mxu0 %v262_v16  ;;  %237 = vmatpush1.bf16.msra.mxu1 %v262_v16 }
  0x22   :  { %172 = vmatmul.mubr.bf16.vlgmr.msra.gmra.mrb[0].mxu0 %v263_v17  ;;  %182 = vmatmul.mubr.bf16.vlgmr.msra.gmra.mrb[0].mxu1 %v264_v18 }
  0xf5   :  { %v173_v26 = vpop.f32.mrb[0].mxu0  ;;  %v183_v27 = vpop.f32.mrb[0].mxu1 }
  0xf6   :  { %v174_v28 = vadd.f32 %v173_v26, %v40_v24  ;;  %v184_v29 = vadd.f32 %v183_v27, %v40_v24  ;;  %v175_v30 = vpop.f32.mrb[1].mxu0  ;;  %v185_v31 = vpop.f32.mrb[1].mxu1 }
  0xf7   :  { %v176_v32 = vadd.f32 %v175_v30, %v44_v25  ;;  %v186_v33 = vadd.f32 %v185_v31, %v44_v25  ;;  %v177_v34 = vpop.f32.mrb[2].mxu0  ;;  %v187_v35 = vpop.f32.mrb[2].mxu1 }
  0xf8   :  { %192 = vst [vmem:[%s370_s3] sm:$0xff] %v174_v28  ;;  %196 = vst [vmem:[%s370_s3 + $0x20] sm:$0xff] %v184_v29  ;;  %v178_v36 = vadd.f32 %v177_v34, %v40_v24  ;;  %v188_v37 = vadd.f32 %v187_v35, %v40_v24  ;;  %v179_v38 = vpop.f32.mrb[3].mxu0  ;;  %v189_v39 = vpop.f32.mrb[3].mxu1 }
  0xf9   :  { %193 = vst [vmem:[%s370_s3 + $0x8] sm:$0xff] %v176_v32  ;;  %197 = vst [vmem:[%s370_s3 + $0x28] sm:$0xff] %v186_v33  ;;  %v180_v40 = vadd.f32 %v179_v38, %v44_v25  ;;  %v190_v41 = vadd.f32 %v189_v39, %v44_v25 }
  0xfa   :  { %194 = vst [vmem:[%s370_s3 + $0x10] sm:$0xff] %v178_v36  ;;  %198 = vst [vmem:[%s370_s3 + $0x30] sm:$0xff] %v188_v37 }
  0xfb   :  { %195 = vst [vmem:[%s370_s3 + $0x18] sm:$0xff] %v180_v40  ;;  %199 = vst [vmem:[%s370_s3 + $0x38] sm:$0xff] %v190_v41 }

// kernel: _forward.44
= control target key start
LH: loop header
LB: loop body
LE: loop exit
PB: predicated region body
PF: predicated region fallthrough
CT: control target
= control target key end

     0   :  { %s1599_s1 = inlined_call_operand.vmem [shape: bf16[1152,128], index: 1, kind: input, shape index: {}]   ;;  %s1600_s0 = inlined_call_operand.vmem [shape: bf16[32,1152], index: 0, kind: input, shape index: {}]   ;;  %s1601_s2 = inlined_call_operand.vmem [shape: f32[1,128], index: 2, kind: input, shape index: {}]   ;;  %s1602_s3 = inlined_call_operand.vmem [shape: f32[32,128], index: 3, kind: output, shape index: {}]  }
   0x1   :  { %v1196_v0 = vld [vmem:[%s1599_s1 + $0x40] sm:$0xff]   ;;  %v1200_v4 = vld [vmem:[%s1599_s1 + $0x48] sm:$0xff]   ;;  %v1204_v8 = vld [vmem:[%s1599_s1 + $0x50] sm:$0xff]  }
   0x2   :  { %v1197_v1 = vld [vmem:[%s1599_s1] sm:$0xff]   ;;  %1054 = vmatprep.subr.bf16.mxu0 %v1196_v0  ;;  %v1201_v5 = vld [vmem:[%s1599_s1 + $0x8] sm:$0xff]   ;;  %v1205_v9 = vld [vmem:[%s1599_s1 + $0x10] sm:$0xff]  }
   0x3   :  { %v1198_v2 = vld [vmem:[%s1599_s1 + $0xc0] sm:$0xff]   ;;  %1055 = vmatpush3.bf16.msra.mxu0 %v1197_v1  ;;  %v1202_v6 = vld [vmem:[%s1599_s1 + $0xc8] sm:$0xff]   ;;  %v1206_v10 = vld [vmem:[%s1599_s1 + $0xd0] sm:$0xff]  }
   0x4   :  { %v1199_v3 = vld [vmem:[%s1599_s1 + $0x80] sm:$0xff]   ;;  %1082 = vmatprep.subr.bf16.mxu1 %v1198_v2  ;;  %1056 = vmatprep.subr.bf16.mxu0 %v1200_v4  ;;  %v1203_v7 = vld [vmem:[%s1599_s1 + $0x88] sm:$0xff]   ;;  %v1207_v11 = vld [vmem:[%s1599_s1 + $0x90] sm:$0xff]  }
   0x5   :  { %1083 = vmatpush3.bf16.msra.mxu1 %v1199_v3  ;;  %v1208_v12 = vld [vmem:[%s1599_s1 + $0x58] sm:$0xff]   ;;  %v1212_v16 = vld [vmem:[%s1599_s1 + $0x60] sm:$0xff]   ;;  %v1216_v20 = vld [vmem:[%s1599_s1 + $0x68] sm:$0xff]  }
   0x6   :  { %1084 = vmatprep.subr.bf16.mxu1 %v1202_v6  ;;  %v1209_v13 = vld [vmem:[%s1599_s1 + $0x18] sm:$0xff]   ;;  %v1213_v17 = vld [vmem:[%s1599_s1 + $0x20] sm:$0xff]   ;;  %v1217_v21 = vld [vmem:[%s1599_s1 + $0x28] sm:$0xff]  }
   0x7   :  { %1057 = vmatpush3.bf16.msra.mxu0 %v1201_v5  ;;  %v1210_v14 = vld [vmem:[%s1599_s1 + $0xd8] sm:$0xff]   ;;  %v1214_v18 = vld [vmem:[%s1599_s1 + $0xe0] sm:$0xff]   ;;  %v1218_v22 = vld [vmem:[%s1599_s1 + $0xe8] sm:$0xff]  }
   0x8   :  { %1058 = vmatprep.subr.bf16.mxu0 %v1204_v8  ;;  %v1211_v15 = vld [vmem:[%s1599_s1 + $0x98] sm:$0xff]   ;;  %v1215_v19 = vld [vmem:[%s1599_s1 + $0xa0] sm:$0xff]   ;;  %v1219_v23 = vld [vmem:[%s1599_s1 + $0xa8] sm:$0xff]  }
   0x9   :  { %1085 = vmatpush3.bf16.msra.mxu1 %v1203_v7  ;;  %v1220_v24 = vld [vmem:[%s1599_s1 + $0x70] sm:$0xff]   ;;  %v1224_v28 = vld [vmem:[%s1599_s1 + $0x78] sm:$0xff]   ;;  %v1227_v31 = vld [vmem:[%s1600_s0] ss:$36 sps:$4 sm:$0xff]  }
   0xa   :  { %1086 = vmatprep.subr.bf16.mxu1 %v1206_v10  ;;  %v1221_v25 = vld [vmem:[%s1599_s1 + $0x30] sm:$0xff]   ;;  %v1225_v29 = vld [vmem:[%s1599_s1 + $0x38] sm:$0xff]   ;;  %v1229_v32 = vld [vmem:[%s1600_s0 + $0x4] ss:$36 sps:$4 sm:$0xff]  }
   0xb   :  { %1059 = vmatpush3.bf16.msra.mxu0 %v1205_v9  ;;  %v1222_v26 = vld [vmem:[%s1599_s1 + $0xf0] sm:$0xff]   ;;  %v1226_v30 = vld [vmem:[%s1599_s1 + $0xf8] sm:$0xff]   ;;  %742 = vmatprep.mubr.bf16.mxu0 %v1229_v32  ;;  %v1231_v34 = vld [vmem:[%s1599_s1 + $0x140] sm:$0xff]  }
   0xc   :  { %1060 = vmatprep.subr.bf16.mxu0 %v1208_v12  ;;  %v1223_v27 = vld [vmem:[%s1599_s1 + $0xb0] sm:$0xff]   ;;  %v1230_v33 = vld [vmem:[%s1599_s1 + $0xb8] sm:$0xff]   ;;  %v1232_v35 = vld [vmem:[%s1600_s0 + $0x8] ss:$36 sps:$4 sm:$0xff]  }
   0xd   :  { %1087 = vmatpush3.bf16.msra.mxu1 %v1207_v11  ;;  %v1234_v36 = vld [vmem:[%s1600_s0 + $0xc] ss:$36 sps:$4 sm:$0xff]   ;;  %v1235_v37 = vld [vmem:[%s1599_s1 + $0x100] sm:$0xff]   ;;  %v1246_v48 = vld [vmem:[%s1599_s1 + $0x158] sm:$0xff]  }
   0xe   :  { %1088 = vmatprep.subr.bf16.mxu1 %v1210_v14  ;;  %791 = vmatprep.mubr.bf16.mxu1 %v1234_v36  ;;  %v1236_v38 = vld [vmem:[%s1599_s1 + $0x1c0] sm:$0xff]   ;;  %v1238_v40 = vld [vmem:[%s1599_s1 + $0x148] sm:$0xff]   ;;  %v1242_v44 = vld [vmem:[%s1599_s1 + $0x150] sm:$0xff]  }
   0xf   :  { %1061 = vmatpush3.bf16.msra.mxu0 %v1209_v13  ;;  %v1237_v39 = vld [vmem:[%s1599_s1 + $0x180] sm:$0xff]   ;;  %v1239_v41 = vld [vmem:[%s1599_s1 + $0x108] sm:$0xff]   ;;  %v1243_v45 = vld [vmem:[%s1599_s1 + $0x110] sm:$0xff]  }
  0x10   :  { %1062 = vmatprep.subr.bf16.mxu0 %v1212_v16  ;;  %v1240_v42 = vld [vmem:[%s1599_s1 + $0x1c8] sm:$0xff]   ;;  %v1244_v46 = vld [vmem:[%s1599_s1 + $0x1d0] sm:$0xff]   ;;  %v1247_v49 = vld [vmem:[%s1599_s1 + $0x118] sm:$0xff]  }
  0x11   :  { %1089 = vmatpush3.bf16.msra.mxu1 %v1211_v15  ;;  %v1241_v43 = vld [vmem:[%s1599_s1 + $0x188] sm:$0xff]   ;;  %v1245_v47 = vld [vmem:[%s1599_s1 + $0x190] sm:$0xff]   ;;  %v1248_v50 = vld [vmem:[%s1599_s1 + $0x1d8] sm:$0xff]  }
  0x12   :  { %1090 = vmatprep.subr.bf16.mxu1 %v1214_v18  ;;  %v1249_v51 = vld [vmem:[%s1599_s1 + $0x198] sm:$0xff]   ;;  %v1250_v52 = vld [vmem:[%s1599_s1 + $0x160] sm:$0xff]   ;;  %v1254_v56 = vld [vmem:[%s1599_s1 + $0x168] sm:$0xff]  }
  0x13   :  { %1063 = vmatpush3.bf16.msra.mxu0 %v1213_v17  ;;  %v1251_v53 = vld [vmem:[%s1599_s1 + $0x120] sm:$0xff]   ;;  %v1255_v57 = vld [vmem:[%s1600_s0 + $0x4c] ss:$36 sps:$4 sm:$0xff]   ;;  %v1260_v61 = vld [vmem:[%s1600_s0 + $0x54] ss:$36 sps:$4 sm:$0xff]  }
  0x14   :  { %1064 = vmatprep.subr.bf16.mxu0 %v1216_v20  ;;  %v1252_v54 = vld [vmem:[%s1599_s1 + $0x1e0] sm:$0xff]   ;;  %v1257_v58 = vld [vmem:[%s1599_s1 + $0x128] sm:$0xff]   ;;  %v1263_v63 = vld [vmem:[%s1600_s0 + $0x50] ss:$36 sps:$4 sm:$0xff]  }
  0x15   :  { %1091 = vmatpush3.bf16.msra.mxu1 %v1215_v19  ;;  %v1253_v55 = vld [vmem:[%s1599_s1 + $0x1a0] sm:$0xff]   ;;  %v1258_v59 = vld [vmem:[%s1600_s0 + $0x48] ss:$36 sps:$4 sm:$0xff]   ;;  %v1264_v0 = vld [vmem:[%s1599_s1 + $0x170] sm:$0xff]  }
  0x16   :  { %1092 = vmatprep.subr.bf16.mxu1 %v1218_v22  ;;  %v1259_v60 = vld [vmem:[%s1599_s1 + $0x1e8] sm:$0xff]   ;;  %v1265_v1 = vld [vmem:[%s1599_s1 + $0x130] sm:$0xff]   ;;  %v1268_v4 = vld [vmem:[%s1599_s1 + $0x178] sm:$0xff]  }
  0x17   :  { %1065 = vmatpush3.bf16.msra.mxu0 %v1217_v21  ;;  %v1262_v62 = vld [vmem:[%s1599_s1 + $0x1a8] sm:$0xff]   ;;  %v1266_v2 = vld [vmem:[%s1599_s1 + $0x1f0] sm:$0xff]   ;;  %v1269_v5 = vld [vmem:[%s1599_s1 + $0x138] sm:$0xff]  }
  0x18   :  { %1066 = vmatprep.subr.bf16.mxu0 %v1220_v24  ;;  %v1267_v3 = vld [vmem:[%s1599_s1 + $0x1b0] sm:$0xff]   ;;  %v1270_v6 = vld [vmem:[%s1599_s1 + $0x1f8] sm:$0xff]   ;;  %v1275_v10 = vld [vmem:[%s1599_s1 + $0x200] sm:$0xff]  }
  0x19   :  { %1093 = vmatpush3.bf16.msra.mxu1 %v1219_v23  ;;  %v1271_v7 = vld [vmem:[%s1600_s0 + $0x10] ss:$36 sps:$4 sm:$0xff]   ;;  %v1274_v9 = vld [vmem:[%s1599_s1 + $0x1b8] sm:$0xff]   ;;  %v1279_v13 = vld [vmem:[%s1599_s1 + $0x208] sm:$0xff]  }
  0x1a   :  { %1094 = vmatprep.subr.bf16.mxu1 %v1222_v26  ;;  %v1273_v8 = vld [vmem:[%s1600_s0 + $0x14] ss:$36 sps:$4 sm:$0xff]   ;;  %v1278_v12 = vld [vmem:[%s1600_s0 + $0x1c] ss:$36 sps:$4 sm:$0xff]   ;;  %v1284_v17 = vld [vmem:[%s1600_s0 + $0x64] ss:$36 sps:$4 sm:$0xff]  }
  0x1b   :  { %1067 = vmatpush3.bf16.msra.mxu0 %v1221_v25  ;;  %v1276_v11 = vld [vmem:[%s1600_s0 + $0x18] ss:$36 sps:$4 sm:$0xff]   ;;  %v1283_v16 = vld [vmem:[%s1599_s1 + $0x210] sm:$0xff]   ;;  %v1286_v18 = vld [vmem:[%s1600_s0 + $0x60] ss:$36 sps:$4 sm:$0xff]  }
  0x1c   :  { %1068 = vmatprep.subr.bf16.mxu0 %v1224_v28  ;;  %v1280_v14 = vld [vmem:[%s1600_s0 + $0x5c] ss:$36 sps:$4 sm:$0xff]   ;;  %v1289_v22 = vld [vmem:[%s1599_s1 + $0x228] sm:$0xff]   ;;  %v1290_v23 = vld [vmem:[%s1599_s1 + $0x230] sm:$0xff]  }
  0x1d   :  { %1095 = vmatpush3.bf16.msra.mxu1 %v1223_v27  ;;  %v1282_v15 = vld [vmem:[%s1600_s0 + $0x58] ss:$36 sps:$4 sm:$0xff]   ;;  %v1288_v20 = vld [vmem:[%s1599_s1 + $0x220] sm:$0xff]   ;;  %v1293_v25 = vld [vmem:[%s1600_s0 + $0x68] ss:$36 sps:$4 sm:$0xff]  }
  0x1e   :  { %1096 = vmatprep.subr.bf16.mxu1 %v1226_v30  ;;  %v1287_v19 = vld [vmem:[%s1599_s1 + $0x218] sm:$0xff]   ;;  %v1292_v21 = vld [vmem:[%s1600_s0 + $0x20] ss:$36 sps:$4 sm:$0xff]  }
  0x1f   :  { %1069 = vmatpush3.bf16.msra.mxu0 %v1225_v29  ;;  %v1291_v24 = vld [vmem:[%s1599_s1 + $0x238] sm:$0xff]   ;;  %v963_v27 = vld [vmem:[%s1601_s2] ss:$0 sm:$0xff] }
  0x20   :  { %1110 = vmatprep.subr.bf16.mxu0 %v1231_v34 }
  0x21   :  { %1097 = vmatpush3.bf16.msra.mxu1 %v1230_v33 }
  0x22   :  { %743 = vmatmul.mubr.bf16.vlgmr.msra.gmra.mrb[0].mxu0 %v1227_v31  ;;  %1138 = vmatprep.subr.bf16.mxu1 %v1236_v38 }
  0x23   :  { %1111 = vmatpush3.bf16.msra.mxu0 %v1235_v37  ;;  %750 = vmatprep.mubr.bf16.mxu0 %v1255_v57 }
  0x24   :  { %792 = vmatmul.mubr.bf16.vlgmr.msra.gmra.mrb[0].mxu1 %v1232_v35  ;;  %1112 = vmatprep.subr.bf16.mxu0 %v1238_v40 }
  0x25   :  { %1139 = vmatpush3.bf16.msra.mxu1 %v1237_v39  ;;  %799 = vmatprep.mubr.bf16.mxu1 %v1260_v61 }
  0x26   :  { %1140 = vmatprep.subr.bf16.mxu1 %v1240_v42 }
  0x27   :  { %1113 = vmatpush3.bf16.msra.mxu0 %v1239_v41 }
  0x28   :  { %1114 = vmatprep.subr.bf16.mxu0 %v1242_v44 }
  0x29   :  { %1141 = vmatpush3.bf16.msra.mxu1 %v1241_v43 }
  0x2a   :  { %1142 = vmatprep.subr.bf16.mxu1 %v1244_v46  ;;  %751 = vmatmul.mubr.bf16.gmra.mrb[4].mxu0 %v1258_v59 }
  0x2b   :  { %1115 = vmatpush3.bf16.msra.mxu0 %v1243_v45  ;;  %840 = vmatprep.mubr.bf16.mxu0 %v1273_v8 }
  0x2c   :  { %1116 = vmatprep.subr.bf16.mxu0 %v1246_v48  ;;  %800 = vmatmul.mubr.bf16.gmra.mrb[4].mxu1 %v1263_v63 }
  0x2d   :  { %1143 = vmatpush3.bf16.msra.mxu1 %v1245_v47  ;;  %889 = vmatprep.mubr.bf16.mxu1 %v1278_v12 }
  0x2e   :  { %1144 = vmatprep.subr.bf16.mxu1 %v1248_v50 }
  0x2f   :  { %1117 = vmatpush3.bf16.msra.mxu0 %v1247_v49 }
  0x30   :  { %1118 = vmatprep.subr.bf16.mxu0 %v1250_v52 }
  0x31   :  { %1145 = vmatpush3.bf16.msra.mxu1 %v1249_v51 }
  0x32   :  { %1146 = vmatprep.subr.bf16.mxu1 %v1252_v54 }
  0x33   :  { %1119 = vmatpush3.bf16.msra.mxu0 %v1251_v53 }
  0x34   :  { %1120 = vmatprep.subr.bf16.mxu0 %v1254_v56 }
  0x35   :  { %1147 = vmatpush3.bf16.msra.mxu1 %v1253_v55 }
  0x36   :  { %1148 = vmatprep.subr.bf16.mxu1 %v1259_v60 }
  0x37   :  { %1121 = vmatpush3.bf16.msra.mxu0 %v1257_v58 }
  0x38   :  { %1122 = vmatprep.subr.bf16.mxu0 %v1264_v0 }
  0x39   :  { %1149 = vmatpush3.bf16.msra.mxu1 %v1262_v62 }
  0x3a   :  { %1150 = vmatprep.subr.bf16.mxu1 %v1266_v2 }
  0x3b   :  { %1123 = vmatpush3.bf16.msra.mxu0 %v1265_v1 }
  0x3c   :  { %1124 = vmatprep.subr.bf16.mxu0 %v1268_v4 }
  0x3d   :  { %1151 = vmatpush3.bf16.msra.mxu1 %v1267_v3 }
  0x3e   :  { %1152 = vmatprep.subr.bf16.mxu1 %v1270_v6 }
  0x3f   :  { %1125 = vmatpush3.bf16.msra.mxu0 %v1269_v5 }
  0x40   :  { %1176 = vmatprep.subr.bf16.mxu0 %v1275_v10 }
  0x41   :  { %1153 = vmatpush3.bf16.msra.mxu1 %v1274_v9 }
  0x42   :  { %841 = vmatmul.mubr.bf16.vlgmr.msra.gmra.mrb[8].mxu0 %v1271_v7 }
  0x43   :  { %1177 = vmatpush3.bf16.msra.mxu0 %v1275_v10  ;;  %848 = vmatprep.mubr.bf16.mxu0 %v1280_v14 }
  0x44   :  { %890 = vmatmul.mubr.bf16.vlgmr.msra.gmra.mrb[8].mxu1 %v1276_v11  ;;  %1178 = vmatprep.subr.bf16.mxu0 %v1279_v13 }
  0x45   :  { %897 = vmatprep.mubr.bf16.mxu1 %v1284_v17 }
  0x47   :  { %1179 = vmatpush3.bf16.msra.mxu0 %v1279_v13 }
  0x48   :  { %1180 = vmatprep.subr.bf16.mxu0 %v1283_v16 }
  0x4a   :  { %849 = vmatmul.mubr.bf16.gmra.mrb[12].mxu0 %v1282_v15 }
  0x4b   :  { %1181 = vmatpush3.bf16.msra.mxu0 %v1283_v16  ;;  %1192 = vmatprep.mubr.bf16.mxu0 %v1292_v21 }
  0x4c   :  { %898 = vmatmul.mubr.bf16.gmra.mrb[12].mxu1 %v1286_v18  ;;  %1182 = vmatprep.subr.bf16.mxu0 %v1287_v19 }
  0x4f   :  { %1183 = vmatpush3.bf16.msra.mxu0 %v1287_v19 }
  0x50   :  { %1184 = vmatprep.subr.bf16.mxu0 %v1288_v20 }
  0x53   :  { %1185 = vmatpush3.bf16.msra.mxu0 %v1288_v20 }
  0x54   :  { %1186 = vmatprep.subr.bf16.mxu0 %v1289_v22 }
  0x57   :  { %1187 = vmatpush3.bf16.msra.mxu0 %v1289_v22 }
  0x58   :  { %1188 = vmatprep.subr.bf16.mxu0 %v1290_v23 }
  0x5b   :  { %1189 = vmatpush3.bf16.msra.mxu0 %v1290_v23 }
  0x5c   :  { %1190 = vmatprep.subr.bf16.mxu0 %v1291_v24 }
  0x5f   :  { %1191 = vmatpush3.bf16.msra.mxu0 %v1291_v24 }
  0x62   :  { %1193 = vmatmul.mubr.bf16.vlgmr.msra.gmra.mrb[16].mxu0 %v1293_v25 }
  0xf5   :  { %v1070_v26 = vpop.f32.mrb[0].mxu0 }
  0xf6   :  { %v1071_v28 = vpop.f32.mrb[1].mxu0 }
  0xf7   :  { %v1072_v29 = vadd.f32 %v1071_v28, %v1070_v26  ;;  %v1073_v30 = vpop.f32.mrb[2].mxu0  ;;  %v1098_v31 = vpop.f32.mrb[0].mxu1 }
  0xf8   :  { %v1074_v32 = vpop.f32.mrb[3].mxu0  ;;  %v1099_v35 = vpop.f32.mrb[1].mxu1 }
  0xf9   :  { %v745_v33 = vadd.f32 %v1072_v29, %v963_v27  ;;  %v1075_v34 = vadd.f32 %v1074_v32, %v1073_v30  ;;  %v1100_v36 = vadd.f32 %v1099_v35, %v1098_v31  ;;  %v1101_v37 = vpop.f32.mrb[2].mxu1 }
  0xfa   :  { %v1102_v39 = vpop.f32.mrb[3].mxu1 }
  0xfb   :  { %v748_v38 = vadd.f32 %v1075_v34, %v963_v27  ;;  %v794_v40 = vadd.f32 %v1100_v36, %v745_v33  ;;  %v1103_v41 = vadd.f32 %v1102_v39, %v1101_v37 }
  0xfd   :  { %v797_v42 = vadd.f32 %v1103_v41, %v748_v38  ;;  %v1076_v43 = vpop.f32.mrb[4].mxu0 }
  0xfe   :  { %v1077_v44 = vpop.f32.mrb[5].mxu0 }
  0xff   :  { %v1078_v45 = vadd.f32 %v1077_v44, %v1076_v43  ;;  %v1079_v46 = vpop.f32.mrb[6].mxu0  ;;  %v1104_v47 = vpop.f32.mrb[4].mxu1 }
 0x100   :  { %v1080_v48 = vpop.f32.mrb[7].mxu0  ;;  %v1105_v51 = vpop.f32.mrb[5].mxu1 }
 0x101   :  { %v753_v49 = vadd.f32 %v1078_v45, %v963_v27  ;;  %v1081_v50 = vadd.f32 %v1080_v48, %v1079_v46  ;;  %v1106_v52 = vadd.f32 %v1105_v51, %v1104_v47  ;;  %v1107_v53 = vpop.f32.mrb[6].mxu1 }
 0x102   :  { %v1108_v55 = vpop.f32.mrb[7].mxu1 }
 0x103   :  { %v756_v54 = vadd.f32 %v1081_v50, %v963_v27  ;;  %v802_v56 = vadd.f32 %v1106_v52, %v753_v49  ;;  %v1109_v57 = vadd.f32 %v1108_v55, %v1107_v53 }
 0x105   :  { %v805_v58 = vadd.f32 %v1109_v57, %v756_v54 }
 0x115   :  { %v1126_v59 = vpop.f32.mrb[8].mxu0 }
 0x116   :  { %v1127_v60 = vpop.f32.mrb[9].mxu0 }
 0x117   :  { %v1128_v61 = vadd.f32 %v1127_v60, %v1126_v59  ;;  %v1129_v62 = vpop.f32.mrb[10].mxu0  ;;  %v1154_v63 = vpop.f32.mrb[8].mxu1 }
 0x118   :  { %v1130_v0 = vpop.f32.mrb[11].mxu0  ;;  %v1155_v3 = vpop.f32.mrb[9].mxu1 }
 0x119   :  { %v843_v1 = vadd.f32 %v1128_v61, %v794_v40  ;;  %v1131_v2 = vadd.f32 %v1130_v0, %v1129_v62  ;;  %v1156_v4 = vadd.f32 %v1155_v3, %v1154_v63  ;;  %v1157_v5 = vpop.f32.mrb[10].mxu1 }
 0x11a   :  { %v1158_v7 = vpop.f32.mrb[11].mxu1 }
 0x11b   :  { %v846_v6 = vadd.f32 %v1131_v2, %v797_v42  ;;  %v1159_v8 = vadd.f32 %v1158_v7, %v1157_v5  ;;  %v892_v9 = vadd.f32 %v1156_v4, %v843_v1 }
 0x11d   :  { %v1132_v10 = vpop.f32.mrb[12].mxu0  ;;  %v895_v12 = vadd.f32 %v1159_v8, %v846_v6 }
 0x11e   :  { %v1133_v11 = vpop.f32.mrb[13].mxu0 }
 0x11f   :  { %v1134_v13 = vadd.f32 %v1133_v11, %v1132_v10  ;;  %v1135_v14 = vpop.f32.mrb[14].mxu0  ;;  %v1160_v15 = vpop.f32.mrb[12].mxu1 }
 0x120   :  { %v1136_v16 = vpop.f32.mrb[15].mxu0  ;;  %v1161_v19 = vpop.f32.mrb[13].mxu1 }
 0x121   :  { %v851_v17 = vadd.f32 %v1134_v13, %v802_v56  ;;  %v1137_v18 = vadd.f32 %v1136_v16, %v1135_v14  ;;  %v1162_v20 = vadd.f32 %v1161_v19, %v1160_v15  ;;  %v1163_v21 = vpop.f32.mrb[14].mxu1 }
 0x122   :  { %v1164_v23 = vpop.f32.mrb[15].mxu1 }
 0x123   :  { %v854_v22 = vadd.f32 %v1137_v18, %v805_v58  ;;  %v1165_v24 = vadd.f32 %v1164_v23, %v1163_v21  ;;  %v900_v25 = vadd.f32 %v1162_v20, %v851_v17 }
 0x125   :  { %v903_v26 = vadd.f32 %v1165_v24, %v854_v22 }
 0x135   :  { %v1194_v27 = vpop.f32.mrb[16].mxu0 }
 0x136   :  { %v949_v28 = vadd.f32 %v1194_v27, %v900_v25  ;;  %v940_v29 = vpop.f32.mrb[17].mxu0 }
 0x137   :  { %v941_v30 = vadd.f32 %v940_v29, %v892_v9  ;;  %v1195_v31 = vpop.f32.mrb[18].mxu0 }
 0x138   :  { %957 = vst [vmem:[%s1602_s3 + $0x10] sm:$0xff] %v949_v28  ;;  %v952_v32 = vadd.f32 %v1195_v31, %v903_v26  ;;  %v943_v33 = vpop.f32.mrb[19].mxu0 }
 0x139   :  { %955 = vst [vmem:[%s1602_s3] sm:$0xff] %v941_v30  ;;  %v944_v34 = vadd.f32 %v943_v33, %v895_v12 }
 0x13a   :  { %958 = vst [vmem:[%s1602_s3 + $0x18] sm:$0xff] %v952_v32 }
 0x13b   :  { %956 = vst [vmem:[%s1602_s3 + $0x8] sm:$0xff] %v944_v34 }

// kernel: _forward.48
= control target key start
LH: loop header
LB: loop body
LE: loop exit
PB: predicated region body
PF: predicated region fallthrough
CT: control target
= control target key end

     0   :  { %v24_v0 = vlaneseq  ;;  %s172_s1 = inlined_call_operand.vmem [shape: f32[1,256], index: 1, kind: input, shape index: {}]   ;;  %s173_s2 = inlined_call_operand.vmem [shape: f32[1,256], index: 2, kind: input, shape index: {}]   ;;  %s174_s0 = inlined_call_operand.vmem [shape: f32[32,256], index: 0, kind: input, shape index: {}]   ;;  %s175_s3 = inlined_call_operand.vmem [shape: f32[32,256], index: 3, kind: output, shape index: {}]  }
   0x1   :  { %v22_v2 = vld [vmem:[%s172_s1] sm:$0x3]  ;;  %v15_v6 = vld [vmem:[%s174_s0 + $0x8] sm:$0xff]  ;;  %v16_v8 = vld [vmem:[%s174_s0 + $0x10] sm:$0xff] }
   0x2   :  { %v25_v1 = vshrl.u32 %v24_v0, 7  ;;  %v42_v3 = vld [vmem:[%s173_s2] sm:$0x3]  ;;  %v17_v9 = vld [vmem:[%s174_s0 + $0x18] sm:$0xff]  ;;  %v19_v15 = vld [vmem:[%s174_s0 + $0x28] sm:$0xff] }
   0x3   :  { %v14_v4 = vld [vmem:[%s174_s0] sm:$0xff]  ;;  %v20_v16 = vld [vmem:[%s174_s0 + $0x30] sm:$0xff]  ;;  %v21_v17 = vld [vmem:[%s174_s0 + $0x38] sm:$0xff] }
   0x4   :  { %v26_v5 = vsub.s32 0, %v25_v1  ;;  %v30_v7 = vsub.s32 1, %v25_v1  ;;  %v18_v10 = vld [vmem:[%s174_s0 + $0x20] sm:$0xff] }
   0x6   :  { %v27_v11 = vrot.slane %v22_v2, %v26_v5  ;;  %v47_v12 = vrot.slane %v42_v3, %v26_v5  ;;  %v31_v13 = vrot.slane %v22_v2, %v30_v7  ;;  %v51_v14 = vrot.slane %v42_v3, %v30_v7 }
   0x8   :  { %v34_v18 = vmul.f32 %v27_v11, %v14_v4  ;;  %v35_v19 = vmul.f32 %v31_v13, %v15_v6  ;;  %v36_v20 = vmul.f32 %v27_v11, %v16_v8  ;;  %v37_v21 = vmul.f32 %v31_v13, %v17_v9 }
   0x9   :  { %v38_v22 = vmul.f32 %v27_v11, %v18_v10  ;;  %v39_v23 = vmul.f32 %v31_v13, %v19_v15  ;;  %v40_v24 = vmul.f32 %v27_v11, %v20_v16  ;;  %v41_v25 = vmul.f32 %v31_v13, %v21_v17 }
   0xa   :  { %v54_v26 = vadd.f32 %v47_v12, %v34_v18  ;;  %v55_v27 = vadd.f32 %v51_v14, %v35_v19  ;;  %v56_v28 = vadd.f32 %v47_v12, %v36_v20  ;;  %v57_v29 = vadd.f32 %v51_v14, %v37_v21 }
   0xb   :  { %v58_v30 = vadd.f32 %v47_v12, %v38_v22  ;;  %v59_v31 = vadd.f32 %v51_v14, %v39_v23  ;;  %v60_v32 = vadd.f32 %v47_v12, %v40_v24  ;;  %v61_v33 = vadd.f32 %v51_v14, %v41_v25 }
   0xc   :  { %vm62_vm0 = vcmp.ge.f32.partialorder %v54_v26, 0.0  ;;  %v70_v34 = vmul.f32 0.25, %v54_v26  ;;  %vm63_vm1 = vcmp.ge.f32.partialorder %v55_v27, 0.0  ;;  %v71_v35 = vmul.f32 0.25, %v55_v27 }
   0xd   :  { %vm64_vm2 = vcmp.ge.f32.partialorder %v56_v28, 0.0  ;;  %v72_v36 = vmul.f32 0.25, %v56_v28  ;;  %vm65_vm3 = vcmp.ge.f32.partialorder %v57_v29, 0.0  ;;  %v73_v37 = vmul.f32 0.25, %v57_v29 }
   0xe   :  { %v78_v38 = vsel %vm62_vm0, %v54_v26, %v70_v34  ;;  %v79_v39 = vsel %vm63_vm1, %v55_v27, %v71_v35  ;;  %vm66_vm4 = vcmp.ge.f32.partialorder %v58_v30, 0.0  ;;  %v74_v40 = vmul.f32 0.25, %v58_v30 }
   0xf   :  { %86 = vst [vmem:[%s175_s3] sm:$0xff] %v78_v38  ;;  %87 = vst [vmem:[%s175_s3 + $0x8] sm:$0xff] %v79_v39  ;;  %v80_v41 = vsel %vm64_vm2, %v56_v28, %v72_v36  ;;  %v81_v42 = vsel %vm65_vm3, %v57_v29, %v73_v37  ;;  %vm67_vm5 = vcmp.ge.f32.partialorder %v59_v31, 0.0  ;;  %v75_v43 = vmul.f32 0.25, %v59_v31 }
  0x10   :  { %88 = vst [vmem:[%s175_s3 + $0x10] sm:$0xff] %v80_v41  ;;  %89 = vst [vmem:[%s175_s3 + $0x18] sm:$0xff] %v81_v42  ;;  %v82_v44 = vsel %vm66_vm4, %v58_v30, %v74_v40  ;;  %vm68_vm6 = vcmp.ge.f32.partialorder %v60_v32, 0.0  ;;  %v76_v45 = vmul.f32 0.25, %v60_v32  ;;  %vm69_vm7 = vcmp.ge.f32.partialorder %v61_v33, 0.0 }
  0x11   :  { %90 = vst [vmem:[%s175_s3 + $0x20] sm:$0xff] %v82_v44  ;;  %v83_v46 = vsel %vm67_vm5, %v59_v31, %v75_v43  ;;  %v77_v47 = vmul.f32 0.25, %v61_v33 }
  0x12   :  { %91 = vst [vmem:[%s175_s3 + $0x28] sm:$0xff] %v83_v46  ;;  %v84_v48 = vsel %vm68_vm6, %v60_v32, %v76_v45 }
  0x13   :  { %92 = vst [vmem:[%s175_s3 + $0x30] sm:$0xff] %v84_v48  ;;  %v85_v49 = vsel %vm69_vm7, %v61_v33, %v77_v47 }
  0x14   :  { %93 = vst [vmem:[%s175_s3 + $0x38] sm:$0xff] %v85_v49 }

// kernel: _forward.47
= control target key start
LH: loop header
LB: loop body
LE: loop exit
PB: predicated region body
PF: predicated region fallthrough
CT: control target
= control target key end

     0   :  { %s2275_s1 = inlined_call_operand.vmem [shape: bf16[1152,256], index: 1, kind: input, shape index: {}]   ;;  %s2276_s0 = inlined_call_operand.vmem [shape: bf16[32,1152], index: 0, kind: input, shape index: {}]   ;;  %s2277_s2 = inlined_call_operand.vmem [shape: f32[1,256], index: 2, kind: input, shape index: {}]   ;;  %s2278_s3 = inlined_call_operand.vmem [shape: f32[32,256], index: 3, kind: output, shape index: {}]  }
   0x1   :  { %v1499_v0 = vld [vmem:[%s2275_s1 + $0x4] ss:$8 sps:$4 sm:$0xff]   ;;  %v1503_v2 = vld [vmem:[%s2275_s1] ss:$8 sps:$4 sm:$0xff]   ;;  %v1505_v4 = vld [vmem:[%s2275_s1 + $0x14] ss:$8 sps:$4 sm:$0xff]  }
   0x2   :  { %v1501_v1 = vld [vmem:[%s2275_s1 + $0x204] ss:$8 sps:$4 sm:$0xff]   ;;  %1003 = vmatprep.subr.bf16.mxu1 %v1499_v0  ;;  %v1504_v3 = vld [vmem:[%s2275_s1 + $0x200] ss:$8 sps:$4 sm:$0xff]   ;;  %v1507_v5 = vld [vmem:[%s2275_s1 + $0x214] ss:$8 sps:$4 sm:$0xff]  }
   0x3   :  { %1109 = vmatprep.subr.bf16.mxu0 %v1501_v1  ;;  %1004 = vmatpush1.bf16.msra.mxu1 %v1503_v2  ;;  %v1509_v6 = vld [vmem:[%s2275_s1 + $0x10] ss:$8 sps:$4 sm:$0xff]   ;;  %v1511_v8 = vld [vmem:[%s2275_s1 + $0x24] ss:$8 sps:$4 sm:$0xff]   ;;  %v1515_v10 = vld [vmem:[%s2275_s1 + $0x20] ss:$8 sps:$4 sm:$0xff]  }
   0x4   :  { %1110 = vmatpush1.bf16.msra.mxu0 %v1504_v3  ;;  %1005 = vmatprep.subr.bf16.mxu1 %v1505_v4  ;;  %v1510_v7 = vld [vmem:[%s2275_s1 + $0x210] ss:$8 sps:$4 sm:$0xff]   ;;  %v1513_v9 = vld [vmem:[%s2275_s1 + $0x224] ss:$8 sps:$4 sm:$0xff]   ;;  %v1516_v11 = vld [vmem:[%s2275_s1 + $0x220] ss:$8 sps:$4 sm:$0xff]  }
   0x5   :  { %1111 = vmatprep.subr.bf16.mxu0 %v1507_v5  ;;  %v1517_v12 = vld [vmem:[%s2275_s1 + $0x34] ss:$8 sps:$4 sm:$0xff]   ;;  %v1521_v14 = vld [vmem:[%s2275_s1 + $0x30] ss:$8 sps:$4 sm:$0xff]   ;;  %v1523_v16 = vld [vmem:[%s2275_s1 + $0x44] ss:$8 sps:$4 sm:$0xff]  }
   0x6   :  { %v1519_v13 = vld [vmem:[%s2275_s1 + $0x234] ss:$8 sps:$4 sm:$0xff]   ;;  %v1522_v15 = vld [vmem:[%s2275_s1 + $0x230] ss:$8 sps:$4 sm:$0xff]   ;;  %v1525_v17 = vld [vmem:[%s2275_s1 + $0x244] ss:$8 sps:$4 sm:$0xff]  }
   0x7   :  { %1006 = vmatpush1.bf16.msra.mxu1 %v1509_v6  ;;  %v1527_v18 = vld [vmem:[%s2275_s1 + $0x40] ss:$8 sps:$4 sm:$0xff]   ;;  %v1529_v20 = vld [vmem:[%s2275_s1 + $0x54] ss:$8 sps:$4 sm:$0xff]   ;;  %v1533_v22 = vld [vmem:[%s2275_s1 + $0x50] ss:$8 sps:$4 sm:$0xff]  }
   0x8   :  { %1112 = vmatpush1.bf16.msra.mxu0 %v1510_v7  ;;  %1007 = vmatprep.subr.bf16.mxu1 %v1511_v8  ;;  %v1528_v19 = vld [vmem:[%s2275_s1 + $0x240] ss:$8 sps:$4 sm:$0xff]   ;;  %v1531_v21 = vld [vmem:[%s2275_s1 + $0x254] ss:$8 sps:$4 sm:$0xff]   ;;  %v1534_v23 = vld [vmem:[%s2275_s1 + $0x250] ss:$8 sps:$4 sm:$0xff]  }
   0x9   :  { %1113 = vmatprep.subr.bf16.mxu0 %v1513_v9  ;;  %v1535_v24 = vld [vmem:[%s2275_s1 + $0x64] ss:$8 sps:$4 sm:$0xff]   ;;  %v1539_v26 = vld [vmem:[%s2275_s1 + $0x60] ss:$8 sps:$4 sm:$0xff]   ;;  %v1541_v28 = vld [vmem:[%s2275_s1 + $0x74] ss:$8 sps:$4 sm:$0xff]  }
   0xa   :  { %v1537_v25 = vld [vmem:[%s2275_s1 + $0x264] ss:$8 sps:$4 sm:$0xff]   ;;  %v1540_v27 = vld [vmem:[%s2275_s1 + $0x260] ss:$8 sps:$4 sm:$0xff]   ;;  %v1543_v29 = vld [vmem:[%s2275_s1 + $0x274] ss:$8 sps:$4 sm:$0xff]  }
   0xb   :  { %1008 = vmatpush1.bf16.msra.mxu1 %v1515_v10  ;;  %v1545_v30 = vld [vmem:[%s2275_s1 + $0x70] ss:$8 sps:$4 sm:$0xff]   ;;  %v1547_v32 = vld [vmem:[%s2275_s1 + $0x84] ss:$8 sps:$4 sm:$0xff]   ;;  %v1551_v34 = vld [vmem:[%s2275_s1 + $0x80] ss:$8 sps:$4 sm:$0xff]  }
   0xc   :  { %1114 = vmatpush1.bf16.msra.mxu0 %v1516_v11  ;;  %1009 = vmatprep.subr.bf16.mxu1 %v1517_v12  ;;  %v1546_v31 = vld [vmem:[%s2275_s1 + $0x270] ss:$8 sps:$4 sm:$0xff]   ;;  %v1549_v33 = vld [vmem:[%s2275_s1 + $0x284] ss:$8 sps:$4 sm:$0xff]   ;;  %v1552_v35 = vld [vmem:[%s2275_s1 + $0x280] ss:$8 sps:$4 sm:$0xff]  }
   0xd   :  { %1115 = vmatprep.subr.bf16.mxu0 %v1519_v13  ;;  %v1553_v36 = vld [vmem:[%s2275_s1 + $0x94] ss:$8 sps:$4 sm:$0xff]   ;;  %v1557_v38 = vld [vmem:[%s2275_s1 + $0x90] ss:$8 sps:$4 sm:$0xff]   ;;  %v1559_v40 = vld [vmem:[%s2275_s1 + $0xa4] ss:$8 sps:$4 sm:$0xff]  }
   0xe   :  { %v1555_v37 = vld [vmem:[%s2275_s1 + $0x294] ss:$8 sps:$4 sm:$0xff]   ;;  %v1558_v39 = vld [vmem:[%s2275_s1 + $0x290] ss:$8 sps:$4 sm:$0xff]   ;;  %v1561_v41 = vld [vmem:[%s2275_s1 + $0x2a4] ss:$8 sps:$4 sm:$0xff]  }
   0xf   :  { %1010 = vmatpush1.bf16.msra.mxu1 %v1521_v14  ;;  %v1563_v42 = vld [vmem:[%s2275_s1 + $0xa0] ss:$8 sps:$4 sm:$0xff]   ;;  %v1565_v44 = vld [vmem:[%s2275_s1 + $0xb4] ss:$8 sps:$4 sm:$0xff]   ;;  %v1569_v46 = vld [vmem:[%s2275_s1 + $0xb0] ss:$8 sps:$4 sm:$0xff]  }
  0x10   :  { %1116 = vmatpush1.bf16.msra.mxu0 %v1522_v15  ;;  %1011 = vmatprep.subr.bf16.mxu1 %v1523_v16  ;;  %v1564_v43 = vld [vmem:[%s2275_s1 + $0x2a0] ss:$8 sps:$4 sm:$0xff]   ;;  %v1567_v45 = vld [vmem:[%s2275_s1 + $0x2b4] ss:$8 sps:$4 sm:$0xff]   ;;  %v1570_v47 = vld [vmem:[%s2275_s1 + $0x2b0] ss:$8 sps:$4 sm:$0xff]  }
  0x11   :  { %1117 = vmatprep.subr.bf16.mxu0 %v1525_v17  ;;  %v1597_v48 = vld [vmem:[%s2276_s0 + $0x4] ss:$36 sps:$4 sm:$0xff]   ;;  %v1603_v51 = vld [vmem:[%s2276_s0 + $0x14] ss:$36 sps:$4 sm:$0xff]  }
  0x12   :  { %v1571_v49 = vld [vmem:[%s2275_s1 + $0xc4] ss:$8 sps:$4 sm:$0xff]   ;;  %1035 = vmatprep.mubr.bf16.mxu1 %v1597_v48  ;;  %v1575_v52 = vld [vmem:[%s2275_s1 + $0xc0] ss:$8 sps:$4 sm:$0xff]   ;;  %v1577_v54 = vld [vmem:[%s2275_s1 + $0xd4] ss:$8 sps:$4 sm:$0xff]   ;;  %1141 = vmatprep.mubr.bf16.mxu0 %v1603_v51 }
  0x13   :  { %1012 = vmatpush1.bf16.msra.mxu1 %v1527_v18  ;;  %v1573_v50 = vld [vmem:[%s2275_s1 + $0x2c4] ss:$8 sps:$4 sm:$0xff]   ;;  %v1576_v53 = vld [vmem:[%s2275_s1 + $0x2c0] ss:$8 sps:$4 sm:$0xff]   ;;  %v1579_v55 = vld [vmem:[%s2275_s1 + $0x2d4] ss:$8 sps:$4 sm:$0xff]  }
  0x14   :  { %1118 = vmatpush1.bf16.msra.mxu0 %v1528_v19  ;;  %1013 = vmatprep.subr.bf16.mxu1 %v1529_v20  ;;  %v1581_v56 = vld [vmem:[%s2275_s1 + $0xd0] ss:$8 sps:$4 sm:$0xff]   ;;  %v1583_v58 = vld [vmem:[%s2275_s1 + $0xe4] ss:$8 sps:$4 sm:$0xff]   ;;  %v1587_v60 = vld [vmem:[%s2275_s1 + $0xe0] ss:$8 sps:$4 sm:$0xff]  }
  0x15   :  { %1119 = vmatprep.subr.bf16.mxu0 %v1531_v21  ;;  %v1582_v57 = vld [vmem:[%s2275_s1 + $0x2d0] ss:$8 sps:$4 sm:$0xff]   ;;  %v1585_v59 = vld [vmem:[%s2275_s1 + $0x2e4] ss:$8 sps:$4 sm:$0xff]   ;;  %v1588_v61 = vld [vmem:[%s2275_s1 + $0x2e0] ss:$8 sps:$4 sm:$0xff]  }
  0x16   :  { %v1589_v62 = vld [vmem:[%s2275_s1 + $0xf4] ss:$8 sps:$4 sm:$0xff]   ;;  %v1593_v0 = vld [vmem:[%s2275_s1 + $0xf0] ss:$8 sps:$4 sm:$0xff]   ;;  %v1600_v2 = vld [vmem:[%s2275_s1 + $0x104] ss:$8 sps:$4 sm:$0xff]  }
  0x17   :  { %1014 = vmatpush1.bf16.msra.mxu1 %v1533_v22  ;;  %v1591_v63 = vld [vmem:[%s2275_s1 + $0x2f4] ss:$8 sps:$4 sm:$0xff]   ;;  %v1594_v1 = vld [vmem:[%s2275_s1 + $0x2f0] ss:$8 sps:$4 sm:$0xff]   ;;  %v1606_v3 = vld [vmem:[%s2275_s1 + $0x304] ss:$8 sps:$4 sm:$0xff]  }
  0x18   :  { %1120 = vmatpush1.bf16.msra.mxu0 %v1534_v23  ;;  %1015 = vmatprep.subr.bf16.mxu1 %v1535_v24  ;;  %v1595_v4 = vld [vmem:[%s2276_s0] ss:$36 sps:$4 sm:$0xff]   ;;  %v1601_v6 = vld [vmem:[%s2276_s0 + $0x10] ss:$36 sps:$4 sm:$0xff]  }
  0x19   :  { %1121 = vmatprep.subr.bf16.mxu0 %v1537_v25  ;;  %v1598_v5 = vld [vmem:[%s2275_s1 + $0x100] ss:$8 sps:$4 sm:$0xff]   ;;  %v1609_v8 = vld [vmem:[%s2275_s1 + $0x114] ss:$8 sps:$4 sm:$0xff]   ;;  %v1607_v10 = vld [vmem:[%s2275_s1 + $0x110] ss:$8 sps:$4 sm:$0xff]  }
  0x1a   :  { %v1604_v7 = vld [vmem:[%s2275_s1 + $0x300] ss:$8 sps:$4 sm:$0xff]   ;;  %v1612_v9 = vld [vmem:[%s2275_s1 + $0x314] ss:$8 sps:$4 sm:$0xff]   ;;  %v1610_v11 = vld [vmem:[%s2275_s1 + $0x310] ss:$8 sps:$4 sm:$0xff]  }
  0x1b   :  { %1016 = vmatpush1.bf16.msra.mxu1 %v1539_v26  ;;  %v1615_v12 = vld [vmem:[%s2275_s1 + $0x124] ss:$8 sps:$4 sm:$0xff]   ;;  %v1613_v14 = vld [vmem:[%s2275_s1 + $0x120] ss:$8 sps:$4 sm:$0xff]   ;;  %v1621_v16 = vld [vmem:[%s2275_s1 + $0x134] ss:$8 sps:$4 sm:$0xff]  }
  0x1c   :  { %1122 = vmatpush1.bf16.msra.mxu0 %v1540_v27  ;;  %1017 = vmatprep.subr.bf16.mxu1 %v1541_v28  ;;  %v1618_v13 = vld [vmem:[%s2275_s1 + $0x324] ss:$8 sps:$4 sm:$0xff]   ;;  %v1616_v15 = vld [vmem:[%s2275_s1 + $0x320] ss:$8 sps:$4 sm:$0xff]   ;;  %v1624_v17 = vld [vmem:[%s2275_s1 + $0x334] ss:$8 sps:$4 sm:$0xff]  }
  0x1d   :  { %1123 = vmatprep.subr.bf16.mxu0 %v1543_v29  ;;  %v1619_v18 = vld [vmem:[%s2275_s1 + $0x130] ss:$8 sps:$4 sm:$0xff]   ;;  %v1627_v20 = vld [vmem:[%s2275_s1 + $0x144] ss:$8 sps:$4 sm:$0xff]   ;;  %v1625_v22 = vld [vmem:[%s2275_s1 + $0x140] ss:$8 sps:$4 sm:$0xff]  }
  0x1e   :  { %v1622_v19 = vld [vmem:[%s2275_s1 + $0x330] ss:$8 sps:$4 sm:$0xff]   ;;  %v1630_v21 = vld [vmem:[%s2275_s1 + $0x344] ss:$8 sps:$4 sm:$0xff]   ;;  %v1628_v23 = vld [vmem:[%s2275_s1 + $0x340] ss:$8 sps:$4 sm:$0xff]  }
  0x1f   :  { %1018 = vmatpush1.bf16.msra.mxu1 %v1545_v30  ;;  %v1633_v24 = vld [vmem:[%s2275_s1 + $0x154] ss:$8 sps:$4 sm:$0xff]   ;;  %v1631_v26 = vld [vmem:[%s2275_s1 + $0x150] ss:$8 sps:$4 sm:$0xff]   ;;  %v1639_v28 = vld [vmem:[%s2275_s1 + $0x164] ss:$8 sps:$4 sm:$0xff]  }
  0x20   :  { %1124 = vmatpush1.bf16.msra.mxu0 %v1546_v31  ;;  %1019 = vmatprep.subr.bf16.mxu1 %v1547_v32  ;;  %v1636_v25 = vld [vmem:[%s2275_s1 + $0x354] ss:$8 sps:$4 sm:$0xff]   ;;  %v1634_v27 = vld [vmem:[%s2275_s1 + $0x350] ss:$8 sps:$4 sm:$0xff]   ;;  %v1689_v31 = vld [vmem:[%s2276_s0 + $0x48] ss:$36 sps:$4 sm:$0xff]  }
  0x21   :  { %1125 = vmatprep.subr.bf16.mxu0 %v1549_v33  ;;  %v1685_v29 = vld [vmem:[%s2276_s0 + $0x4c] ss:$36 sps:$4 sm:$0xff]   ;;  %v1687_v30 = vld [vmem:[%s2276_s0 + $0x5c] ss:$36 sps:$4 sm:$0xff]  }
  0x22   :  { %v1642_v32 = vld [vmem:[%s2275_s1 + $0x364] ss:$8 sps:$4 sm:$0xff]   ;;  %v1693_v33 = vld [vmem:[%s2276_s0 + $0x58] ss:$36 sps:$4 sm:$0xff]  }
  0x23   :  { %1020 = vmatpush1.bf16.msra.mxu1 %v1551_v34  ;;  %v1637_v34 = vld [vmem:[%s2275_s1 + $0x160] ss:$8 sps:$4 sm:$0xff]   ;;  %v1655_v48 = vld [vmem:[%s2275_s1 + $0x190] ss:$8 sps:$4 sm:$0xff]   ;;  %v1666_v51 = vld [vmem:[%s2275_s1 + $0x3a4] ss:$8 sps:$4 sm:$0xff]  }
  0x24   :  { %1126 = vmatpush1.bf16.msra.mxu0 %v1552_v35  ;;  %1021 = vmatprep.subr.bf16.mxu1 %v1553_v36  ;;  %v1640_v35 = vld [vmem:[%s2275_s1 + $0x360] ss:$8 sps:$4 sm:$0xff]   ;;  %v1645_v36 = vld [vmem:[%s2275_s1 + $0x174] ss:$8 sps:$4 sm:$0xff]  }
  0x25   :  { %1127 = vmatprep.subr.bf16.mxu0 %v1555_v37  ;;  %v1648_v37 = vld [vmem:[%s2275_s1 + $0x374] ss:$8 sps:$4 sm:$0xff]  }
  0x27   :  { %1022 = vmatpush1.bf16.msra.mxu1 %v1557_v38  ;;  %v1643_v38 = vld [vmem:[%s2275_s1 + $0x170] ss:$8 sps:$4 sm:$0xff]  }
  0x28   :  { %1128 = vmatpush1.bf16.msra.mxu0 %v1558_v39  ;;  %1023 = vmatprep.subr.bf16.mxu1 %v1559_v40  ;;  %v1646_v39 = vld [vmem:[%s2275_s1 + $0x370] ss:$8 sps:$4 sm:$0xff]   ;;  %v1651_v40 = vld [vmem:[%s2275_s1 + $0x184] ss:$8 sps:$4 sm:$0xff]  }
  0x29   :  { %1129 = vmatprep.subr.bf16.mxu0 %v1561_v41  ;;  %v1705_v41 = vld [vmem:[%s2276_s0 + $0xc] ss:$36 sps:$4 sm:$0xff]  }
  0x2b   :  { %1024 = vmatpush1.bf16.msra.mxu1 %v1563_v42  ;;  %v1654_v42 = vld [vmem:[%s2275_s1 + $0x384] ss:$8 sps:$4 sm:$0xff]  }
  0x2c   :  { %1130 = vmatpush1.bf16.msra.mxu0 %v1564_v43  ;;  %1025 = vmatprep.subr.bf16.mxu1 %v1565_v44  ;;  %v1708_v43 = vld [vmem:[%s2276_s0 + $0x1c] ss:$36 sps:$4 sm:$0xff]  }
  0x2d   :  { %1131 = vmatprep.subr.bf16.mxu0 %v1567_v45  ;;  %v1649_v44 = vld [vmem:[%s2275_s1 + $0x180] ss:$8 sps:$4 sm:$0xff]  }
  0x2e   :  { %v1652_v45 = vld [vmem:[%s2275_s1 + $0x380] ss:$8 sps:$4 sm:$0xff]  }
  0x2f   :  { %1026 = vmatpush1.bf16.msra.mxu1 %v1569_v46  ;;  %v1657_v46 = vld [vmem:[%s2275_s1 + $0x194] ss:$8 sps:$4 sm:$0xff]  }
  0x30   :  { %1132 = vmatpush1.bf16.msra.mxu0 %v1570_v47  ;;  %1027 = vmatprep.subr.bf16.mxu1 %v1571_v49  ;;  %v1660_v47 = vld [vmem:[%s2275_s1 + $0x394] ss:$8 sps:$4 sm:$0xff]   ;;  %v1658_v49 = vld [vmem:[%s2275_s1 + $0x390] ss:$8 sps:$4 sm:$0xff]  }
  0x31   :  { %1133 = vmatprep.subr.bf16.mxu0 %v1573_v50  ;;  %v1663_v50 = vld [vmem:[%s2275_s1 + $0x1a4] ss:$8 sps:$4 sm:$0xff]  }
  0x33   :  { %1028 = vmatpush1.bf16.msra.mxu1 %v1575_v52  ;;  %v1661_v52 = vld [vmem:[%s2275_s1 + $0x1a0] ss:$8 sps:$4 sm:$0xff]  }
  0x34   :  { %1134 = vmatpush1.bf16.msra.mxu0 %v1576_v53  ;;  %1029 = vmatprep.subr.bf16.mxu1 %v1577_v54  ;;  %v1664_v53 = vld [vmem:[%s2275_s1 + $0x3a0] ss:$8 sps:$4 sm:$0xff]   ;;  %v1669_v54 = vld [vmem:[%s2275_s1 + $0x1b4] ss:$8 sps:$4 sm:$0xff]  }
  0x35   :  { %1135 = vmatprep.subr.bf16.mxu0 %v1579_v55  ;;  %v1672_v55 = vld [vmem:[%s2275_s1 + $0x3b4] ss:$8 sps:$4 sm:$0xff]  }
  0x37   :  { %1030 = vmatpush1.bf16.msra.mxu1 %v1581_v56  ;;  %v1667_v56 = vld [vmem:[%s2275_s1 + $0x1b0] ss:$8 sps:$4 sm:$0xff]  }
  0x38   :  { %1136 = vmatpush1.bf16.msra.mxu0 %v1582_v57  ;;  %1031 = vmatprep.subr.bf16.mxu1 %v1583_v58  ;;  %v1670_v57 = vld [vmem:[%s2275_s1 + $0x3b0] ss:$8 sps:$4 sm:$0xff]   ;;  %v1675_v58 = vld [vmem:[%s2275_s1 + $0x1c4] ss:$8 sps:$4 sm:$0xff]  }
  0x39   :  { %1137 = vmatprep.subr.bf16.mxu0 %v1585_v59  ;;  %v1678_v59 = vld [vmem:[%s2275_s1 + $0x3c4] ss:$8 sps:$4 sm:$0xff]  }
  0x3b   :  { %1032 = vmatpush1.bf16.msra.mxu1 %v1587_v60  ;;  %v1673_v60 = vld [vmem:[%s2275_s1 + $0x1c0] ss:$8 sps:$4 sm:$0xff]  }
  0x3c   :  { %1138 = vmatpush1.bf16.msra.mxu0 %v1588_v61  ;;  %1033 = vmatprep.subr.bf16.mxu1 %v1589_v62  ;;  %v1676_v61 = vld [vmem:[%s2275_s1 + $0x3c0] ss:$8 sps:$4 sm:$0xff]   ;;  %v1681_v62 = vld [vmem:[%s2275_s1 + $0x1d4] ss:$8 sps:$4 sm:$0xff]  }
  0x3d   :  { %1139 = vmatprep.subr.bf16.mxu0 %v1591_v63  ;;  %v1684_v63 = vld [vmem:[%s2275_s1 + $0x3d4] ss:$8 sps:$4 sm:$0xff]  }
  0x3f   :  { %1034 = vmatpush1.bf16.msra.mxu1 %v1593_v0  ;;  %v1679_v0 = vld [vmem:[%s2275_s1 + $0x1d0] ss:$8 sps:$4 sm:$0xff]  }
  0x40   :  { %1140 = vmatpush1.bf16.msra.mxu0 %v1594_v1  ;;  %1056 = vmatprep.subr.bf16.mxu1 %v1600_v2  ;;  %v1682_v1 = vld [vmem:[%s2275_s1 + $0x3d0] ss:$8 sps:$4 sm:$0xff]   ;;  %v1692_v2 = vld [vmem:[%s2275_s1 + $0x1e4] ss:$8 sps:$4 sm:$0xff]  }
  0x41   :  { %1162 = vmatprep.subr.bf16.mxu0 %v1606_v3  ;;  %v1696_v3 = vld [vmem:[%s2275_s1 + $0x3e4] ss:$8 sps:$4 sm:$0xff]  }
  0x42   :  { %1036 = vmatmul.mubr.bf16.vlgmr.msra.gmra.mrb[0].mxu1 %v1595_v4  ;;  %v1690_v4 = vld [vmem:[%s2275_s1 + $0x1e0] ss:$8 sps:$4 sm:$0xff]  }
  0x43   :  { %1142 = vmatmul.mubr.bf16.vlgmr.msra.gmra.mrb[0].mxu0 %v1601_v6  ;;  %1057 = vmatpush1.bf16.msra.mxu1 %v1598_v5  ;;  %v1694_v5 = vld [vmem:[%s2275_s1 + $0x3e0] ss:$8 sps:$4 sm:$0xff]   ;;  %v1699_v6 = vld [vmem:[%s2275_s1 + $0x1f4] ss:$8 sps:$4 sm:$0xff]  }
  0x44   :  { %1163 = vmatpush1.bf16.msra.mxu0 %v1604_v7  ;;  %1058 = vmatprep.subr.bf16.mxu1 %v1609_v8  ;;  %v1702_v7 = vld [vmem:[%s2275_s1 + $0x3f4] ss:$8 sps:$4 sm:$0xff]   ;;  %v1697_v8 = vld [vmem:[%s2275_s1 + $0x1f0] ss:$8 sps:$4 sm:$0xff]  }
  0x45   :  { %1164 = vmatprep.subr.bf16.mxu0 %v1612_v9  ;;  %1045 = vmatprep.mubr.bf16.mxu1 %v1685_v29  ;;  %v1700_v9 = vld [vmem:[%s2275_s1 + $0x3f0] ss:$8 sps:$4 sm:$0xff]   ;;  %v1735_v29 = vld [vmem:[%s2275_s1 + $0x464] ss:$8 sps:$4 sm:$0xff]  }
  0x46   :  { %1151 = vmatprep.mubr.bf16.mxu0 %v1687_v30  ;;  %v1733_v30 = vld [vmem:[%s2275_s1 + $0x460] ss:$8 sps:$4 sm:$0xff]  }
  0x47   :  { %1059 = vmatpush1.bf16.msra.mxu1 %v1607_v10  ;;  %v1711_v10 = vld [vmem:[%s2275_s1 + $0x404] ss:$8 sps:$4 sm:$0xff]  }
  0x48   :  { %1165 = vmatpush1.bf16.msra.mxu0 %v1610_v11  ;;  %1060 = vmatprep.subr.bf16.mxu1 %v1615_v12  ;;  %v1703_v11 = vld [vmem:[%s2276_s0 + $0x8] ss:$36 sps:$4 sm:$0xff]   ;;  %v1706_v12 = vld [vmem:[%s2276_s0 + $0x18] ss:$36 sps:$4 sm:$0xff]  }
  0x49   :  { %1166 = vmatprep.subr.bf16.mxu0 %v1618_v13  ;;  %v1709_v13 = vld [vmem:[%s2275_s1 + $0x400] ss:$8 sps:$4 sm:$0xff]  }
  0x4a   :  { %1046 = vmatmul.mubr.bf16.gmra.mrb[4].mxu1 %v1689_v31  ;;  %v1738_v31 = vld [vmem:[%s2275_s1 + $0x474] ss:$8 sps:$4 sm:$0xff]  }
  0x4b   :  { %1061 = vmatpush1.bf16.msra.mxu1 %v1613_v14  ;;  %1152 = vmatmul.mubr.bf16.gmra.mrb[4].mxu0 %v1693_v33  ;;  %v1714_v14 = vld [vmem:[%s2275_s1 + $0x414] ss:$8 sps:$4 sm:$0xff]   ;;  %v1739_v33 = vld [vmem:[%s2276_s0 + $0x20] ss:$36 sps:$4 sm:$0xff]  }
  0x4c   :  { %1167 = vmatpush1.bf16.msra.mxu0 %v1616_v15  ;;  %1062 = vmatprep.subr.bf16.mxu1 %v1621_v16  ;;  %v1715_v15 = vld [vmem:[%s2276_s0 + $0x54] ss:$36 sps:$4 sm:$0xff]   ;;  %v1717_v16 = vld [vmem:[%s2276_s0 + $0x64] ss:$36 sps:$4 sm:$0xff]  }
  0x4d   :  { %1168 = vmatprep.subr.bf16.mxu0 %v1624_v17  ;;  %1088 = vmatprep.mubr.bf16.mxu1 %v1705_v41  ;;  %v1712_v17 = vld [vmem:[%s2275_s1 + $0x410] ss:$8 sps:$4 sm:$0xff]  }
  0x4e   :  { %1194 = vmatprep.mubr.bf16.mxu0 %v1708_v43 }
  0x4f   :  { %1063 = vmatpush1.bf16.msra.mxu1 %v1619_v18  ;;  %v1723_v18 = vld [vmem:[%s2275_s1 + $0x424] ss:$8 sps:$4 sm:$0xff]  }
  0x50   :  { %1169 = vmatpush1.bf16.msra.mxu0 %v1622_v19  ;;  %1064 = vmatprep.subr.bf16.mxu1 %v1627_v20  ;;  %v1719_v19 = vld [vmem:[%s2276_s0 + $0x50] ss:$36 sps:$4 sm:$0xff]   ;;  %v1720_v20 = vld [vmem:[%s2276_s0 + $0x60] ss:$36 sps:$4 sm:$0xff]  }
  0x51   :  { %1170 = vmatprep.subr.bf16.mxu0 %v1630_v21  ;;  %v1721_v21 = vld [vmem:[%s2275_s1 + $0x420] ss:$8 sps:$4 sm:$0xff]  }
  0x53   :  { %1065 = vmatpush1.bf16.msra.mxu1 %v1625_v22  ;;  %v1726_v22 = vld [vmem:[%s2275_s1 + $0x434] ss:$8 sps:$4 sm:$0xff]  }
  0x54   :  { %1171 = vmatpush1.bf16.msra.mxu0 %v1628_v23  ;;  %1066 = vmatprep.subr.bf16.mxu1 %v1633_v24  ;;  %v1724_v23 = vld [vmem:[%s2275_s1 + $0x430] ss:$8 sps:$4 sm:$0xff]   ;;  %v1729_v24 = vld [vmem:[%s2275_s1 + $0x444] ss:$8 sps:$4 sm:$0xff]  }
  0x55   :  { %1172 = vmatprep.subr.bf16.mxu0 %v1636_v25  ;;  %v1741_v25 = vmov 0  }
  0x57   :  { %1067 = vmatpush1.bf16.msra.mxu1 %v1631_v26  ;;  %v1727_v26 = vld [vmem:[%s2275_s1 + $0x440] ss:$8 sps:$4 sm:$0xff]  }
  0x58   :  { %1173 = vmatpush1.bf16.msra.mxu0 %v1634_v27  ;;  %1068 = vmatprep.subr.bf16.mxu1 %v1639_v28  ;;  %v1732_v27 = vld [vmem:[%s2275_s1 + $0x454] ss:$8 sps:$4 sm:$0xff]   ;;  %v1730_v28 = vld [vmem:[%s2275_s1 + $0x450] ss:$8 sps:$4 sm:$0xff]  }
  0x59   :  { %1174 = vmatprep.subr.bf16.mxu0 %v1642_v32  ;;  %v1736_v32 = vld [vmem:[%s2275_s1 + $0x470] ss:$8 sps:$4 sm:$0xff]  }
  0x5b   :  { %1069 = vmatpush1.bf16.msra.mxu1 %v1637_v34  ;;  %v1740_v34 = vld [vmem:[%s2276_s0 + $0x68] ss:$36 sps:$4 sm:$0xff]  }
  0x5c   :  { %1175 = vmatpush1.bf16.msra.mxu0 %v1640_v35  ;;  %1070 = vmatprep.subr.bf16.mxu1 %v1645_v36  ;;  %v181_v35 = vlaneseq }
  0x5d   :  { %1176 = vmatprep.subr.bf16.mxu0 %v1648_v37 }
  0x5e   :  { %v182_v36 = vshrl.u32 %v181_v35, 7 }
  0x5f   :  { %1071 = vmatpush1.bf16.msra.mxu1 %v1643_v38 }
  0x60   :  { %1177 = vmatpush1.bf16.msra.mxu0 %v1646_v39  ;;  %1072 = vmatprep.subr.bf16.mxu1 %v1651_v40  ;;  %v183_v40 = vsub.s32 0, %v182_v36  ;;  %v187_v43 = vsub.s32 1, %v182_v36 }
  0x61   :  { %1178 = vmatprep.subr.bf16.mxu0 %v1654_v42  ;;  %v179_v42 = vld [vmem:[%s2277_s2] sm:$0x3] }
  0x63   :  { %1073 = vmatpush1.bf16.msra.mxu1 %v1649_v44  ;;  %v184_v44 = vrot.slane %v179_v42, %v183_v40 }
  0x64   :  { %1179 = vmatpush1.bf16.msra.mxu0 %v1652_v45  ;;  %1074 = vmatprep.subr.bf16.mxu1 %v1657_v46  ;;  %v188_v45 = vrot.slane %v179_v42, %v187_v43 }
  0x65   :  { %1180 = vmatprep.subr.bf16.mxu0 %v1660_v47 }
  0x67   :  { %1075 = vmatpush1.bf16.msra.mxu1 %v1655_v48 }
  0x68   :  { %1181 = vmatpush1.bf16.msra.mxu0 %v1658_v49  ;;  %1076 = vmatprep.subr.bf16.mxu1 %v1663_v50 }
  0x69   :  { %1182 = vmatprep.subr.bf16.mxu0 %v1666_v51 }
  0x6b   :  { %1077 = vmatpush1.bf16.msra.mxu1 %v1661_v52 }
  0x6c   :  { %1183 = vmatpush1.bf16.msra.mxu0 %v1664_v53  ;;  %1078 = vmatprep.subr.bf16.mxu1 %v1669_v54 }
  0x6d   :  { %1184 = vmatprep.subr.bf16.mxu0 %v1672_v55 }
  0x6f   :  { %1079 = vmatpush1.bf16.msra.mxu1 %v1667_v56 }
  0x70   :  { %1185 = vmatpush1.bf16.msra.mxu0 %v1670_v57  ;;  %1080 = vmatprep.subr.bf16.mxu1 %v1675_v58 }
  0x71   :  { %1186 = vmatprep.subr.bf16.mxu0 %v1678_v59 }
  0x73   :  { %1081 = vmatpush1.bf16.msra.mxu1 %v1673_v60 }
  0x74   :  { %1187 = vmatpush1.bf16.msra.mxu0 %v1676_v61  ;;  %1082 = vmatprep.subr.bf16.mxu1 %v1681_v62 }
  0x75   :  { %1188 = vmatprep.subr.bf16.mxu0 %v1684_v63 }
  0x77   :  { %1083 = vmatpush1.bf16.msra.mxu1 %v1679_v0 }
  0x78   :  { %1189 = vmatpush1.bf16.msra.mxu0 %v1682_v1  ;;  %1084 = vmatprep.subr.bf16.mxu1 %v1692_v2 }
  0x79   :  { %1190 = vmatprep.subr.bf16.mxu0 %v1696_v3 }
  0x7b   :  { %1085 = vmatpush1.bf16.msra.mxu1 %v1690_v4 }
  0x7c   :  { %1191 = vmatpush1.bf16.msra.mxu0 %v1694_v5  ;;  %1086 = vmatprep.subr.bf16.mxu1 %v1699_v6 }
  0x7d   :  { %1192 = vmatprep.subr.bf16.mxu0 %v1702_v7 }
  0x7f   :  { %1087 = vmatpush1.bf16.msra.mxu1 %v1697_v8 }
  0x80   :  { %1193 = vmatpush1.bf16.msra.mxu0 %v1700_v9  ;;  %1442 = vmatprep.subr.bf16.mxu1 %v1711_v10 }
  0x81   :  { %1215 = vmatprep.subr.bf16.mxu0 %v1711_v10 }
  0x82   :  { %1089 = vmatmul.mubr.bf16.vlgmr.msra.gmra.mrb[0].mxu1 %v1703_v11 }
  0x83   :  { %1195 = vmatmul.mubr.bf16.vlgmr.msra.gmra.mrb[0].mxu0 %v1706_v12  ;;  %1450 = vmatpush1.bf16.msra.mxu1 %v1709_v13 }
  0x84   :  { %1216 = vmatpush1.bf16.msra.mxu0 %v1709_v13  ;;  %1443 = vmatprep.subr.bf16.mxu1 %v1714_v14 }
  0x85   :  { %1217 = vmatprep.subr.bf16.mxu0 %v1714_v14  ;;  %1098 = vmatprep.mubr.bf16.mxu1 %v1715_v15 }
  0x86   :  { %1204 = vmatprep.mubr.bf16.mxu0 %v1717_v16 }
  0x87   :  { %1451 = vmatpush1.bf16.msra.mxu1 %v1712_v17 }
  0x88   :  { %1218 = vmatpush1.bf16.msra.mxu0 %v1712_v17  ;;  %1444 = vmatprep.subr.bf16.mxu1 %v1723_v18 }
  0x89   :  { %1219 = vmatprep.subr.bf16.mxu0 %v1723_v18 }
  0x8a   :  { %1099 = vmatmul.mubr.bf16.gmra.mrb[4].mxu1 %v1719_v19 }
  0x8b   :  { %1205 = vmatmul.mubr.bf16.gmra.mrb[4].mxu0 %v1720_v20  ;;  %1452 = vmatpush1.bf16.msra.mxu1 %v1721_v21 }
  0x8c   :  { %1220 = vmatpush1.bf16.msra.mxu0 %v1721_v21  ;;  %1445 = vmatprep.subr.bf16.mxu1 %v1726_v22 }
  0x8d   :  { %1221 = vmatprep.subr.bf16.mxu0 %v1726_v22  ;;  %1247 = vmatprep.mubr.bf16.mxu0 %v1741_v25 }
  0x8e   :  { %1257 = vmatprep.mubr.bf16.mxu1 %v1741_v25 }
  0x8f   :  { %1453 = vmatpush1.bf16.msra.mxu1 %v1724_v23 }
  0x90   :  { %1222 = vmatpush1.bf16.msra.mxu0 %v1724_v23  ;;  %1446 = vmatprep.subr.bf16.mxu1 %v1729_v24 }
  0x91   :  { %1223 = vmatprep.subr.bf16.mxu0 %v1729_v24 }
  0x93   :  { %1454 = vmatpush1.bf16.msra.mxu1 %v1727_v26 }
  0x94   :  { %1224 = vmatpush1.bf16.msra.mxu0 %v1727_v26  ;;  %1447 = vmatprep.subr.bf16.mxu1 %v1732_v27 }
  0x95   :  { %1225 = vmatprep.subr.bf16.mxu0 %v1732_v27 }
  0x97   :  { %1455 = vmatpush1.bf16.msra.mxu1 %v1730_v28 }
  0x98   :  { %1226 = vmatpush1.bf16.msra.mxu0 %v1730_v28  ;;  %1448 = vmatprep.subr.bf16.mxu1 %v1735_v29 }
  0x99   :  { %1227 = vmatprep.subr.bf16.mxu0 %v1735_v29 }
  0x9b   :  { %1456 = vmatpush1.bf16.msra.mxu1 %v1733_v30 }
  0x9c   :  { %1228 = vmatpush1.bf16.msra.mxu0 %v1733_v30  ;;  %1449 = vmatprep.subr.bf16.mxu1 %v1738_v31 }
  0x9d   :  { %1229 = vmatprep.subr.bf16.mxu0 %v1738_v31 }
  0x9f   :  { %1457 = vmatpush1.bf16.msra.mxu1 %v1736_v32 }
  0xa0   :  { %1230 = vmatpush1.bf16.msra.mxu0 %v1736_v32 }
  0xa2   :  { %1258 = vmatmul.mubr.bf16.vlgmr.msra.gmra.mrb[8].mxu1 %v1740_v34 }
  0xa3   :  { %1248 = vmatmul.mubr.bf16.vlgmr.msra.gmra.mrb[0].mxu0 %v1739_v33 }
 0x155   :  { %v1090_v37 = vpop.f32.mrb[0].mxu1 }
 0x156   :  { %v1092_v38 = vpop.f32.mrb[1].mxu1  ;;  %v1458_v62 = vadd.f32 %v1090_v37, %v184_v44 }
 0x157   :  { %v1094_v39 = vpop.f32.mrb[2].mxu1  ;;  %v1460_v63 = vadd.f32 %v1092_v38, %v188_v45 }
 0x158   :  { %v1096_v41 = vpop.f32.mrb[3].mxu1  ;;  %v1462_v2 = vadd.f32 %v1094_v39, %v184_v44 }
 0x159   :  { %v1464_v7 = vadd.f32 %v1096_v41, %v188_v45 }
 0x15d   :  { %v1100_v46 = vpop.f32.mrb[4].mxu1 }
 0x15e   :  { %v1206_v47 = vpop.f32.mrb[4].mxu0  ;;  %v1466_v48 = vadd.f32 %v1100_v46, %v184_v44  ;;  %v1102_v49 = vpop.f32.mrb[5].mxu1 }
 0x15f   :  { %v1208_v50 = vpop.f32.mrb[5].mxu0  ;;  %v1469_v51 = vadd.f32 %v1102_v49, %v188_v45  ;;  %v1104_v52 = vpop.f32.mrb[6].mxu1 }
 0x160   :  { %v1210_v53 = vpop.f32.mrb[6].mxu0  ;;  %v1467_v54 = vadd.f32 %v1466_v48, %v1206_v47  ;;  %v1472_v55 = vadd.f32 %v1104_v52, %v184_v44  ;;  %v1106_v56 = vpop.f32.mrb[7].mxu1 }
 0x161   :  { %v1212_v57 = vpop.f32.mrb[7].mxu0  ;;  %v1470_v58 = vadd.f32 %v1469_v51, %v1208_v50  ;;  %v1475_v59 = vadd.f32 %v1106_v56, %v188_v45 }
 0x162   :  { %v1473_v60 = vadd.f32 %v1472_v55, %v1210_v53 }
 0x163   :  { %v1476_v61 = vadd.f32 %v1475_v59, %v1212_v57 }
 0x175   :  { %v1259_v1 = vpop.f32.mrb[8].mxu1 }
 0x176   :  { %v1249_v0 = vpop.f32.mrb[0].mxu0  ;;  %v1468_v4 = vadd.f32 %v1467_v54, %v1259_v1  ;;  %v1261_v6 = vpop.f32.mrb[9].mxu1 }
 0x177   :  { %v1459_v3 = vadd.f32 %v1458_v62, %v1249_v0  ;;  %v1251_v5 = vpop.f32.mrb[1].mxu0  ;;  %v1471_v9 = vadd.f32 %v1470_v58, %v1261_v6  ;;  %v1263_v11 = vpop.f32.mrb[10].mxu1 }
 0x178   :  { %v1461_v8 = vadd.f32 %v1460_v63, %v1251_v5  ;;  %v1253_v10 = vpop.f32.mrb[2].mxu0  ;;  %1272 = vst [vmem:[%s2278_s3 + $0x20] sm:$0xff] %v1468_v4  ;;  %v1474_v13 = vadd.f32 %v1473_v60, %v1263_v11  ;;  %v1265_v15 = vpop.f32.mrb[11].mxu1 }
 0x179   :  { %1268 = vst [vmem:[%s2278_s3] sm:$0xff] %v1459_v3  ;;  %v1463_v12 = vadd.f32 %v1462_v2, %v1253_v10  ;;  %v1255_v14 = vpop.f32.mrb[3].mxu0  ;;  %1273 = vst [vmem:[%s2278_s3 + $0x28] sm:$0xff] %v1471_v9  ;;  %v1477_v17 = vadd.f32 %v1476_v61, %v1265_v15 }
 0x17a   :  { %1269 = vst [vmem:[%s2278_s3 + $0x8] sm:$0xff] %v1461_v8  ;;  %v1465_v16 = vadd.f32 %v1464_v7, %v1255_v14  ;;  %1274 = vst [vmem:[%s2278_s3 + $0x30] sm:$0xff] %v1474_v13 }
 0x17b   :  { %1270 = vst [vmem:[%s2278_s3 + $0x10] sm:$0xff] %v1463_v12  ;;  %1275 = vst [vmem:[%s2278_s3 + $0x38] sm:$0xff] %v1477_v17 }
 0x17c   :  { %1271 = vst [vmem:[%s2278_s3 + $0x18] sm:$0xff] %v1465_v16 }

// kernel: _forward.50
= control target key start
LH: loop header
LB: loop body
LE: loop exit
PB: predicated region body
PF: predicated region fallthrough
CT: control target
= control target key end

     0   :  { %v27_v0 = vlaneseq  ;;  %s220_s2 = inlined_call_operand.vmem [shape: f32[1,256], index: 2, kind: input, shape index: {}]   ;;  %s221_s3 = inlined_call_operand.vmem [shape: f32[1,256], index: 3, kind: input, shape index: {}]   ;;  %s222_s0 = inlined_call_operand.vmem [shape: f32[32,256], index: 0, kind: input, shape index: {}]   ;;  %s223_s1 = inlined_call_operand.vmem [shape: f32[32,256], index: 1, kind: input, shape index: {}]   ;;  %s224_s4 = inlined_call_operand.vmem [shape: f32[32,256], index: 4, kind: output, shape index: {}]  }
   0x1   :  { %v25_v2 = vld [vmem:[%s220_s2] sm:$0x3]  ;;  %v18_v6 = vld [vmem:[%s222_s0 + $0x8] sm:$0xff]  ;;  %v19_v8 = vld [vmem:[%s222_s0 + $0x10] sm:$0xff] }
   0x2   :  { %v28_v1 = vshrl.u32 %v27_v0, 7  ;;  %v45_v3 = vld [vmem:[%s221_s3] sm:$0x3]  ;;  %v20_v9 = vld [vmem:[%s222_s0 + $0x18] sm:$0xff]  ;;  %v22_v15 = vld [vmem:[%s222_s0 + $0x28] sm:$0xff] }
   0x3   :  { %v17_v4 = vld [vmem:[%s222_s0] sm:$0xff]  ;;  %v23_v16 = vld [vmem:[%s222_s0 + $0x30] sm:$0xff]  ;;  %v24_v17 = vld [vmem:[%s222_s0 + $0x38] sm:$0xff] }
   0x4   :  { %v29_v5 = vsub.s32 0, %v28_v1  ;;  %v33_v7 = vsub.s32 1, %v28_v1  ;;  %v21_v10 = vld [vmem:[%s222_s0 + $0x20] sm:$0xff]  ;;  %v90_v37 = vld [vmem:[%s223_s1 + $0x8] sm:$0xff]  ;;  %v91_v39 = vld [vmem:[%s223_s1 + $0x10] sm:$0xff] }
   0x5   :  { %v89_v35 = vld [vmem:[%s223_s1] sm:$0xff]  ;;  %v92_v41 = vld [vmem:[%s223_s1 + $0x18] sm:$0xff]  ;;  %v94_v55 = vld [vmem:[%s223_s1 + $0x28] sm:$0xff] }
   0x6   :  { %v30_v11 = vrot.slane %v25_v2, %v29_v5  ;;  %v50_v12 = vrot.slane %v45_v3, %v29_v5  ;;  %v34_v13 = vrot.slane %v25_v2, %v33_v7  ;;  %v54_v14 = vrot.slane %v45_v3, %v33_v7  ;;  %v93_v45 = vld [vmem:[%s223_s1 + $0x20] sm:$0xff]  ;;  %v95_v57 = vld [vmem:[%s223_s1 + $0x30] sm:$0xff]  ;;  %v96_v59 = vld [vmem:[%s223_s1 + $0x38] sm:$0xff] }
   0x8   :  { %v37_v18 = vmul.f32 %v30_v11, %v17_v4  ;;  %v38_v19 = vmul.f32 %v34_v13, %v18_v6  ;;  %v39_v20 = vmul.f32 %v30_v11, %v19_v8  ;;  %v40_v21 = vmul.f32 %v34_v13, %v20_v9 }
   0x9   :  { %v41_v22 = vmul.f32 %v30_v11, %v21_v10  ;;  %v42_v23 = vmul.f32 %v34_v13, %v22_v15  ;;  %v43_v24 = vmul.f32 %v30_v11, %v23_v16  ;;  %v44_v25 = vmul.f32 %v34_v13, %v24_v17 }
   0xa   :  { %v57_v26 = vadd.f32 %v50_v12, %v37_v18  ;;  %v58_v27 = vadd.f32 %v54_v14, %v38_v19  ;;  %v59_v28 = vadd.f32 %v50_v12, %v39_v20  ;;  %v60_v29 = vadd.f32 %v54_v14, %v40_v21 }
   0xb   :  { %v61_v30 = vadd.f32 %v50_v12, %v41_v22  ;;  %v62_v31 = vadd.f32 %v54_v14, %v42_v23  ;;  %v63_v32 = vadd.f32 %v50_v12, %v43_v24  ;;  %v64_v33 = vadd.f32 %v54_v14, %v44_v25 }
   0xc   :  { %vm65_vm0 = vcmp.ge.f32.partialorder %v57_v26, 0.0  ;;  %v73_v34 = vmul.f32 0.25, %v57_v26  ;;  %vm66_vm1 = vcmp.ge.f32.partialorder %v58_v27, 0.0  ;;  %v74_v36 = vmul.f32 0.25, %v58_v27 }
   0xd   :  { %vm67_vm2 = vcmp.ge.f32.partialorder %v59_v28, 0.0  ;;  %v75_v38 = vmul.f32 0.25, %v59_v28  ;;  %vm68_vm3 = vcmp.ge.f32.partialorder %v60_v29, 0.0  ;;  %v76_v40 = vmul.f32 0.25, %v60_v29 }
   0xe   :  { %v81_v42 = vsel %vm65_vm0, %v57_v26, %v73_v34  ;;  %v82_v43 = vsel %vm66_vm1, %v58_v27, %v74_v36  ;;  %vm69_vm4 = vcmp.ge.f32.partialorder %v61_v30, 0.0  ;;  %v77_v44 = vmul.f32 0.25, %v61_v30 }
   0xf   :  { %v97_v46 = vadd.f32 %v89_v35, %v81_v42  ;;  %v98_v47 = vadd.f32 %v90_v37, %v82_v43  ;;  %v83_v48 = vsel %vm67_vm2, %v59_v28, %v75_v38  ;;  %v84_v49 = vsel %vm68_vm3, %v60_v29, %v76_v40 }
  0x10   :  { %v99_v50 = vadd.f32 %v91_v39, %v83_v48  ;;  %v100_v51 = vadd.f32 %v92_v41, %v84_v49  ;;  %v85_v52 = vsel %vm69_vm4, %v61_v30, %v77_v44  ;;  %vm70_vm5 = vcmp.ge.f32.partialorder %v62_v31, 0.0 }
  0x11   :  { %105 = vst [vmem:[%s224_s4] sm:$0xff] %v97_v46  ;;  %106 = vst [vmem:[%s224_s4 + $0x8] sm:$0xff] %v98_v47  ;;  %v101_v53 = vadd.f32 %v93_v45, %v85_v52  ;;  %v78_v54 = vmul.f32 0.25, %v62_v31  ;;  %vm71_vm6 = vcmp.ge.f32.partialorder %v63_v32, 0.0  ;;  %v79_v56 = vmul.f32 0.25, %v63_v32 }
  0x12   :  { %107 = vst [vmem:[%s224_s4 + $0x10] sm:$0xff] %v99_v50  ;;  %108 = vst [vmem:[%s224_s4 + $0x18] sm:$0xff] %v100_v51  ;;  %vm72_vm7 = vcmp.ge.f32.partialorder %v64_v33, 0.0  ;;  %v80_v58 = vmul.f32 0.25, %v64_v33 }
  0x13   :  { %109 = vst [vmem:[%s224_s4 + $0x20] sm:$0xff] %v101_v53  ;;  %v86_v60 = vsel %vm70_vm5, %v62_v31, %v78_v54  ;;  %v87_v61 = vsel %vm71_vm6, %v63_v32, %v79_v56 }
  0x14   :  { %v102_v62 = vadd.f32 %v94_v55, %v86_v60  ;;  %v103_v63 = vadd.f32 %v95_v57, %v87_v61  ;;  %v88_v0 = vsel %vm72_vm7, %v64_v33, %v80_v58 }
  0x15   :  { %v104_v1 = vadd.f32 %v96_v59, %v88_v0 }
  0x16   :  { %110 = vst [vmem:[%s224_s4 + $0x28] sm:$0xff] %v102_v62  ;;  %111 = vst [vmem:[%s224_s4 + $0x30] sm:$0xff] %v103_v63 }
  0x17   :  { %112 = vst [vmem:[%s224_s4 + $0x38] sm:$0xff] %v104_v1 }

// kernel: _forward.49
= control target key start
LH: loop header
LB: loop body
LE: loop exit
PB: predicated region body
PF: predicated region fallthrough
CT: control target
= control target key end

     0   :  { %s4392_s1 = inlined_call_operand.vmem [shape: bf16[2304,256], index: 1, kind: input, shape index: {}]   ;;  %s4393_s0 = inlined_call_operand.vmem [shape: bf16[32,2304], index: 0, kind: input, shape index: {}]   ;;  %s4394_s2 = inlined_call_operand.vmem [shape: f32[1,256], index: 2, kind: input, shape index: {}]   ;;  %s4395_s3 = inlined_call_operand.vmem [shape: f32[32,256], index: 3, kind: output, shape index: {}]  }
   0x1   :  { %v2887_v0 = vld [vmem:[%s4392_s1 + $0x4] ss:$8 sps:$4 sm:$0xff]   ;;  %v2891_v2 = vld [vmem:[%s4392_s1] ss:$8 sps:$4 sm:$0xff]   ;;  %v2893_v4 = vld [vmem:[%s4392_s1 + $0x14] ss:$8 sps:$4 sm:$0xff]  }
   0x2   :  { %v2889_v1 = vld [vmem:[%s4392_s1 + $0x404] ss:$8 sps:$4 sm:$0xff]   ;;  %1970 = vmatprep.subr.bf16.mxu1 %v2887_v0  ;;  %v2892_v3 = vld [vmem:[%s4392_s1 + $0x400] ss:$8 sps:$4 sm:$0xff]   ;;  %v2895_v5 = vld [vmem:[%s4392_s1 + $0x414] ss:$8 sps:$4 sm:$0xff]  }
   0x3   :  { %2182 = vmatprep.subr.bf16.mxu0 %v2889_v1  ;;  %1971 = vmatpush1.bf16.msra.mxu1 %v2891_v2  ;;  %v2897_v6 = vld [vmem:[%s4392_s1 + $0x10] ss:$8 sps:$4 sm:$0xff]   ;;  %v2899_v8 = vld [vmem:[%s4392_s1 + $0x24] ss:$8 sps:$4 sm:$0xff]   ;;  %v2903_v10 = vld [vmem:[%s4392_s1 + $0x20] ss:$8 sps:$4 sm:$0xff]  }
   0x4   :  { %2183 = vmatpush1.bf16.msra.mxu0 %v2892_v3  ;;  %1972 = vmatprep.subr.bf16.mxu1 %v2893_v4  ;;  %v2898_v7 = vld [vmem:[%s4392_s1 + $0x410] ss:$8 sps:$4 sm:$0xff]   ;;  %v2901_v9 = vld [vmem:[%s4392_s1 + $0x424] ss:$8 sps:$4 sm:$0xff]   ;;  %v2904_v11 = vld [vmem:[%s4392_s1 + $0x420] ss:$8 sps:$4 sm:$0xff]  }
   0x5   :  { %2184 = vmatprep.subr.bf16.mxu0 %v2895_v5  ;;  %v2905_v12 = vld [vmem:[%s4392_s1 + $0x34] ss:$8 sps:$4 sm:$0xff]   ;;  %v2909_v14 = vld [vmem:[%s4392_s1 + $0x30] ss:$8 sps:$4 sm:$0xff]   ;;  %v2911_v16 = vld [vmem:[%s4392_s1 + $0x44] ss:$8 sps:$4 sm:$0xff]  }
   0x6   :  { %v2907_v13 = vld [vmem:[%s4392_s1 + $0x434] ss:$8 sps:$4 sm:$0xff]   ;;  %v2910_v15 = vld [vmem:[%s4392_s1 + $0x430] ss:$8 sps:$4 sm:$0xff]   ;;  %v2913_v17 = vld [vmem:[%s4392_s1 + $0x444] ss:$8 sps:$4 sm:$0xff]  }
   0x7   :  { %1973 = vmatpush1.bf16.msra.mxu1 %v2897_v6  ;;  %v2915_v18 = vld [vmem:[%s4392_s1 + $0x40] ss:$8 sps:$4 sm:$0xff]   ;;  %v2917_v20 = vld [vmem:[%s4392_s1 + $0x54] ss:$8 sps:$4 sm:$0xff]   ;;  %v2921_v22 = vld [vmem:[%s4392_s1 + $0x50] ss:$8 sps:$4 sm:$0xff]  }
   0x8   :  { %2185 = vmatpush1.bf16.msra.mxu0 %v2898_v7  ;;  %1974 = vmatprep.subr.bf16.mxu1 %v2899_v8  ;;  %v2916_v19 = vld [vmem:[%s4392_s1 + $0x440] ss:$8 sps:$4 sm:$0xff]   ;;  %v2919_v21 = vld [vmem:[%s4392_s1 + $0x454] ss:$8 sps:$4 sm:$0xff]   ;;  %v2922_v23 = vld [vmem:[%s4392_s1 + $0x450] ss:$8 sps:$4 sm:$0xff]  }
   0x9   :  { %2186 = vmatprep.subr.bf16.mxu0 %v2901_v9  ;;  %v2923_v24 = vld [vmem:[%s4392_s1 + $0x64] ss:$8 sps:$4 sm:$0xff]   ;;  %v2927_v26 = vld [vmem:[%s4392_s1 + $0x60] ss:$8 sps:$4 sm:$0xff]   ;;  %v2929_v28 = vld [vmem:[%s4392_s1 + $0x74] ss:$8 sps:$4 sm:$0xff]  }
   0xa   :  { %v2925_v25 = vld [vmem:[%s4392_s1 + $0x464] ss:$8 sps:$4 sm:$0xff]   ;;  %v2928_v27 = vld [vmem:[%s4392_s1 + $0x460] ss:$8 sps:$4 sm:$0xff]   ;;  %v2931_v29 = vld [vmem:[%s4392_s1 + $0x474] ss:$8 sps:$4 sm:$0xff]  }
   0xb   :  { %1975 = vmatpush1.bf16.msra.mxu1 %v2903_v10  ;;  %v2933_v30 = vld [vmem:[%s4392_s1 + $0x70] ss:$8 sps:$4 sm:$0xff]   ;;  %v2935_v32 = vld [vmem:[%s4392_s1 + $0x84] ss:$8 sps:$4 sm:$0xff]   ;;  %v2939_v34 = vld [vmem:[%s4392_s1 + $0x80] ss:$8 sps:$4 sm:$0xff]  }
   0xc   :  { %2187 = vmatpush1.bf16.msra.mxu0 %v2904_v11  ;;  %1976 = vmatprep.subr.bf16.mxu1 %v2905_v12  ;;  %v2934_v31 = vld [vmem:[%s4392_s1 + $0x470] ss:$8 sps:$4 sm:$0xff]   ;;  %v2937_v33 = vld [vmem:[%s4392_s1 + $0x484] ss:$8 sps:$4 sm:$0xff]   ;;  %v2940_v35 = vld [vmem:[%s4392_s1 + $0x480] ss:$8 sps:$4 sm:$0xff]  }
   0xd   :  { %2188 = vmatprep.subr.bf16.mxu0 %v2907_v13  ;;  %v2941_v36 = vld [vmem:[%s4392_s1 + $0x94] ss:$8 sps:$4 sm:$0xff]   ;;  %v2945_v38 = vld [vmem:[%s4392_s1 + $0x90] ss:$8 sps:$4 sm:$0xff]   ;;  %v2947_v40 = vld [vmem:[%s4392_s1 + $0xa4] ss:$8 sps:$4 sm:$0xff]  }
   0xe   :  { %v2943_v37 = vld [vmem:[%s4392_s1 + $0x494] ss:$8 sps:$4 sm:$0xff]   ;;  %v2946_v39 = vld [vmem:[%s4392_s1 + $0x490] ss:$8 sps:$4 sm:$0xff]   ;;  %v2949_v41 = vld [vmem:[%s4392_s1 + $0x4a4] ss:$8 sps:$4 sm:$0xff]  }
   0xf   :  { %1977 = vmatpush1.bf16.msra.mxu1 %v2909_v14  ;;  %v2951_v42 = vld [vmem:[%s4392_s1 + $0xa0] ss:$8 sps:$4 sm:$0xff]   ;;  %v2953_v44 = vld [vmem:[%s4392_s1 + $0xb4] ss:$8 sps:$4 sm:$0xff]   ;;  %v2957_v46 = vld [vmem:[%s4392_s1 + $0xb0] ss:$8 sps:$4 sm:$0xff]  }
  0x10   :  { %2189 = vmatpush1.bf16.msra.mxu0 %v2910_v15  ;;  %1978 = vmatprep.subr.bf16.mxu1 %v2911_v16  ;;  %v2952_v43 = vld [vmem:[%s4392_s1 + $0x4a0] ss:$8 sps:$4 sm:$0xff]   ;;  %v2955_v45 = vld [vmem:[%s4392_s1 + $0x4b4] ss:$8 sps:$4 sm:$0xff]   ;;  %v2958_v47 = vld [vmem:[%s4392_s1 + $0x4b0] ss:$8 sps:$4 sm:$0xff]  }
  0x11   :  { %2190 = vmatprep.subr.bf16.mxu0 %v2913_v17  ;;  %v2985_v48 = vld [vmem:[%s4393_s0 + $0x4] ss:$72 sps:$4 sm:$0xff]   ;;  %v2963_v52 = vld [vmem:[%s4392_s1 + $0xc0] ss:$8 sps:$4 sm:$0xff]   ;;  %v2965_v54 = vld [vmem:[%s4392_s1 + $0xd4] ss:$8 sps:$4 sm:$0xff]  }
  0x12   :  { %v2959_v49 = vld [vmem:[%s4392_s1 + $0xc4] ss:$8 sps:$4 sm:$0xff]   ;;  %2002 = vmatprep.mubr.bf16.mxu1 %v2985_v48  ;;  %v2964_v53 = vld [vmem:[%s4392_s1 + $0x4c0] ss:$8 sps:$4 sm:$0xff]   ;;  %v2967_v55 = vld [vmem:[%s4392_s1 + $0x4d4] ss:$8 sps:$4 sm:$0xff]  }
  0x13   :  { %1979 = vmatpush1.bf16.msra.mxu1 %v2915_v18  ;;  %v2961_v50 = vld [vmem:[%s4392_s1 + $0x4c4] ss:$8 sps:$4 sm:$0xff]   ;;  %v2969_v56 = vld [vmem:[%s4392_s1 + $0xd0] ss:$8 sps:$4 sm:$0xff]   ;;  %v2975_v60 = vld [vmem:[%s4392_s1 + $0xe0] ss:$8 sps:$4 sm:$0xff]  }
  0x14   :  { %2191 = vmatpush1.bf16.msra.mxu0 %v2916_v19  ;;  %1980 = vmatprep.subr.bf16.mxu1 %v2917_v20  ;;  %v2991_v51 = vld [vmem:[%s4393_s0 + $0x24] ss:$72 sps:$4 sm:$0xff]   ;;  %v2970_v57 = vld [vmem:[%s4392_s1 + $0x4d0] ss:$8 sps:$4 sm:$0xff]   ;;  %v2976_v61 = vld [vmem:[%s4392_s1 + $0x4e0] ss:$8 sps:$4 sm:$0xff]  }
  0x15   :  { %2192 = vmatprep.subr.bf16.mxu0 %v2919_v21  ;;  %2214 = vmatprep.mubr.bf16.mxu0 %v2991_v51  ;;  %v2971_v58 = vld [vmem:[%s4392_s1 + $0xe4] ss:$8 sps:$4 sm:$0xff]   ;;  %v2977_v62 = vld [vmem:[%s4392_s1 + $0xf4] ss:$8 sps:$4 sm:$0xff]   ;;  %v2981_v0 = vld [vmem:[%s4392_s1 + $0xf0] ss:$8 sps:$4 sm:$0xff]  }
  0x16   :  { %v2973_v59 = vld [vmem:[%s4392_s1 + $0x4e4] ss:$8 sps:$4 sm:$0xff]   ;;  %v2979_v63 = vld [vmem:[%s4392_s1 + $0x4f4] ss:$8 sps:$4 sm:$0xff]   ;;  %v2982_v1 = vld [vmem:[%s4392_s1 + $0x4f0] ss:$8 sps:$4 sm:$0xff]  }
  0x17   :  { %1981 = vmatpush1.bf16.msra.mxu1 %v2921_v22  ;;  %v2988_v2 = vld [vmem:[%s4392_s1 + $0x104] ss:$8 sps:$4 sm:$0xff]   ;;  %v2983_v4 = vld [vmem:[%s4393_s0] ss:$72 sps:$4 sm:$0xff]   ;;  %v2997_v8 = vld [vmem:[%s4392_s1 + $0x114] ss:$8 sps:$4 sm:$0xff]  }
  0x18   :  { %2193 = vmatpush1.bf16.msra.mxu0 %v2922_v23  ;;  %1982 = vmatprep.subr.bf16.mxu1 %v2923_v24  ;;  %v2994_v3 = vld [vmem:[%s4392_s1 + $0x504] ss:$8 sps:$4 sm:$0xff]   ;;  %v2986_v5 = vld [vmem:[%s4392_s1 + $0x100] ss:$8 sps:$4 sm:$0xff]   ;;  %v3000_v9 = vld [vmem:[%s4392_s1 + $0x514] ss:$8 sps:$4 sm:$0xff]  }
  0x19   :  { %2194 = vmatprep.subr.bf16.mxu0 %v2925_v25  ;;  %v2989_v6 = vld [vmem:[%s4393_s0 + $0x20] ss:$72 sps:$4 sm:$0xff]   ;;  %v2995_v10 = vld [vmem:[%s4392_s1 + $0x110] ss:$8 sps:$4 sm:$0xff]   ;;  %v3003_v12 = vld [vmem:[%s4392_s1 + $0x124] ss:$8 sps:$4 sm:$0xff]  }
  0x1a   :  { %v2992_v7 = vld [vmem:[%s4392_s1 + $0x500] ss:$8 sps:$4 sm:$0xff]   ;;  %v2998_v11 = vld [vmem:[%s4392_s1 + $0x510] ss:$8 sps:$4 sm:$0xff]   ;;  %v3006_v13 = vld [vmem:[%s4392_s1 + $0x524] ss:$8 sps:$4 sm:$0xff]  }
  0x1b   :  { %1983 = vmatpush1.bf16.msra.mxu1 %v2927_v26  ;;  %v3001_v14 = vld [vmem:[%s4392_s1 + $0x120] ss:$8 sps:$4 sm:$0xff]   ;;  %v3009_v16 = vld [vmem:[%s4392_s1 + $0x134] ss:$8 sps:$4 sm:$0xff]   ;;  %v3007_v18 = vld [vmem:[%s4392_s1 + $0x130] ss:$8 sps:$4 sm:$0xff]  }
  0x1c   :  { %2195 = vmatpush1.bf16.msra.mxu0 %v2928_v27  ;;  %1984 = vmatprep.subr.bf16.mxu1 %v2929_v28  ;;  %v3004_v15 = vld [vmem:[%s4392_s1 + $0x520] ss:$8 sps:$4 sm:$0xff]   ;;  %v3012_v17 = vld [vmem:[%s4392_s1 + $0x534] ss:$8 sps:$4 sm:$0xff]   ;;  %v3010_v19 = vld [vmem:[%s4392_s1 + $0x530] ss:$8 sps:$4 sm:$0xff]  }
  0x1d   :  { %2196 = vmatprep.subr.bf16.mxu0 %v2931_v29  ;;  %v3015_v20 = vld [vmem:[%s4392_s1 + $0x144] ss:$8 sps:$4 sm:$0xff]   ;;  %v3013_v22 = vld [vmem:[%s4392_s1 + $0x140] ss:$8 sps:$4 sm:$0xff]   ;;  %v3021_v24 = vld [vmem:[%s4392_s1 + $0x154] ss:$8 sps:$4 sm:$0xff]  }
  0x1e   :  { %v3018_v21 = vld [vmem:[%s4392_s1 + $0x544] ss:$8 sps:$4 sm:$0xff]   ;;  %v3016_v23 = vld [vmem:[%s4392_s1 + $0x540] ss:$8 sps:$4 sm:$0xff]   ;;  %v3024_v25 = vld [vmem:[%s4392_s1 + $0x554] ss:$8 sps:$4 sm:$0xff]  }
  0x1f   :  { %1985 = vmatpush1.bf16.msra.mxu1 %v2933_v30  ;;  %v3019_v26 = vld [vmem:[%s4392_s1 + $0x150] ss:$8 sps:$4 sm:$0xff]   ;;  %v3073_v28 = vld [vmem:[%s4393_s0 + $0x94] ss:$72 sps:$4 sm:$0xff]   ;;  %v3027_v29 = vld [vmem:[%s4392_s1 + $0x164] ss:$8 sps:$4 sm:$0xff]  }
  0x20   :  { %2197 = vmatpush1.bf16.msra.mxu0 %v2934_v31  ;;  %1986 = vmatprep.subr.bf16.mxu1 %v2935_v32  ;;  %v3022_v27 = vld [vmem:[%s4392_s1 + $0x550] ss:$8 sps:$4 sm:$0xff]   ;;  %v3030_v30 = vld [vmem:[%s4392_s1 + $0x564] ss:$8 sps:$4 sm:$0xff]   ;;  %v3078_v31 = vld [vmem:[%s4393_s0 + $0xb4] ss:$72 sps:$4 sm:$0xff]  }
  0x21   :  { %2198 = vmatprep.subr.bf16.mxu0 %v2937_v33  ;;  %v3025_v32 = vld [vmem:[%s4392_s1 + $0x160] ss:$8 sps:$4 sm:$0xff]   ;;  %v3043_v48 = vld [vmem:[%s4392_s1 + $0x190] ss:$8 sps:$4 sm:$0xff]   ;;  %v3054_v51 = vld [vmem:[%s4392_s1 + $0x5a4] ss:$8 sps:$4 sm:$0xff]  }
  0x22   :  { %v3028_v33 = vld [vmem:[%s4392_s1 + $0x560] ss:$8 sps:$4 sm:$0xff]  }
  0x23   :  { %1987 = vmatpush1.bf16.msra.mxu1 %v2939_v34  ;;  %v3083_v34 = vld [vmem:[%s4393_s0 + $0x90] ss:$72 sps:$4 sm:$0xff]  }
  0x24   :  { %2199 = vmatpush1.bf16.msra.mxu0 %v2940_v35  ;;  %1988 = vmatprep.subr.bf16.mxu1 %v2941_v36  ;;  %v3084_v35 = vld [vmem:[%s4393_s0 + $0xb0] ss:$72 sps:$4 sm:$0xff]   ;;  %v3033_v36 = vld [vmem:[%s4392_s1 + $0x174] ss:$8 sps:$4 sm:$0xff]  }
  0x25   :  { %2200 = vmatprep.subr.bf16.mxu0 %v2943_v37  ;;  %v3036_v37 = vld [vmem:[%s4392_s1 + $0x574] ss:$8 sps:$4 sm:$0xff]  }
  0x27   :  { %1989 = vmatpush1.bf16.msra.mxu1 %v2945_v38  ;;  %v3031_v38 = vld [vmem:[%s4392_s1 + $0x170] ss:$8 sps:$4 sm:$0xff]  }
  0x28   :  { %2201 = vmatpush1.bf16.msra.mxu0 %v2946_v39  ;;  %1990 = vmatprep.subr.bf16.mxu1 %v2947_v40  ;;  %v3034_v39 = vld [vmem:[%s4392_s1 + $0x570] ss:$8 sps:$4 sm:$0xff]   ;;  %v3093_v40 = vld [vmem:[%s4393_s0 + $0xc] ss:$72 sps:$4 sm:$0xff]  }
  0x29   :  { %2202 = vmatprep.subr.bf16.mxu0 %v2949_v41  ;;  %v3039_v41 = vld [vmem:[%s4392_s1 + $0x184] ss:$8 sps:$4 sm:$0xff]  }
  0x2b   :  { %1991 = vmatpush1.bf16.msra.mxu1 %v2951_v42  ;;  %v3042_v42 = vld [vmem:[%s4392_s1 + $0x584] ss:$8 sps:$4 sm:$0xff]  }
  0x2c   :  { %2203 = vmatpush1.bf16.msra.mxu0 %v2952_v43  ;;  %1992 = vmatprep.subr.bf16.mxu1 %v2953_v44  ;;  %v3099_v43 = vld [vmem:[%s4393_s0 + $0x2c] ss:$72 sps:$4 sm:$0xff]   ;;  %v3037_v44 = vld [vmem:[%s4392_s1 + $0x180] ss:$8 sps:$4 sm:$0xff]  }
  0x2d   :  { %2204 = vmatprep.subr.bf16.mxu0 %v2955_v45  ;;  %v3040_v45 = vld [vmem:[%s4392_s1 + $0x580] ss:$8 sps:$4 sm:$0xff]  }
  0x2f   :  { %1993 = vmatpush1.bf16.msra.mxu1 %v2957_v46  ;;  %v3045_v46 = vld [vmem:[%s4392_s1 + $0x194] ss:$8 sps:$4 sm:$0xff]  }
  0x30   :  { %2205 = vmatpush1.bf16.msra.mxu0 %v2958_v47  ;;  %1994 = vmatprep.subr.bf16.mxu1 %v2959_v49  ;;  %v3048_v47 = vld [vmem:[%s4392_s1 + $0x594] ss:$8 sps:$4 sm:$0xff]   ;;  %v3046_v49 = vld [vmem:[%s4392_s1 + $0x590] ss:$8 sps:$4 sm:$0xff]  }
  0x31   :  { %2206 = vmatprep.subr.bf16.mxu0 %v2961_v50  ;;  %v3051_v50 = vld [vmem:[%s4392_s1 + $0x1a4] ss:$8 sps:$4 sm:$0xff]  }
  0x33   :  { %1995 = vmatpush1.bf16.msra.mxu1 %v2963_v52  ;;  %v3049_v52 = vld [vmem:[%s4392_s1 + $0x1a0] ss:$8 sps:$4 sm:$0xff]  }
  0x34   :  { %2207 = vmatpush1.bf16.msra.mxu0 %v2964_v53  ;;  %1996 = vmatprep.subr.bf16.mxu1 %v2965_v54  ;;  %v3052_v53 = vld [vmem:[%s4392_s1 + $0x5a0] ss:$8 sps:$4 sm:$0xff]   ;;  %v3057_v54 = vld [vmem:[%s4392_s1 + $0x1b4] ss:$8 sps:$4 sm:$0xff]  }
  0x35   :  { %2208 = vmatprep.subr.bf16.mxu0 %v2967_v55  ;;  %v3060_v55 = vld [vmem:[%s4392_s1 + $0x5b4] ss:$8 sps:$4 sm:$0xff]  }
  0x37   :  { %1997 = vmatpush1.bf16.msra.mxu1 %v2969_v56  ;;  %v3055_v56 = vld [vmem:[%s4392_s1 + $0x1b0] ss:$8 sps:$4 sm:$0xff]  }
  0x38   :  { %2209 = vmatpush1.bf16.msra.mxu0 %v2970_v57  ;;  %1998 = vmatprep.subr.bf16.mxu1 %v2971_v58  ;;  %v3058_v57 = vld [vmem:[%s4392_s1 + $0x5b0] ss:$8 sps:$4 sm:$0xff]   ;;  %v3063_v58 = vld [vmem:[%s4392_s1 + $0x1c4] ss:$8 sps:$4 sm:$0xff]  }
  0x39   :  { %2210 = vmatprep.subr.bf16.mxu0 %v2973_v59  ;;  %v3066_v59 = vld [vmem:[%s4392_s1 + $0x5c4] ss:$8 sps:$4 sm:$0xff]  }
  0x3b   :  { %1999 = vmatpush1.bf16.msra.mxu1 %v2975_v60  ;;  %v3061_v60 = vld [vmem:[%s4392_s1 + $0x1c0] ss:$8 sps:$4 sm:$0xff]  }
  0x3c   :  { %2211 = vmatpush1.bf16.msra.mxu0 %v2976_v61  ;;  %2000 = vmatprep.subr.bf16.mxu1 %v2977_v62  ;;  %v3064_v61 = vld [vmem:[%s4392_s1 + $0x5c0] ss:$8 sps:$4 sm:$0xff]   ;;  %v3069_v62 = vld [vmem:[%s4392_s1 + $0x1d4] ss:$8 sps:$4 sm:$0xff]  }
  0x3d   :  { %2212 = vmatprep.subr.bf16.mxu0 %v2979_v63  ;;  %v3072_v63 = vld [vmem:[%s4392_s1 + $0x5d4] ss:$8 sps:$4 sm:$0xff]  }
  0x3f   :  { %2001 = vmatpush1.bf16.msra.mxu1 %v2981_v0  ;;  %v3067_v0 = vld [vmem:[%s4392_s1 + $0x1d0] ss:$8 sps:$4 sm:$0xff]  }
  0x40   :  { %2213 = vmatpush1.bf16.msra.mxu0 %v2982_v1  ;;  %2023 = vmatprep.subr.bf16.mxu1 %v2988_v2  ;;  %v3070_v1 = vld [vmem:[%s4392_s1 + $0x5d0] ss:$8 sps:$4 sm:$0xff]   ;;  %v3077_v2 = vld [vmem:[%s4392_s1 + $0x1e4] ss:$8 sps:$4 sm:$0xff]  }
  0x41   :  { %2235 = vmatprep.subr.bf16.mxu0 %v2994_v3  ;;  %v3082_v3 = vld [vmem:[%s4392_s1 + $0x5e4] ss:$8 sps:$4 sm:$0xff]  }
  0x42   :  { %2003 = vmatmul.mubr.bf16.vlgmr.msra.gmra.mrb[0].mxu1 %v2983_v4  ;;  %v3075_v4 = vld [vmem:[%s4392_s1 + $0x1e0] ss:$8 sps:$4 sm:$0xff]  }
  0x43   :  { %2215 = vmatmul.mubr.bf16.vlgmr.msra.gmra.mrb[0].mxu0 %v2989_v6  ;;  %2024 = vmatpush1.bf16.msra.mxu1 %v2986_v5  ;;  %v3080_v5 = vld [vmem:[%s4392_s1 + $0x5e0] ss:$8 sps:$4 sm:$0xff]   ;;  %v3087_v6 = vld [vmem:[%s4392_s1 + $0x1f4] ss:$8 sps:$4 sm:$0xff]  }
  0x44   :  { %2236 = vmatpush1.bf16.msra.mxu0 %v2992_v7  ;;  %2025 = vmatprep.subr.bf16.mxu1 %v2997_v8  ;;  %v3090_v7 = vld [vmem:[%s4392_s1 + $0x5f4] ss:$8 sps:$4 sm:$0xff]   ;;  %v3085_v8 = vld [vmem:[%s4392_s1 + $0x1f0] ss:$8 sps:$4 sm:$0xff]  }
  0x45   :  { %2237 = vmatprep.subr.bf16.mxu0 %v3000_v9  ;;  %2012 = vmatprep.mubr.bf16.mxu1 %v3073_v28  ;;  %v3088_v9 = vld [vmem:[%s4392_s1 + $0x5f0] ss:$8 sps:$4 sm:$0xff]   ;;  %v3117_v28 = vld [vmem:[%s4392_s1 + $0x234] ss:$8 sps:$4 sm:$0xff]  }
  0x46   :  { %2224 = vmatprep.mubr.bf16.mxu0 %v3078_v31  ;;  %v3118_v31 = vld [vmem:[%s4392_s1 + $0x630] ss:$8 sps:$4 sm:$0xff]  }
  0x47   :  { %2026 = vmatpush1.bf16.msra.mxu1 %v2995_v10  ;;  %v3096_v10 = vld [vmem:[%s4392_s1 + $0x204] ss:$8 sps:$4 sm:$0xff]  }
  0x48   :  { %2238 = vmatpush1.bf16.msra.mxu0 %v2998_v11  ;;  %2027 = vmatprep.subr.bf16.mxu1 %v3003_v12  ;;  %v3102_v11 = vld [vmem:[%s4392_s1 + $0x604] ss:$8 sps:$4 sm:$0xff]   ;;  %v3091_v12 = vld [vmem:[%s4393_s0 + $0x8] ss:$72 sps:$4 sm:$0xff]  }
  0x49   :  { %2239 = vmatprep.subr.bf16.mxu0 %v3006_v13  ;;  %v3094_v13 = vld [vmem:[%s4392_s1 + $0x200] ss:$8 sps:$4 sm:$0xff]  }
  0x4a   :  { %2013 = vmatmul.mubr.bf16.gmra.mrb[4].mxu1 %v3083_v34  ;;  %v3126_v34 = vld [vmem:[%s4392_s1 + $0x644] ss:$8 sps:$4 sm:$0xff]  }
  0x4b   :  { %2028 = vmatpush1.bf16.msra.mxu1 %v3001_v14  ;;  %2225 = vmatmul.mubr.bf16.gmra.mrb[4].mxu0 %v3084_v35  ;;  %v3097_v14 = vld [vmem:[%s4393_s0 + $0x28] ss:$72 sps:$4 sm:$0xff]   ;;  %v3207_v35 = vld [vmem:[%s4393_s0 + $0x34] ss:$72 sps:$4 sm:$0xff]  }
  0x4c   :  { %2240 = vmatpush1.bf16.msra.mxu0 %v3004_v15  ;;  %2029 = vmatprep.subr.bf16.mxu1 %v3009_v16  ;;  %v3100_v15 = vld [vmem:[%s4392_s1 + $0x600] ss:$8 sps:$4 sm:$0xff]   ;;  %v3105_v16 = vld [vmem:[%s4392_s1 + $0x214] ss:$8 sps:$4 sm:$0xff]  }
  0x4d   :  { %2241 = vmatprep.subr.bf16.mxu0 %v3012_v17  ;;  %2055 = vmatprep.mubr.bf16.mxu1 %v3093_v40  ;;  %v3108_v17 = vld [vmem:[%s4392_s1 + $0x614] ss:$8 sps:$4 sm:$0xff]   ;;  %v3127_v40 = vld [vmem:[%s4392_s1 + $0x250] ss:$8 sps:$4 sm:$0xff]  }
  0x4e   :  { %2267 = vmatprep.mubr.bf16.mxu0 %v3099_v43  ;;  %v3138_v43 = vld [vmem:[%s4392_s1 + $0x664] ss:$8 sps:$4 sm:$0xff]  }
  0x4f   :  { %2030 = vmatpush1.bf16.msra.mxu1 %v3007_v18  ;;  %v3103_v18 = vld [vmem:[%s4392_s1 + $0x210] ss:$8 sps:$4 sm:$0xff]  }
  0x50   :  { %2242 = vmatpush1.bf16.msra.mxu0 %v3010_v19  ;;  %2031 = vmatprep.subr.bf16.mxu1 %v3015_v20  ;;  %v3106_v19 = vld [vmem:[%s4392_s1 + $0x610] ss:$8 sps:$4 sm:$0xff]   ;;  %v3181_v20 = vld [vmem:[%s4393_s0 + $0x9c] ss:$72 sps:$4 sm:$0xff]  }
  0x51   :  { %2243 = vmatprep.subr.bf16.mxu0 %v3018_v21  ;;  %v3111_v21 = vld [vmem:[%s4392_s1 + $0x224] ss:$8 sps:$4 sm:$0xff]  }
  0x53   :  { %2032 = vmatpush1.bf16.msra.mxu1 %v3013_v22  ;;  %v3114_v22 = vld [vmem:[%s4392_s1 + $0x624] ss:$8 sps:$4 sm:$0xff]  }
  0x54   :  { %2244 = vmatpush1.bf16.msra.mxu0 %v3016_v23  ;;  %2033 = vmatprep.subr.bf16.mxu1 %v3021_v24  ;;  %v3186_v23 = vld [vmem:[%s4393_s0 + $0xbc] ss:$72 sps:$4 sm:$0xff]   ;;  %v3109_v24 = vld [vmem:[%s4392_s1 + $0x220] ss:$8 sps:$4 sm:$0xff]  }
  0x55   :  { %2245 = vmatprep.subr.bf16.mxu0 %v3024_v25  ;;  %v3112_v25 = vld [vmem:[%s4392_s1 + $0x620] ss:$8 sps:$4 sm:$0xff]  }
  0x57   :  { %2034 = vmatpush1.bf16.msra.mxu1 %v3019_v26  ;;  %v3191_v26 = vld [vmem:[%s4393_s0 + $0x98] ss:$72 sps:$4 sm:$0xff]  }
  0x58   :  { %2246 = vmatpush1.bf16.msra.mxu0 %v3022_v27  ;;  %2035 = vmatprep.subr.bf16.mxu1 %v3027_v29  ;;  %v3192_v27 = vld [vmem:[%s4393_s0 + $0xb8] ss:$72 sps:$4 sm:$0xff]   ;;  %v3120_v29 = vld [vmem:[%s4392_s1 + $0x634] ss:$8 sps:$4 sm:$0xff]  }
  0x59   :  { %2247 = vmatprep.subr.bf16.mxu0 %v3030_v30  ;;  %v3115_v30 = vld [vmem:[%s4392_s1 + $0x230] ss:$8 sps:$4 sm:$0xff]  }
  0x5b   :  { %2036 = vmatpush1.bf16.msra.mxu1 %v3025_v32  ;;  %v3201_v32 = vld [vmem:[%s4393_s0 + $0x14] ss:$72 sps:$4 sm:$0xff]  }
  0x5c   :  { %2248 = vmatpush1.bf16.msra.mxu0 %v3028_v33  ;;  %2037 = vmatprep.subr.bf16.mxu1 %v3033_v36  ;;  %v3123_v33 = vld [vmem:[%s4392_s1 + $0x244] ss:$8 sps:$4 sm:$0xff]   ;;  %v3121_v36 = vld [vmem:[%s4392_s1 + $0x240] ss:$8 sps:$4 sm:$0xff]  }
  0x5d   :  { %2249 = vmatprep.subr.bf16.mxu0 %v3036_v37  ;;  %v3124_v37 = vld [vmem:[%s4392_s1 + $0x640] ss:$8 sps:$4 sm:$0xff]  }
  0x5f   :  { %2038 = vmatpush1.bf16.msra.mxu1 %v3031_v38  ;;  %v3129_v38 = vld [vmem:[%s4392_s1 + $0x254] ss:$8 sps:$4 sm:$0xff]  }
  0x60   :  { %2250 = vmatpush1.bf16.msra.mxu0 %v3034_v39  ;;  %2039 = vmatprep.subr.bf16.mxu1 %v3039_v41  ;;  %v3132_v39 = vld [vmem:[%s4392_s1 + $0x654] ss:$8 sps:$4 sm:$0xff]   ;;  %v3130_v41 = vld [vmem:[%s4392_s1 + $0x650] ss:$8 sps:$4 sm:$0xff]  }
  0x61   :  { %2251 = vmatprep.subr.bf16.mxu0 %v3042_v42  ;;  %v3135_v42 = vld [vmem:[%s4392_s1 + $0x264] ss:$8 sps:$4 sm:$0xff]  }
  0x63   :  { %2040 = vmatpush1.bf16.msra.mxu1 %v3037_v44  ;;  %v3133_v44 = vld [vmem:[%s4392_s1 + $0x260] ss:$8 sps:$4 sm:$0xff]  }
  0x64   :  { %2252 = vmatpush1.bf16.msra.mxu0 %v3040_v45  ;;  %2041 = vmatprep.subr.bf16.mxu1 %v3045_v46  ;;  %v3136_v45 = vld [vmem:[%s4392_s1 + $0x660] ss:$8 sps:$4 sm:$0xff]   ;;  %v3141_v46 = vld [vmem:[%s4392_s1 + $0x274] ss:$8 sps:$4 sm:$0xff]  }
  0x65   :  { %2253 = vmatprep.subr.bf16.mxu0 %v3048_v47  ;;  %v3144_v47 = vld [vmem:[%s4392_s1 + $0x674] ss:$8 sps:$4 sm:$0xff]  }
  0x67   :  { %2042 = vmatpush1.bf16.msra.mxu1 %v3043_v48  ;;  %v3139_v48 = vld [vmem:[%s4392_s1 + $0x270] ss:$8 sps:$4 sm:$0xff]  }
  0x68   :  { %2254 = vmatpush1.bf16.msra.mxu0 %v3046_v49  ;;  %2043 = vmatprep.subr.bf16.mxu1 %v3051_v50  ;;  %v3142_v49 = vld [vmem:[%s4392_s1 + $0x670] ss:$8 sps:$4 sm:$0xff]   ;;  %v3147_v50 = vld [vmem:[%s4392_s1 + $0x284] ss:$8 sps:$4 sm:$0xff]  }
  0x69   :  { %2255 = vmatprep.subr.bf16.mxu0 %v3054_v51  ;;  %v3150_v51 = vld [vmem:[%s4392_s1 + $0x684] ss:$8 sps:$4 sm:$0xff]  }
  0x6b   :  { %2044 = vmatpush1.bf16.msra.mxu1 %v3049_v52  ;;  %v3145_v52 = vld [vmem:[%s4392_s1 + $0x280] ss:$8 sps:$4 sm:$0xff]  }
  0x6c   :  { %2256 = vmatpush1.bf16.msra.mxu0 %v3052_v53  ;;  %2045 = vmatprep.subr.bf16.mxu1 %v3057_v54  ;;  %v3148_v53 = vld [vmem:[%s4392_s1 + $0x680] ss:$8 sps:$4 sm:$0xff]   ;;  %v3153_v54 = vld [vmem:[%s4392_s1 + $0x294] ss:$8 sps:$4 sm:$0xff]  }
  0x6d   :  { %2257 = vmatprep.subr.bf16.mxu0 %v3060_v55  ;;  %v3156_v55 = vld [vmem:[%s4392_s1 + $0x694] ss:$8 sps:$4 sm:$0xff]  }
  0x6f   :  { %2046 = vmatpush1.bf16.msra.mxu1 %v3055_v56  ;;  %v3151_v56 = vld [vmem:[%s4392_s1 + $0x290] ss:$8 sps:$4 sm:$0xff]  }
  0x70   :  { %2258 = vmatpush1.bf16.msra.mxu0 %v3058_v57  ;;  %2047 = vmatprep.subr.bf16.mxu1 %v3063_v58  ;;  %v3154_v57 = vld [vmem:[%s4392_s1 + $0x690] ss:$8 sps:$4 sm:$0xff]   ;;  %v3159_v58 = vld [vmem:[%s4392_s1 + $0x2a4] ss:$8 sps:$4 sm:$0xff]  }
  0x71   :  { %2259 = vmatprep.subr.bf16.mxu0 %v3066_v59  ;;  %v3162_v59 = vld [vmem:[%s4392_s1 + $0x6a4] ss:$8 sps:$4 sm:$0xff]  }
  0x73   :  { %2048 = vmatpush1.bf16.msra.mxu1 %v3061_v60  ;;  %v3157_v60 = vld [vmem:[%s4392_s1 + $0x2a0] ss:$8 sps:$4 sm:$0xff]  }
  0x74   :  { %2260 = vmatpush1.bf16.msra.mxu0 %v3064_v61  ;;  %2049 = vmatprep.subr.bf16.mxu1 %v3069_v62  ;;  %v3160_v61 = vld [vmem:[%s4392_s1 + $0x6a0] ss:$8 sps:$4 sm:$0xff]   ;;  %v3165_v62 = vld [vmem:[%s4392_s1 + $0x2b4] ss:$8 sps:$4 sm:$0xff]  }
  0x75   :  { %2261 = vmatprep.subr.bf16.mxu0 %v3072_v63  ;;  %v3168_v63 = vld [vmem:[%s4392_s1 + $0x6b4] ss:$8 sps:$4 sm:$0xff]  }
  0x77   :  { %2050 = vmatpush1.bf16.msra.mxu1 %v3067_v0  ;;  %v3163_v0 = vld [vmem:[%s4392_s1 + $0x2b0] ss:$8 sps:$4 sm:$0xff]  }
  0x78   :  { %2262 = vmatpush1.bf16.msra.mxu0 %v3070_v1  ;;  %2051 = vmatprep.subr.bf16.mxu1 %v3077_v2  ;;  %v3166_v1 = vld [vmem:[%s4392_s1 + $0x6b0] ss:$8 sps:$4 sm:$0xff]   ;;  %v3171_v2 = vld [vmem:[%s4392_s1 + $0x2c4] ss:$8 sps:$4 sm:$0xff]  }
  0x79   :  { %2263 = vmatprep.subr.bf16.mxu0 %v3082_v3  ;;  %v3174_v3 = vld [vmem:[%s4392_s1 + $0x6c4] ss:$8 sps:$4 sm:$0xff]  }
  0x7b   :  { %2052 = vmatpush1.bf16.msra.mxu1 %v3075_v4  ;;  %v3169_v4 = vld [vmem:[%s4392_s1 + $0x2c0] ss:$8 sps:$4 sm:$0xff]  }
  0x7c   :  { %2264 = vmatpush1.bf16.msra.mxu0 %v3080_v5  ;;  %2053 = vmatprep.subr.bf16.mxu1 %v3087_v6  ;;  %v3172_v5 = vld [vmem:[%s4392_s1 + $0x6c0] ss:$8 sps:$4 sm:$0xff]   ;;  %v3177_v6 = vld [vmem:[%s4392_s1 + $0x2d4] ss:$8 sps:$4 sm:$0xff]  }
  0x7d   :  { %2265 = vmatprep.subr.bf16.mxu0 %v3090_v7  ;;  %v3180_v7 = vld [vmem:[%s4392_s1 + $0x6d4] ss:$8 sps:$4 sm:$0xff]  }
  0x7f   :  { %2054 = vmatpush1.bf16.msra.mxu1 %v3085_v8  ;;  %v3175_v8 = vld [vmem:[%s4392_s1 + $0x2d0] ss:$8 sps:$4 sm:$0xff]  }
  0x80   :  { %2266 = vmatpush1.bf16.msra.mxu0 %v3088_v9  ;;  %2076 = vmatprep.subr.bf16.mxu1 %v3096_v10  ;;  %v3178_v9 = vld [vmem:[%s4392_s1 + $0x6d0] ss:$8 sps:$4 sm:$0xff]   ;;  %v3185_v10 = vld [vmem:[%s4392_s1 + $0x2e4] ss:$8 sps:$4 sm:$0xff]  }
  0x81   :  { %2288 = vmatprep.subr.bf16.mxu0 %v3102_v11  ;;  %v3190_v11 = vld [vmem:[%s4392_s1 + $0x6e4] ss:$8 sps:$4 sm:$0xff]  }
  0x82   :  { %2056 = vmatmul.mubr.bf16.vlgmr.msra.gmra.mrb[0].mxu1 %v3091_v12  ;;  %v3183_v12 = vld [vmem:[%s4392_s1 + $0x2e0] ss:$8 sps:$4 sm:$0xff]  }
  0x83   :  { %2268 = vmatmul.mubr.bf16.vlgmr.msra.gmra.mrb[0].mxu0 %v3097_v14  ;;  %2077 = vmatpush1.bf16.msra.mxu1 %v3094_v13  ;;  %v3188_v13 = vld [vmem:[%s4392_s1 + $0x6e0] ss:$8 sps:$4 sm:$0xff]   ;;  %v3195_v14 = vld [vmem:[%s4392_s1 + $0x2f4] ss:$8 sps:$4 sm:$0xff]  }
  0x84   :  { %2289 = vmatpush1.bf16.msra.mxu0 %v3100_v15  ;;  %2078 = vmatprep.subr.bf16.mxu1 %v3105_v16  ;;  %v3198_v15 = vld [vmem:[%s4392_s1 + $0x6f4] ss:$8 sps:$4 sm:$0xff]   ;;  %v3193_v16 = vld [vmem:[%s4392_s1 + $0x2f0] ss:$8 sps:$4 sm:$0xff]  }
  0x85   :  { %2290 = vmatprep.subr.bf16.mxu0 %v3108_v17  ;;  %2065 = vmatprep.mubr.bf16.mxu1 %v3181_v20  ;;  %v3196_v17 = vld [vmem:[%s4392_s1 + $0x6f0] ss:$8 sps:$4 sm:$0xff]  }
  0x86   :  { %2277 = vmatprep.mubr.bf16.mxu0 %v3186_v23  ;;  %v3199_v20 = vld [vmem:[%s4393_s0 + $0x10] ss:$72 sps:$4 sm:$0xff]   ;;  %v3208_v23 = vld [vmem:[%s4392_s1 + $0x700] ss:$8 sps:$4 sm:$0xff]  }
  0x87   :  { %2079 = vmatpush1.bf16.msra.mxu1 %v3103_v18  ;;  %v3204_v18 = vld [vmem:[%s4392_s1 + $0x304] ss:$8 sps:$4 sm:$0xff]  }
  0x88   :  { %2291 = vmatpush1.bf16.msra.mxu0 %v3106_v19  ;;  %2080 = vmatprep.subr.bf16.mxu1 %v3111_v21  ;;  %v3210_v19 = vld [vmem:[%s4392_s1 + $0x704] ss:$8 sps:$4 sm:$0xff]   ;;  %v3202_v21 = vld [vmem:[%s4392_s1 + $0x300] ss:$8 sps:$4 sm:$0xff]  }
  0x89   :  { %2292 = vmatprep.subr.bf16.mxu0 %v3114_v22  ;;  %v3205_v22 = vld [vmem:[%s4393_s0 + $0x30] ss:$72 sps:$4 sm:$0xff]  }
  0x8a   :  { %2066 = vmatmul.mubr.bf16.gmra.mrb[4].mxu1 %v3191_v26  ;;  %v3289_v26 = vld [vmem:[%s4393_s0 + $0xa4] ss:$72 sps:$4 sm:$0xff]  }
  0x8b   :  { %2278 = vmatmul.mubr.bf16.gmra.mrb[4].mxu0 %v3192_v27  ;;  %2081 = vmatpush1.bf16.msra.mxu1 %v3109_v24  ;;  %v3213_v24 = vld [vmem:[%s4392_s1 + $0x314] ss:$8 sps:$4 sm:$0xff]   ;;  %v3291_v27 = vld [vmem:[%s4393_s0 + $0xc4] ss:$72 sps:$4 sm:$0xff]  }
  0x8c   :  { %2293 = vmatpush1.bf16.msra.mxu0 %v3112_v25  ;;  %2082 = vmatprep.subr.bf16.mxu1 %v3117_v28  ;;  %v3216_v25 = vld [vmem:[%s4392_s1 + $0x714] ss:$8 sps:$4 sm:$0xff]   ;;  %v3211_v28 = vld [vmem:[%s4392_s1 + $0x310] ss:$8 sps:$4 sm:$0xff]  }
  0x8d   :  { %2294 = vmatprep.subr.bf16.mxu0 %v3120_v29  ;;  %2108 = vmatprep.mubr.bf16.mxu1 %v3201_v32  ;;  %v3214_v29 = vld [vmem:[%s4392_s1 + $0x710] ss:$8 sps:$4 sm:$0xff]   ;;  %v3217_v32 = vld [vmem:[%s4392_s1 + $0x320] ss:$8 sps:$4 sm:$0xff]  }
  0x8e   :  { %2320 = vmatprep.mubr.bf16.mxu0 %v3207_v35  ;;  %v3297_v35 = vld [vmem:[%s4393_s0 + $0xc0] ss:$72 sps:$4 sm:$0xff]  }
  0x8f   :  { %2083 = vmatpush1.bf16.msra.mxu1 %v3115_v30  ;;  %v3219_v30 = vld [vmem:[%s4392_s1 + $0x324] ss:$8 sps:$4 sm:$0xff]  }
  0x90   :  { %2295 = vmatpush1.bf16.msra.mxu0 %v3118_v31  ;;  %2084 = vmatprep.subr.bf16.mxu1 %v3123_v33  ;;  %v3222_v31 = vld [vmem:[%s4392_s1 + $0x724] ss:$8 sps:$4 sm:$0xff]   ;;  %v3220_v33 = vld [vmem:[%s4392_s1 + $0x720] ss:$8 sps:$4 sm:$0xff]  }
  0x91   :  { %2296 = vmatprep.subr.bf16.mxu0 %v3126_v34  ;;  %v3293_v34 = vld [vmem:[%s4393_s0 + $0xa0] ss:$72 sps:$4 sm:$0xff]  }
  0x93   :  { %2085 = vmatpush1.bf16.msra.mxu1 %v3121_v36  ;;  %v3225_v36 = vld [vmem:[%s4392_s1 + $0x334] ss:$8 sps:$4 sm:$0xff]  }
  0x94   :  { %2297 = vmatpush1.bf16.msra.mxu0 %v3124_v37  ;;  %2086 = vmatprep.subr.bf16.mxu1 %v3129_v38  ;;  %v3228_v37 = vld [vmem:[%s4392_s1 + $0x734] ss:$8 sps:$4 sm:$0xff]  }
  0x95   :  { %2298 = vmatprep.subr.bf16.mxu0 %v3132_v39  ;;  %v3309_v38 = vld [vmem:[%s4393_s0 + $0x1c] ss:$72 sps:$4 sm:$0xff]  }
  0x96   :  { %v3312_v39 = vld [vmem:[%s4393_s0 + $0x3c] ss:$72 sps:$4 sm:$0xff]  }
  0x97   :  { %2087 = vmatpush1.bf16.msra.mxu1 %v3127_v40  ;;  %v3223_v40 = vld [vmem:[%s4392_s1 + $0x330] ss:$8 sps:$4 sm:$0xff]  }
  0x98   :  { %2299 = vmatpush1.bf16.msra.mxu0 %v3130_v41  ;;  %2088 = vmatprep.subr.bf16.mxu1 %v3135_v42  ;;  %v3226_v41 = vld [vmem:[%s4392_s1 + $0x730] ss:$8 sps:$4 sm:$0xff]   ;;  %v3231_v42 = vld [vmem:[%s4392_s1 + $0x344] ss:$8 sps:$4 sm:$0xff]  }
  0x99   :  { %2300 = vmatprep.subr.bf16.mxu0 %v3138_v43  ;;  %v3234_v43 = vld [vmem:[%s4392_s1 + $0x744] ss:$8 sps:$4 sm:$0xff]  }
  0x9b   :  { %2089 = vmatpush1.bf16.msra.mxu1 %v3133_v44  ;;  %v3229_v44 = vld [vmem:[%s4392_s1 + $0x340] ss:$8 sps:$4 sm:$0xff]  }
  0x9c   :  { %2301 = vmatpush1.bf16.msra.mxu0 %v3136_v45  ;;  %2090 = vmatprep.subr.bf16.mxu1 %v3141_v46  ;;  %v3232_v45 = vld [vmem:[%s4392_s1 + $0x740] ss:$8 sps:$4 sm:$0xff]   ;;  %v3237_v46 = vld [vmem:[%s4392_s1 + $0x354] ss:$8 sps:$4 sm:$0xff]  }
  0x9d   :  { %2302 = vmatprep.subr.bf16.mxu0 %v3144_v47  ;;  %v3240_v47 = vld [vmem:[%s4392_s1 + $0x754] ss:$8 sps:$4 sm:$0xff]  }
  0x9f   :  { %2091 = vmatpush1.bf16.msra.mxu1 %v3139_v48  ;;  %v3235_v48 = vld [vmem:[%s4392_s1 + $0x350] ss:$8 sps:$4 sm:$0xff]  }
  0xa0   :  { %2303 = vmatpush1.bf16.msra.mxu0 %v3142_v49  ;;  %2092 = vmatprep.subr.bf16.mxu1 %v3147_v50  ;;  %v3238_v49 = vld [vmem:[%s4392_s1 + $0x750] ss:$8 sps:$4 sm:$0xff]   ;;  %v3243_v50 = vld [vmem:[%s4392_s1 + $0x364] ss:$8 sps:$4 sm:$0xff]  }
  0xa1   :  { %2304 = vmatprep.subr.bf16.mxu0 %v3150_v51  ;;  %v3246_v51 = vld [vmem:[%s4392_s1 + $0x764] ss:$8 sps:$4 sm:$0xff]  }
  0xa3   :  { %2093 = vmatpush1.bf16.msra.mxu1 %v3145_v52  ;;  %v3241_v52 = vld [vmem:[%s4392_s1 + $0x360] ss:$8 sps:$4 sm:$0xff]  }
  0xa4   :  { %2305 = vmatpush1.bf16.msra.mxu0 %v3148_v53  ;;  %2094 = vmatprep.subr.bf16.mxu1 %v3153_v54  ;;  %v3244_v53 = vld [vmem:[%s4392_s1 + $0x760] ss:$8 sps:$4 sm:$0xff]   ;;  %v3249_v54 = vld [vmem:[%s4392_s1 + $0x374] ss:$8 sps:$4 sm:$0xff]  }
  0xa5   :  { %2306 = vmatprep.subr.bf16.mxu0 %v3156_v55  ;;  %v3252_v55 = vld [vmem:[%s4392_s1 + $0x774] ss:$8 sps:$4 sm:$0xff]  }
  0xa7   :  { %2095 = vmatpush1.bf16.msra.mxu1 %v3151_v56  ;;  %v3247_v56 = vld [vmem:[%s4392_s1 + $0x370] ss:$8 sps:$4 sm:$0xff]  }
  0xa8   :  { %2307 = vmatpush1.bf16.msra.mxu0 %v3154_v57  ;;  %2096 = vmatprep.subr.bf16.mxu1 %v3159_v58  ;;  %v3250_v57 = vld [vmem:[%s4392_s1 + $0x770] ss:$8 sps:$4 sm:$0xff]   ;;  %v3255_v58 = vld [vmem:[%s4392_s1 + $0x384] ss:$8 sps:$4 sm:$0xff]  }
  0xa9   :  { %2308 = vmatprep.subr.bf16.mxu0 %v3162_v59  ;;  %v3258_v59 = vld [vmem:[%s4392_s1 + $0x784] ss:$8 sps:$4 sm:$0xff]  }
  0xab   :  { %2097 = vmatpush1.bf16.msra.mxu1 %v3157_v60  ;;  %v3253_v60 = vld [vmem:[%s4392_s1 + $0x380] ss:$8 sps:$4 sm:$0xff]  }
  0xac   :  { %2309 = vmatpush1.bf16.msra.mxu0 %v3160_v61  ;;  %2098 = vmatprep.subr.bf16.mxu1 %v3165_v62  ;;  %v3256_v61 = vld [vmem:[%s4392_s1 + $0x780] ss:$8 sps:$4 sm:$0xff]   ;;  %v3261_v62 = vld [vmem:[%s4392_s1 + $0x394] ss:$8 sps:$4 sm:$0xff]  }
  0xad   :  { %2310 = vmatprep.subr.bf16.mxu0 %v3168_v63  ;;  %v3264_v63 = vld [vmem:[%s4392_s1 + $0x794] ss:$8 sps:$4 sm:$0xff]  }
  0xaf   :  { %2099 = vmatpush1.bf16.msra.mxu1 %v3163_v0  ;;  %v3259_v0 = vld [vmem:[%s4392_s1 + $0x390] ss:$8 sps:$4 sm:$0xff]  }
  0xb0   :  { %2311 = vmatpush1.bf16.msra.mxu0 %v3166_v1  ;;  %2100 = vmatprep.subr.bf16.mxu1 %v3171_v2  ;;  %v3262_v1 = vld [vmem:[%s4392_s1 + $0x790] ss:$8 sps:$4 sm:$0xff]   ;;  %v3267_v2 = vld [vmem:[%s4392_s1 + $0x3a4] ss:$8 sps:$4 sm:$0xff]  }
  0xb1   :  { %2312 = vmatprep.subr.bf16.mxu0 %v3174_v3  ;;  %v3270_v3 = vld [vmem:[%s4392_s1 + $0x7a4] ss:$8 sps:$4 sm:$0xff]  }
  0xb3   :  { %2101 = vmatpush1.bf16.msra.mxu1 %v3169_v4  ;;  %v3265_v4 = vld [vmem:[%s4392_s1 + $0x3a0] ss:$8 sps:$4 sm:$0xff]  }
  0xb4   :  { %2313 = vmatpush1.bf16.msra.mxu0 %v3172_v5  ;;  %2102 = vmatprep.subr.bf16.mxu1 %v3177_v6  ;;  %v3268_v5 = vld [vmem:[%s4392_s1 + $0x7a0] ss:$8 sps:$4 sm:$0xff]   ;;  %v3273_v6 = vld [vmem:[%s4392_s1 + $0x3b4] ss:$8 sps:$4 sm:$0xff]  }
  0xb5   :  { %2314 = vmatprep.subr.bf16.mxu0 %v3180_v7  ;;  %v3276_v7 = vld [vmem:[%s4392_s1 + $0x7b4] ss:$8 sps:$4 sm:$0xff]  }
  0xb7   :  { %2103 = vmatpush1.bf16.msra.mxu1 %v3175_v8  ;;  %v3271_v8 = vld [vmem:[%s4392_s1 + $0x3b0] ss:$8 sps:$4 sm:$0xff]  }
  0xb8   :  { %2315 = vmatpush1.bf16.msra.mxu0 %v3178_v9  ;;  %2104 = vmatprep.subr.bf16.mxu1 %v3185_v10  ;;  %v3274_v9 = vld [vmem:[%s4392_s1 + $0x7b0] ss:$8 sps:$4 sm:$0xff]   ;;  %v3279_v10 = vld [vmem:[%s4392_s1 + $0x3c4] ss:$8 sps:$4 sm:$0xff]  }
  0xb9   :  { %2316 = vmatprep.subr.bf16.mxu0 %v3190_v11  ;;  %v3282_v11 = vld [vmem:[%s4392_s1 + $0x7c4] ss:$8 sps:$4 sm:$0xff]  }
  0xbb   :  { %2105 = vmatpush1.bf16.msra.mxu1 %v3183_v12  ;;  %v3277_v12 = vld [vmem:[%s4392_s1 + $0x3c0] ss:$8 sps:$4 sm:$0xff]  }
  0xbc   :  { %2317 = vmatpush1.bf16.msra.mxu0 %v3188_v13  ;;  %2106 = vmatprep.subr.bf16.mxu1 %v3195_v14  ;;  %v3280_v13 = vld [vmem:[%s4392_s1 + $0x7c0] ss:$8 sps:$4 sm:$0xff]   ;;  %v3285_v14 = vld [vmem:[%s4392_s1 + $0x3d4] ss:$8 sps:$4 sm:$0xff]  }
  0xbd   :  { %2318 = vmatprep.subr.bf16.mxu0 %v3198_v15  ;;  %v3288_v15 = vld [vmem:[%s4392_s1 + $0x7d4] ss:$8 sps:$4 sm:$0xff]  }
  0xbf   :  { %2107 = vmatpush1.bf16.msra.mxu1 %v3193_v16  ;;  %v3283_v16 = vld [vmem:[%s4392_s1 + $0x3d0] ss:$8 sps:$4 sm:$0xff]  }
  0xc0   :  { %2319 = vmatpush1.bf16.msra.mxu0 %v3196_v17  ;;  %2129 = vmatprep.subr.bf16.mxu1 %v3204_v18  ;;  %v3286_v17 = vld [vmem:[%s4392_s1 + $0x7d0] ss:$8 sps:$4 sm:$0xff]   ;;  %v3296_v18 = vld [vmem:[%s4392_s1 + $0x3e4] ss:$8 sps:$4 sm:$0xff]  }
  0xc1   :  { %2341 = vmatprep.subr.bf16.mxu0 %v3210_v19  ;;  %v3300_v19 = vld [vmem:[%s4392_s1 + $0x7e4] ss:$8 sps:$4 sm:$0xff]  }
  0xc2   :  { %2109 = vmatmul.mubr.bf16.vlgmr.msra.gmra.mrb[0].mxu1 %v3199_v20  ;;  %v3294_v20 = vld [vmem:[%s4392_s1 + $0x3e0] ss:$8 sps:$4 sm:$0xff]  }
  0xc3   :  { %2321 = vmatmul.mubr.bf16.vlgmr.msra.gmra.mrb[0].mxu0 %v3205_v22  ;;  %2130 = vmatpush1.bf16.msra.mxu1 %v3202_v21  ;;  %v3298_v21 = vld [vmem:[%s4392_s1 + $0x7e0] ss:$8 sps:$4 sm:$0xff]   ;;  %v3303_v22 = vld [vmem:[%s4392_s1 + $0x3f4] ss:$8 sps:$4 sm:$0xff]  }
  0xc4   :  { %2342 = vmatpush1.bf16.msra.mxu0 %v3208_v23  ;;  %2131 = vmatprep.subr.bf16.mxu1 %v3213_v24  ;;  %v3306_v23 = vld [vmem:[%s4392_s1 + $0x7f4] ss:$8 sps:$4 sm:$0xff]   ;;  %v3301_v24 = vld [vmem:[%s4392_s1 + $0x3f0] ss:$8 sps:$4 sm:$0xff]  }
  0xc5   :  { %2343 = vmatprep.subr.bf16.mxu0 %v3216_v25  ;;  %2118 = vmatprep.mubr.bf16.mxu1 %v3289_v26  ;;  %v3304_v25 = vld [vmem:[%s4392_s1 + $0x7f0] ss:$8 sps:$4 sm:$0xff]   ;;  %v3315_v26 = vld [vmem:[%s4392_s1 + $0x804] ss:$8 sps:$4 sm:$0xff]  }
  0xc6   :  { %2330 = vmatprep.mubr.bf16.mxu0 %v3291_v27  ;;  %v3307_v27 = vld [vmem:[%s4393_s0 + $0x18] ss:$72 sps:$4 sm:$0xff]  }
  0xc7   :  { %2132 = vmatpush1.bf16.msra.mxu1 %v3211_v28  ;;  %v3310_v28 = vld [vmem:[%s4393_s0 + $0x38] ss:$72 sps:$4 sm:$0xff]  }
  0xc8   :  { %2344 = vmatpush1.bf16.msra.mxu0 %v3214_v29  ;;  %2133 = vmatprep.subr.bf16.mxu1 %v3219_v30  ;;  %v3313_v29 = vld [vmem:[%s4392_s1 + $0x800] ss:$8 sps:$4 sm:$0xff]   ;;  %v3318_v30 = vld [vmem:[%s4392_s1 + $0x814] ss:$8 sps:$4 sm:$0xff]  }
  0xc9   :  { %2345 = vmatprep.subr.bf16.mxu0 %v3222_v31  ;;  %v3319_v31 = vld [vmem:[%s4393_s0 + $0xac] ss:$72 sps:$4 sm:$0xff]  }
  0xca   :  { %2119 = vmatmul.mubr.bf16.gmra.mrb[4].mxu1 %v3293_v34  ;;  %v3327_v34 = vld [vmem:[%s4392_s1 + $0x824] ss:$8 sps:$4 sm:$0xff]  }
  0xcb   :  { %2331 = vmatmul.mubr.bf16.gmra.mrb[4].mxu0 %v3297_v35  ;;  %2134 = vmatpush1.bf16.msra.mxu1 %v3217_v32  ;;  %v3321_v32 = vld [vmem:[%s4393_s0 + $0xcc] ss:$72 sps:$4 sm:$0xff]   ;;  %v3323_v35 = vld [vmem:[%s4393_s0 + $0xa8] ss:$72 sps:$4 sm:$0xff]  }
  0xcc   :  { %2346 = vmatpush1.bf16.msra.mxu0 %v3220_v33  ;;  %2135 = vmatprep.subr.bf16.mxu1 %v3225_v36  ;;  %v3316_v33 = vld [vmem:[%s4392_s1 + $0x810] ss:$8 sps:$4 sm:$0xff]  }
  0xcd   :  { %2347 = vmatprep.subr.bf16.mxu0 %v3228_v37  ;;  %2161 = vmatprep.mubr.bf16.mxu1 %v3309_v38  ;;  %v3324_v36 = vld [vmem:[%s4393_s0 + $0xc8] ss:$72 sps:$4 sm:$0xff]   ;;  %v3330_v38 = vld [vmem:[%s4392_s1 + $0x834] ss:$8 sps:$4 sm:$0xff]  }
  0xce   :  { %2373 = vmatprep.mubr.bf16.mxu0 %v3312_v39  ;;  %v3325_v37 = vld [vmem:[%s4392_s1 + $0x820] ss:$8 sps:$4 sm:$0xff]   ;;  %v3369_v39 = vld [vmem:[%s4393_s0 + $0x44] ss:$72 sps:$4 sm:$0xff]  }
  0xcf   :  { %2136 = vmatpush1.bf16.msra.mxu1 %v3223_v40  ;;  %v3372_v40 = vld [vmem:[%s4393_s0 + $0xd4] ss:$72 sps:$4 sm:$0xff]  }
  0xd0   :  { %2348 = vmatpush1.bf16.msra.mxu0 %v3226_v41  ;;  %2137 = vmatprep.subr.bf16.mxu1 %v3231_v42  ;;  %v3328_v41 = vld [vmem:[%s4392_s1 + $0x830] ss:$8 sps:$4 sm:$0xff]   ;;  %v3333_v42 = vld [vmem:[%s4392_s1 + $0x844] ss:$8 sps:$4 sm:$0xff]  }
  0xd1   :  { %2349 = vmatprep.subr.bf16.mxu0 %v3234_v43  ;;  %v3331_v43 = vld [vmem:[%s4392_s1 + $0x840] ss:$8 sps:$4 sm:$0xff]  }
  0xd3   :  { %2138 = vmatpush1.bf16.msra.mxu1 %v3229_v44  ;;  %v3336_v44 = vld [vmem:[%s4392_s1 + $0x854] ss:$8 sps:$4 sm:$0xff]  }
  0xd4   :  { %2350 = vmatpush1.bf16.msra.mxu0 %v3232_v45  ;;  %2139 = vmatprep.subr.bf16.mxu1 %v3237_v46  ;;  %v3334_v45 = vld [vmem:[%s4392_s1 + $0x850] ss:$8 sps:$4 sm:$0xff]   ;;  %v3339_v46 = vld [vmem:[%s4392_s1 + $0x864] ss:$8 sps:$4 sm:$0xff]  }
  0xd5   :  { %2351 = vmatprep.subr.bf16.mxu0 %v3240_v47  ;;  %v3337_v47 = vld [vmem:[%s4392_s1 + $0x860] ss:$8 sps:$4 sm:$0xff]  }
  0xd7   :  { %2140 = vmatpush1.bf16.msra.mxu1 %v3235_v48  ;;  %v3342_v48 = vld [vmem:[%s4392_s1 + $0x874] ss:$8 sps:$4 sm:$0xff]  }
  0xd8   :  { %2352 = vmatpush1.bf16.msra.mxu0 %v3238_v49  ;;  %2141 = vmatprep.subr.bf16.mxu1 %v3243_v50  ;;  %v3340_v49 = vld [vmem:[%s4392_s1 + $0x870] ss:$8 sps:$4 sm:$0xff]   ;;  %v3345_v50 = vld [vmem:[%s4392_s1 + $0x884] ss:$8 sps:$4 sm:$0xff]  }
  0xd9   :  { %2353 = vmatprep.subr.bf16.mxu0 %v3246_v51  ;;  %v3343_v51 = vld [vmem:[%s4392_s1 + $0x880] ss:$8 sps:$4 sm:$0xff]  }
  0xdb   :  { %2142 = vmatpush1.bf16.msra.mxu1 %v3241_v52  ;;  %v3348_v52 = vld [vmem:[%s4392_s1 + $0x894] ss:$8 sps:$4 sm:$0xff]  }
  0xdc   :  { %2354 = vmatpush1.bf16.msra.mxu0 %v3244_v53  ;;  %2143 = vmatprep.subr.bf16.mxu1 %v3249_v54  ;;  %v3346_v53 = vld [vmem:[%s4392_s1 + $0x890] ss:$8 sps:$4 sm:$0xff]   ;;  %v3351_v54 = vld [vmem:[%s4392_s1 + $0x8a4] ss:$8 sps:$4 sm:$0xff]  }
  0xdd   :  { %2355 = vmatprep.subr.bf16.mxu0 %v3252_v55  ;;  %v3349_v55 = vld [vmem:[%s4392_s1 + $0x8a0] ss:$8 sps:$4 sm:$0xff]  }
  0xdf   :  { %2144 = vmatpush1.bf16.msra.mxu1 %v3247_v56  ;;  %v3354_v56 = vld [vmem:[%s4392_s1 + $0x8b4] ss:$8 sps:$4 sm:$0xff]  }
  0xe0   :  { %2356 = vmatpush1.bf16.msra.mxu0 %v3250_v57  ;;  %2145 = vmatprep.subr.bf16.mxu1 %v3255_v58  ;;  %v3352_v57 = vld [vmem:[%s4392_s1 + $0x8b0] ss:$8 sps:$4 sm:$0xff]   ;;  %v3357_v58 = vld [vmem:[%s4392_s1 + $0x8c4] ss:$8 sps:$4 sm:$0xff]  }
  0xe1   :  { %2357 = vmatprep.subr.bf16.mxu0 %v3258_v59  ;;  %v3355_v59 = vld [vmem:[%s4392_s1 + $0x8c0] ss:$8 sps:$4 sm:$0xff]  }
  0xe3   :  { %2146 = vmatpush1.bf16.msra.mxu1 %v3253_v60  ;;  %v3360_v60 = vld [vmem:[%s4392_s1 + $0x8d4] ss:$8 sps:$4 sm:$0xff]  }
  0xe4   :  { %2358 = vmatpush1.bf16.msra.mxu0 %v3256_v61  ;;  %2147 = vmatprep.subr.bf16.mxu1 %v3261_v62  ;;  %v3358_v61 = vld [vmem:[%s4392_s1 + $0x8d0] ss:$8 sps:$4 sm:$0xff]   ;;  %v3363_v62 = vld [vmem:[%s4392_s1 + $0x8e4] ss:$8 sps:$4 sm:$0xff]  }
  0xe5   :  { %2359 = vmatprep.subr.bf16.mxu0 %v3264_v63  ;;  %v3361_v63 = vld [vmem:[%s4392_s1 + $0x8e0] ss:$8 sps:$4 sm:$0xff]  }
  0xe7   :  { %2148 = vmatpush1.bf16.msra.mxu1 %v3259_v0  ;;  %v3366_v0 = vld [vmem:[%s4392_s1 + $0x8f4] ss:$8 sps:$4 sm:$0xff]  }
  0xe8   :  { %2360 = vmatpush1.bf16.msra.mxu0 %v3262_v1  ;;  %2149 = vmatprep.subr.bf16.mxu1 %v3267_v2  ;;  %v3364_v1 = vld [vmem:[%s4392_s1 + $0x8f0] ss:$8 sps:$4 sm:$0xff]   ;;  %v3367_v2 = vld [vmem:[%s4393_s0 + $0x40] ss:$72 sps:$4 sm:$0xff]  }
  0xe9   :  { %2361 = vmatprep.subr.bf16.mxu0 %v3270_v3  ;;  %v3370_v3 = vld [vmem:[%s4393_s0 + $0xd0] ss:$72 sps:$4 sm:$0xff]  }
  0xeb   :  { %2150 = vmatpush1.bf16.msra.mxu1 %v3265_v4  ;;  %v340_v4 = vlaneseq }
  0xec   :  { %2362 = vmatpush1.bf16.msra.mxu0 %v3268_v5  ;;  %2151 = vmatprep.subr.bf16.mxu1 %v3273_v6 }
  0xed   :  { %2363 = vmatprep.subr.bf16.mxu0 %v3276_v7  ;;  %v341_v5 = vshrl.u32 %v340_v4, 7 }
  0xef   :  { %2152 = vmatpush1.bf16.msra.mxu1 %v3271_v8 }
  0xf0   :  { %2364 = vmatpush1.bf16.msra.mxu0 %v3274_v9  ;;  %2153 = vmatprep.subr.bf16.mxu1 %v3279_v10  ;;  %v342_v9 = vsub.s32 0, %v341_v5 }
  0xf1   :  { %2365 = vmatprep.subr.bf16.mxu0 %v3282_v11  ;;  %v338_v11 = vld [vmem:[%s4394_s2] sm:$0x3] }
  0xf3   :  { %2154 = vmatpush1.bf16.msra.mxu1 %v3277_v12  ;;  %v346_v12 = vsub.s32 1, %v341_v5 }
  0xf4   :  { %2366 = vmatpush1.bf16.msra.mxu0 %v3280_v13  ;;  %2155 = vmatprep.subr.bf16.mxu1 %v3285_v14  ;;  %v343_v13 = vrot.slane %v338_v11, %v342_v9 }
  0xf5   :  { %2367 = vmatprep.subr.bf16.mxu0 %v3288_v15  ;;  %v347_v14 = vrot.slane %v338_v11, %v346_v12 }
  0xf7   :  { %2156 = vmatpush1.bf16.msra.mxu1 %v3283_v16 }
  0xf8   :  { %2368 = vmatpush1.bf16.msra.mxu0 %v3286_v17  ;;  %2157 = vmatprep.subr.bf16.mxu1 %v3296_v18 }
  0xf9   :  { %2369 = vmatprep.subr.bf16.mxu0 %v3300_v19 }
  0xfb   :  { %2158 = vmatpush1.bf16.msra.mxu1 %v3294_v20 }
  0xfc   :  { %2370 = vmatpush1.bf16.msra.mxu0 %v3298_v21  ;;  %2159 = vmatprep.subr.bf16.mxu1 %v3303_v22 }
  0xfd   :  { %2371 = vmatprep.subr.bf16.mxu0 %v3306_v23 }
  0xff   :  { %2160 = vmatpush1.bf16.msra.mxu1 %v3301_v24 }
 0x100   :  { %2372 = vmatpush1.bf16.msra.mxu0 %v3304_v25  ;;  %2783 = vmatprep.subr.bf16.mxu1 %v3315_v26 }
 0x101   :  { %2394 = vmatprep.subr.bf16.mxu0 %v3315_v26 }
 0x102   :  { %2162 = vmatmul.mubr.bf16.vlgmr.msra.gmra.mrb[0].mxu1 %v3307_v27 }
 0x103   :  { %2374 = vmatmul.mubr.bf16.vlgmr.msra.gmra.mrb[0].mxu0 %v3310_v28  ;;  %2799 = vmatpush1.bf16.msra.mxu1 %v3313_v29 }
 0x104   :  { %2395 = vmatpush1.bf16.msra.mxu0 %v3313_v29  ;;  %2784 = vmatprep.subr.bf16.mxu1 %v3318_v30 }
 0x105   :  { %2396 = vmatprep.subr.bf16.mxu0 %v3318_v30  ;;  %2171 = vmatprep.mubr.bf16.mxu1 %v3319_v31 }
 0x106   :  { %2383 = vmatprep.mubr.bf16.mxu0 %v3321_v32 }
 0x107   :  { %2800 = vmatpush1.bf16.msra.mxu1 %v3316_v33 }
 0x108   :  { %2397 = vmatpush1.bf16.msra.mxu0 %v3316_v33  ;;  %2785 = vmatprep.subr.bf16.mxu1 %v3327_v34 }
 0x109   :  { %2398 = vmatprep.subr.bf16.mxu0 %v3327_v34 }
 0x10a   :  { %2172 = vmatmul.mubr.bf16.gmra.mrb[4].mxu1 %v3323_v35 }
 0x10b   :  { %2384 = vmatmul.mubr.bf16.gmra.mrb[4].mxu0 %v3324_v36  ;;  %2801 = vmatpush1.bf16.msra.mxu1 %v3325_v37 }
 0x10c   :  { %2399 = vmatpush1.bf16.msra.mxu0 %v3325_v37  ;;  %2786 = vmatprep.subr.bf16.mxu1 %v3330_v38 }
 0x10d   :  { %2400 = vmatprep.subr.bf16.mxu0 %v3330_v38  ;;  %2426 = vmatprep.mubr.bf16.mxu0 %v3369_v39 }
 0x10e   :  { %2436 = vmatprep.mubr.bf16.mxu1 %v3372_v40 }
 0x10f   :  { %2802 = vmatpush1.bf16.msra.mxu1 %v3328_v41 }
 0x110   :  { %2401 = vmatpush1.bf16.msra.mxu0 %v3328_v41  ;;  %2787 = vmatprep.subr.bf16.mxu1 %v3333_v42 }
 0x111   :  { %2402 = vmatprep.subr.bf16.mxu0 %v3333_v42 }
 0x113   :  { %2803 = vmatpush1.bf16.msra.mxu1 %v3331_v43 }
 0x114   :  { %2403 = vmatpush1.bf16.msra.mxu0 %v3331_v43  ;;  %2788 = vmatprep.subr.bf16.mxu1 %v3336_v44 }
 0x115   :  { %2404 = vmatprep.subr.bf16.mxu0 %v3336_v44 }
 0x117   :  { %2804 = vmatpush1.bf16.msra.mxu1 %v3334_v45 }
 0x118   :  { %2405 = vmatpush1.bf16.msra.mxu0 %v3334_v45  ;;  %2789 = vmatprep.subr.bf16.mxu1 %v3339_v46 }
 0x119   :  { %2406 = vmatprep.subr.bf16.mxu0 %v3339_v46 }
 0x11b   :  { %2805 = vmatpush1.bf16.msra.mxu1 %v3337_v47 }
 0x11c   :  { %2407 = vmatpush1.bf16.msra.mxu0 %v3337_v47  ;;  %2790 = vmatprep.subr.bf16.mxu1 %v3342_v48 }
 0x11d   :  { %2408 = vmatprep.subr.bf16.mxu0 %v3342_v48 }
 0x11f   :  { %2806 = vmatpush1.bf16.msra.mxu1 %v3340_v49 }
 0x120   :  { %2409 = vmatpush1.bf16.msra.mxu0 %v3340_v49  ;;  %2791 = vmatprep.subr.bf16.mxu1 %v3345_v50 }
 0x121   :  { %2410 = vmatprep.subr.bf16.mxu0 %v3345_v50 }
 0x123   :  { %2807 = vmatpush1.bf16.msra.mxu1 %v3343_v51 }
 0x124   :  { %2411 = vmatpush1.bf16.msra.mxu0 %v3343_v51  ;;  %2792 = vmatprep.subr.bf16.mxu1 %v3348_v52 }
 0x125   :  { %2412 = vmatprep.subr.bf16.mxu0 %v3348_v52 }
 0x127   :  { %2808 = vmatpush1.bf16.msra.mxu1 %v3346_v53 }
 0x128   :  { %2413 = vmatpush1.bf16.msra.mxu0 %v3346_v53  ;;  %2793 = vmatprep.subr.bf16.mxu1 %v3351_v54 }
 0x129   :  { %2414 = vmatprep.subr.bf16.mxu0 %v3351_v54 }
 0x12b   :  { %2809 = vmatpush1.bf16.msra.mxu1 %v3349_v55 }
 0x12c   :  { %2415 = vmatpush1.bf16.msra.mxu0 %v3349_v55  ;;  %2794 = vmatprep.subr.bf16.mxu1 %v3354_v56 }
 0x12d   :  { %2416 = vmatprep.subr.bf16.mxu0 %v3354_v56 }
 0x12f   :  { %2810 = vmatpush1.bf16.msra.mxu1 %v3352_v57 }
 0x130   :  { %2417 = vmatpush1.bf16.msra.mxu0 %v3352_v57  ;;  %2795 = vmatprep.subr.bf16.mxu1 %v3357_v58 }
 0x131   :  { %2418 = vmatprep.subr.bf16.mxu0 %v3357_v58 }
 0x133   :  { %2811 = vmatpush1.bf16.msra.mxu1 %v3355_v59 }
 0x134   :  { %2419 = vmatpush1.bf16.msra.mxu0 %v3355_v59  ;;  %2796 = vmatprep.subr.bf16.mxu1 %v3360_v60 }
 0x135   :  { %2420 = vmatprep.subr.bf16.mxu0 %v3360_v60 }
 0x137   :  { %2812 = vmatpush1.bf16.msra.mxu1 %v3358_v61 }
 0x138   :  { %2421 = vmatpush1.bf16.msra.mxu0 %v3358_v61  ;;  %2797 = vmatprep.subr.bf16.mxu1 %v3363_v62 }
 0x139   :  { %2422 = vmatprep.subr.bf16.mxu0 %v3363_v62 }
 0x13b   :  { %2813 = vmatpush1.bf16.msra.mxu1 %v3361_v63 }
 0x13c   :  { %2423 = vmatpush1.bf16.msra.mxu0 %v3361_v63  ;;  %2798 = vmatprep.subr.bf16.mxu1 %v3366_v0 }
 0x13d   :  { %2424 = vmatprep.subr.bf16.mxu0 %v3366_v0 }
 0x13f   :  { %2814 = vmatpush1.bf16.msra.mxu1 %v3364_v1 }
 0x140   :  { %2425 = vmatpush1.bf16.msra.mxu0 %v3364_v1 }
 0x142   :  { %2437 = vmatmul.mubr.bf16.vlgmr.msra.gmra.mrb[8].mxu1 %v3370_v3 }
 0x143   :  { %2427 = vmatmul.mubr.bf16.vlgmr.msra.gmra.mrb[0].mxu0 %v3367_v2 }
 0x1d5   :  { %v2163_v6 = vpop.f32.mrb[0].mxu1 }
 0x1d6   :  { %v2165_v7 = vpop.f32.mrb[1].mxu1  ;;  %v2815_v31 = vadd.f32 %v2163_v6, %v343_v13 }
 0x1d7   :  { %v2167_v8 = vpop.f32.mrb[2].mxu1  ;;  %v2817_v32 = vadd.f32 %v2165_v7, %v347_v14 }
 0x1d8   :  { %v2169_v10 = vpop.f32.mrb[3].mxu1  ;;  %v2819_v35 = vadd.f32 %v2167_v8, %v343_v13 }
 0x1d9   :  { %v2821_v40 = vadd.f32 %v2169_v10, %v347_v14 }
 0x1dd   :  { %v2173_v15 = vpop.f32.mrb[4].mxu1 }
 0x1de   :  { %v2385_v16 = vpop.f32.mrb[4].mxu0  ;;  %v2823_v17 = vadd.f32 %v2173_v15, %v343_v13  ;;  %v2175_v18 = vpop.f32.mrb[5].mxu1 }
 0x1df   :  { %v2387_v19 = vpop.f32.mrb[5].mxu0  ;;  %v2826_v20 = vadd.f32 %v2175_v18, %v347_v14  ;;  %v2177_v21 = vpop.f32.mrb[6].mxu1 }
 0x1e0   :  { %v2389_v22 = vpop.f32.mrb[6].mxu0  ;;  %v2824_v23 = vadd.f32 %v2823_v17, %v2385_v16  ;;  %v2829_v24 = vadd.f32 %v2177_v21, %v343_v13  ;;  %v2179_v25 = vpop.f32.mrb[7].mxu1 }
 0x1e1   :  { %v2391_v26 = vpop.f32.mrb[7].mxu0  ;;  %v2827_v27 = vadd.f32 %v2826_v20, %v2387_v19  ;;  %v2832_v28 = vadd.f32 %v2179_v25, %v347_v14 }
 0x1e2   :  { %v2830_v29 = vadd.f32 %v2829_v24, %v2389_v22 }
 0x1e3   :  { %v2833_v30 = vadd.f32 %v2832_v28, %v2391_v26 }
 0x215   :  { %v2438_v34 = vpop.f32.mrb[8].mxu1 }
 0x216   :  { %v2428_v33 = vpop.f32.mrb[0].mxu0  ;;  %v2825_v37 = vadd.f32 %v2824_v23, %v2438_v34  ;;  %v2440_v39 = vpop.f32.mrb[9].mxu1 }
 0x217   :  { %v2816_v36 = vadd.f32 %v2815_v31, %v2428_v33  ;;  %v2430_v38 = vpop.f32.mrb[1].mxu0  ;;  %v2828_v42 = vadd.f32 %v2827_v27, %v2440_v39  ;;  %v2442_v44 = vpop.f32.mrb[10].mxu1 }
 0x218   :  { %v2818_v41 = vadd.f32 %v2817_v32, %v2430_v38  ;;  %v2432_v43 = vpop.f32.mrb[2].mxu0  ;;  %2451 = vst [vmem:[%s4395_s3 + $0x20] sm:$0xff] %v2825_v37  ;;  %v2831_v46 = vadd.f32 %v2830_v29, %v2442_v44  ;;  %v2444_v48 = vpop.f32.mrb[11].mxu1 }
 0x219   :  { %2447 = vst [vmem:[%s4395_s3] sm:$0xff] %v2816_v36  ;;  %v2820_v45 = vadd.f32 %v2819_v35, %v2432_v43  ;;  %v2434_v47 = vpop.f32.mrb[3].mxu0  ;;  %2452 = vst [vmem:[%s4395_s3 + $0x28] sm:$0xff] %v2828_v42  ;;  %v2834_v50 = vadd.f32 %v2833_v30, %v2444_v48 }
 0x21a   :  { %2448 = vst [vmem:[%s4395_s3 + $0x8] sm:$0xff] %v2818_v41  ;;  %v2822_v49 = vadd.f32 %v2821_v40, %v2434_v47  ;;  %2453 = vst [vmem:[%s4395_s3 + $0x30] sm:$0xff] %v2831_v46 }
 0x21b   :  { %2449 = vst [vmem:[%s4395_s3 + $0x10] sm:$0xff] %v2820_v45  ;;  %2454 = vst [vmem:[%s4395_s3 + $0x38] sm:$0xff] %v2834_v50 }
 0x21c   :  { %2450 = vst [vmem:[%s4395_s3 + $0x18] sm:$0xff] %v2822_v49 }

// kernel: _forward.51
= control target key start
LH: loop header
LB: loop body
LE: loop exit
PB: predicated region body
PF: predicated region fallthrough
CT: control target
= control target key end

     0   :  { %s2935_s1 = inlined_call_operand.vmem [shape: bf16[1536,256], index: 1, kind: input, shape index: {}]   ;;  %s2936_s0 = inlined_call_operand.vmem [shape: bf16[32,1536], index: 0, kind: input, shape index: {}]   ;;  %s2937_s2 = inlined_call_operand.vmem [shape: f32[1,256], index: 2, kind: input, shape index: {}]   ;;  %s2938_s3 = inlined_call_operand.vmem [shape: f32[32,256], index: 3, kind: output, shape index: {}]  }
   0x1   :  { %v1916_v0 = vld [vmem:[%s2935_s1 + $0x4] ss:$8 sps:$4 sm:$0xff]   ;;  %v1920_v2 = vld [vmem:[%s2935_s1] ss:$8 sps:$4 sm:$0xff]   ;;  %v1922_v4 = vld [vmem:[%s2935_s1 + $0x14] ss:$8 sps:$4 sm:$0xff]  }
   0x2   :  { %v1918_v1 = vld [vmem:[%s2935_s1 + $0x304] ss:$8 sps:$4 sm:$0xff]   ;;  %1322 = vmatprep.subr.bf16.mxu1 %v1916_v0  ;;  %v1921_v3 = vld [vmem:[%s2935_s1 + $0x300] ss:$8 sps:$4 sm:$0xff]   ;;  %v1924_v5 = vld [vmem:[%s2935_s1 + $0x314] ss:$8 sps:$4 sm:$0xff]  }
   0x3   :  { %1481 = vmatprep.subr.bf16.mxu0 %v1918_v1  ;;  %1323 = vmatpush1.bf16.msra.mxu1 %v1920_v2  ;;  %v1926_v6 = vld [vmem:[%s2935_s1 + $0x10] ss:$8 sps:$4 sm:$0xff]   ;;  %v1928_v8 = vld [vmem:[%s2935_s1 + $0x24] ss:$8 sps:$4 sm:$0xff]   ;;  %v1932_v10 = vld [vmem:[%s2935_s1 + $0x20] ss:$8 sps:$4 sm:$0xff]  }
   0x4   :  { %1482 = vmatpush1.bf16.msra.mxu0 %v1921_v3  ;;  %1324 = vmatprep.subr.bf16.mxu1 %v1922_v4  ;;  %v1927_v7 = vld [vmem:[%s2935_s1 + $0x310] ss:$8 sps:$4 sm:$0xff]   ;;  %v1930_v9 = vld [vmem:[%s2935_s1 + $0x324] ss:$8 sps:$4 sm:$0xff]   ;;  %v1933_v11 = vld [vmem:[%s2935_s1 + $0x320] ss:$8 sps:$4 sm:$0xff]  }
   0x5   :  { %1483 = vmatprep.subr.bf16.mxu0 %v1924_v5  ;;  %v1934_v12 = vld [vmem:[%s2935_s1 + $0x34] ss:$8 sps:$4 sm:$0xff]   ;;  %v1938_v14 = vld [vmem:[%s2935_s1 + $0x30] ss:$8 sps:$4 sm:$0xff]   ;;  %v1940_v16 = vld [vmem:[%s2935_s1 + $0x44] ss:$8 sps:$4 sm:$0xff]  }
   0x6   :  { %v1936_v13 = vld [vmem:[%s2935_s1 + $0x334] ss:$8 sps:$4 sm:$0xff]   ;;  %v1939_v15 = vld [vmem:[%s2935_s1 + $0x330] ss:$8 sps:$4 sm:$0xff]   ;;  %v1942_v17 = vld [vmem:[%s2935_s1 + $0x344] ss:$8 sps:$4 sm:$0xff]  }
   0x7   :  { %1325 = vmatpush1.bf16.msra.mxu1 %v1926_v6  ;;  %v1944_v18 = vld [vmem:[%s2935_s1 + $0x40] ss:$8 sps:$4 sm:$0xff]   ;;  %v1946_v20 = vld [vmem:[%s2935_s1 + $0x54] ss:$8 sps:$4 sm:$0xff]   ;;  %v1950_v22 = vld [vmem:[%s2935_s1 + $0x50] ss:$8 sps:$4 sm:$0xff]  }
   0x8   :  { %1484 = vmatpush1.bf16.msra.mxu0 %v1927_v7  ;;  %1326 = vmatprep.subr.bf16.mxu1 %v1928_v8  ;;  %v1945_v19 = vld [vmem:[%s2935_s1 + $0x340] ss:$8 sps:$4 sm:$0xff]   ;;  %v1948_v21 = vld [vmem:[%s2935_s1 + $0x354] ss:$8 sps:$4 sm:$0xff]   ;;  %v1951_v23 = vld [vmem:[%s2935_s1 + $0x350] ss:$8 sps:$4 sm:$0xff]  }
   0x9   :  { %1485 = vmatprep.subr.bf16.mxu0 %v1930_v9  ;;  %v1952_v24 = vld [vmem:[%s2935_s1 + $0x64] ss:$8 sps:$4 sm:$0xff]   ;;  %v1956_v26 = vld [vmem:[%s2935_s1 + $0x60] ss:$8 sps:$4 sm:$0xff]   ;;  %v1958_v28 = vld [vmem:[%s2935_s1 + $0x74] ss:$8 sps:$4 sm:$0xff]  }
   0xa   :  { %v1954_v25 = vld [vmem:[%s2935_s1 + $0x364] ss:$8 sps:$4 sm:$0xff]   ;;  %v1957_v27 = vld [vmem:[%s2935_s1 + $0x360] ss:$8 sps:$4 sm:$0xff]   ;;  %v1960_v29 = vld [vmem:[%s2935_s1 + $0x374] ss:$8 sps:$4 sm:$0xff]  }
   0xb   :  { %1327 = vmatpush1.bf16.msra.mxu1 %v1932_v10  ;;  %v1962_v30 = vld [vmem:[%s2935_s1 + $0x70] ss:$8 sps:$4 sm:$0xff]   ;;  %v1964_v32 = vld [vmem:[%s2935_s1 + $0x84] ss:$8 sps:$4 sm:$0xff]   ;;  %v1968_v34 = vld [vmem:[%s2935_s1 + $0x80] ss:$8 sps:$4 sm:$0xff]  }
   0xc   :  { %1486 = vmatpush1.bf16.msra.mxu0 %v1933_v11  ;;  %1328 = vmatprep.subr.bf16.mxu1 %v1934_v12  ;;  %v1963_v31 = vld [vmem:[%s2935_s1 + $0x370] ss:$8 sps:$4 sm:$0xff]   ;;  %v1966_v33 = vld [vmem:[%s2935_s1 + $0x384] ss:$8 sps:$4 sm:$0xff]   ;;  %v1969_v35 = vld [vmem:[%s2935_s1 + $0x380] ss:$8 sps:$4 sm:$0xff]  }
   0xd   :  { %1487 = vmatprep.subr.bf16.mxu0 %v1936_v13  ;;  %v1970_v36 = vld [vmem:[%s2935_s1 + $0x94] ss:$8 sps:$4 sm:$0xff]   ;;  %v1974_v38 = vld [vmem:[%s2935_s1 + $0x90] ss:$8 sps:$4 sm:$0xff]   ;;  %v1976_v40 = vld [vmem:[%s2935_s1 + $0xa4] ss:$8 sps:$4 sm:$0xff]  }
   0xe   :  { %v1972_v37 = vld [vmem:[%s2935_s1 + $0x394] ss:$8 sps:$4 sm:$0xff]   ;;  %v1975_v39 = vld [vmem:[%s2935_s1 + $0x390] ss:$8 sps:$4 sm:$0xff]   ;;  %v1978_v41 = vld [vmem:[%s2935_s1 + $0x3a4] ss:$8 sps:$4 sm:$0xff]  }
   0xf   :  { %1329 = vmatpush1.bf16.msra.mxu1 %v1938_v14  ;;  %v1980_v42 = vld [vmem:[%s2935_s1 + $0xa0] ss:$8 sps:$4 sm:$0xff]   ;;  %v1982_v44 = vld [vmem:[%s2935_s1 + $0xb4] ss:$8 sps:$4 sm:$0xff]   ;;  %v1986_v46 = vld [vmem:[%s2935_s1 + $0xb0] ss:$8 sps:$4 sm:$0xff]  }
  0x10   :  { %1488 = vmatpush1.bf16.msra.mxu0 %v1939_v15  ;;  %1330 = vmatprep.subr.bf16.mxu1 %v1940_v16  ;;  %v1981_v43 = vld [vmem:[%s2935_s1 + $0x3a0] ss:$8 sps:$4 sm:$0xff]   ;;  %v1984_v45 = vld [vmem:[%s2935_s1 + $0x3b4] ss:$8 sps:$4 sm:$0xff]   ;;  %v1987_v47 = vld [vmem:[%s2935_s1 + $0x3b0] ss:$8 sps:$4 sm:$0xff]  }
  0x11   :  { %1489 = vmatprep.subr.bf16.mxu0 %v1942_v17  ;;  %v2014_v48 = vld [vmem:[%s2936_s0 + $0x4] ss:$48 sps:$4 sm:$0xff]   ;;  %v2020_v51 = vld [vmem:[%s2936_s0 + $0x1c] ss:$48 sps:$4 sm:$0xff]   ;;  %v1992_v52 = vld [vmem:[%s2935_s1 + $0xc0] ss:$8 sps:$4 sm:$0xff]  }
  0x12   :  { %v1988_v49 = vld [vmem:[%s2935_s1 + $0xc4] ss:$8 sps:$4 sm:$0xff]   ;;  %1354 = vmatprep.mubr.bf16.mxu1 %v2014_v48  ;;  %v1993_v53 = vld [vmem:[%s2935_s1 + $0x3c0] ss:$8 sps:$4 sm:$0xff]   ;;  %v1994_v54 = vld [vmem:[%s2935_s1 + $0xd4] ss:$8 sps:$4 sm:$0xff]   ;;  %1513 = vmatprep.mubr.bf16.mxu0 %v2020_v51 }
  0x13   :  { %1331 = vmatpush1.bf16.msra.mxu1 %v1944_v18  ;;  %v1990_v50 = vld [vmem:[%s2935_s1 + $0x3c4] ss:$8 sps:$4 sm:$0xff]   ;;  %v1996_v55 = vld [vmem:[%s2935_s1 + $0x3d4] ss:$8 sps:$4 sm:$0xff]   ;;  %v1998_v56 = vld [vmem:[%s2935_s1 + $0xd0] ss:$8 sps:$4 sm:$0xff]  }
  0x14   :  { %1490 = vmatpush1.bf16.msra.mxu0 %v1945_v19  ;;  %1332 = vmatprep.subr.bf16.mxu1 %v1946_v20  ;;  %v1999_v57 = vld [vmem:[%s2935_s1 + $0x3d0] ss:$8 sps:$4 sm:$0xff]   ;;  %v2000_v58 = vld [vmem:[%s2935_s1 + $0xe4] ss:$8 sps:$4 sm:$0xff]   ;;  %v2004_v60 = vld [vmem:[%s2935_s1 + $0xe0] ss:$8 sps:$4 sm:$0xff]  }
  0x15   :  { %1491 = vmatprep.subr.bf16.mxu0 %v1948_v21  ;;  %v2002_v59 = vld [vmem:[%s2935_s1 + $0x3e4] ss:$8 sps:$4 sm:$0xff]   ;;  %v2005_v61 = vld [vmem:[%s2935_s1 + $0x3e0] ss:$8 sps:$4 sm:$0xff]   ;;  %v2006_v62 = vld [vmem:[%s2935_s1 + $0xf4] ss:$8 sps:$4 sm:$0xff]  }
  0x16   :  { %v2008_v63 = vld [vmem:[%s2935_s1 + $0x3f4] ss:$8 sps:$4 sm:$0xff]   ;;  %v2010_v0 = vld [vmem:[%s2935_s1 + $0xf0] ss:$8 sps:$4 sm:$0xff]   ;;  %v2017_v2 = vld [vmem:[%s2935_s1 + $0x104] ss:$8 sps:$4 sm:$0xff]  }
  0x17   :  { %1333 = vmatpush1.bf16.msra.mxu1 %v1950_v22  ;;  %v2011_v1 = vld [vmem:[%s2935_s1 + $0x3f0] ss:$8 sps:$4 sm:$0xff]   ;;  %v2023_v3 = vld [vmem:[%s2935_s1 + $0x404] ss:$8 sps:$4 sm:$0xff]   ;;  %v2015_v5 = vld [vmem:[%s2935_s1 + $0x100] ss:$8 sps:$4 sm:$0xff]  }
  0x18   :  { %1492 = vmatpush1.bf16.msra.mxu0 %v1951_v23  ;;  %1334 = vmatprep.subr.bf16.mxu1 %v1952_v24  ;;  %v2012_v4 = vld [vmem:[%s2936_s0] ss:$48 sps:$4 sm:$0xff]   ;;  %v2018_v6 = vld [vmem:[%s2936_s0 + $0x18] ss:$48 sps:$4 sm:$0xff]   ;;  %v2026_v8 = vld [vmem:[%s2935_s1 + $0x114] ss:$8 sps:$4 sm:$0xff]  }
  0x19   :  { %1493 = vmatprep.subr.bf16.mxu0 %v1954_v25  ;;  %v2021_v7 = vld [vmem:[%s2935_s1 + $0x400] ss:$8 sps:$4 sm:$0xff]   ;;  %v2029_v9 = vld [vmem:[%s2935_s1 + $0x414] ss:$8 sps:$4 sm:$0xff]   ;;  %v2024_v10 = vld [vmem:[%s2935_s1 + $0x110] ss:$8 sps:$4 sm:$0xff]  }
  0x1a   :  { %v2027_v11 = vld [vmem:[%s2935_s1 + $0x410] ss:$8 sps:$4 sm:$0xff]   ;;  %v2032_v12 = vld [vmem:[%s2935_s1 + $0x124] ss:$8 sps:$4 sm:$0xff]   ;;  %v2030_v14 = vld [vmem:[%s2935_s1 + $0x120] ss:$8 sps:$4 sm:$0xff]  }
  0x1b   :  { %1335 = vmatpush1.bf16.msra.mxu1 %v1956_v26  ;;  %v2035_v13 = vld [vmem:[%s2935_s1 + $0x424] ss:$8 sps:$4 sm:$0xff]   ;;  %v2033_v15 = vld [vmem:[%s2935_s1 + $0x420] ss:$8 sps:$4 sm:$0xff]   ;;  %v2038_v16 = vld [vmem:[%s2935_s1 + $0x134] ss:$8 sps:$4 sm:$0xff]  }
  0x1c   :  { %1494 = vmatpush1.bf16.msra.mxu0 %v1957_v27  ;;  %1336 = vmatprep.subr.bf16.mxu1 %v1958_v28  ;;  %v2041_v17 = vld [vmem:[%s2935_s1 + $0x434] ss:$8 sps:$4 sm:$0xff]   ;;  %v2036_v18 = vld [vmem:[%s2935_s1 + $0x130] ss:$8 sps:$4 sm:$0xff]   ;;  %v2044_v20 = vld [vmem:[%s2935_s1 + $0x144] ss:$8 sps:$4 sm:$0xff]  }
  0x1d   :  { %1495 = vmatprep.subr.bf16.mxu0 %v1960_v29  ;;  %v2039_v19 = vld [vmem:[%s2935_s1 + $0x430] ss:$8 sps:$4 sm:$0xff]   ;;  %v2047_v21 = vld [vmem:[%s2935_s1 + $0x444] ss:$8 sps:$4 sm:$0xff]   ;;  %v2042_v22 = vld [vmem:[%s2935_s1 + $0x140] ss:$8 sps:$4 sm:$0xff]  }
  0x1e   :  { %v2045_v23 = vld [vmem:[%s2935_s1 + $0x440] ss:$8 sps:$4 sm:$0xff]   ;;  %v2050_v24 = vld [vmem:[%s2935_s1 + $0x154] ss:$8 sps:$4 sm:$0xff]   ;;  %v2048_v26 = vld [vmem:[%s2935_s1 + $0x150] ss:$8 sps:$4 sm:$0xff]  }
  0x1f   :  { %1337 = vmatpush1.bf16.msra.mxu1 %v1962_v30  ;;  %v2053_v25 = vld [vmem:[%s2935_s1 + $0x454] ss:$8 sps:$4 sm:$0xff]   ;;  %v2051_v27 = vld [vmem:[%s2935_s1 + $0x450] ss:$8 sps:$4 sm:$0xff]   ;;  %v2056_v29 = vld [vmem:[%s2935_s1 + $0x164] ss:$8 sps:$4 sm:$0xff]  }
  0x20   :  { %1496 = vmatpush1.bf16.msra.mxu0 %v1963_v31  ;;  %1338 = vmatprep.subr.bf16.mxu1 %v1964_v32  ;;  %v2102_v28 = vld [vmem:[%s2936_s0 + $0x64] ss:$48 sps:$4 sm:$0xff]   ;;  %v2107_v31 = vld [vmem:[%s2936_s0 + $0x7c] ss:$48 sps:$4 sm:$0xff]   ;;  %v2054_v32 = vld [vmem:[%s2935_s1 + $0x160] ss:$8 sps:$4 sm:$0xff]  }
  0x21   :  { %1497 = vmatprep.subr.bf16.mxu0 %v1966_v33  ;;  %v2059_v30 = vld [vmem:[%s2935_s1 + $0x464] ss:$8 sps:$4 sm:$0xff]   ;;  %v2057_v33 = vld [vmem:[%s2935_s1 + $0x460] ss:$8 sps:$4 sm:$0xff]   ;;  %v2072_v48 = vld [vmem:[%s2935_s1 + $0x190] ss:$8 sps:$4 sm:$0xff]  }
  0x22   :  { %v2083_v51 = vld [vmem:[%s2935_s1 + $0x4a4] ss:$8 sps:$4 sm:$0xff]  }
  0x23   :  { %1339 = vmatpush1.bf16.msra.mxu1 %v1968_v34  ;;  %v2112_v34 = vld [vmem:[%s2936_s0 + $0x60] ss:$48 sps:$4 sm:$0xff]  }
  0x24   :  { %1498 = vmatpush1.bf16.msra.mxu0 %v1969_v35  ;;  %1340 = vmatprep.subr.bf16.mxu1 %v1970_v36  ;;  %v2113_v35 = vld [vmem:[%s2936_s0 + $0x78] ss:$48 sps:$4 sm:$0xff]   ;;  %v2062_v36 = vld [vmem:[%s2935_s1 + $0x174] ss:$8 sps:$4 sm:$0xff]  }
  0x25   :  { %1499 = vmatprep.subr.bf16.mxu0 %v1972_v37  ;;  %v2065_v37 = vld [vmem:[%s2935_s1 + $0x474] ss:$8 sps:$4 sm:$0xff]  }
  0x27   :  { %1341 = vmatpush1.bf16.msra.mxu1 %v1974_v38  ;;  %v2060_v38 = vld [vmem:[%s2935_s1 + $0x170] ss:$8 sps:$4 sm:$0xff]  }
  0x28   :  { %1500 = vmatpush1.bf16.msra.mxu0 %v1975_v39  ;;  %1342 = vmatprep.subr.bf16.mxu1 %v1976_v40  ;;  %v2063_v39 = vld [vmem:[%s2935_s1 + $0x470] ss:$8 sps:$4 sm:$0xff]   ;;  %v2122_v40 = vld [vmem:[%s2936_s0 + $0xc] ss:$48 sps:$4 sm:$0xff]  }
  0x29   :  { %1501 = vmatprep.subr.bf16.mxu0 %v1978_v41  ;;  %v2068_v41 = vld [vmem:[%s2935_s1 + $0x184] ss:$8 sps:$4 sm:$0xff]  }
  0x2b   :  { %1343 = vmatpush1.bf16.msra.mxu1 %v1980_v42  ;;  %v2071_v42 = vld [vmem:[%s2935_s1 + $0x484] ss:$8 sps:$4 sm:$0xff]  }
  0x2c   :  { %1502 = vmatpush1.bf16.msra.mxu0 %v1981_v43  ;;  %1344 = vmatprep.subr.bf16.mxu1 %v1982_v44  ;;  %v2128_v43 = vld [vmem:[%s2936_s0 + $0x24] ss:$48 sps:$4 sm:$0xff]   ;;  %v2066_v44 = vld [vmem:[%s2935_s1 + $0x180] ss:$8 sps:$4 sm:$0xff]  }
  0x2d   :  { %1503 = vmatprep.subr.bf16.mxu0 %v1984_v45  ;;  %v2069_v45 = vld [vmem:[%s2935_s1 + $0x480] ss:$8 sps:$4 sm:$0xff]  }
  0x2f   :  { %1345 = vmatpush1.bf16.msra.mxu1 %v1986_v46  ;;  %v2074_v46 = vld [vmem:[%s2935_s1 + $0x194] ss:$8 sps:$4 sm:$0xff]  }
  0x30   :  { %1504 = vmatpush1.bf16.msra.mxu0 %v1987_v47  ;;  %1346 = vmatprep.subr.bf16.mxu1 %v1988_v49  ;;  %v2077_v47 = vld [vmem:[%s2935_s1 + $0x494] ss:$8 sps:$4 sm:$0xff]   ;;  %v2075_v49 = vld [vmem:[%s2935_s1 + $0x490] ss:$8 sps:$4 sm:$0xff]  }
  0x31   :  { %1505 = vmatprep.subr.bf16.mxu0 %v1990_v50  ;;  %v2080_v50 = vld [vmem:[%s2935_s1 + $0x1a4] ss:$8 sps:$4 sm:$0xff]  }
  0x33   :  { %1347 = vmatpush1.bf16.msra.mxu1 %v1992_v52  ;;  %v2078_v52 = vld [vmem:[%s2935_s1 + $0x1a0] ss:$8 sps:$4 sm:$0xff]  }
  0x34   :  { %1506 = vmatpush1.bf16.msra.mxu0 %v1993_v53  ;;  %1348 = vmatprep.subr.bf16.mxu1 %v1994_v54  ;;  %v2081_v53 = vld [vmem:[%s2935_s1 + $0x4a0] ss:$8 sps:$4 sm:$0xff]   ;;  %v2086_v54 = vld [vmem:[%s2935_s1 + $0x1b4] ss:$8 sps:$4 sm:$0xff]  }
  0x35   :  { %1507 = vmatprep.subr.bf16.mxu0 %v1996_v55  ;;  %v2089_v55 = vld [vmem:[%s2935_s1 + $0x4b4] ss:$8 sps:$4 sm:$0xff]  }
  0x37   :  { %1349 = vmatpush1.bf16.msra.mxu1 %v1998_v56  ;;  %v2084_v56 = vld [vmem:[%s2935_s1 + $0x1b0] ss:$8 sps:$4 sm:$0xff]  }
  0x38   :  { %1508 = vmatpush1.bf16.msra.mxu0 %v1999_v57  ;;  %1350 = vmatprep.subr.bf16.mxu1 %v2000_v58  ;;  %v2087_v57 = vld [vmem:[%s2935_s1 + $0x4b0] ss:$8 sps:$4 sm:$0xff]   ;;  %v2092_v58 = vld [vmem:[%s2935_s1 + $0x1c4] ss:$8 sps:$4 sm:$0xff]  }
  0x39   :  { %1509 = vmatprep.subr.bf16.mxu0 %v2002_v59  ;;  %v2095_v59 = vld [vmem:[%s2935_s1 + $0x4c4] ss:$8 sps:$4 sm:$0xff]  }
  0x3b   :  { %1351 = vmatpush1.bf16.msra.mxu1 %v2004_v60  ;;  %v2090_v60 = vld [vmem:[%s2935_s1 + $0x1c0] ss:$8 sps:$4 sm:$0xff]  }
  0x3c   :  { %1510 = vmatpush1.bf16.msra.mxu0 %v2005_v61  ;;  %1352 = vmatprep.subr.bf16.mxu1 %v2006_v62  ;;  %v2093_v61 = vld [vmem:[%s2935_s1 + $0x4c0] ss:$8 sps:$4 sm:$0xff]   ;;  %v2098_v62 = vld [vmem:[%s2935_s1 + $0x1d4] ss:$8 sps:$4 sm:$0xff]  }
  0x3d   :  { %1511 = vmatprep.subr.bf16.mxu0 %v2008_v63  ;;  %v2101_v63 = vld [vmem:[%s2935_s1 + $0x4d4] ss:$8 sps:$4 sm:$0xff]  }
  0x3f   :  { %1353 = vmatpush1.bf16.msra.mxu1 %v2010_v0  ;;  %v2096_v0 = vld [vmem:[%s2935_s1 + $0x1d0] ss:$8 sps:$4 sm:$0xff]  }
  0x40   :  { %1512 = vmatpush1.bf16.msra.mxu0 %v2011_v1  ;;  %1375 = vmatprep.subr.bf16.mxu1 %v2017_v2  ;;  %v2099_v1 = vld [vmem:[%s2935_s1 + $0x4d0] ss:$8 sps:$4 sm:$0xff]   ;;  %v2106_v2 = vld [vmem:[%s2935_s1 + $0x1e4] ss:$8 sps:$4 sm:$0xff]  }
  0x41   :  { %1534 = vmatprep.subr.bf16.mxu0 %v2023_v3  ;;  %v2111_v3 = vld [vmem:[%s2935_s1 + $0x4e4] ss:$8 sps:$4 sm:$0xff]  }
  0x42   :  { %1355 = vmatmul.mubr.bf16.vlgmr.msra.gmra.mrb[0].mxu1 %v2012_v4  ;;  %v2104_v4 = vld [vmem:[%s2935_s1 + $0x1e0] ss:$8 sps:$4 sm:$0xff]  }
  0x43   :  { %1514 = vmatmul.mubr.bf16.vlgmr.msra.gmra.mrb[0].mxu0 %v2018_v6  ;;  %1376 = vmatpush1.bf16.msra.mxu1 %v2015_v5  ;;  %v2109_v5 = vld [vmem:[%s2935_s1 + $0x4e0] ss:$8 sps:$4 sm:$0xff]   ;;  %v2116_v6 = vld [vmem:[%s2935_s1 + $0x1f4] ss:$8 sps:$4 sm:$0xff]  }
  0x44   :  { %1535 = vmatpush1.bf16.msra.mxu0 %v2021_v7  ;;  %1377 = vmatprep.subr.bf16.mxu1 %v2026_v8  ;;  %v2119_v7 = vld [vmem:[%s2935_s1 + $0x4f4] ss:$8 sps:$4 sm:$0xff]   ;;  %v2114_v8 = vld [vmem:[%s2935_s1 + $0x1f0] ss:$8 sps:$4 sm:$0xff]  }
  0x45   :  { %1536 = vmatprep.subr.bf16.mxu0 %v2029_v9  ;;  %1364 = vmatprep.mubr.bf16.mxu1 %v2102_v28  ;;  %v2117_v9 = vld [vmem:[%s2935_s1 + $0x4f0] ss:$8 sps:$4 sm:$0xff]   ;;  %v2146_v28 = vld [vmem:[%s2935_s1 + $0x234] ss:$8 sps:$4 sm:$0xff]  }
  0x46   :  { %1523 = vmatprep.mubr.bf16.mxu0 %v2107_v31  ;;  %v2147_v31 = vld [vmem:[%s2935_s1 + $0x530] ss:$8 sps:$4 sm:$0xff]  }
  0x47   :  { %1378 = vmatpush1.bf16.msra.mxu1 %v2024_v10  ;;  %v2125_v10 = vld [vmem:[%s2935_s1 + $0x204] ss:$8 sps:$4 sm:$0xff]  }
  0x48   :  { %1537 = vmatpush1.bf16.msra.mxu0 %v2027_v11  ;;  %1379 = vmatprep.subr.bf16.mxu1 %v2032_v12  ;;  %v2131_v11 = vld [vmem:[%s2935_s1 + $0x504] ss:$8 sps:$4 sm:$0xff]   ;;  %v2120_v12 = vld [vmem:[%s2936_s0 + $0x8] ss:$48 sps:$4 sm:$0xff]  }
  0x49   :  { %1538 = vmatprep.subr.bf16.mxu0 %v2035_v13  ;;  %v2123_v13 = vld [vmem:[%s2935_s1 + $0x200] ss:$8 sps:$4 sm:$0xff]  }
  0x4a   :  { %1365 = vmatmul.mubr.bf16.gmra.mrb[4].mxu1 %v2112_v34  ;;  %v2155_v34 = vld [vmem:[%s2935_s1 + $0x544] ss:$8 sps:$4 sm:$0xff]  }
  0x4b   :  { %1380 = vmatpush1.bf16.msra.mxu1 %v2030_v14  ;;  %1524 = vmatmul.mubr.bf16.gmra.mrb[4].mxu0 %v2113_v35  ;;  %v2126_v14 = vld [vmem:[%s2936_s0 + $0x20] ss:$48 sps:$4 sm:$0xff]   ;;  %v2233_v35 = vld [vmem:[%s2936_s0 + $0x2c] ss:$48 sps:$4 sm:$0xff]  }
  0x4c   :  { %1539 = vmatpush1.bf16.msra.mxu0 %v2033_v15  ;;  %1381 = vmatprep.subr.bf16.mxu1 %v2038_v16  ;;  %v2129_v15 = vld [vmem:[%s2935_s1 + $0x500] ss:$8 sps:$4 sm:$0xff]   ;;  %v2134_v16 = vld [vmem:[%s2935_s1 + $0x214] ss:$8 sps:$4 sm:$0xff]  }
  0x4d   :  { %1540 = vmatprep.subr.bf16.mxu0 %v2041_v17  ;;  %1407 = vmatprep.mubr.bf16.mxu1 %v2122_v40  ;;  %v2137_v17 = vld [vmem:[%s2935_s1 + $0x514] ss:$8 sps:$4 sm:$0xff]   ;;  %v2156_v40 = vld [vmem:[%s2935_s1 + $0x250] ss:$8 sps:$4 sm:$0xff]  }
  0x4e   :  { %1566 = vmatprep.mubr.bf16.mxu0 %v2128_v43  ;;  %v2167_v43 = vld [vmem:[%s2935_s1 + $0x564] ss:$8 sps:$4 sm:$0xff]  }
  0x4f   :  { %1382 = vmatpush1.bf16.msra.mxu1 %v2036_v18  ;;  %v2132_v18 = vld [vmem:[%s2935_s1 + $0x210] ss:$8 sps:$4 sm:$0xff]  }
  0x50   :  { %1541 = vmatpush1.bf16.msra.mxu0 %v2039_v19  ;;  %1383 = vmatprep.subr.bf16.mxu1 %v2044_v20  ;;  %v2135_v19 = vld [vmem:[%s2935_s1 + $0x510] ss:$8 sps:$4 sm:$0xff]   ;;  %v2210_v20 = vld [vmem:[%s2936_s0 + $0x6c] ss:$48 sps:$4 sm:$0xff]  }
  0x51   :  { %1542 = vmatprep.subr.bf16.mxu0 %v2047_v21  ;;  %v2140_v21 = vld [vmem:[%s2935_s1 + $0x224] ss:$8 sps:$4 sm:$0xff]  }
  0x53   :  { %1384 = vmatpush1.bf16.msra.mxu1 %v2042_v22  ;;  %v2212_v22 = vld [vmem:[%s2936_s0 + $0x84] ss:$48 sps:$4 sm:$0xff]  }
  0x54   :  { %1543 = vmatpush1.bf16.msra.mxu0 %v2045_v23  ;;  %1385 = vmatprep.subr.bf16.mxu1 %v2050_v24  ;;  %v2143_v23 = vld [vmem:[%s2935_s1 + $0x524] ss:$8 sps:$4 sm:$0xff]   ;;  %v2138_v24 = vld [vmem:[%s2935_s1 + $0x220] ss:$8 sps:$4 sm:$0xff]  }
  0x55   :  { %1544 = vmatprep.subr.bf16.mxu0 %v2053_v25  ;;  %v2141_v25 = vld [vmem:[%s2935_s1 + $0x520] ss:$8 sps:$4 sm:$0xff]  }
  0x57   :  { %1386 = vmatpush1.bf16.msra.mxu1 %v2048_v26  ;;  %v2214_v26 = vld [vmem:[%s2936_s0 + $0x68] ss:$48 sps:$4 sm:$0xff]  }
  0x58   :  { %1545 = vmatpush1.bf16.msra.mxu0 %v2051_v27  ;;  %1387 = vmatprep.subr.bf16.mxu1 %v2056_v29  ;;  %v2218_v27 = vld [vmem:[%s2936_s0 + $0x80] ss:$48 sps:$4 sm:$0xff]   ;;  %v2149_v29 = vld [vmem:[%s2935_s1 + $0x534] ss:$8 sps:$4 sm:$0xff]  }
  0x59   :  { %1546 = vmatprep.subr.bf16.mxu0 %v2059_v30  ;;  %v2144_v30 = vld [vmem:[%s2935_s1 + $0x230] ss:$8 sps:$4 sm:$0xff]  }
  0x5b   :  { %1388 = vmatpush1.bf16.msra.mxu1 %v2054_v32  ;;  %v2152_v32 = vld [vmem:[%s2935_s1 + $0x244] ss:$8 sps:$4 sm:$0xff]  }
  0x5c   :  { %1547 = vmatpush1.bf16.msra.mxu0 %v2057_v33  ;;  %1389 = vmatprep.subr.bf16.mxu1 %v2062_v36  ;;  %v2230_v33 = vld [vmem:[%s2936_s0 + $0x14] ss:$48 sps:$4 sm:$0xff]   ;;  %v2150_v36 = vld [vmem:[%s2935_s1 + $0x240] ss:$8 sps:$4 sm:$0xff]  }
  0x5d   :  { %1548 = vmatprep.subr.bf16.mxu0 %v2065_v37  ;;  %v2153_v37 = vld [vmem:[%s2935_s1 + $0x540] ss:$8 sps:$4 sm:$0xff]  }
  0x5f   :  { %1390 = vmatpush1.bf16.msra.mxu1 %v2060_v38  ;;  %v2158_v38 = vld [vmem:[%s2935_s1 + $0x254] ss:$8 sps:$4 sm:$0xff]  }
  0x60   :  { %1549 = vmatpush1.bf16.msra.mxu0 %v2063_v39  ;;  %1391 = vmatprep.subr.bf16.mxu1 %v2068_v41  ;;  %v2161_v39 = vld [vmem:[%s2935_s1 + $0x554] ss:$8 sps:$4 sm:$0xff]   ;;  %v2159_v41 = vld [vmem:[%s2935_s1 + $0x550] ss:$8 sps:$4 sm:$0xff]  }
  0x61   :  { %1550 = vmatprep.subr.bf16.mxu0 %v2071_v42  ;;  %v2164_v42 = vld [vmem:[%s2935_s1 + $0x264] ss:$8 sps:$4 sm:$0xff]  }
  0x63   :  { %1392 = vmatpush1.bf16.msra.mxu1 %v2066_v44  ;;  %v2162_v44 = vld [vmem:[%s2935_s1 + $0x260] ss:$8 sps:$4 sm:$0xff]  }
  0x64   :  { %1551 = vmatpush1.bf16.msra.mxu0 %v2069_v45  ;;  %1393 = vmatprep.subr.bf16.mxu1 %v2074_v46  ;;  %v2165_v45 = vld [vmem:[%s2935_s1 + $0x560] ss:$8 sps:$4 sm:$0xff]   ;;  %v2170_v46 = vld [vmem:[%s2935_s1 + $0x274] ss:$8 sps:$4 sm:$0xff]  }
  0x65   :  { %1552 = vmatprep.subr.bf16.mxu0 %v2077_v47  ;;  %v2173_v47 = vld [vmem:[%s2935_s1 + $0x574] ss:$8 sps:$4 sm:$0xff]  }
  0x67   :  { %1394 = vmatpush1.bf16.msra.mxu1 %v2072_v48  ;;  %v2168_v48 = vld [vmem:[%s2935_s1 + $0x270] ss:$8 sps:$4 sm:$0xff]  }
  0x68   :  { %1553 = vmatpush1.bf16.msra.mxu0 %v2075_v49  ;;  %1395 = vmatprep.subr.bf16.mxu1 %v2080_v50  ;;  %v2171_v49 = vld [vmem:[%s2935_s1 + $0x570] ss:$8 sps:$4 sm:$0xff]   ;;  %v2176_v50 = vld [vmem:[%s2935_s1 + $0x284] ss:$8 sps:$4 sm:$0xff]  }
  0x69   :  { %1554 = vmatprep.subr.bf16.mxu0 %v2083_v51  ;;  %v2179_v51 = vld [vmem:[%s2935_s1 + $0x584] ss:$8 sps:$4 sm:$0xff]  }
  0x6b   :  { %1396 = vmatpush1.bf16.msra.mxu1 %v2078_v52  ;;  %v2174_v52 = vld [vmem:[%s2935_s1 + $0x280] ss:$8 sps:$4 sm:$0xff]  }
  0x6c   :  { %1555 = vmatpush1.bf16.msra.mxu0 %v2081_v53  ;;  %1397 = vmatprep.subr.bf16.mxu1 %v2086_v54  ;;  %v2177_v53 = vld [vmem:[%s2935_s1 + $0x580] ss:$8 sps:$4 sm:$0xff]   ;;  %v2182_v54 = vld [vmem:[%s2935_s1 + $0x294] ss:$8 sps:$4 sm:$0xff]  }
  0x6d   :  { %1556 = vmatprep.subr.bf16.mxu0 %v2089_v55  ;;  %v2185_v55 = vld [vmem:[%s2935_s1 + $0x594] ss:$8 sps:$4 sm:$0xff]  }
  0x6f   :  { %1398 = vmatpush1.bf16.msra.mxu1 %v2084_v56  ;;  %v2180_v56 = vld [vmem:[%s2935_s1 + $0x290] ss:$8 sps:$4 sm:$0xff]  }
  0x70   :  { %1557 = vmatpush1.bf16.msra.mxu0 %v2087_v57  ;;  %1399 = vmatprep.subr.bf16.mxu1 %v2092_v58  ;;  %v2183_v57 = vld [vmem:[%s2935_s1 + $0x590] ss:$8 sps:$4 sm:$0xff]   ;;  %v2188_v58 = vld [vmem:[%s2935_s1 + $0x2a4] ss:$8 sps:$4 sm:$0xff]  }
  0x71   :  { %1558 = vmatprep.subr.bf16.mxu0 %v2095_v59  ;;  %v2191_v59 = vld [vmem:[%s2935_s1 + $0x5a4] ss:$8 sps:$4 sm:$0xff]  }
  0x73   :  { %1400 = vmatpush1.bf16.msra.mxu1 %v2090_v60  ;;  %v2186_v60 = vld [vmem:[%s2935_s1 + $0x2a0] ss:$8 sps:$4 sm:$0xff]  }
  0x74   :  { %1559 = vmatpush1.bf16.msra.mxu0 %v2093_v61  ;;  %1401 = vmatprep.subr.bf16.mxu1 %v2098_v62  ;;  %v2189_v61 = vld [vmem:[%s2935_s1 + $0x5a0] ss:$8 sps:$4 sm:$0xff]   ;;  %v2194_v62 = vld [vmem:[%s2935_s1 + $0x2b4] ss:$8 sps:$4 sm:$0xff]  }
  0x75   :  { %1560 = vmatprep.subr.bf16.mxu0 %v2101_v63  ;;  %v2197_v63 = vld [vmem:[%s2935_s1 + $0x5b4] ss:$8 sps:$4 sm:$0xff]  }
  0x77   :  { %1402 = vmatpush1.bf16.msra.mxu1 %v2096_v0  ;;  %v2192_v0 = vld [vmem:[%s2935_s1 + $0x2b0] ss:$8 sps:$4 sm:$0xff]  }
  0x78   :  { %1561 = vmatpush1.bf16.msra.mxu0 %v2099_v1  ;;  %1403 = vmatprep.subr.bf16.mxu1 %v2106_v2  ;;  %v2195_v1 = vld [vmem:[%s2935_s1 + $0x5b0] ss:$8 sps:$4 sm:$0xff]   ;;  %v2200_v2 = vld [vmem:[%s2935_s1 + $0x2c4] ss:$8 sps:$4 sm:$0xff]  }
  0x79   :  { %1562 = vmatprep.subr.bf16.mxu0 %v2111_v3  ;;  %v2203_v3 = vld [vmem:[%s2935_s1 + $0x5c4] ss:$8 sps:$4 sm:$0xff]  }
  0x7b   :  { %1404 = vmatpush1.bf16.msra.mxu1 %v2104_v4  ;;  %v2198_v4 = vld [vmem:[%s2935_s1 + $0x2c0] ss:$8 sps:$4 sm:$0xff]  }
  0x7c   :  { %1563 = vmatpush1.bf16.msra.mxu0 %v2109_v5  ;;  %1405 = vmatprep.subr.bf16.mxu1 %v2116_v6  ;;  %v2201_v5 = vld [vmem:[%s2935_s1 + $0x5c0] ss:$8 sps:$4 sm:$0xff]   ;;  %v2206_v6 = vld [vmem:[%s2935_s1 + $0x2d4] ss:$8 sps:$4 sm:$0xff]  }
  0x7d   :  { %1564 = vmatprep.subr.bf16.mxu0 %v2119_v7  ;;  %v2209_v7 = vld [vmem:[%s2935_s1 + $0x5d4] ss:$8 sps:$4 sm:$0xff]  }
  0x7f   :  { %1406 = vmatpush1.bf16.msra.mxu1 %v2114_v8  ;;  %v2204_v8 = vld [vmem:[%s2935_s1 + $0x2d0] ss:$8 sps:$4 sm:$0xff]  }
  0x80   :  { %1565 = vmatpush1.bf16.msra.mxu0 %v2117_v9  ;;  %1428 = vmatprep.subr.bf16.mxu1 %v2125_v10  ;;  %v2207_v9 = vld [vmem:[%s2935_s1 + $0x5d0] ss:$8 sps:$4 sm:$0xff]   ;;  %v2217_v10 = vld [vmem:[%s2935_s1 + $0x2e4] ss:$8 sps:$4 sm:$0xff]  }
  0x81   :  { %1587 = vmatprep.subr.bf16.mxu0 %v2131_v11  ;;  %v2221_v11 = vld [vmem:[%s2935_s1 + $0x5e4] ss:$8 sps:$4 sm:$0xff]  }
  0x82   :  { %1408 = vmatmul.mubr.bf16.vlgmr.msra.gmra.mrb[0].mxu1 %v2120_v12  ;;  %v2215_v12 = vld [vmem:[%s2935_s1 + $0x2e0] ss:$8 sps:$4 sm:$0xff]  }
  0x83   :  { %1567 = vmatmul.mubr.bf16.vlgmr.msra.gmra.mrb[0].mxu0 %v2126_v14  ;;  %1429 = vmatpush1.bf16.msra.mxu1 %v2123_v13  ;;  %v2219_v13 = vld [vmem:[%s2935_s1 + $0x5e0] ss:$8 sps:$4 sm:$0xff]   ;;  %v2224_v14 = vld [vmem:[%s2935_s1 + $0x2f4] ss:$8 sps:$4 sm:$0xff]  }
  0x84   :  { %1588 = vmatpush1.bf16.msra.mxu0 %v2129_v15  ;;  %1430 = vmatprep.subr.bf16.mxu1 %v2134_v16  ;;  %v2227_v15 = vld [vmem:[%s2935_s1 + $0x5f4] ss:$8 sps:$4 sm:$0xff]   ;;  %v2222_v16 = vld [vmem:[%s2935_s1 + $0x2f0] ss:$8 sps:$4 sm:$0xff]  }
  0x85   :  { %1589 = vmatprep.subr.bf16.mxu0 %v2137_v17  ;;  %1417 = vmatprep.mubr.bf16.mxu1 %v2210_v20  ;;  %v2225_v17 = vld [vmem:[%s2935_s1 + $0x5f0] ss:$8 sps:$4 sm:$0xff]   ;;  %v2234_v20 = vld [vmem:[%s2936_s0 + $0x74] ss:$48 sps:$4 sm:$0xff]  }
  0x86   :  { %1576 = vmatprep.mubr.bf16.mxu0 %v2212_v22  ;;  %v2238_v22 = vld [vmem:[%s2936_s0 + $0x70] ss:$48 sps:$4 sm:$0xff]  }
  0x87   :  { %1431 = vmatpush1.bf16.msra.mxu1 %v2132_v18  ;;  %v2228_v18 = vld [vmem:[%s2936_s0 + $0x10] ss:$48 sps:$4 sm:$0xff]  }
  0x88   :  { %1590 = vmatpush1.bf16.msra.mxu0 %v2135_v19  ;;  %1432 = vmatprep.subr.bf16.mxu1 %v2140_v21  ;;  %v2231_v19 = vld [vmem:[%s2936_s0 + $0x28] ss:$48 sps:$4 sm:$0xff]   ;;  %v2236_v21 = vld [vmem:[%s2936_s0 + $0x8c] ss:$48 sps:$4 sm:$0xff]  }
  0x89   :  { %1591 = vmatprep.subr.bf16.mxu0 %v2143_v23  ;;  %v2239_v23 = vld [vmem:[%s2936_s0 + $0x88] ss:$48 sps:$4 sm:$0xff]  }
  0x8a   :  { %1418 = vmatmul.mubr.bf16.gmra.mrb[4].mxu1 %v2214_v26 }
  0x8b   :  { %1577 = vmatmul.mubr.bf16.gmra.mrb[4].mxu0 %v2218_v27  ;;  %1433 = vmatpush1.bf16.msra.mxu1 %v2138_v24  ;;  %v232_v24 = vlaneseq  ;;  %v230_v27 = vld [vmem:[%s2937_s2] sm:$0x3] }
  0x8c   :  { %1592 = vmatpush1.bf16.msra.mxu0 %v2141_v25  ;;  %1434 = vmatprep.subr.bf16.mxu1 %v2146_v28 }
  0x8d   :  { %1593 = vmatprep.subr.bf16.mxu0 %v2149_v29  ;;  %1460 = vmatprep.mubr.bf16.mxu1 %v2230_v33  ;;  %v233_v25 = vshrl.u32 %v232_v24, 7 }
  0x8e   :  { %1619 = vmatprep.mubr.bf16.mxu0 %v2233_v35 }
  0x8f   :  { %1435 = vmatpush1.bf16.msra.mxu1 %v2144_v30  ;;  %v234_v26 = vsub.s32 0, %v233_v25  ;;  %v238_v28 = vsub.s32 1, %v233_v25 }
  0x90   :  { %1594 = vmatpush1.bf16.msra.mxu0 %v2147_v31  ;;  %1436 = vmatprep.subr.bf16.mxu1 %v2152_v32 }
  0x91   :  { %1595 = vmatprep.subr.bf16.mxu0 %v2155_v34  ;;  %v235_v29 = vrot.slane %v230_v27, %v234_v26  ;;  %v239_v30 = vrot.slane %v230_v27, %v238_v28 }
  0x93   :  { %1437 = vmatpush1.bf16.msra.mxu1 %v2150_v36 }
  0x94   :  { %1596 = vmatpush1.bf16.msra.mxu0 %v2153_v37  ;;  %1438 = vmatprep.subr.bf16.mxu1 %v2158_v38 }
  0x95   :  { %1597 = vmatprep.subr.bf16.mxu0 %v2161_v39 }
  0x97   :  { %1439 = vmatpush1.bf16.msra.mxu1 %v2156_v40 }
  0x98   :  { %1598 = vmatpush1.bf16.msra.mxu0 %v2159_v41  ;;  %1440 = vmatprep.subr.bf16.mxu1 %v2164_v42 }
  0x99   :  { %1599 = vmatprep.subr.bf16.mxu0 %v2167_v43 }
  0x9b   :  { %1441 = vmatpush1.bf16.msra.mxu1 %v2162_v44 }
  0x9c   :  { %1600 = vmatpush1.bf16.msra.mxu0 %v2165_v45  ;;  %1442 = vmatprep.subr.bf16.mxu1 %v2170_v46 }
  0x9d   :  { %1601 = vmatprep.subr.bf16.mxu0 %v2173_v47 }
  0x9f   :  { %1443 = vmatpush1.bf16.msra.mxu1 %v2168_v48 }
  0xa0   :  { %1602 = vmatpush1.bf16.msra.mxu0 %v2171_v49  ;;  %1444 = vmatprep.subr.bf16.mxu1 %v2176_v50 }
  0xa1   :  { %1603 = vmatprep.subr.bf16.mxu0 %v2179_v51 }
  0xa3   :  { %1445 = vmatpush1.bf16.msra.mxu1 %v2174_v52 }
  0xa4   :  { %1604 = vmatpush1.bf16.msra.mxu0 %v2177_v53  ;;  %1446 = vmatprep.subr.bf16.mxu1 %v2182_v54 }
  0xa5   :  { %1605 = vmatprep.subr.bf16.mxu0 %v2185_v55 }
  0xa7   :  { %1447 = vmatpush1.bf16.msra.mxu1 %v2180_v56 }
  0xa8   :  { %1606 = vmatpush1.bf16.msra.mxu0 %v2183_v57  ;;  %1448 = vmatprep.subr.bf16.mxu1 %v2188_v58 }
  0xa9   :  { %1607 = vmatprep.subr.bf16.mxu0 %v2191_v59 }
  0xab   :  { %1449 = vmatpush1.bf16.msra.mxu1 %v2186_v60 }
  0xac   :  { %1608 = vmatpush1.bf16.msra.mxu0 %v2189_v61  ;;  %1450 = vmatprep.subr.bf16.mxu1 %v2194_v62 }
  0xad   :  { %1609 = vmatprep.subr.bf16.mxu0 %v2197_v63 }
  0xaf   :  { %1451 = vmatpush1.bf16.msra.mxu1 %v2192_v0 }
  0xb0   :  { %1610 = vmatpush1.bf16.msra.mxu0 %v2195_v1  ;;  %1452 = vmatprep.subr.bf16.mxu1 %v2200_v2 }
  0xb1   :  { %1611 = vmatprep.subr.bf16.mxu0 %v2203_v3 }
  0xb3   :  { %1453 = vmatpush1.bf16.msra.mxu1 %v2198_v4 }
  0xb4   :  { %1612 = vmatpush1.bf16.msra.mxu0 %v2201_v5  ;;  %1454 = vmatprep.subr.bf16.mxu1 %v2206_v6 }
  0xb5   :  { %1613 = vmatprep.subr.bf16.mxu0 %v2209_v7 }
  0xb7   :  { %1455 = vmatpush1.bf16.msra.mxu1 %v2204_v8 }
  0xb8   :  { %1614 = vmatpush1.bf16.msra.mxu0 %v2207_v9  ;;  %1456 = vmatprep.subr.bf16.mxu1 %v2217_v10 }
  0xb9   :  { %1615 = vmatprep.subr.bf16.mxu0 %v2221_v11 }
  0xbb   :  { %1457 = vmatpush1.bf16.msra.mxu1 %v2215_v12 }
  0xbc   :  { %1616 = vmatpush1.bf16.msra.mxu0 %v2219_v13  ;;  %1458 = vmatprep.subr.bf16.mxu1 %v2224_v14 }
  0xbd   :  { %1617 = vmatprep.subr.bf16.mxu0 %v2227_v15 }
  0xbf   :  { %1459 = vmatpush1.bf16.msra.mxu1 %v2222_v16 }
  0xc0   :  { %1618 = vmatpush1.bf16.msra.mxu0 %v2225_v17 }
  0xc2   :  { %1461 = vmatmul.mubr.bf16.vlgmr.msra.gmra.mrb[0].mxu1 %v2228_v18 }
  0xc3   :  { %1620 = vmatmul.mubr.bf16.vlgmr.msra.gmra.mrb[0].mxu0 %v2231_v19  ;;  %1470 = vmatprep.mubr.bf16.mxu1 %v2234_v20 }
  0xc4   :  { %1629 = vmatprep.mubr.bf16.mxu0 %v2236_v21 }
  0xca   :  { %1471 = vmatmul.mubr.bf16.gmra.mrb[4].mxu1 %v2238_v22 }
  0xcb   :  { %1630 = vmatmul.mubr.bf16.gmra.mrb[4].mxu0 %v2239_v23 }
 0x195   :  { %v1462_v31 = vpop.f32.mrb[0].mxu1 }
 0x196   :  { %v1621_v32 = vpop.f32.mrb[0].mxu0  ;;  %v1868_v33 = vadd.f32 %v1462_v31, %v235_v29  ;;  %v1464_v34 = vpop.f32.mrb[1].mxu1 }
 0x197   :  { %v1623_v35 = vpop.f32.mrb[1].mxu0  ;;  %v1870_v36 = vadd.f32 %v1464_v34, %v239_v30  ;;  %v1466_v37 = vpop.f32.mrb[2].mxu1 }
 0x198   :  { %v1625_v38 = vpop.f32.mrb[2].mxu0  ;;  %v1869_v39 = vadd.f32 %v1868_v33, %v1621_v32  ;;  %v1872_v40 = vadd.f32 %v1466_v37, %v235_v29  ;;  %v1468_v41 = vpop.f32.mrb[3].mxu1 }
 0x199   :  { %v1627_v42 = vpop.f32.mrb[3].mxu0  ;;  %v1871_v43 = vadd.f32 %v1870_v36, %v1623_v35  ;;  %v1874_v44 = vadd.f32 %v1468_v41, %v239_v30 }
 0x19a   :  { %1640 = vst [vmem:[%s2938_s3] sm:$0xff] %v1869_v39  ;;  %v1873_v45 = vadd.f32 %v1872_v40, %v1625_v38 }
 0x19b   :  { %1641 = vst [vmem:[%s2938_s3 + $0x8] sm:$0xff] %v1871_v43  ;;  %v1875_v46 = vadd.f32 %v1874_v44, %v1627_v42 }
 0x19c   :  { %1642 = vst [vmem:[%s2938_s3 + $0x10] sm:$0xff] %v1873_v45 }
 0x19d   :  { %1643 = vst [vmem:[%s2938_s3 + $0x18] sm:$0xff] %v1875_v46  ;;  %v1472_v47 = vpop.f32.mrb[4].mxu1 }
 0x19e   :  { %v1631_v48 = vpop.f32.mrb[4].mxu0  ;;  %v1876_v49 = vadd.f32 %v1472_v47, %v235_v29  ;;  %v1474_v50 = vpop.f32.mrb[5].mxu1 }
 0x19f   :  { %v1633_v51 = vpop.f32.mrb[5].mxu0  ;;  %v1878_v52 = vadd.f32 %v1474_v50, %v239_v30  ;;  %v1476_v53 = vpop.f32.mrb[6].mxu1 }
 0x1a0   :  { %v1635_v54 = vpop.f32.mrb[6].mxu0  ;;  %v1877_v55 = vadd.f32 %v1876_v49, %v1631_v48  ;;  %v1880_v56 = vadd.f32 %v1476_v53, %v235_v29  ;;  %v1478_v57 = vpop.f32.mrb[7].mxu1 }
 0x1a1   :  { %v1637_v58 = vpop.f32.mrb[7].mxu0  ;;  %v1879_v59 = vadd.f32 %v1878_v52, %v1633_v51  ;;  %v1882_v60 = vadd.f32 %v1478_v57, %v239_v30 }
 0x1a2   :  { %1644 = vst [vmem:[%s2938_s3 + $0x20] sm:$0xff] %v1877_v55  ;;  %v1881_v61 = vadd.f32 %v1880_v56, %v1635_v54 }
 0x1a3   :  { %1645 = vst [vmem:[%s2938_s3 + $0x28] sm:$0xff] %v1879_v59  ;;  %v1883_v62 = vadd.f32 %v1882_v60, %v1637_v58 }
 0x1a4   :  { %1646 = vst [vmem:[%s2938_s3 + $0x30] sm:$0xff] %v1881_v61 }
 0x1a5   :  { %1647 = vst [vmem:[%s2938_s3 + $0x38] sm:$0xff] %v1883_v62 }

// kernel: _forward.55
= control target key start
LH: loop header
LB: loop body
LE: loop exit
PB: predicated region body
PF: predicated region fallthrough
CT: control target
= control target key end

     0   :  { %s1238_s1 = inlined_call_operand.vmem [shape: bf16[512,128], index: 1, kind: input, shape index: {}]   ;;  %s1239_s0 = inlined_call_operand.vmem [shape: bf16[128,512], index: 0, kind: input, shape index: {}]   ;;  %s1240_s2 = inlined_call_operand.vmem [shape: f32[1,128], index: 2, kind: input, shape index: {}]   ;;  %s1241_s3 = inlined_call_operand.vmem [shape: f32[128,128], index: 3, kind: output, shape index: {}]  }
   0x1   :  { %v877_v0 = vld [vmem:[%s1238_s1 + $0x40] sm:$0xff]   ;;  %v881_v4 = vld [vmem:[%s1238_s1 + $0x48] sm:$0xff]   ;;  %v885_v8 = vld [vmem:[%s1238_s1 + $0x50] sm:$0xff]  }
   0x2   :  { %v878_v1 = vld [vmem:[%s1238_s1 + $0xc0] sm:$0xff]   ;;  %749 = vmatprep.subr.bf16.mxu0 %v877_v0  ;;  %v882_v5 = vld [vmem:[%s1238_s1 + $0xc8] sm:$0xff]   ;;  %v886_v9 = vld [vmem:[%s1238_s1 + $0xd0] sm:$0xff]  }
   0x3   :  { %v879_v2 = vld [vmem:[%s1238_s1] sm:$0xff]   ;;  %813 = vmatprep.subr.bf16.mxu1 %v878_v1  ;;  %v883_v6 = vld [vmem:[%s1238_s1 + $0x8] sm:$0xff]   ;;  %v887_v10 = vld [vmem:[%s1238_s1 + $0x10] sm:$0xff]  }
   0x4   :  { %v880_v3 = vld [vmem:[%s1238_s1 + $0x80] sm:$0xff]   ;;  %750 = vmatpush3.bf16.msra.mxu0 %v879_v2  ;;  %v884_v7 = vld [vmem:[%s1238_s1 + $0x88] sm:$0xff]   ;;  %v888_v11 = vld [vmem:[%s1238_s1 + $0x90] sm:$0xff]  }
   0x5   :  { %814 = vmatpush3.bf16.msra.mxu1 %v880_v3  ;;  %751 = vmatprep.subr.bf16.mxu0 %v881_v4  ;;  %v889_v12 = vld [vmem:[%s1238_s1 + $0x58] sm:$0xff]   ;;  %v893_v16 = vld [vmem:[%s1238_s1 + $0x60] sm:$0xff]   ;;  %v897_v20 = vld [vmem:[%s1238_s1 + $0x68] sm:$0xff]  }
   0x6   :  { %815 = vmatprep.subr.bf16.mxu1 %v882_v5  ;;  %v890_v13 = vld [vmem:[%s1238_s1 + $0xd8] sm:$0xff]   ;;  %v894_v17 = vld [vmem:[%s1238_s1 + $0xe0] sm:$0xff]   ;;  %v898_v21 = vld [vmem:[%s1238_s1 + $0xe8] sm:$0xff]  }
   0x7   :  { %v891_v14 = vld [vmem:[%s1238_s1 + $0x18] sm:$0xff]   ;;  %v895_v18 = vld [vmem:[%s1238_s1 + $0x20] sm:$0xff]   ;;  %v899_v22 = vld [vmem:[%s1238_s1 + $0x28] sm:$0xff]  }
   0x8   :  { %752 = vmatpush3.bf16.msra.mxu0 %v883_v6  ;;  %v892_v15 = vld [vmem:[%s1238_s1 + $0x98] sm:$0xff]   ;;  %v896_v19 = vld [vmem:[%s1238_s1 + $0xa0] sm:$0xff]   ;;  %v900_v23 = vld [vmem:[%s1238_s1 + $0xa8] sm:$0xff]  }
   0x9   :  { %816 = vmatpush3.bf16.msra.mxu1 %v884_v7  ;;  %753 = vmatprep.subr.bf16.mxu0 %v885_v8  ;;  %v901_v24 = vld [vmem:[%s1238_s1 + $0x70] sm:$0xff]   ;;  %v905_v28 = vld [vmem:[%s1238_s1 + $0x78] sm:$0xff]   ;;  %v1172_v2 = vld [vmem:[%s1240_s2] ss:$0 sm:$0xff] }
   0xa   :  { %817 = vmatprep.subr.bf16.mxu1 %v886_v9  ;;  %v902_v25 = vld [vmem:[%s1238_s1 + $0xf0] sm:$0xff]   ;;  %v906_v29 = vld [vmem:[%s1238_s1 + $0xf8] sm:$0xff]  }
   0xb   :  { %v903_v26 = vld [vmem:[%s1238_s1 + $0x30] sm:$0xff]   ;;  %v907_v30 = vld [vmem:[%s1238_s1 + $0x38] sm:$0xff]  }
   0xc   :  { %754 = vmatpush3.bf16.msra.mxu0 %v887_v10  ;;  %v904_v27 = vld [vmem:[%s1238_s1 + $0xb0] sm:$0xff]   ;;  %v908_v31 = vld [vmem:[%s1238_s1 + $0xb8] sm:$0xff]  }
   0xd   :  { %818 = vmatpush3.bf16.msra.mxu1 %v888_v11  ;;  %755 = vmatprep.subr.bf16.mxu0 %v889_v12  ;;  %v909_v32 = vld [vmem:[%s1239_s0] ss:$16 sps:$4 sm:$0xff]   ;;  %v911_v33 = vld [vmem:[%s1239_s0 + $0x4] ss:$16 sps:$4 sm:$0xff]   ;;  %v912_v34 = vld [vmem:[%s1239_s0 + $0x8] ss:$16 sps:$4 sm:$0xff]  }
   0xe   :  { %819 = vmatprep.subr.bf16.mxu1 %v890_v13  ;;  %v914_v35 = vld [vmem:[%s1239_s0 + $0xc] ss:$16 sps:$4 sm:$0xff]   ;;  %502 = vmatprep.mubr.bf16.mxu0 %v911_v33  ;;  %v915_v36 = vld [vmem:[%s1239_s0 + $0x24] ss:$16 sps:$4 sm:$0xff]   ;;  %v919_v38 = vld [vmem:[%s1239_s0 + $0x20] ss:$16 sps:$4 sm:$0xff]  }
   0xf   :  { %599 = vmatprep.mubr.bf16.mxu1 %v914_v35  ;;  %v917_v37 = vld [vmem:[%s1239_s0 + $0x2c] ss:$16 sps:$4 sm:$0xff]   ;;  %v920_v39 = vld [vmem:[%s1239_s0 + $0x28] ss:$16 sps:$4 sm:$0xff]   ;;  %v921_v40 = vld [vmem:[%s1239_s0 + $0x44] ss:$16 sps:$4 sm:$0xff]  }
  0x10   :  { %756 = vmatpush3.bf16.msra.mxu0 %v891_v14  ;;  %v923_v41 = vld [vmem:[%s1239_s0 + $0x4c] ss:$16 sps:$4 sm:$0xff]   ;;  %v925_v42 = vld [vmem:[%s1239_s0 + $0x40] ss:$16 sps:$4 sm:$0xff]   ;;  %v926_v43 = vld [vmem:[%s1239_s0 + $0x48] ss:$16 sps:$4 sm:$0xff]  }
  0x11   :  { %820 = vmatpush3.bf16.msra.mxu1 %v892_v15  ;;  %757 = vmatprep.subr.bf16.mxu0 %v893_v16  ;;  %v927_v44 = vld [vmem:[%s1239_s0 + $0x64] ss:$16 sps:$4 sm:$0xff]   ;;  %v929_v45 = vld [vmem:[%s1239_s0 + $0x6c] ss:$16 sps:$4 sm:$0xff]   ;;  %v931_v46 = vld [vmem:[%s1239_s0 + $0x60] ss:$16 sps:$4 sm:$0xff]  }
  0x12   :  { %821 = vmatprep.subr.bf16.mxu1 %v894_v17  ;;  %v932_v47 = vld [vmem:[%s1239_s0 + $0x68] ss:$16 sps:$4 sm:$0xff]   ;;  %v933_v48 = vld [vmem:[%s1239_s0 + $0x84] ss:$16 sps:$4 sm:$0xff]   ;;  %v935_v49 = vld [vmem:[%s1239_s0 + $0x8c] ss:$16 sps:$4 sm:$0xff]  }
  0x13   :  { %v937_v50 = vld [vmem:[%s1239_s0 + $0x80] ss:$16 sps:$4 sm:$0xff]   ;;  %v938_v51 = vld [vmem:[%s1239_s0 + $0x88] ss:$16 sps:$4 sm:$0xff]   ;;  %v939_v52 = vld [vmem:[%s1239_s0 + $0xa4] ss:$16 sps:$4 sm:$0xff]  }
  0x14   :  { %758 = vmatpush3.bf16.msra.mxu0 %v895_v18  ;;  %v941_v53 = vld [vmem:[%s1239_s0 + $0xac] ss:$16 sps:$4 sm:$0xff]   ;;  %v943_v54 = vld [vmem:[%s1239_s0 + $0xa0] ss:$16 sps:$4 sm:$0xff]   ;;  %v944_v55 = vld [vmem:[%s1239_s0 + $0xa8] ss:$16 sps:$4 sm:$0xff]  }
  0x15   :  { %822 = vmatpush3.bf16.msra.mxu1 %v896_v19  ;;  %759 = vmatprep.subr.bf16.mxu0 %v897_v20  ;;  %v945_v56 = vld [vmem:[%s1239_s0 + $0xc4] ss:$16 sps:$4 sm:$0xff]   ;;  %v947_v57 = vld [vmem:[%s1239_s0 + $0xcc] ss:$16 sps:$4 sm:$0xff]   ;;  %v949_v58 = vld [vmem:[%s1239_s0 + $0xc0] ss:$16 sps:$4 sm:$0xff]  }
  0x16   :  { %823 = vmatprep.subr.bf16.mxu1 %v898_v21  ;;  %v950_v59 = vld [vmem:[%s1239_s0 + $0xc8] ss:$16 sps:$4 sm:$0xff]   ;;  %v951_v60 = vld [vmem:[%s1239_s0 + $0xe4] ss:$16 sps:$4 sm:$0xff]   ;;  %v953_v61 = vld [vmem:[%s1239_s0 + $0xec] ss:$16 sps:$4 sm:$0xff]  }
  0x17   :  { %v955_v62 = vld [vmem:[%s1239_s0 + $0xe0] ss:$16 sps:$4 sm:$0xff]   ;;  %v956_v63 = vld [vmem:[%s1239_s0 + $0xe8] ss:$16 sps:$4 sm:$0xff]  }
  0x18   :  { %760 = vmatpush3.bf16.msra.mxu0 %v899_v22 }
  0x19   :  { %824 = vmatpush3.bf16.msra.mxu1 %v900_v23  ;;  %761 = vmatprep.subr.bf16.mxu0 %v901_v24 }
  0x1a   :  { %825 = vmatprep.subr.bf16.mxu1 %v902_v25 }
  0x1c   :  { %762 = vmatpush3.bf16.msra.mxu0 %v903_v26 }
  0x1d   :  { %826 = vmatpush3.bf16.msra.mxu1 %v904_v27  ;;  %763 = vmatprep.subr.bf16.mxu0 %v905_v28 }
  0x1e   :  { %827 = vmatprep.subr.bf16.mxu1 %v906_v29 }
  0x20   :  { %764 = vmatpush3.bf16.msra.mxu0 %v907_v30 }
  0x21   :  { %828 = vmatpush3.bf16.msra.mxu1 %v908_v31 }
  0x23   :  { %503 = vmatmul.mubr.bf16.vlgmr.msra.gmra.mrb[0].mxu0 %v909_v32 }
  0x24   :  { %600 = vmatmul.mubr.bf16.vlgmr.msra.gmra.mrb[0].mxu1 %v912_v34  ;;  %510 = vmatprep.mubr.bf16.mxu0 %v915_v36 }
  0x25   :  { %607 = vmatprep.mubr.bf16.mxu1 %v917_v37 }
  0x2b   :  { %511 = vmatmul.mubr.bf16.gmra.mrb[4].mxu0 %v919_v38 }
  0x2c   :  { %608 = vmatmul.mubr.bf16.gmra.mrb[4].mxu1 %v920_v39  ;;  %518 = vmatprep.mubr.bf16.mxu0 %v921_v40 }
  0x2d   :  { %615 = vmatprep.mubr.bf16.mxu1 %v923_v41 }
  0x33   :  { %519 = vmatmul.mubr.bf16.gmra.mrb[8].mxu0 %v925_v42 }
  0x34   :  { %616 = vmatmul.mubr.bf16.gmra.mrb[8].mxu1 %v926_v43  ;;  %526 = vmatprep.mubr.bf16.mxu0 %v927_v44 }
  0x35   :  { %623 = vmatprep.mubr.bf16.mxu1 %v929_v45 }
  0x3b   :  { %527 = vmatmul.mubr.bf16.gmra.mrb[12].mxu0 %v931_v46 }
  0x3c   :  { %624 = vmatmul.mubr.bf16.gmra.mrb[12].mxu1 %v932_v47  ;;  %534 = vmatprep.mubr.bf16.mxu0 %v933_v48 }
  0x3d   :  { %631 = vmatprep.mubr.bf16.mxu1 %v935_v49 }
  0x43   :  { %535 = vmatmul.mubr.bf16.gmra.mrb[16].mxu0 %v937_v50 }
  0x44   :  { %632 = vmatmul.mubr.bf16.gmra.mrb[16].mxu1 %v938_v51  ;;  %542 = vmatprep.mubr.bf16.mxu0 %v939_v52 }
  0x45   :  { %639 = vmatprep.mubr.bf16.mxu1 %v941_v53 }
  0x4b   :  { %543 = vmatmul.mubr.bf16.gmra.mrb[20].mxu0 %v943_v54 }
  0x4c   :  { %640 = vmatmul.mubr.bf16.gmra.mrb[20].mxu1 %v944_v55  ;;  %550 = vmatprep.mubr.bf16.mxu0 %v945_v56 }
  0x4d   :  { %647 = vmatprep.mubr.bf16.mxu1 %v947_v57 }
  0x53   :  { %551 = vmatmul.mubr.bf16.gmra.mrb[24].mxu0 %v949_v58 }
  0x54   :  { %648 = vmatmul.mubr.bf16.gmra.mrb[24].mxu1 %v950_v59  ;;  %558 = vmatprep.mubr.bf16.mxu0 %v951_v60 }
  0x55   :  { %655 = vmatprep.mubr.bf16.mxu1 %v953_v61 }
  0x5b   :  { %559 = vmatmul.mubr.bf16.gmra.mrb[28].mxu0 %v955_v62 }
  0x5c   :  { %656 = vmatmul.mubr.bf16.gmra.mrb[28].mxu1 %v956_v63 }
  0xf6   :  { %v765_v0 = vpop.f32.mrb[0].mxu0 }
  0xf7   :  { %v829_v1 = vpop.f32.mrb[0].mxu1  ;;  %v766_v3 = vpop.f32.mrb[1].mxu0 }
  0xf8   :  { %v767_v4 = vadd.f32 %v766_v3, %v765_v0  ;;  %v830_v5 = vpop.f32.mrb[1].mxu1  ;;  %v768_v6 = vpop.f32.mrb[2].mxu0 }
  0xf9   :  { %v831_v7 = vadd.f32 %v830_v5, %v829_v1  ;;  %v832_v8 = vpop.f32.mrb[2].mxu1  ;;  %v769_v9 = vpop.f32.mrb[3].mxu0 }
  0xfa   :  { %v505_v10 = vadd.f32 %v767_v4, %v1172_v2  ;;  %v770_v11 = vadd.f32 %v769_v9, %v768_v6  ;;  %v833_v12 = vpop.f32.mrb[3].mxu1 }
  0xfb   :  { %v834_v13 = vadd.f32 %v833_v12, %v832_v8 }
  0xfc   :  { %v602_v14 = vadd.f32 %v831_v7, %v505_v10  ;;  %v508_v15 = vadd.f32 %v770_v11, %v1172_v2 }
  0xfe   :  { %664 = vst [vmem:[%s1241_s3] sm:$0xff] %v602_v14  ;;  %v605_v16 = vadd.f32 %v834_v13, %v508_v15  ;;  %v771_v17 = vpop.f32.mrb[4].mxu0 }
  0xff   :  { %v835_v18 = vpop.f32.mrb[4].mxu1  ;;  %v772_v19 = vpop.f32.mrb[5].mxu0 }
 0x100   :  { %665 = vst [vmem:[%s1241_s3 + $0x8] sm:$0xff] %v605_v16  ;;  %v773_v20 = vadd.f32 %v772_v19, %v771_v17  ;;  %v836_v21 = vpop.f32.mrb[5].mxu1  ;;  %v774_v22 = vpop.f32.mrb[6].mxu0 }
 0x101   :  { %v837_v23 = vadd.f32 %v836_v21, %v835_v18  ;;  %v838_v24 = vpop.f32.mrb[6].mxu1  ;;  %v775_v25 = vpop.f32.mrb[7].mxu0 }
 0x102   :  { %v513_v26 = vadd.f32 %v773_v20, %v1172_v2  ;;  %v776_v27 = vadd.f32 %v775_v25, %v774_v22  ;;  %v839_v28 = vpop.f32.mrb[7].mxu1 }
 0x103   :  { %v840_v29 = vadd.f32 %v839_v28, %v838_v24 }
 0x104   :  { %v610_v30 = vadd.f32 %v837_v23, %v513_v26  ;;  %v516_v31 = vadd.f32 %v776_v27, %v1172_v2 }
 0x106   :  { %666 = vst [vmem:[%s1241_s3 + $0x10] sm:$0xff] %v610_v30  ;;  %v613_v32 = vadd.f32 %v840_v29, %v516_v31  ;;  %v777_v33 = vpop.f32.mrb[8].mxu0 }
 0x107   :  { %v841_v34 = vpop.f32.mrb[8].mxu1  ;;  %v778_v35 = vpop.f32.mrb[9].mxu0 }
 0x108   :  { %667 = vst [vmem:[%s1241_s3 + $0x18] sm:$0xff] %v613_v32  ;;  %v779_v36 = vadd.f32 %v778_v35, %v777_v33  ;;  %v842_v37 = vpop.f32.mrb[9].mxu1  ;;  %v780_v38 = vpop.f32.mrb[10].mxu0 }
 0x109   :  { %v843_v39 = vadd.f32 %v842_v37, %v841_v34  ;;  %v844_v40 = vpop.f32.mrb[10].mxu1  ;;  %v781_v41 = vpop.f32.mrb[11].mxu0 }
 0x10a   :  { %v521_v42 = vadd.f32 %v779_v36, %v1172_v2  ;;  %v782_v43 = vadd.f32 %v781_v41, %v780_v38  ;;  %v845_v44 = vpop.f32.mrb[11].mxu1 }
 0x10b   :  { %v846_v45 = vadd.f32 %v845_v44, %v844_v40 }
 0x10c   :  { %v618_v46 = vadd.f32 %v843_v39, %v521_v42  ;;  %v524_v47 = vadd.f32 %v782_v43, %v1172_v2 }
 0x10e   :  { %668 = vst [vmem:[%s1241_s3 + $0x20] sm:$0xff] %v618_v46  ;;  %v621_v48 = vadd.f32 %v846_v45, %v524_v47  ;;  %v783_v49 = vpop.f32.mrb[12].mxu0 }
 0x10f   :  { %v847_v50 = vpop.f32.mrb[12].mxu1  ;;  %v784_v51 = vpop.f32.mrb[13].mxu0 }
 0x110   :  { %669 = vst [vmem:[%s1241_s3 + $0x28] sm:$0xff] %v621_v48  ;;  %v785_v52 = vadd.f32 %v784_v51, %v783_v49  ;;  %v848_v53 = vpop.f32.mrb[13].mxu1  ;;  %v786_v54 = vpop.f32.mrb[14].mxu0 }
 0x111   :  { %v849_v55 = vadd.f32 %v848_v53, %v847_v50  ;;  %v850_v56 = vpop.f32.mrb[14].mxu1  ;;  %v787_v57 = vpop.f32.mrb[15].mxu0 }
 0x112   :  { %v529_v58 = vadd.f32 %v785_v52, %v1172_v2  ;;  %v788_v59 = vadd.f32 %v787_v57, %v786_v54  ;;  %v851_v60 = vpop.f32.mrb[15].mxu1 }
 0x113   :  { %v852_v61 = vadd.f32 %v851_v60, %v850_v56 }
 0x114   :  { %v626_v62 = vadd.f32 %v849_v55, %v529_v58  ;;  %v532_v63 = vadd.f32 %v788_v59, %v1172_v2 }
 0x116   :  { %670 = vst [vmem:[%s1241_s3 + $0x30] sm:$0xff] %v626_v62  ;;  %v629_v0 = vadd.f32 %v852_v61, %v532_v63  ;;  %v789_v1 = vpop.f32.mrb[16].mxu0 }
 0x117   :  { %v853_v3 = vpop.f32.mrb[16].mxu1  ;;  %v790_v4 = vpop.f32.mrb[17].mxu0 }
 0x118   :  { %671 = vst [vmem:[%s1241_s3 + $0x38] sm:$0xff] %v629_v0  ;;  %v791_v5 = vadd.f32 %v790_v4, %v789_v1  ;;  %v854_v6 = vpop.f32.mrb[17].mxu1  ;;  %v792_v7 = vpop.f32.mrb[18].mxu0 }
 0x119   :  { %v855_v8 = vadd.f32 %v854_v6, %v853_v3  ;;  %v856_v9 = vpop.f32.mrb[18].mxu1  ;;  %v793_v10 = vpop.f32.mrb[19].mxu0 }
 0x11a   :  { %v537_v11 = vadd.f32 %v791_v5, %v1172_v2  ;;  %v794_v12 = vadd.f32 %v793_v10, %v792_v7  ;;  %v857_v13 = vpop.f32.mrb[19].mxu1 }
 0x11b   :  { %v858_v14 = vadd.f32 %v857_v13, %v856_v9 }
 0x11c   :  { %v634_v15 = vadd.f32 %v855_v8, %v537_v11  ;;  %v540_v16 = vadd.f32 %v794_v12, %v1172_v2 }
 0x11e   :  { %672 = vst [vmem:[%s1241_s3 + $0x40] sm:$0xff] %v634_v15  ;;  %v637_v17 = vadd.f32 %v858_v14, %v540_v16  ;;  %v795_v18 = vpop.f32.mrb[20].mxu0 }
 0x11f   :  { %v859_v19 = vpop.f32.mrb[20].mxu1  ;;  %v796_v20 = vpop.f32.mrb[21].mxu0 }
 0x120   :  { %673 = vst [vmem:[%s1241_s3 + $0x48] sm:$0xff] %v637_v17  ;;  %v797_v21 = vadd.f32 %v796_v20, %v795_v18  ;;  %v860_v22 = vpop.f32.mrb[21].mxu1  ;;  %v798_v23 = vpop.f32.mrb[22].mxu0 }
 0x121   :  { %v861_v24 = vadd.f32 %v860_v22, %v859_v19  ;;  %v862_v25 = vpop.f32.mrb[22].mxu1  ;;  %v799_v26 = vpop.f32.mrb[23].mxu0 }
 0x122   :  { %v545_v27 = vadd.f32 %v797_v21, %v1172_v2  ;;  %v800_v28 = vadd.f32 %v799_v26, %v798_v23  ;;  %v863_v29 = vpop.f32.mrb[23].mxu1 }
 0x123   :  { %v864_v30 = vadd.f32 %v863_v29, %v862_v25 }
 0x124   :  { %v642_v31 = vadd.f32 %v861_v24, %v545_v27  ;;  %v548_v32 = vadd.f32 %v800_v28, %v1172_v2 }
 0x126   :  { %674 = vst [vmem:[%s1241_s3 + $0x50] sm:$0xff] %v642_v31  ;;  %v645_v33 = vadd.f32 %v864_v30, %v548_v32  ;;  %v801_v34 = vpop.f32.mrb[24].mxu0 }
 0x127   :  { %v865_v35 = vpop.f32.mrb[24].mxu1  ;;  %v802_v36 = vpop.f32.mrb[25].mxu0 }
 0x128   :  { %675 = vst [vmem:[%s1241_s3 + $0x58] sm:$0xff] %v645_v33  ;;  %v803_v37 = vadd.f32 %v802_v36, %v801_v34  ;;  %v866_v38 = vpop.f32.mrb[25].mxu1  ;;  %v804_v39 = vpop.f32.mrb[26].mxu0 }
 0x129   :  { %v867_v40 = vadd.f32 %v866_v38, %v865_v35  ;;  %v868_v41 = vpop.f32.mrb[26].mxu1  ;;  %v805_v42 = vpop.f32.mrb[27].mxu0 }
 0x12a   :  { %v553_v43 = vadd.f32 %v803_v37, %v1172_v2  ;;  %v806_v44 = vadd.f32 %v805_v42, %v804_v39  ;;  %v869_v45 = vpop.f32.mrb[27].mxu1 }
 0x12b   :  { %v870_v46 = vadd.f32 %v869_v45, %v868_v41 }
 0x12c   :  { %v650_v47 = vadd.f32 %v867_v40, %v553_v43  ;;  %v556_v48 = vadd.f32 %v806_v44, %v1172_v2 }
 0x12e   :  { %676 = vst [vmem:[%s1241_s3 + $0x60] sm:$0xff] %v650_v47  ;;  %v653_v49 = vadd.f32 %v870_v46, %v556_v48  ;;  %v807_v50 = vpop.f32.mrb[28].mxu0 }
 0x12f   :  { %v871_v51 = vpop.f32.mrb[28].mxu1  ;;  %v808_v52 = vpop.f32.mrb[29].mxu0 }
 0x130   :  { %677 = vst [vmem:[%s1241_s3 + $0x68] sm:$0xff] %v653_v49  ;;  %v809_v53 = vadd.f32 %v808_v52, %v807_v50  ;;  %v872_v54 = vpop.f32.mrb[29].mxu1  ;;  %v810_v55 = vpop.f32.mrb[30].mxu0 }
 0x131   :  { %v873_v56 = vadd.f32 %v872_v54, %v871_v51  ;;  %v874_v57 = vpop.f32.mrb[30].mxu1  ;;  %v811_v58 = vpop.f32.mrb[31].mxu0 }
 0x132   :  { %v561_v59 = vadd.f32 %v809_v53, %v1172_v2  ;;  %v812_v60 = vadd.f32 %v811_v58, %v810_v55  ;;  %v875_v61 = vpop.f32.mrb[31].mxu1 }
 0x133   :  { %v876_v62 = vadd.f32 %v875_v61, %v874_v57 }
 0x134   :  { %v658_v63 = vadd.f32 %v873_v56, %v561_v59  ;;  %v564_v0 = vadd.f32 %v812_v60, %v1172_v2 }
 0x136   :  { %678 = vst [vmem:[%s1241_s3 + $0x70] sm:$0xff] %v658_v63  ;;  %v661_v1 = vadd.f32 %v876_v62, %v564_v0 }
 0x138   :  { %679 = vst [vmem:[%s1241_s3 + $0x78] sm:$0xff] %v661_v1 }

// kernel: _forward.59
= control target key start
LH: loop header
LB: loop body
LE: loop exit
PB: predicated region body
PF: predicated region fallthrough
CT: control target
= control target key end

     0   :  { %s1045_s12 = smov 0   ;;  %s1254_s0 = inlined_call_operand.vmem [shape: bf16[512,256], index: 0, kind: input, shape index: {}]   ;;  %s1255_s1 = inlined_call_operand.vmem [shape: bf16[256,4], index: 1, kind: input, shape index: {}]   ;;  %s1256_s2 = inlined_call_operand.vmem [shape: f32[1,4], index: 2, kind: input, shape index: {}]   ;;  %s1257_s3 = inlined_call_operand.vmem [shape: f32[512,4], index: 3, kind: output, shape index: {}]  }
   0x1 LB: > { %s755_s13 = sadd.s32 4294967295, %s1023_s12   ;;  %p759_p0 = scmp.ge.s32.totalorder %s1023_s12, 1  ;;  %s1023_s12 = sphi %s1045_s12, %s13_s12  }
   0x2   : > { %p139_p1 = scmp.lt.s32.totalorder %s1023_s12, 3 }
   0x4   : > { %p140_p2 = pnand %p759_p0, %p139_p1 }
   0x5   : > { %v953_v0 = vld [vmem:[%s1255_s1 + $0x40] sm:$0xff] (!%p140_p2)   ;;  %s760_s16 = sshll.u32 (!%p140_p2), %s755_s13, 5  ;;  %v955_v2 = vld [vmem:[%s1255_s1 + $0x48] sm:$0xff] (!%p140_p2)   ;;  %v957_v4 = vld [vmem:[%s1255_s1 + $0x50] sm:$0xff] (!%p140_p2)   ;;  %vm666_vm0 = vcmask (!%p140_p2), 31744  }
   0x6   : > { %143 = sbr.rel (%p140_p2) target bundleno = 314 (0x13a), region = 32  ;;  %v954_v1 = vld [vmem:[%s1255_s1] sm:$0xff] (!%p140_p2)   ;;  %817 = vmatprep.subr.bf16.mxu0 (!%p140_p2), %v953_v0  ;;  %929 = vmatprep.subr.bf16.mxu1 (!%p140_p2), %v953_v0  ;;  %v956_v3 = vld [vmem:[%s1255_s1 + $0x8] sm:$0xff] (!%p140_p2)   ;;  %p165_p3 = scmp.lt.s32.totalorder (!%p140_p2), %s760_s16, 63  ;;  %v958_v5 = vld [vmem:[%s1255_s1 + $0x10] sm:$0xff] (!%p140_p2)  }
   0x7   : > { %818 = vmatpush3.bf16.msra.mxu0 (!%p140_p2), %v954_v1  ;;  %937 = vmatpush3.bf16.msra.mxu1 (!%p140_p2), %v954_v1  ;;  %v959_v6 = vld [vmem:[%s1255_s1 + $0x58] sm:$0xff] (!%p140_p2)   ;;  %v961_v8 = vld [vmem:[%s1255_s1 + $0x60] sm:$0xff] (!%p140_p2)   ;;  %v963_v10 = vld [vmem:[%s1255_s1 + $0x68] sm:$0xff] (!%p140_p2)  }
   0x8   : > { %819 = vmatprep.subr.bf16.mxu0 (!%p140_p2), %v955_v2  ;;  %930 = vmatprep.subr.bf16.mxu1 (!%p140_p2), %v955_v2  ;;  %v960_v7 = vld [vmem:[%s1255_s1 + $0x18] sm:$0xff] (!%p140_p2)   ;;  %v962_v9 = vld [vmem:[%s1255_s1 + $0x20] sm:$0xff] (!%p140_p2)   ;;  %v964_v13 = vld [vmem:[%s1255_s1 + $0x28] sm:$0xff] (!%p140_p2)  }
   0x9   : > { %v965_v14 = vld [vmem:[%s1255_s1 + $0x70] sm:$0xff] (!%p140_p2)   ;;  %v967_v16 = vld [vmem:[%s1255_s1 + $0x78] sm:$0xff] (!%p140_p2)   ;;  %v1146_v50 = vld [vmem:[%s1256_s2] ss:$0 sm:$0xff] (!%p140_p2) }
   0xa   : > { %v966_v15 = vld [vmem:[%s1255_s1 + $0x30] sm:$0xff] (!%p140_p2)   ;;  %v968_v17 = vld [vmem:[%s1255_s1 + $0x38] sm:$0xff] (!%p140_p2)  }
   0xb   : > { %820 = vmatpush3.bf16.msra.mxu0 (!%p140_p2), %v956_v3  ;;  %938 = vmatpush3.bf16.msra.mxu1 (!%p140_p2), %v956_v3 }
   0xc   : > { %821 = vmatprep.subr.bf16.mxu0 (!%p140_p2), %v957_v4  ;;  %931 = vmatprep.subr.bf16.mxu1 (!%p140_p2), %v957_v4 }
   0xd   : > { %s1259_s16 = smov (!%p165_p3, %s760_s16), 63 }
   0xe   : > { %s816_s4 = sshll.u32 %s1259_s16, 3 }
   0xf   : > { %822 = vmatpush3.bf16.msra.mxu0 %v958_v5  ;;  %939 = vmatpush3.bf16.msra.mxu1 %v958_v5  ;;  %s1088_s9 = scalar_lea.vmem %s1254_s0, %s816_s4  ;;  %s1153_s30 = scalar_lea.vmem %s1257_s3, %s816_s4 }
  0x10   : > { %823 = vmatprep.subr.bf16.mxu0 %v959_v6  ;;  %932 = vmatprep.subr.bf16.mxu1 %v959_v6  ;;  %v971_v11 = vld [vmem:[%s1088_s9 + $0x4] ss:$8 sps:$4 sm:$0xff]   ;;  %v969_v18 = vld [vmem:[%s1088_s9] ss:$8 sps:$4 sm:$0xff]   ;;  %v975_v20 = vld [vmem:[%s1088_s9 + $0x14] ss:$8 sps:$4 sm:$0xff]  }
  0x11   : > { %v974_v12 = vld [vmem:[%s1088_s9 + $0x84] ss:$8 sps:$4 sm:$0xff]   ;;  %537 = vmatprep.mubr.bf16.mxu0 %v971_v11  ;;  %v972_v19 = vld [vmem:[%s1088_s9 + $0x80] ss:$8 sps:$4 sm:$0xff]   ;;  %v977_v21 = vld [vmem:[%s1088_s9 + $0x94] ss:$8 sps:$4 sm:$0xff]  }
  0x12   : > { %601 = vmatprep.mubr.bf16.mxu1 %v974_v12  ;;  %v979_v22 = vld [vmem:[%s1088_s9 + $0x10] ss:$8 sps:$4 sm:$0xff]   ;;  %v981_v24 = vld [vmem:[%s1088_s9 + $0x24] ss:$8 sps:$4 sm:$0xff]   ;;  %v985_v26 = vld [vmem:[%s1088_s9 + $0x20] ss:$8 sps:$4 sm:$0xff]  }
  0x13   : > { %824 = vmatpush3.bf16.msra.mxu0 %v960_v7  ;;  %940 = vmatpush3.bf16.msra.mxu1 %v960_v7  ;;  %v980_v23 = vld [vmem:[%s1088_s9 + $0x90] ss:$8 sps:$4 sm:$0xff]   ;;  %v983_v25 = vld [vmem:[%s1088_s9 + $0xa4] ss:$8 sps:$4 sm:$0xff]   ;;  %v986_v27 = vld [vmem:[%s1088_s9 + $0xa0] ss:$8 sps:$4 sm:$0xff]  }
  0x14   : > { %825 = vmatprep.subr.bf16.mxu0 %v961_v8  ;;  %933 = vmatprep.subr.bf16.mxu1 %v961_v8  ;;  %v987_v28 = vld [vmem:[%s1088_s9 + $0x34] ss:$8 sps:$4 sm:$0xff]   ;;  %v991_v30 = vld [vmem:[%s1088_s9 + $0x30] ss:$8 sps:$4 sm:$0xff]   ;;  %v993_v32 = vld [vmem:[%s1088_s9 + $0x44] ss:$8 sps:$4 sm:$0xff]  }
  0x15   : > { %v989_v29 = vld [vmem:[%s1088_s9 + $0xb4] ss:$8 sps:$4 sm:$0xff]   ;;  %v992_v31 = vld [vmem:[%s1088_s9 + $0xb0] ss:$8 sps:$4 sm:$0xff]   ;;  %v995_v33 = vld [vmem:[%s1088_s9 + $0xc4] ss:$8 sps:$4 sm:$0xff]  }
  0x16   : > { %v997_v34 = vld [vmem:[%s1088_s9 + $0x40] ss:$8 sps:$4 sm:$0xff]   ;;  %v999_v36 = vld [vmem:[%s1088_s9 + $0x54] ss:$8 sps:$4 sm:$0xff]   ;;  %v1003_v38 = vld [vmem:[%s1088_s9 + $0x50] ss:$8 sps:$4 sm:$0xff]  }
  0x17   : > { %826 = vmatpush3.bf16.msra.mxu0 %v962_v9  ;;  %941 = vmatpush3.bf16.msra.mxu1 %v962_v9  ;;  %v998_v35 = vld [vmem:[%s1088_s9 + $0xc0] ss:$8 sps:$4 sm:$0xff]   ;;  %v1001_v37 = vld [vmem:[%s1088_s9 + $0xd4] ss:$8 sps:$4 sm:$0xff]   ;;  %v1004_v39 = vld [vmem:[%s1088_s9 + $0xd0] ss:$8 sps:$4 sm:$0xff]  }
  0x18   : > { %827 = vmatprep.subr.bf16.mxu0 %v963_v10  ;;  %934 = vmatprep.subr.bf16.mxu1 %v963_v10  ;;  %v1005_v40 = vld [vmem:[%s1088_s9 + $0x64] ss:$8 sps:$4 sm:$0xff]   ;;  %v1009_v42 = vld [vmem:[%s1088_s9 + $0x60] ss:$8 sps:$4 sm:$0xff]   ;;  %v1011_v44 = vld [vmem:[%s1088_s9 + $0x74] ss:$8 sps:$4 sm:$0xff]  }
  0x19   : > { %v1007_v41 = vld [vmem:[%s1088_s9 + $0xe4] ss:$8 sps:$4 sm:$0xff]   ;;  %v1010_v43 = vld [vmem:[%s1088_s9 + $0xe0] ss:$8 sps:$4 sm:$0xff]   ;;  %v1013_v45 = vld [vmem:[%s1088_s9 + $0xf4] ss:$8 sps:$4 sm:$0xff]  }
  0x1a   : > { %v1015_v46 = vld [vmem:[%s1088_s9 + $0x70] ss:$8 sps:$4 sm:$0xff]  }
  0x1b   : > { %828 = vmatpush3.bf16.msra.mxu0 %v964_v13  ;;  %942 = vmatpush3.bf16.msra.mxu1 %v964_v13  ;;  %v1016_v47 = vld [vmem:[%s1088_s9 + $0xf0] ss:$8 sps:$4 sm:$0xff]  }
  0x1c   : > { %829 = vmatprep.subr.bf16.mxu0 %v965_v14  ;;  %935 = vmatprep.subr.bf16.mxu1 %v965_v14 }
  0x1f   : > { %830 = vmatpush3.bf16.msra.mxu0 %v966_v15  ;;  %943 = vmatpush3.bf16.msra.mxu1 %v966_v15 }
  0x20   : > { %831 = vmatprep.subr.bf16.mxu0 %v967_v16  ;;  %936 = vmatprep.subr.bf16.mxu1 %v967_v16 }
  0x23   : > { %832 = vmatpush3.bf16.msra.mxu0 %v968_v17  ;;  %944 = vmatpush3.bf16.msra.mxu1 %v968_v17 }
  0x26   : > { %538 = vmatmul.mubr.bf16.vlgmr.msra.gmra.mrb[0].mxu0 %v969_v18  ;;  %602 = vmatmul.mubr.bf16.vlgmr.msra.gmra.mrb[0].mxu1 %v972_v19 }
  0x27   : > { %545 = vmatprep.mubr.bf16.mxu0 %v975_v20  ;;  %609 = vmatprep.mubr.bf16.mxu1 %v977_v21 }
  0x2e   : > { %546 = vmatmul.mubr.bf16.gmra.mrb[4].mxu0 %v979_v22  ;;  %610 = vmatmul.mubr.bf16.gmra.mrb[4].mxu1 %v980_v23 }
  0x2f   : > { %553 = vmatprep.mubr.bf16.mxu0 %v981_v24  ;;  %617 = vmatprep.mubr.bf16.mxu1 %v983_v25 }
  0x36   : > { %554 = vmatmul.mubr.bf16.gmra.mrb[8].mxu0 %v985_v26  ;;  %618 = vmatmul.mubr.bf16.gmra.mrb[8].mxu1 %v986_v27 }
  0x37   : > { %561 = vmatprep.mubr.bf16.mxu0 %v987_v28  ;;  %625 = vmatprep.mubr.bf16.mxu1 %v989_v29 }
  0x3e   : > { %562 = vmatmul.mubr.bf16.gmra.mrb[12].mxu0 %v991_v30  ;;  %626 = vmatmul.mubr.bf16.gmra.mrb[12].mxu1 %v992_v31 }
  0x3f   : > { %569 = vmatprep.mubr.bf16.mxu0 %v993_v32  ;;  %633 = vmatprep.mubr.bf16.mxu1 %v995_v33 }
  0x46   : > { %570 = vmatmul.mubr.bf16.gmra.mrb[16].mxu0 %v997_v34  ;;  %634 = vmatmul.mubr.bf16.gmra.mrb[16].mxu1 %v998_v35 }
  0x47   : > { %577 = vmatprep.mubr.bf16.mxu0 %v999_v36  ;;  %641 = vmatprep.mubr.bf16.mxu1 %v1001_v37 }
  0x4e   : > { %578 = vmatmul.mubr.bf16.gmra.mrb[20].mxu0 %v1003_v38  ;;  %642 = vmatmul.mubr.bf16.gmra.mrb[20].mxu1 %v1004_v39 }
  0x4f   : > { %585 = vmatprep.mubr.bf16.mxu0 %v1005_v40  ;;  %649 = vmatprep.mubr.bf16.mxu1 %v1007_v41 }
  0x56   : > { %586 = vmatmul.mubr.bf16.gmra.mrb[24].mxu0 %v1009_v42  ;;  %650 = vmatmul.mubr.bf16.gmra.mrb[24].mxu1 %v1010_v43 }
  0x57   : > { %593 = vmatprep.mubr.bf16.mxu0 %v1011_v44  ;;  %657 = vmatprep.mubr.bf16.mxu1 %v1013_v45 }
  0x5e   : > { %594 = vmatmul.mubr.bf16.gmra.mrb[28].mxu0 %v1015_v46  ;;  %658 = vmatmul.mubr.bf16.gmra.mrb[28].mxu1 %v1016_v47 }
  0xf9   : > { %v833_v48 = vpop.f32.mrb[0].mxu0  ;;  %v881_v49 = vpop.f32.mrb[0].mxu1 }
  0xfa   : > { %v834_v51 = vpop.f32.mrb[1].mxu0  ;;  %v882_v52 = vpop.f32.mrb[1].mxu1 }
  0xfb   : > { %v835_v53 = vadd.f32 %v834_v51, %v833_v48  ;;  %v883_v54 = vadd.f32 %v882_v52, %v881_v49  ;;  %v836_v55 = vpop.f32.mrb[2].mxu0  ;;  %v884_v56 = vpop.f32.mrb[2].mxu1 }
  0xfc   : > { %v837_v57 = vpop.f32.mrb[3].mxu0  ;;  %v885_v58 = vpop.f32.mrb[3].mxu1 }
  0xfd   : > { %v540_v59 = vadd.f32 %v835_v53, %v1146_v50  ;;  %v604_v60 = vadd.f32 %v883_v54, %v1146_v50  ;;  %v838_v61 = vadd.f32 %v837_v57, %v836_v55  ;;  %v886_v62 = vadd.f32 %v885_v58, %v884_v56 }
  0xff   : > { %667 = vst.msk [vmem:[%s1153_s30] sm:$0xff] %vm666_vm0, %v540_v59  ;;  %683 = vst.msk [vmem:[%s1153_s30 + $0x80] sm:$0xff] %vm666_vm0, %v604_v60  ;;  %v543_v63 = vadd.f32 %v838_v61, %v1146_v50  ;;  %v607_v0 = vadd.f32 %v886_v62, %v1146_v50 }
 0x101   : > { %668 = vst.msk [vmem:[%s1153_s30 + $0x8] sm:$0xff] %vm666_vm0, %v543_v63  ;;  %684 = vst.msk [vmem:[%s1153_s30 + $0x88] sm:$0xff] %vm666_vm0, %v607_v0  ;;  %v839_v1 = vpop.f32.mrb[4].mxu0  ;;  %v887_v2 = vpop.f32.mrb[4].mxu1 }
 0x102   : > { %v840_v3 = vpop.f32.mrb[5].mxu0  ;;  %v888_v4 = vpop.f32.mrb[5].mxu1 }
 0x103   : > { %v841_v5 = vadd.f32 %v840_v3, %v839_v1  ;;  %v889_v6 = vadd.f32 %v888_v4, %v887_v2  ;;  %v842_v7 = vpop.f32.mrb[6].mxu0  ;;  %v890_v8 = vpop.f32.mrb[6].mxu1 }
 0x104   : > { %v843_v9 = vpop.f32.mrb[7].mxu0  ;;  %v891_v10 = vpop.f32.mrb[7].mxu1 }
 0x105   : > { %v548_v11 = vadd.f32 %v841_v5, %v1146_v50  ;;  %v612_v12 = vadd.f32 %v889_v6, %v1146_v50  ;;  %v844_v13 = vadd.f32 %v843_v9, %v842_v7  ;;  %v892_v14 = vadd.f32 %v891_v10, %v890_v8 }
 0x107   : > { %669 = vst.msk [vmem:[%s1153_s30 + $0x10] sm:$0xff] %vm666_vm0, %v548_v11  ;;  %685 = vst.msk [vmem:[%s1153_s30 + $0x90] sm:$0xff] %vm666_vm0, %v612_v12  ;;  %v551_v15 = vadd.f32 %v844_v13, %v1146_v50  ;;  %v615_v16 = vadd.f32 %v892_v14, %v1146_v50 }
 0x109   : > { %670 = vst.msk [vmem:[%s1153_s30 + $0x18] sm:$0xff] %vm666_vm0, %v551_v15  ;;  %686 = vst.msk [vmem:[%s1153_s30 + $0x98] sm:$0xff] %vm666_vm0, %v615_v16  ;;  %v845_v17 = vpop.f32.mrb[8].mxu0  ;;  %v893_v18 = vpop.f32.mrb[8].mxu1 }
 0x10a   : > { %v846_v19 = vpop.f32.mrb[9].mxu0  ;;  %v894_v20 = vpop.f32.mrb[9].mxu1 }
 0x10b   : > { %v847_v21 = vadd.f32 %v846_v19, %v845_v17  ;;  %v895_v22 = vadd.f32 %v894_v20, %v893_v18  ;;  %v848_v23 = vpop.f32.mrb[10].mxu0  ;;  %v896_v24 = vpop.f32.mrb[10].mxu1 }
 0x10c   : > { %v849_v25 = vpop.f32.mrb[11].mxu0  ;;  %v897_v26 = vpop.f32.mrb[11].mxu1 }
 0x10d   : > { %v556_v27 = vadd.f32 %v847_v21, %v1146_v50  ;;  %v620_v28 = vadd.f32 %v895_v22, %v1146_v50  ;;  %v850_v29 = vadd.f32 %v849_v25, %v848_v23  ;;  %v898_v30 = vadd.f32 %v897_v26, %v896_v24 }
 0x10f   : > { %671 = vst.msk [vmem:[%s1153_s30 + $0x20] sm:$0xff] %vm666_vm0, %v556_v27  ;;  %687 = vst.msk [vmem:[%s1153_s30 + $0xa0] sm:$0xff] %vm666_vm0, %v620_v28  ;;  %v559_v31 = vadd.f32 %v850_v29, %v1146_v50  ;;  %v623_v32 = vadd.f32 %v898_v30, %v1146_v50 }
 0x111   : > { %672 = vst.msk [vmem:[%s1153_s30 + $0x28] sm:$0xff] %vm666_vm0, %v559_v31  ;;  %688 = vst.msk [vmem:[%s1153_s30 + $0xa8] sm:$0xff] %vm666_vm0, %v623_v32  ;;  %v851_v33 = vpop.f32.mrb[12].mxu0  ;;  %v899_v34 = vpop.f32.mrb[12].mxu1 }
 0x112   : > { %v852_v35 = vpop.f32.mrb[13].mxu0  ;;  %v900_v36 = vpop.f32.mrb[13].mxu1 }
 0x113   : > { %v853_v37 = vadd.f32 %v852_v35, %v851_v33  ;;  %v901_v38 = vadd.f32 %v900_v36, %v899_v34  ;;  %v854_v39 = vpop.f32.mrb[14].mxu0  ;;  %v902_v40 = vpop.f32.mrb[14].mxu1 }
 0x114   : > { %v855_v41 = vpop.f32.mrb[15].mxu0  ;;  %v903_v42 = vpop.f32.mrb[15].mxu1 }
 0x115   : > { %v564_v43 = vadd.f32 %v853_v37, %v1146_v50  ;;  %v628_v44 = vadd.f32 %v901_v38, %v1146_v50  ;;  %v856_v45 = vadd.f32 %v855_v41, %v854_v39  ;;  %v904_v46 = vadd.f32 %v903_v42, %v902_v40 }
 0x117   : > { %673 = vst.msk [vmem:[%s1153_s30 + $0x30] sm:$0xff] %vm666_vm0, %v564_v43  ;;  %689 = vst.msk [vmem:[%s1153_s30 + $0xb0] sm:$0xff] %vm666_vm0, %v628_v44  ;;  %v567_v47 = vadd.f32 %v856_v45, %v1146_v50  ;;  %v631_v48 = vadd.f32 %v904_v46, %v1146_v50 }
 0x119   : > { %674 = vst.msk [vmem:[%s1153_s30 + $0x38] sm:$0xff] %vm666_vm0, %v567_v47  ;;  %690 = vst.msk [vmem:[%s1153_s30 + $0xb8] sm:$0xff] %vm666_vm0, %v631_v48  ;;  %v857_v49 = vpop.f32.mrb[16].mxu0  ;;  %v905_v51 = vpop.f32.mrb[16].mxu1 }
 0x11a   : > { %v858_v52 = vpop.f32.mrb[17].mxu0  ;;  %v906_v53 = vpop.f32.mrb[17].mxu1 }
 0x11b   : > { %v859_v54 = vadd.f32 %v858_v52, %v857_v49  ;;  %v907_v55 = vadd.f32 %v906_v53, %v905_v51  ;;  %v860_v56 = vpop.f32.mrb[18].mxu0  ;;  %v908_v57 = vpop.f32.mrb[18].mxu1 }
 0x11c   : > { %v861_v58 = vpop.f32.mrb[19].mxu0  ;;  %v909_v59 = vpop.f32.mrb[19].mxu1 }
 0x11d   : > { %v572_v60 = vadd.f32 %v859_v54, %v1146_v50  ;;  %v636_v61 = vadd.f32 %v907_v55, %v1146_v50  ;;  %v862_v62 = vadd.f32 %v861_v58, %v860_v56  ;;  %v910_v63 = vadd.f32 %v909_v59, %v908_v57 }
 0x11f   : > { %675 = vst.msk [vmem:[%s1153_s30 + $0x40] sm:$0xff] %vm666_vm0, %v572_v60  ;;  %691 = vst.msk [vmem:[%s1153_s30 + $0xc0] sm:$0xff] %vm666_vm0, %v636_v61  ;;  %v575_v0 = vadd.f32 %v862_v62, %v1146_v50  ;;  %v639_v1 = vadd.f32 %v910_v63, %v1146_v50 }
 0x121   : > { %676 = vst.msk [vmem:[%s1153_s30 + $0x48] sm:$0xff] %vm666_vm0, %v575_v0  ;;  %692 = vst.msk [vmem:[%s1153_s30 + $0xc8] sm:$0xff] %vm666_vm0, %v639_v1  ;;  %v863_v2 = vpop.f32.mrb[20].mxu0  ;;  %v911_v3 = vpop.f32.mrb[20].mxu1 }
 0x122   : > { %v864_v4 = vpop.f32.mrb[21].mxu0  ;;  %v912_v5 = vpop.f32.mrb[21].mxu1 }
 0x123   : > { %v865_v6 = vadd.f32 %v864_v4, %v863_v2  ;;  %v913_v7 = vadd.f32 %v912_v5, %v911_v3  ;;  %v866_v8 = vpop.f32.mrb[22].mxu0  ;;  %v914_v9 = vpop.f32.mrb[22].mxu1 }
 0x124   : > { %v867_v10 = vpop.f32.mrb[23].mxu0  ;;  %v915_v11 = vpop.f32.mrb[23].mxu1 }
 0x125   : > { %v580_v12 = vadd.f32 %v865_v6, %v1146_v50  ;;  %v644_v13 = vadd.f32 %v913_v7, %v1146_v50  ;;  %v868_v14 = vadd.f32 %v867_v10, %v866_v8  ;;  %v916_v15 = vadd.f32 %v915_v11, %v914_v9 }
 0x127   : > { %677 = vst.msk [vmem:[%s1153_s30 + $0x50] sm:$0xff] %vm666_vm0, %v580_v12  ;;  %693 = vst.msk [vmem:[%s1153_s30 + $0xd0] sm:$0xff] %vm666_vm0, %v644_v13  ;;  %v583_v16 = vadd.f32 %v868_v14, %v1146_v50  ;;  %v647_v17 = vadd.f32 %v916_v15, %v1146_v50 }
 0x129   : > { %678 = vst.msk [vmem:[%s1153_s30 + $0x58] sm:$0xff] %vm666_vm0, %v583_v16  ;;  %694 = vst.msk [vmem:[%s1153_s30 + $0xd8] sm:$0xff] %vm666_vm0, %v647_v17  ;;  %v869_v18 = vpop.f32.mrb[24].mxu0  ;;  %v917_v19 = vpop.f32.mrb[24].mxu1 }
 0x12a   : > { %v870_v20 = vpop.f32.mrb[25].mxu0  ;;  %v918_v21 = vpop.f32.mrb[25].mxu1 }
 0x12b   : > { %v871_v22 = vadd.f32 %v870_v20, %v869_v18  ;;  %v919_v23 = vadd.f32 %v918_v21, %v917_v19  ;;  %v872_v24 = vpop.f32.mrb[26].mxu0  ;;  %v920_v25 = vpop.f32.mrb[26].mxu1 }
 0x12c   : > { %v873_v26 = vpop.f32.mrb[27].mxu0  ;;  %v921_v27 = vpop.f32.mrb[27].mxu1 }
 0x12d   : > { %v588_v28 = vadd.f32 %v871_v22, %v1146_v50  ;;  %v652_v29 = vadd.f32 %v919_v23, %v1146_v50  ;;  %v874_v30 = vadd.f32 %v873_v26, %v872_v24  ;;  %v922_v31 = vadd.f32 %v921_v27, %v920_v25 }
 0x12f   : > { %679 = vst.msk [vmem:[%s1153_s30 + $0x60] sm:$0xff] %vm666_vm0, %v588_v28  ;;  %695 = vst.msk [vmem:[%s1153_s30 + $0xe0] sm:$0xff] %vm666_vm0, %v652_v29  ;;  %v591_v32 = vadd.f32 %v874_v30, %v1146_v50  ;;  %v655_v33 = vadd.f32 %v922_v31, %v1146_v50 }
 0x131   : > { %680 = vst.msk [vmem:[%s1153_s30 + $0x68] sm:$0xff] %vm666_vm0, %v591_v32  ;;  %696 = vst.msk [vmem:[%s1153_s30 + $0xe8] sm:$0xff] %vm666_vm0, %v655_v33  ;;  %v875_v34 = vpop.f32.mrb[28].mxu0  ;;  %v923_v35 = vpop.f32.mrb[28].mxu1 }
 0x132   : > { %v876_v36 = vpop.f32.mrb[29].mxu0  ;;  %v924_v37 = vpop.f32.mrb[29].mxu1 }
 0x133   : > { %v877_v38 = vadd.f32 %v876_v36, %v875_v34  ;;  %v925_v39 = vadd.f32 %v924_v37, %v923_v35  ;;  %v878_v40 = vpop.f32.mrb[30].mxu0  ;;  %v926_v41 = vpop.f32.mrb[30].mxu1 }
 0x134   : > { %v879_v42 = vpop.f32.mrb[31].mxu0  ;;  %v927_v43 = vpop.f32.mrb[31].mxu1 }
 0x135   : > { %v596_v44 = vadd.f32 %v877_v38, %v1146_v50  ;;  %v660_v45 = vadd.f32 %v925_v39, %v1146_v50  ;;  %v880_v46 = vadd.f32 %v879_v42, %v878_v40  ;;  %v928_v47 = vadd.f32 %v927_v43, %v926_v41 }
 0x137   : > { %681 = vst.msk [vmem:[%s1153_s30 + $0x70] sm:$0xff] %vm666_vm0, %v596_v44  ;;  %697 = vst.msk [vmem:[%s1153_s30 + $0xf0] sm:$0xff] %vm666_vm0, %v660_v45  ;;  %v599_v48 = vadd.f32 %v880_v46, %v1146_v50  ;;  %v663_v49 = vadd.f32 %v928_v47, %v1146_v50 }
 0x139   : > { %682 = vst.msk [vmem:[%s1153_s30 + $0x78] sm:$0xff] %vm666_vm0, %v599_v48  ;;  %698 = vst.msk [vmem:[%s1153_s30 + $0xf8] sm:$0xff] %vm666_vm0, %v663_v49 }
 0x13a PF: > { %s13_s12 = sadd.s32 1, %s1023_s12  }
 0x13b   : > { %p10_p4 = scmp.ge.s32.totalorder %s13_s12, 4  }
 0x13d   :  { %12 = sbr.rel (!%p10_p4) target bundleno = 1 (0x1), region = 62 }

// kernel: _forward.60
= control target key start
LH: loop header
LB: loop body
LE: loop exit
PB: predicated region body
PF: predicated region fallthrough
CT: control target
= control target key end

     0   :  { %s752_s16 = smov 0   ;;  %s1100_s0 = inlined_call_operand.vmem [shape: f32[2048,1], index: 0, kind: input, shape index: {}]   ;;  %s1101_s1 = inlined_call_operand.<no memory space> [shape: f32[1,1], index: 1, kind: input, shape index: {}]   ;;  %s1102_s3 = inlined_call_operand.vmem [shape: f32[2048,1], index: 3, kind: output, shape index: {}]   ;;  %s1103_s2 = inlined_call_operand.<no memory space> [shape: f32[1,1], index: 2, kind: input, shape index: {}]  }
   0x1   :  { %v8_v0 = vstv %s1101_s1  ;;  %v10_v1 = vstv %s1103_s2 }
   0x2   :  { %9 = vst [vmem:[#allocation2] sm:$0x1] %v8_v0  ;;  %11 = vst [vmem:[#allocation3] sm:$0x1] %v10_v1 }
   0x3 LB: > { %s697_s17 = sadd.s32 4294967295, %s724_s16   ;;  %p701_p0 = scmp.ge.s32.totalorder %s724_s16, 1  ;;  %s724_s16 = sphi %s752_s16, %s17_s16  }
   0x4   : > { %p142_p1 = scmp.lt.s32.totalorder %s724_s16, 5 }
   0x6   : > { %p143_p2 = pnand %p701_p0, %p142_p1 }
   0x7   : > { %s702_s1 = sshll.u32 (!%p143_p2), %s697_s17, 6  ;;  %vm576_vm0 = vcmask (!%p143_p2), 7168  }
   0x8   : > { %146 = sbr.rel (%p143_p2) target bundleno = 104 (0x68), region = 32  ;;  %p167_p3 = scmp.lt.s32.totalorder (!%p143_p2), %s702_s1, 255 }
   0x9   : > { %v763_v2 = vld [vmem:[#allocation2] ss:$0 sm:$0xff] (!%p143_p2)  ;;  %v770_v3 = vld [vmem:[#allocation3] ss:$0 sm:$0xff] (!%p143_p2) }
   0xf   : > { %s1105_s1 = smov (!%p167_p3, %s702_s1), 255 }
  0x10   : > { %s703_s2 = sshll.u32 %s1105_s1, 3 }
  0x11   : > { %s768_s20 = scalar_lea.vmem %s1100_s0, %s703_s2  ;;  %s797_s23 = scalar_lea.vmem %s1102_s3, %s703_s2 }
  0x12   : > { %v178_v4 = vld [vmem:[%s768_s20] sm:$0xff]  ;;  %v179_v5 = vld [vmem:[%s768_s20 + $0x8] sm:$0xff]  ;;  %v180_v6 = vld [vmem:[%s768_s20 + $0x10] sm:$0xff] }
  0x13   : > { %v249_v7 = vmul.f32 %v763_v2, %v178_v4  ;;  %v250_v8 = vmul.f32 %v763_v2, %v179_v5  ;;  %v251_v9 = vmul.f32 %v763_v2, %v180_v6  ;;  %v181_v10 = vld [vmem:[%s768_s20 + $0x18] sm:$0xff]  ;;  %v182_v11 = vld [vmem:[%s768_s20 + $0x20] sm:$0xff]  ;;  %v183_v12 = vld [vmem:[%s768_s20 + $0x28] sm:$0xff] }
  0x14   : > { %v252_v13 = vmul.f32 %v763_v2, %v181_v10  ;;  %v253_v14 = vmul.f32 %v763_v2, %v182_v11  ;;  %v254_v15 = vmul.f32 %v763_v2, %v183_v12  ;;  %v184_v16 = vld [vmem:[%s768_s20 + $0x30] sm:$0xff]  ;;  %v185_v17 = vld [vmem:[%s768_s20 + $0x38] sm:$0xff]  ;;  %v186_v30 = vld [vmem:[%s768_s20 + $0x40] sm:$0xff] }
  0x15   : > { %v320_v18 = vadd.f32 %v770_v3, %v249_v7  ;;  %v321_v19 = vadd.f32 %v770_v3, %v250_v8  ;;  %v322_v20 = vadd.f32 %v770_v3, %v251_v9  ;;  %v255_v21 = vmul.f32 %v763_v2, %v184_v16  ;;  %v187_v34 = vld [vmem:[%s768_s20 + $0x48] sm:$0xff]  ;;  %v188_v35 = vld [vmem:[%s768_s20 + $0x50] sm:$0xff]  ;;  %v189_v36 = vld [vmem:[%s768_s20 + $0x58] sm:$0xff] }
  0x16   : > { %v323_v22 = vadd.f32 %v770_v3, %v252_v13  ;;  %v324_v23 = vadd.f32 %v770_v3, %v253_v14  ;;  %v325_v24 = vadd.f32 %v770_v3, %v254_v15  ;;  %v256_v25 = vmul.f32 %v763_v2, %v185_v17  ;;  %v190_v48 = vld [vmem:[%s768_s20 + $0x60] sm:$0xff]  ;;  %v191_v49 = vld [vmem:[%s768_s20 + $0x68] sm:$0xff]  ;;  %v192_v62 = vld [vmem:[%s768_s20 + $0x70] sm:$0xff] }
  0x17   : > { %vm384_vm1 = vcmp.ge.f32.partialorder %v320_v18, 0.0  ;;  %v448_v26 = vmul.f32 0.25, %v320_v18  ;;  %vm385_vm2 = vcmp.ge.f32.partialorder %v321_v19, 0.0  ;;  %v449_v27 = vmul.f32 0.25, %v321_v19  ;;  %v193_v63 = vld [vmem:[%s768_s20 + $0x78] sm:$0xff]  ;;  %v194_v8 = vld [vmem:[%s768_s20 + $0x80] sm:$0xff] }
  0x18   : > { %vm386_vm3 = vcmp.ge.f32.partialorder %v322_v20, 0.0  ;;  %v450_v28 = vmul.f32 0.25, %v322_v20  ;;  %vm387_vm4 = vcmp.ge.f32.partialorder %v323_v22, 0.0  ;;  %v451_v29 = vmul.f32 0.25, %v323_v22  ;;  %v195_v9 = vld [vmem:[%s768_s20 + $0x88] sm:$0xff]  ;;  %v196_v14 = vld [vmem:[%s768_s20 + $0x90] sm:$0xff] }
  0x19   : > { %v512_v31 = vsel %vm384_vm1, %v320_v18, %v448_v26  ;;  %v513_v32 = vsel %vm385_vm2, %v321_v19, %v449_v27  ;;  %vm388_vm5 = vcmp.ge.f32.partialorder %v324_v23, 0.0  ;;  %v452_v33 = vmul.f32 0.25, %v324_v23  ;;  %v197_v15 = vld [vmem:[%s768_s20 + $0x98] sm:$0xff]  ;;  %v198_v26 = vld [vmem:[%s768_s20 + $0xa0] sm:$0xff]  ;;  %v199_v27 = vld [vmem:[%s768_s20 + $0xa8] sm:$0xff] }
  0x1a   : > { %577 = vst.msk [vmem:[%s797_s23] sm:$0xff] %vm576_vm0, %v512_v31  ;;  %578 = vst.msk [vmem:[%s797_s23 + $0x8] sm:$0xff] %vm576_vm0, %v513_v32  ;;  %v514_v37 = vsel %vm386_vm3, %v322_v20, %v450_v28  ;;  %v515_v38 = vsel %vm387_vm4, %v323_v22, %v451_v29  ;;  %vm389_vm6 = vcmp.ge.f32.partialorder %v325_v24, 0.0  ;;  %v453_v39 = vmul.f32 0.25, %v325_v24 }
  0x1b   : > { %579 = vst.msk [vmem:[%s797_s23 + $0x10] sm:$0xff] %vm576_vm0, %v514_v37  ;;  %580 = vst.msk [vmem:[%s797_s23 + $0x18] sm:$0xff] %vm576_vm0, %v515_v38  ;;  %v516_v40 = vsel %vm388_vm5, %v324_v23, %v452_v33  ;;  %v326_v41 = vadd.f32 %v770_v3, %v255_v21  ;;  %v327_v42 = vadd.f32 %v770_v3, %v256_v25 }
  0x1c   : > { %v257_v43 = vmul.f32 %v763_v2, %v186_v30  ;;  %581 = vst.msk [vmem:[%s797_s23 + $0x20] sm:$0xff] %vm576_vm0, %v516_v40  ;;  %v517_v44 = vsel %vm389_vm6, %v325_v24, %v453_v39  ;;  %v258_v45 = vmul.f32 %v763_v2, %v187_v34  ;;  %v259_v46 = vmul.f32 %v763_v2, %v188_v35  ;;  %v200_v40 = vld [vmem:[%s768_s20 + $0xb0] sm:$0xff] }
  0x1d   : > { %v260_v47 = vmul.f32 %v763_v2, %v189_v36  ;;  %582 = vst.msk [vmem:[%s797_s23 + $0x28] sm:$0xff] %vm576_vm0, %v517_v44  ;;  %vm390_vm7 = vcmp.ge.f32.partialorder %v326_v41, 0.0  ;;  %v454_v50 = vmul.f32 0.25, %v326_v41  ;;  %vm391_vm8 = vcmp.ge.f32.partialorder %v327_v42, 0.0 }
  0x1e   : > { %v455_v51 = vmul.f32 0.25, %v327_v42  ;;  %v328_v52 = vadd.f32 %v770_v3, %v257_v43  ;;  %v329_v53 = vadd.f32 %v770_v3, %v258_v45  ;;  %v330_v54 = vadd.f32 %v770_v3, %v259_v46 }
  0x1f   : > { %v331_v55 = vadd.f32 %v770_v3, %v260_v47  ;;  %v518_v56 = vsel %vm390_vm7, %v326_v41, %v454_v50  ;;  %v261_v58 = vmul.f32 %v763_v2, %v190_v48  ;;  %v262_v59 = vmul.f32 %v763_v2, %v191_v49  ;;  %v201_v41 = vld [vmem:[%s768_s20 + $0xb8] sm:$0xff]  ;;  %v202_v48 = vld [vmem:[%s768_s20 + $0xc0] sm:$0xff]  ;;  %v203_v49 = vld [vmem:[%s768_s20 + $0xc8] sm:$0xff] }
  0x20   : > { %v519_v57 = vsel %vm391_vm8, %v327_v42, %v455_v51  ;;  %583 = vst.msk [vmem:[%s797_s23 + $0x30] sm:$0xff] %vm576_vm0, %v518_v56  ;;  %vm392_vm9 = vcmp.ge.f32.partialorder %v328_v52, 0.0  ;;  %v456_v60 = vmul.f32 0.25, %v328_v52  ;;  %vm393_vm10 = vcmp.ge.f32.partialorder %v329_v53, 0.0 }
  0x21   : > { %584 = vst.msk [vmem:[%s797_s23 + $0x38] sm:$0xff] %vm576_vm0, %v519_v57  ;;  %v457_v61 = vmul.f32 0.25, %v329_v53  ;;  %vm394_vm11 = vcmp.ge.f32.partialorder %v330_v54, 0.0  ;;  %v458_v0 = vmul.f32 0.25, %v330_v54  ;;  %vm395_vm12 = vcmp.ge.f32.partialorder %v331_v55, 0.0 }
  0x22   : > { %v459_v1 = vmul.f32 0.25, %v331_v55  ;;  %v520_v4 = vsel %vm392_vm9, %v328_v52, %v456_v60  ;;  %v332_v6 = vadd.f32 %v770_v3, %v261_v58  ;;  %v333_v7 = vadd.f32 %v770_v3, %v262_v59 }
  0x23   : > { %v521_v5 = vsel %vm393_vm10, %v329_v53, %v457_v61  ;;  %585 = vst.msk [vmem:[%s797_s23 + $0x40] sm:$0xff] %vm576_vm0, %v520_v4  ;;  %v522_v10 = vsel %vm394_vm11, %v330_v54, %v458_v0  ;;  %v263_v12 = vmul.f32 %v763_v2, %v192_v62  ;;  %v264_v13 = vmul.f32 %v763_v2, %v193_v63  ;;  %v204_v54 = vld [vmem:[%s768_s20 + $0xd0] sm:$0xff]  ;;  %v206_v4 = vld [vmem:[%s768_s20 + $0xe0] sm:$0xff] }
  0x24   : > { %586 = vst.msk [vmem:[%s797_s23 + $0x48] sm:$0xff] %vm576_vm0, %v521_v5  ;;  %v523_v11 = vsel %vm395_vm12, %v331_v55, %v459_v1  ;;  %587 = vst.msk [vmem:[%s797_s23 + $0x50] sm:$0xff] %vm576_vm0, %v522_v10  ;;  %vm396_vm13 = vcmp.ge.f32.partialorder %v332_v6, 0.0  ;;  %v460_v16 = vmul.f32 0.25, %v332_v6  ;;  %vm397_vm14 = vcmp.ge.f32.partialorder %v333_v7, 0.0  ;;  %v205_v55 = vld [vmem:[%s768_s20 + $0xd8] sm:$0xff] }
  0x25   : > { %588 = vst.msk [vmem:[%s797_s23 + $0x58] sm:$0xff] %vm576_vm0, %v523_v11  ;;  %v461_v17 = vmul.f32 0.25, %v333_v7  ;;  %v334_v18 = vadd.f32 %v770_v3, %v263_v12  ;;  %v335_v19 = vadd.f32 %v770_v3, %v264_v13  ;;  %v265_v20 = vmul.f32 %v763_v2, %v194_v8  ;;  %v207_v5 = vld [vmem:[%s768_s20 + $0xe8] sm:$0xff] }
  0x26   : > { %v266_v21 = vmul.f32 %v763_v2, %v195_v9  ;;  %v524_v22 = vsel %vm396_vm13, %v332_v6, %v460_v16  ;;  %v267_v24 = vmul.f32 %v763_v2, %v196_v14  ;;  %v268_v25 = vmul.f32 %v763_v2, %v197_v15 }
  0x27   : > { %v525_v23 = vsel %vm397_vm14, %v333_v7, %v461_v17  ;;  %589 = vst.msk [vmem:[%s797_s23 + $0x60] sm:$0xff] %vm576_vm0, %v524_v22  ;;  %vm398_vm15 = vcmp.ge.f32.partialorder %v334_v18, 0.0  ;;  %v462_v28 = vmul.f32 0.25, %v334_v18  ;;  %vm399_vm1 = vcmp.ge.f32.partialorder %v335_v19, 0.0 }
  0x28   : > { %590 = vst.msk [vmem:[%s797_s23 + $0x68] sm:$0xff] %vm576_vm0, %v525_v23  ;;  %v463_v29 = vmul.f32 0.25, %v335_v19  ;;  %v336_v30 = vadd.f32 %v770_v3, %v265_v20  ;;  %v337_v31 = vadd.f32 %v770_v3, %v266_v21  ;;  %v338_v32 = vadd.f32 %v770_v3, %v267_v24 }
  0x29   : > { %v339_v33 = vadd.f32 %v770_v3, %v268_v25  ;;  %v526_v34 = vsel %vm398_vm15, %v334_v18, %v462_v28  ;;  %v269_v36 = vmul.f32 %v763_v2, %v198_v26  ;;  %v270_v37 = vmul.f32 %v763_v2, %v199_v27  ;;  %v208_v18 = vld [vmem:[%s768_s20 + $0xf0] sm:$0xff]  ;;  %v210_v26 = vld [vmem:[%s768_s20 + $0x100] sm:$0xff]  ;;  %v211_v27 = vld [vmem:[%s768_s20 + $0x108] sm:$0xff] }
  0x2a   : > { %v527_v35 = vsel %vm399_vm1, %v335_v19, %v463_v29  ;;  %591 = vst.msk [vmem:[%s797_s23 + $0x70] sm:$0xff] %vm576_vm0, %v526_v34  ;;  %vm400_vm2 = vcmp.ge.f32.partialorder %v336_v30, 0.0  ;;  %v464_v38 = vmul.f32 0.25, %v336_v30  ;;  %vm401_vm3 = vcmp.ge.f32.partialorder %v337_v31, 0.0  ;;  %v209_v19 = vld [vmem:[%s768_s20 + $0xf8] sm:$0xff] }
  0x2b   : > { %592 = vst.msk [vmem:[%s797_s23 + $0x78] sm:$0xff] %vm576_vm0, %v527_v35  ;;  %v465_v39 = vmul.f32 0.25, %v337_v31  ;;  %vm402_vm4 = vcmp.ge.f32.partialorder %v338_v32, 0.0  ;;  %v466_v42 = vmul.f32 0.25, %v338_v32  ;;  %vm403_vm5 = vcmp.ge.f32.partialorder %v339_v33, 0.0 }
  0x2c   : > { %v467_v43 = vmul.f32 0.25, %v339_v33  ;;  %v528_v44 = vsel %vm400_vm2, %v336_v30, %v464_v38  ;;  %v340_v46 = vadd.f32 %v770_v3, %v269_v36  ;;  %v341_v47 = vadd.f32 %v770_v3, %v270_v37 }
  0x2d   : > { %v529_v45 = vsel %vm401_vm3, %v337_v31, %v465_v39  ;;  %593 = vst.msk [vmem:[%s797_s23 + $0x80] sm:$0xff] %vm576_vm0, %v528_v44  ;;  %v530_v50 = vsel %vm402_vm4, %v338_v32, %v466_v42  ;;  %v271_v52 = vmul.f32 %v763_v2, %v200_v40  ;;  %v272_v53 = vmul.f32 %v763_v2, %v201_v41  ;;  %v212_v32 = vld [vmem:[%s768_s20 + $0x110] sm:$0xff]  ;;  %v214_v44 = vld [vmem:[%s768_s20 + $0x120] sm:$0xff] }
  0x2e   : > { %594 = vst.msk [vmem:[%s797_s23 + $0x88] sm:$0xff] %vm576_vm0, %v529_v45  ;;  %v531_v51 = vsel %vm403_vm5, %v339_v33, %v467_v43  ;;  %595 = vst.msk [vmem:[%s797_s23 + $0x90] sm:$0xff] %vm576_vm0, %v530_v50  ;;  %vm404_vm6 = vcmp.ge.f32.partialorder %v340_v46, 0.0  ;;  %v468_v56 = vmul.f32 0.25, %v340_v46  ;;  %vm405_vm7 = vcmp.ge.f32.partialorder %v341_v47, 0.0  ;;  %v213_v33 = vld [vmem:[%s768_s20 + $0x118] sm:$0xff] }
  0x2f   : > { %596 = vst.msk [vmem:[%s797_s23 + $0x98] sm:$0xff] %vm576_vm0, %v531_v51  ;;  %v469_v57 = vmul.f32 0.25, %v341_v47  ;;  %v342_v58 = vadd.f32 %v770_v3, %v271_v52  ;;  %v343_v59 = vadd.f32 %v770_v3, %v272_v53  ;;  %v273_v60 = vmul.f32 %v763_v2, %v202_v48  ;;  %v215_v45 = vld [vmem:[%s768_s20 + $0x128] sm:$0xff] }
  0x30   : > { %v274_v61 = vmul.f32 %v763_v2, %v203_v49  ;;  %v532_v62 = vsel %vm404_vm6, %v340_v46, %v468_v56  ;;  %v275_v0 = vmul.f32 %v763_v2, %v204_v54  ;;  %v276_v1 = vmul.f32 %v763_v2, %v205_v55 }
  0x31   : > { %v533_v63 = vsel %vm405_vm7, %v341_v47, %v469_v57  ;;  %597 = vst.msk [vmem:[%s797_s23 + $0xa0] sm:$0xff] %vm576_vm0, %v532_v62  ;;  %vm406_vm8 = vcmp.ge.f32.partialorder %v342_v58, 0.0  ;;  %v470_v6 = vmul.f32 0.25, %v342_v58  ;;  %vm407_vm9 = vcmp.ge.f32.partialorder %v343_v59, 0.0 }
  0x32   : > { %598 = vst.msk [vmem:[%s797_s23 + $0xa8] sm:$0xff] %vm576_vm0, %v533_v63  ;;  %v471_v7 = vmul.f32 0.25, %v343_v59  ;;  %v344_v8 = vadd.f32 %v770_v3, %v273_v60  ;;  %v345_v9 = vadd.f32 %v770_v3, %v274_v61  ;;  %v346_v10 = vadd.f32 %v770_v3, %v275_v0 }
  0x33   : > { %v347_v11 = vadd.f32 %v770_v3, %v276_v1  ;;  %v534_v12 = vsel %vm406_vm8, %v342_v58, %v470_v6  ;;  %v277_v14 = vmul.f32 %v763_v2, %v206_v4  ;;  %v278_v15 = vmul.f32 %v763_v2, %v207_v5  ;;  %v216_v58 = vld [vmem:[%s768_s20 + $0x130] sm:$0xff]  ;;  %v218_v4 = vld [vmem:[%s768_s20 + $0x140] sm:$0xff]  ;;  %v219_v5 = vld [vmem:[%s768_s20 + $0x148] sm:$0xff] }
  0x34   : > { %v535_v13 = vsel %vm407_vm9, %v343_v59, %v471_v7  ;;  %599 = vst.msk [vmem:[%s797_s23 + $0xb0] sm:$0xff] %vm576_vm0, %v534_v12  ;;  %vm408_vm10 = vcmp.ge.f32.partialorder %v344_v8, 0.0  ;;  %v472_v16 = vmul.f32 0.25, %v344_v8  ;;  %vm409_vm11 = vcmp.ge.f32.partialorder %v345_v9, 0.0  ;;  %v217_v59 = vld [vmem:[%s768_s20 + $0x138] sm:$0xff] }
  0x35   : > { %600 = vst.msk [vmem:[%s797_s23 + $0xb8] sm:$0xff] %vm576_vm0, %v535_v13  ;;  %v473_v17 = vmul.f32 0.25, %v345_v9  ;;  %vm410_vm12 = vcmp.ge.f32.partialorder %v346_v10, 0.0  ;;  %v474_v20 = vmul.f32 0.25, %v346_v10  ;;  %vm411_vm13 = vcmp.ge.f32.partialorder %v347_v11, 0.0 }
  0x36   : > { %v475_v21 = vmul.f32 0.25, %v347_v11  ;;  %v536_v22 = vsel %vm408_vm10, %v344_v8, %v472_v16  ;;  %v348_v24 = vadd.f32 %v770_v3, %v277_v14  ;;  %v349_v25 = vadd.f32 %v770_v3, %v278_v15 }
  0x37   : > { %v537_v23 = vsel %vm409_vm11, %v345_v9, %v473_v17  ;;  %601 = vst.msk [vmem:[%s797_s23 + $0xc0] sm:$0xff] %vm576_vm0, %v536_v22  ;;  %v538_v28 = vsel %vm410_vm12, %v346_v10, %v474_v20  ;;  %v279_v30 = vmul.f32 %v763_v2, %v208_v18  ;;  %v280_v31 = vmul.f32 %v763_v2, %v209_v19  ;;  %v220_v10 = vld [vmem:[%s768_s20 + $0x150] sm:$0xff]  ;;  %v222_v22 = vld [vmem:[%s768_s20 + $0x160] sm:$0xff] }
  0x38   : > { %602 = vst.msk [vmem:[%s797_s23 + $0xc8] sm:$0xff] %vm576_vm0, %v537_v23  ;;  %v539_v29 = vsel %vm411_vm13, %v347_v11, %v475_v21  ;;  %603 = vst.msk [vmem:[%s797_s23 + $0xd0] sm:$0xff] %vm576_vm0, %v538_v28  ;;  %vm412_vm14 = vcmp.ge.f32.partialorder %v348_v24, 0.0  ;;  %v476_v34 = vmul.f32 0.25, %v348_v24  ;;  %vm413_vm15 = vcmp.ge.f32.partialorder %v349_v25, 0.0  ;;  %v221_v11 = vld [vmem:[%s768_s20 + $0x158] sm:$0xff] }
  0x39   : > { %604 = vst.msk [vmem:[%s797_s23 + $0xd8] sm:$0xff] %vm576_vm0, %v539_v29  ;;  %v477_v35 = vmul.f32 0.25, %v349_v25  ;;  %v350_v36 = vadd.f32 %v770_v3, %v279_v30  ;;  %v351_v37 = vadd.f32 %v770_v3, %v280_v31  ;;  %v281_v38 = vmul.f32 %v763_v2, %v210_v26  ;;  %v223_v23 = vld [vmem:[%s768_s20 + $0x168] sm:$0xff] }
  0x3a   : > { %v282_v39 = vmul.f32 %v763_v2, %v211_v27  ;;  %v540_v40 = vsel %vm412_vm14, %v348_v24, %v476_v34  ;;  %v283_v42 = vmul.f32 %v763_v2, %v212_v32  ;;  %v284_v43 = vmul.f32 %v763_v2, %v213_v33 }
  0x3b   : > { %v541_v41 = vsel %vm413_vm15, %v349_v25, %v477_v35  ;;  %605 = vst.msk [vmem:[%s797_s23 + $0xe0] sm:$0xff] %vm576_vm0, %v540_v40  ;;  %vm414_vm1 = vcmp.ge.f32.partialorder %v350_v36, 0.0  ;;  %v478_v46 = vmul.f32 0.25, %v350_v36  ;;  %vm415_vm2 = vcmp.ge.f32.partialorder %v351_v37, 0.0 }
  0x3c   : > { %606 = vst.msk [vmem:[%s797_s23 + $0xe8] sm:$0xff] %vm576_vm0, %v541_v41  ;;  %v479_v47 = vmul.f32 0.25, %v351_v37  ;;  %v352_v48 = vadd.f32 %v770_v3, %v281_v38  ;;  %v353_v49 = vadd.f32 %v770_v3, %v282_v39  ;;  %v354_v50 = vadd.f32 %v770_v3, %v283_v42 }
  0x3d   : > { %v355_v51 = vadd.f32 %v770_v3, %v284_v43  ;;  %v542_v52 = vsel %vm414_vm1, %v350_v36, %v478_v46  ;;  %v285_v54 = vmul.f32 %v763_v2, %v214_v44  ;;  %v286_v55 = vmul.f32 %v763_v2, %v215_v45  ;;  %v224_v36 = vld [vmem:[%s768_s20 + $0x170] sm:$0xff]  ;;  %v226_v44 = vld [vmem:[%s768_s20 + $0x180] sm:$0xff]  ;;  %v227_v45 = vld [vmem:[%s768_s20 + $0x188] sm:$0xff] }
  0x3e   : > { %v543_v53 = vsel %vm415_vm2, %v351_v37, %v479_v47  ;;  %607 = vst.msk [vmem:[%s797_s23 + $0xf0] sm:$0xff] %vm576_vm0, %v542_v52  ;;  %vm416_vm3 = vcmp.ge.f32.partialorder %v352_v48, 0.0  ;;  %v480_v56 = vmul.f32 0.25, %v352_v48  ;;  %vm417_vm4 = vcmp.ge.f32.partialorder %v353_v49, 0.0  ;;  %v225_v37 = vld [vmem:[%s768_s20 + $0x178] sm:$0xff] }
  0x3f   : > { %608 = vst.msk [vmem:[%s797_s23 + $0xf8] sm:$0xff] %vm576_vm0, %v543_v53  ;;  %v481_v57 = vmul.f32 0.25, %v353_v49  ;;  %vm418_vm5 = vcmp.ge.f32.partialorder %v354_v50, 0.0  ;;  %v482_v60 = vmul.f32 0.25, %v354_v50  ;;  %vm419_vm6 = vcmp.ge.f32.partialorder %v355_v51, 0.0 }
  0x40   : > { %v483_v61 = vmul.f32 0.25, %v355_v51  ;;  %v544_v62 = vsel %vm416_vm3, %v352_v48, %v480_v56  ;;  %v356_v0 = vadd.f32 %v770_v3, %v285_v54  ;;  %v357_v1 = vadd.f32 %v770_v3, %v286_v55 }
  0x41   : > { %v545_v63 = vsel %vm417_vm4, %v353_v49, %v481_v57  ;;  %609 = vst.msk [vmem:[%s797_s23 + $0x100] sm:$0xff] %vm576_vm0, %v544_v62  ;;  %v546_v6 = vsel %vm418_vm5, %v354_v50, %v482_v60  ;;  %v287_v8 = vmul.f32 %v763_v2, %v216_v58  ;;  %v288_v9 = vmul.f32 %v763_v2, %v217_v59  ;;  %v228_v50 = vld [vmem:[%s768_s20 + $0x190] sm:$0xff]  ;;  %v230_v62 = vld [vmem:[%s768_s20 + $0x1a0] sm:$0xff] }
  0x42   : > { %610 = vst.msk [vmem:[%s797_s23 + $0x108] sm:$0xff] %vm576_vm0, %v545_v63  ;;  %v547_v7 = vsel %vm419_vm6, %v355_v51, %v483_v61  ;;  %611 = vst.msk [vmem:[%s797_s23 + $0x110] sm:$0xff] %vm576_vm0, %v546_v6  ;;  %vm420_vm7 = vcmp.ge.f32.partialorder %v356_v0, 0.0  ;;  %v484_v12 = vmul.f32 0.25, %v356_v0  ;;  %vm421_vm8 = vcmp.ge.f32.partialorder %v357_v1, 0.0  ;;  %v229_v51 = vld [vmem:[%s768_s20 + $0x198] sm:$0xff] }
  0x43   : > { %612 = vst.msk [vmem:[%s797_s23 + $0x118] sm:$0xff] %vm576_vm0, %v547_v7  ;;  %v485_v13 = vmul.f32 0.25, %v357_v1  ;;  %v358_v14 = vadd.f32 %v770_v3, %v287_v8  ;;  %v359_v15 = vadd.f32 %v770_v3, %v288_v9  ;;  %v289_v16 = vmul.f32 %v763_v2, %v218_v4  ;;  %v231_v63 = vld [vmem:[%s768_s20 + $0x1a8] sm:$0xff] }
  0x44   : > { %v290_v17 = vmul.f32 %v763_v2, %v219_v5  ;;  %v548_v18 = vsel %vm420_vm7, %v356_v0, %v484_v12  ;;  %v291_v20 = vmul.f32 %v763_v2, %v220_v10  ;;  %v292_v21 = vmul.f32 %v763_v2, %v221_v11 }
  0x45   : > { %v549_v19 = vsel %vm421_vm8, %v357_v1, %v485_v13  ;;  %613 = vst.msk [vmem:[%s797_s23 + $0x120] sm:$0xff] %vm576_vm0, %v548_v18  ;;  %vm422_vm9 = vcmp.ge.f32.partialorder %v358_v14, 0.0  ;;  %v486_v24 = vmul.f32 0.25, %v358_v14  ;;  %vm423_vm10 = vcmp.ge.f32.partialorder %v359_v15, 0.0 }
  0x46   : > { %614 = vst.msk [vmem:[%s797_s23 + $0x128] sm:$0xff] %vm576_vm0, %v549_v19  ;;  %v487_v25 = vmul.f32 0.25, %v359_v15  ;;  %v360_v26 = vadd.f32 %v770_v3, %v289_v16  ;;  %v361_v27 = vadd.f32 %v770_v3, %v290_v17  ;;  %v362_v28 = vadd.f32 %v770_v3, %v291_v20 }
  0x47   : > { %v363_v29 = vadd.f32 %v770_v3, %v292_v21  ;;  %v550_v30 = vsel %vm422_vm9, %v358_v14, %v486_v24  ;;  %v293_v32 = vmul.f32 %v763_v2, %v222_v22  ;;  %v294_v33 = vmul.f32 %v763_v2, %v223_v23  ;;  %v232_v14 = vld [vmem:[%s768_s20 + $0x1b0] sm:$0xff]  ;;  %v234_v22 = vld [vmem:[%s768_s20 + $0x1c0] sm:$0xff]  ;;  %v235_v23 = vld [vmem:[%s768_s20 + $0x1c8] sm:$0xff] }
  0x48   : > { %v551_v31 = vsel %vm423_vm10, %v359_v15, %v487_v25  ;;  %615 = vst.msk [vmem:[%s797_s23 + $0x130] sm:$0xff] %vm576_vm0, %v550_v30  ;;  %vm424_vm11 = vcmp.ge.f32.partialorder %v360_v26, 0.0  ;;  %v488_v34 = vmul.f32 0.25, %v360_v26  ;;  %vm425_vm12 = vcmp.ge.f32.partialorder %v361_v27, 0.0  ;;  %v233_v15 = vld [vmem:[%s768_s20 + $0x1b8] sm:$0xff] }
  0x49   : > { %616 = vst.msk [vmem:[%s797_s23 + $0x138] sm:$0xff] %vm576_vm0, %v551_v31  ;;  %v489_v35 = vmul.f32 0.25, %v361_v27  ;;  %vm426_vm13 = vcmp.ge.f32.partialorder %v362_v28, 0.0  ;;  %v490_v38 = vmul.f32 0.25, %v362_v28  ;;  %vm427_vm14 = vcmp.ge.f32.partialorder %v363_v29, 0.0 }
  0x4a   : > { %v491_v39 = vmul.f32 0.25, %v363_v29  ;;  %v552_v40 = vsel %vm424_vm11, %v360_v26, %v488_v34  ;;  %v364_v42 = vadd.f32 %v770_v3, %v293_v32  ;;  %v365_v43 = vadd.f32 %v770_v3, %v294_v33 }
  0x4b   : > { %v553_v41 = vsel %vm425_vm12, %v361_v27, %v489_v35  ;;  %617 = vst.msk [vmem:[%s797_s23 + $0x140] sm:$0xff] %vm576_vm0, %v552_v40  ;;  %v554_v46 = vsel %vm426_vm13, %v362_v28, %v490_v38  ;;  %v295_v48 = vmul.f32 %v763_v2, %v224_v36  ;;  %v296_v49 = vmul.f32 %v763_v2, %v225_v37  ;;  %v236_v28 = vld [vmem:[%s768_s20 + $0x1d0] sm:$0xff]  ;;  %v238_v40 = vld [vmem:[%s768_s20 + $0x1e0] sm:$0xff] }
  0x4c   : > { %618 = vst.msk [vmem:[%s797_s23 + $0x148] sm:$0xff] %vm576_vm0, %v553_v41  ;;  %v555_v47 = vsel %vm427_vm14, %v363_v29, %v491_v39  ;;  %619 = vst.msk [vmem:[%s797_s23 + $0x150] sm:$0xff] %vm576_vm0, %v554_v46  ;;  %vm428_vm15 = vcmp.ge.f32.partialorder %v364_v42, 0.0  ;;  %v492_v52 = vmul.f32 0.25, %v364_v42  ;;  %vm429_vm1 = vcmp.ge.f32.partialorder %v365_v43, 0.0  ;;  %v237_v29 = vld [vmem:[%s768_s20 + $0x1d8] sm:$0xff] }
  0x4d   : > { %620 = vst.msk [vmem:[%s797_s23 + $0x158] sm:$0xff] %vm576_vm0, %v555_v47  ;;  %v493_v53 = vmul.f32 0.25, %v365_v43  ;;  %v366_v54 = vadd.f32 %v770_v3, %v295_v48  ;;  %v367_v55 = vadd.f32 %v770_v3, %v296_v49  ;;  %v297_v56 = vmul.f32 %v763_v2, %v226_v44  ;;  %v239_v41 = vld [vmem:[%s768_s20 + $0x1e8] sm:$0xff] }
  0x4e   : > { %v298_v57 = vmul.f32 %v763_v2, %v227_v45  ;;  %v556_v58 = vsel %vm428_vm15, %v364_v42, %v492_v52  ;;  %v299_v60 = vmul.f32 %v763_v2, %v228_v50  ;;  %v300_v61 = vmul.f32 %v763_v2, %v229_v51 }
  0x4f   : > { %v557_v59 = vsel %vm429_vm1, %v365_v43, %v493_v53  ;;  %621 = vst.msk [vmem:[%s797_s23 + $0x160] sm:$0xff] %vm576_vm0, %v556_v58  ;;  %vm430_vm2 = vcmp.ge.f32.partialorder %v366_v54, 0.0  ;;  %v494_v0 = vmul.f32 0.25, %v366_v54  ;;  %vm431_vm3 = vcmp.ge.f32.partialorder %v367_v55, 0.0 }
  0x50   : > { %622 = vst.msk [vmem:[%s797_s23 + $0x168] sm:$0xff] %vm576_vm0, %v557_v59  ;;  %v495_v1 = vmul.f32 0.25, %v367_v55  ;;  %v368_v4 = vadd.f32 %v770_v3, %v297_v56  ;;  %v369_v5 = vadd.f32 %v770_v3, %v298_v57  ;;  %v370_v6 = vadd.f32 %v770_v3, %v299_v60 }
  0x51   : > { %v371_v7 = vadd.f32 %v770_v3, %v300_v61  ;;  %v558_v8 = vsel %vm430_vm2, %v366_v54, %v494_v0  ;;  %v301_v10 = vmul.f32 %v763_v2, %v230_v62  ;;  %v302_v11 = vmul.f32 %v763_v2, %v231_v63  ;;  %v240_v54 = vld [vmem:[%s768_s20 + $0x1f0] sm:$0xff] }
  0x52   : > { %v559_v9 = vsel %vm431_vm3, %v367_v55, %v495_v1  ;;  %623 = vst.msk [vmem:[%s797_s23 + $0x170] sm:$0xff] %vm576_vm0, %v558_v8  ;;  %vm432_vm4 = vcmp.ge.f32.partialorder %v368_v4, 0.0  ;;  %v496_v12 = vmul.f32 0.25, %v368_v4  ;;  %vm433_vm5 = vcmp.ge.f32.partialorder %v369_v5, 0.0  ;;  %v241_v55 = vld [vmem:[%s768_s20 + $0x1f8] sm:$0xff] }
  0x53   : > { %624 = vst.msk [vmem:[%s797_s23 + $0x178] sm:$0xff] %vm576_vm0, %v559_v9  ;;  %v497_v13 = vmul.f32 0.25, %v369_v5  ;;  %vm434_vm6 = vcmp.ge.f32.partialorder %v370_v6, 0.0  ;;  %v498_v16 = vmul.f32 0.25, %v370_v6  ;;  %vm435_vm7 = vcmp.ge.f32.partialorder %v371_v7, 0.0 }
  0x54   : > { %v499_v17 = vmul.f32 0.25, %v371_v7  ;;  %v560_v18 = vsel %vm432_vm4, %v368_v4, %v496_v12  ;;  %v372_v20 = vadd.f32 %v770_v3, %v301_v10  ;;  %v373_v21 = vadd.f32 %v770_v3, %v302_v11 }
  0x55   : > { %v561_v19 = vsel %vm433_vm5, %v369_v5, %v497_v13  ;;  %625 = vst.msk [vmem:[%s797_s23 + $0x180] sm:$0xff] %vm576_vm0, %v560_v18  ;;  %v562_v24 = vsel %vm434_vm6, %v370_v6, %v498_v16  ;;  %v303_v26 = vmul.f32 %v763_v2, %v232_v14  ;;  %v304_v27 = vmul.f32 %v763_v2, %v233_v15 }
  0x56   : > { %626 = vst.msk [vmem:[%s797_s23 + $0x188] sm:$0xff] %vm576_vm0, %v561_v19  ;;  %v563_v25 = vsel %vm435_vm7, %v371_v7, %v499_v17  ;;  %627 = vst.msk [vmem:[%s797_s23 + $0x190] sm:$0xff] %vm576_vm0, %v562_v24  ;;  %vm436_vm8 = vcmp.ge.f32.partialorder %v372_v20, 0.0  ;;  %v500_v30 = vmul.f32 0.25, %v372_v20  ;;  %vm437_vm9 = vcmp.ge.f32.partialorder %v373_v21, 0.0 }
  0x57   : > { %628 = vst.msk [vmem:[%s797_s23 + $0x198] sm:$0xff] %vm576_vm0, %v563_v25  ;;  %v501_v31 = vmul.f32 0.25, %v373_v21  ;;  %v374_v32 = vadd.f32 %v770_v3, %v303_v26  ;;  %v375_v33 = vadd.f32 %v770_v3, %v304_v27  ;;  %v305_v34 = vmul.f32 %v763_v2, %v234_v22 }
  0x58   : > { %v306_v35 = vmul.f32 %v763_v2, %v235_v23  ;;  %v564_v36 = vsel %vm436_vm8, %v372_v20, %v500_v30  ;;  %v307_v38 = vmul.f32 %v763_v2, %v236_v28  ;;  %v308_v39 = vmul.f32 %v763_v2, %v237_v29 }
  0x59   : > { %v565_v37 = vsel %vm437_vm9, %v373_v21, %v501_v31  ;;  %629 = vst.msk [vmem:[%s797_s23 + $0x1a0] sm:$0xff] %vm576_vm0, %v564_v36  ;;  %vm438_vm10 = vcmp.ge.f32.partialorder %v374_v32, 0.0  ;;  %v502_v42 = vmul.f32 0.25, %v374_v32  ;;  %vm439_vm11 = vcmp.ge.f32.partialorder %v375_v33, 0.0 }
  0x5a   : > { %630 = vst.msk [vmem:[%s797_s23 + $0x1a8] sm:$0xff] %vm576_vm0, %v565_v37  ;;  %v503_v43 = vmul.f32 0.25, %v375_v33  ;;  %v376_v44 = vadd.f32 %v770_v3, %v305_v34  ;;  %v377_v45 = vadd.f32 %v770_v3, %v306_v35  ;;  %v378_v46 = vadd.f32 %v770_v3, %v307_v38 }
  0x5b   : > { %v379_v47 = vadd.f32 %v770_v3, %v308_v39  ;;  %v566_v48 = vsel %vm438_vm10, %v374_v32, %v502_v42  ;;  %v309_v50 = vmul.f32 %v763_v2, %v238_v40  ;;  %v310_v51 = vmul.f32 %v763_v2, %v239_v41 }
  0x5c   : > { %v567_v49 = vsel %vm439_vm11, %v375_v33, %v503_v43  ;;  %631 = vst.msk [vmem:[%s797_s23 + $0x1b0] sm:$0xff] %vm576_vm0, %v566_v48  ;;  %vm440_vm12 = vcmp.ge.f32.partialorder %v376_v44, 0.0  ;;  %v504_v52 = vmul.f32 0.25, %v376_v44  ;;  %vm441_vm13 = vcmp.ge.f32.partialorder %v377_v45, 0.0 }
  0x5d   : > { %632 = vst.msk [vmem:[%s797_s23 + $0x1b8] sm:$0xff] %vm576_vm0, %v567_v49  ;;  %v505_v53 = vmul.f32 0.25, %v377_v45  ;;  %vm442_vm14 = vcmp.ge.f32.partialorder %v378_v46, 0.0  ;;  %v506_v56 = vmul.f32 0.25, %v378_v46  ;;  %vm443_vm15 = vcmp.ge.f32.partialorder %v379_v47, 0.0 }
  0x5e   : > { %v507_v57 = vmul.f32 0.25, %v379_v47  ;;  %v568_v58 = vsel %vm440_vm12, %v376_v44, %v504_v52  ;;  %v380_v60 = vadd.f32 %v770_v3, %v309_v50  ;;  %v381_v61 = vadd.f32 %v770_v3, %v310_v51 }
  0x5f   : > { %v569_v59 = vsel %vm441_vm13, %v377_v45, %v505_v53  ;;  %633 = vst.msk [vmem:[%s797_s23 + $0x1c0] sm:$0xff] %vm576_vm0, %v568_v58  ;;  %v570_v62 = vsel %vm442_vm14, %v378_v46, %v506_v56  ;;  %v311_v0 = vmul.f32 %v763_v2, %v240_v54  ;;  %v312_v1 = vmul.f32 %v763_v2, %v241_v55 }
  0x60   : > { %634 = vst.msk [vmem:[%s797_s23 + $0x1c8] sm:$0xff] %vm576_vm0, %v569_v59  ;;  %v571_v63 = vsel %vm443_vm15, %v379_v47, %v507_v57  ;;  %635 = vst.msk [vmem:[%s797_s23 + $0x1d0] sm:$0xff] %vm576_vm0, %v570_v62  ;;  %vm444_vm1 = vcmp.ge.f32.partialorder %v380_v60, 0.0  ;;  %v508_v4 = vmul.f32 0.25, %v380_v60  ;;  %vm445_vm2 = vcmp.ge.f32.partialorder %v381_v61, 0.0 }
  0x61   : > { %636 = vst.msk [vmem:[%s797_s23 + $0x1d8] sm:$0xff] %vm576_vm0, %v571_v63  ;;  %v509_v5 = vmul.f32 0.25, %v381_v61  ;;  %v382_v6 = vadd.f32 %v770_v3, %v311_v0  ;;  %v383_v7 = vadd.f32 %v770_v3, %v312_v1 }
  0x62   : > { %v572_v8 = vsel %vm444_vm1, %v380_v60, %v508_v4 }
  0x63   : > { %v573_v9 = vsel %vm445_vm2, %v381_v61, %v509_v5  ;;  %637 = vst.msk [vmem:[%s797_s23 + $0x1e0] sm:$0xff] %vm576_vm0, %v572_v8  ;;  %vm446_vm3 = vcmp.ge.f32.partialorder %v382_v6, 0.0  ;;  %v510_v2 = vmul.f32 0.25, %v382_v6  ;;  %vm447_vm4 = vcmp.ge.f32.partialorder %v383_v7, 0.0 }
  0x64   : > { %638 = vst.msk [vmem:[%s797_s23 + $0x1e8] sm:$0xff] %vm576_vm0, %v573_v9  ;;  %v511_v10 = vmul.f32 0.25, %v383_v7 }
  0x65   : > { %v574_v11 = vsel %vm446_vm3, %v382_v6, %v510_v2 }
  0x66   : > { %v575_v12 = vsel %vm447_vm4, %v383_v7, %v511_v10  ;;  %639 = vst.msk [vmem:[%s797_s23 + $0x1f0] sm:$0xff] %vm576_vm0, %v574_v11 }
  0x67   : > { %640 = vst.msk [vmem:[%s797_s23 + $0x1f8] sm:$0xff] %vm576_vm0, %v575_v12 }
  0x68 PF: > { %s17_s16 = sadd.s32 1, %s724_s16  }
  0x69   : > { %p14_p4 = scmp.ge.s32.totalorder %s17_s16, 6  }
  0x6b   :  { %16 = sbr.rel (!%p14_p4) target bundleno = 3 (0x3), region = 62 }

// kernel: _forward.61
= control target key start
LH: loop header
LB: loop body
LE: loop exit
PB: predicated region body
PF: predicated region fallthrough
CT: control target
= control target key end

     0   :  { %s1181_s14 = smov 0   ;;  %s1467_s0 = inlined_call_operand.vmem [shape: bf16[2048,9], index: 0, kind: input, shape index: {}]   ;;  %s1468_s1 = inlined_call_operand.vmem [shape: bf16[9,1], index: 1, kind: input, shape index: {}]   ;;  %s1469_s2 = inlined_call_operand.<no memory space> [shape: f32[1,1], index: 2, kind: input, shape index: {}]   ;;  %s1470_s3 = inlined_call_operand.vmem [shape: f32[2048,1], index: 3, kind: output, shape index: {}]  }
   0x1   :  { %v8_v0 = vstv %s1469_s2 }
   0x2   :  { %9 = vst [vmem:[#allocation2] sm:$0x1] %v8_v0 }
   0x3 LB: > { %s929_s15 = sadd.s32 4294967295, %s1155_s14   ;;  %p933_p0 = scmp.ge.s32.totalorder %s1155_s14, 1  ;;  %s1155_s14 = sphi %s1181_s14, %s15_s14  }
   0x4   : > { %p140_p1 = scmp.lt.s32.totalorder %s1155_s14, 5 }
   0x6   : > { %p141_p2 = pnand %p933_p0, %p140_p1 }
   0x7   : > { %v1116_v1 = vld [vmem:[%s1468_s1] sm:$0x1f] (!%p141_p2)   ;;  %vm512_vm0 = vcmask (!%p141_p2), 1043456   ;;  %vm513_vm1 = vcmask (!%p141_p2), 1044480   ;;  %s934_s2 = sshll.u32 (!%p141_p2), %s929_s15, 6  ;;  %v1157_v2 = vmov (!%p141_p2), 65535  }
   0x8   : > { %144 = sbr.rel (%p141_p2) target bundleno = 295 (0x127), region = 32  ;;  %v514_v3 = vsel (!%p141_p2), %vm512_vm0, 4294967295, %v1157_v2  ;;  %p165_p3 = scmp.lt.s32.totalorder (!%p141_p2), %s934_s2, 255  ;;  %vm415_vm2 = vcmask (!%p141_p2), 72704   ;;  %vm808_vm3 = vcmask (!%p141_p2), 7168  }
   0x9   : > { %v515_v4 = vsel (!%p141_p2), %vm513_vm1, %v514_v3, 0  ;;  %v1265_v38 = vld [vmem:[#allocation2] ss:$0 sm:$0xff] (!%p141_p2) }
   0xa   : > { %v517_v5 = vand.u32 (!%p141_p2), %v1116_v1, %v515_v4 }
   0xc   : > { %1039 = vmatprep.subr.bf16.mxu0 (!%p141_p2), %v517_v5  ;;  %1105 = vmatprep.subr.bf16.mxu1 (!%p141_p2), %v517_v5 }
   0xd   : > { %1040 = vmatpush3.bf16.msra.mxu0 (!%p141_p2), %v517_v5  ;;  %1106 = vmatpush3.bf16.msra.mxu1 (!%p141_p2), %v517_v5 }
   0xf   : > { %s1472_s2 = smov (!%p165_p3, %s934_s2), 255 }
  0x10   : > { %s935_s18 = sshll.u32 %s1472_s2, 2  ;;  %s937_s22 = sshll.u32 %s1472_s2, 3 }
  0x11   : > { %s1198_s21 = scalar_lea.vmem %s1467_s0, %s935_s18  ;;  %s1270_s25 = scalar_lea.vmem %s1470_s3, %s937_s22 }
  0x12   : > { %v1117_v6 = vld [vmem:[%s1198_s21] sm:$0xff]   ;;  %v1119_v8 = vld [vmem:[%s1198_s21 + $0x8] sm:$0xff]   ;;  %v1121_v10 = vld [vmem:[%s1198_s21 + $0x10] sm:$0xff]  }
  0x13   : > { %v1118_v7 = vld [vmem:[%s1198_s21 + $0x80] sm:$0xff]   ;;  %1041 = vmatprep.mubr.msk.bf16.mxu0 %vm415_vm2, %v1117_v6  ;;  %v1120_v9 = vld [vmem:[%s1198_s21 + $0x88] sm:$0xff]   ;;  %v1122_v11 = vld [vmem:[%s1198_s21 + $0x90] sm:$0xff]  }
  0x14   : > { %1073 = vmatprep.mubr.msk.bf16.mxu1 %vm415_vm2, %v1118_v7  ;;  %1042 = vmatmul.mubr.msk.bf16.vlgmr.msra.gmra.mrb[0].mxu0 %vm415_vm2, %v1119_v8  ;;  %v1123_v12 = vld [vmem:[%s1198_s21 + $0x18] sm:$0xff]   ;;  %v1125_v14 = vld [vmem:[%s1198_s21 + $0x20] sm:$0xff]   ;;  %v1127_v16 = vld [vmem:[%s1198_s21 + $0x28] sm:$0xff]  }
  0x15   : > { %1074 = vmatmul.mubr.msk.bf16.vlgmr.msra.gmra.mrb[0].mxu1 %vm415_vm2, %v1120_v9  ;;  %1045 = vmatprep.mubr.msk.bf16.mxu0 %vm415_vm2, %v1121_v10  ;;  %v1124_v13 = vld [vmem:[%s1198_s21 + $0x98] sm:$0xff]   ;;  %v1126_v15 = vld [vmem:[%s1198_s21 + $0xa0] sm:$0xff]   ;;  %v1128_v17 = vld [vmem:[%s1198_s21 + $0xa8] sm:$0xff]  }
  0x16   : > { %1077 = vmatprep.mubr.msk.bf16.mxu1 %vm415_vm2, %v1122_v11  ;;  %v1129_v18 = vld [vmem:[%s1198_s21 + $0x30] sm:$0xff]   ;;  %v1131_v20 = vld [vmem:[%s1198_s21 + $0x38] sm:$0xff]   ;;  %v1133_v22 = vld [vmem:[%s1198_s21 + $0x40] sm:$0xff]  }
  0x17   : > { %v1130_v19 = vld [vmem:[%s1198_s21 + $0xb0] sm:$0xff]   ;;  %v1132_v21 = vld [vmem:[%s1198_s21 + $0xb8] sm:$0xff]   ;;  %v1134_v23 = vld [vmem:[%s1198_s21 + $0xc0] sm:$0xff]  }
  0x18   : > { %v1135_v24 = vld [vmem:[%s1198_s21 + $0x48] sm:$0xff]   ;;  %v1137_v26 = vld [vmem:[%s1198_s21 + $0x50] sm:$0xff]   ;;  %v1139_v28 = vld [vmem:[%s1198_s21 + $0x58] sm:$0xff]  }
  0x19   : > { %v1136_v25 = vld [vmem:[%s1198_s21 + $0xc8] sm:$0xff]   ;;  %v1138_v27 = vld [vmem:[%s1198_s21 + $0xd0] sm:$0xff]   ;;  %v1140_v29 = vld [vmem:[%s1198_s21 + $0xd8] sm:$0xff]  }
  0x1a   : > { %v1141_v30 = vld [vmem:[%s1198_s21 + $0x60] sm:$0xff]   ;;  %v1143_v32 = vld [vmem:[%s1198_s21 + $0x68] sm:$0xff]   ;;  %v1145_v34 = vld [vmem:[%s1198_s21 + $0x70] sm:$0xff]  }
  0x1b   : > { %v1142_v31 = vld [vmem:[%s1198_s21 + $0xe0] sm:$0xff]   ;;  %v1144_v33 = vld [vmem:[%s1198_s21 + $0xe8] sm:$0xff]   ;;  %v1146_v35 = vld [vmem:[%s1198_s21 + $0xf0] sm:$0xff]  }
  0x1c   : > { %1046 = vmatmul.mubr.msk.bf16.gmra.mrb[4].mxu0 %vm415_vm2, %v1123_v12  ;;  %v1147_v36 = vld [vmem:[%s1198_s21 + $0x78] sm:$0xff]  }
  0x1d   : > { %1078 = vmatmul.mubr.msk.bf16.gmra.mrb[4].mxu1 %vm415_vm2, %v1124_v13  ;;  %1049 = vmatprep.mubr.msk.bf16.mxu0 %vm415_vm2, %v1125_v14  ;;  %v1148_v37 = vld [vmem:[%s1198_s21 + $0xf8] sm:$0xff]  }
  0x1e   : > { %1081 = vmatprep.mubr.msk.bf16.mxu1 %vm415_vm2, %v1126_v15 }
  0x24   : > { %1050 = vmatmul.mubr.msk.bf16.gmra.mrb[8].mxu0 %vm415_vm2, %v1127_v16 }
  0x25   : > { %1082 = vmatmul.mubr.msk.bf16.gmra.mrb[8].mxu1 %vm415_vm2, %v1128_v17  ;;  %1053 = vmatprep.mubr.msk.bf16.mxu0 %vm415_vm2, %v1129_v18 }
  0x26   : > { %1085 = vmatprep.mubr.msk.bf16.mxu1 %vm415_vm2, %v1130_v19 }
  0x2c   : > { %1054 = vmatmul.mubr.msk.bf16.gmra.mrb[12].mxu0 %vm415_vm2, %v1131_v20 }
  0x2d   : > { %1086 = vmatmul.mubr.msk.bf16.gmra.mrb[12].mxu1 %vm415_vm2, %v1132_v21  ;;  %1057 = vmatprep.mubr.msk.bf16.mxu0 %vm415_vm2, %v1133_v22 }
  0x2e   : > { %1089 = vmatprep.mubr.msk.bf16.mxu1 %vm415_vm2, %v1134_v23 }
  0x34   : > { %1058 = vmatmul.mubr.msk.bf16.gmra.mrb[16].mxu0 %vm415_vm2, %v1135_v24 }
  0x35   : > { %1090 = vmatmul.mubr.msk.bf16.gmra.mrb[16].mxu1 %vm415_vm2, %v1136_v25  ;;  %1061 = vmatprep.mubr.msk.bf16.mxu0 %vm415_vm2, %v1137_v26 }
  0x36   : > { %1093 = vmatprep.mubr.msk.bf16.mxu1 %vm415_vm2, %v1138_v27 }
  0x3c   : > { %1062 = vmatmul.mubr.msk.bf16.gmra.mrb[20].mxu0 %vm415_vm2, %v1139_v28 }
  0x3d   : > { %1094 = vmatmul.mubr.msk.bf16.gmra.mrb[20].mxu1 %vm415_vm2, %v1140_v29  ;;  %1065 = vmatprep.mubr.msk.bf16.mxu0 %vm415_vm2, %v1141_v30 }
  0x3e   : > { %1097 = vmatprep.mubr.msk.bf16.mxu1 %vm415_vm2, %v1142_v31 }
  0x44   : > { %1066 = vmatmul.mubr.msk.bf16.gmra.mrb[24].mxu0 %vm415_vm2, %v1143_v32 }
  0x45   : > { %1098 = vmatmul.mubr.msk.bf16.gmra.mrb[24].mxu1 %vm415_vm2, %v1144_v33  ;;  %1069 = vmatprep.mubr.msk.bf16.mxu0 %vm415_vm2, %v1145_v34 }
  0x46   : > { %1101 = vmatprep.mubr.msk.bf16.mxu1 %vm415_vm2, %v1146_v35 }
  0x4c   : > { %1070 = vmatmul.mubr.msk.bf16.gmra.mrb[28].mxu0 %vm415_vm2, %v1147_v36 }
  0x4d   : > { %1102 = vmatmul.mubr.msk.bf16.gmra.mrb[28].mxu1 %vm415_vm2, %v1148_v37 }
  0xe7   : > { %v1043_v39 = vpop.f32.mrb[0].mxu0 }
  0xe8   : > { %v562_v40 = vadd.f32 %v1043_v39, %v1265_v38  ;;  %v1075_v41 = vpop.f32.mrb[0].mxu1  ;;  %v553_v42 = vpop.f32.mrb[1].mxu0 }
  0xe9   : > { %v690_v43 = vadd.f32 %v1075_v41, %v1265_v38  ;;  %v554_v44 = vadd.f32 %v1265_v38, %v553_v42  ;;  %v681_v45 = vpop.f32.mrb[1].mxu1  ;;  %v1044_v46 = vpop.f32.mrb[2].mxu0 }
  0xea   : > { %811 = vst.msk [vmem:[%s1270_s25 + $0x10] sm:$0xff] %vm808_vm3, %v562_v40  ;;  %v682_v47 = vadd.f32 %v1265_v38, %v681_v45  ;;  %v565_v48 = vadd.f32 %v1044_v46, %v1265_v38  ;;  %v1076_v49 = vpop.f32.mrb[2].mxu1  ;;  %v556_v50 = vpop.f32.mrb[3].mxu0 }
  0xeb   : > { %843 = vst.msk [vmem:[%s1270_s25 + $0x110] sm:$0xff] %vm808_vm3, %v690_v43  ;;  %809 = vst.msk [vmem:[%s1270_s25] sm:$0xff] %vm808_vm3, %v554_v44  ;;  %v693_v51 = vadd.f32 %v1076_v49, %v1265_v38  ;;  %v557_v52 = vadd.f32 %v1265_v38, %v556_v50  ;;  %v684_v53 = vpop.f32.mrb[3].mxu1 }
  0xec   : > { %841 = vst.msk [vmem:[%s1270_s25 + $0x100] sm:$0xff] %vm808_vm3, %v682_v47  ;;  %812 = vst.msk [vmem:[%s1270_s25 + $0x18] sm:$0xff] %vm808_vm3, %v565_v48  ;;  %v685_v54 = vadd.f32 %v1265_v38, %v684_v53 }
  0xed   : > { %844 = vst.msk [vmem:[%s1270_s25 + $0x118] sm:$0xff] %vm808_vm3, %v693_v51  ;;  %810 = vst.msk [vmem:[%s1270_s25 + $0x8] sm:$0xff] %vm808_vm3, %v557_v52 }
  0xee   : > { %842 = vst.msk [vmem:[%s1270_s25 + $0x108] sm:$0xff] %vm808_vm3, %v685_v54 }
  0xef   : > { %v1047_v55 = vpop.f32.mrb[4].mxu0 }
  0xf0   : > { %v578_v56 = vadd.f32 %v1047_v55, %v1265_v38  ;;  %v1079_v57 = vpop.f32.mrb[4].mxu1  ;;  %v569_v58 = vpop.f32.mrb[5].mxu0 }
  0xf1   : > { %v706_v59 = vadd.f32 %v1079_v57, %v1265_v38  ;;  %v570_v60 = vadd.f32 %v1265_v38, %v569_v58  ;;  %v697_v61 = vpop.f32.mrb[5].mxu1  ;;  %v1048_v62 = vpop.f32.mrb[6].mxu0 }
  0xf2   : > { %815 = vst.msk [vmem:[%s1270_s25 + $0x30] sm:$0xff] %vm808_vm3, %v578_v56  ;;  %v698_v63 = vadd.f32 %v1265_v38, %v697_v61  ;;  %v581_v0 = vadd.f32 %v1048_v62, %v1265_v38  ;;  %v1080_v1 = vpop.f32.mrb[6].mxu1  ;;  %v572_v2 = vpop.f32.mrb[7].mxu0 }
  0xf3   : > { %847 = vst.msk [vmem:[%s1270_s25 + $0x130] sm:$0xff] %vm808_vm3, %v706_v59  ;;  %813 = vst.msk [vmem:[%s1270_s25 + $0x20] sm:$0xff] %vm808_vm3, %v570_v60  ;;  %v709_v3 = vadd.f32 %v1080_v1, %v1265_v38  ;;  %v573_v4 = vadd.f32 %v1265_v38, %v572_v2  ;;  %v700_v5 = vpop.f32.mrb[7].mxu1 }
  0xf4   : > { %845 = vst.msk [vmem:[%s1270_s25 + $0x120] sm:$0xff] %vm808_vm3, %v698_v63  ;;  %816 = vst.msk [vmem:[%s1270_s25 + $0x38] sm:$0xff] %vm808_vm3, %v581_v0  ;;  %v701_v6 = vadd.f32 %v1265_v38, %v700_v5 }
  0xf5   : > { %848 = vst.msk [vmem:[%s1270_s25 + $0x138] sm:$0xff] %vm808_vm3, %v709_v3  ;;  %814 = vst.msk [vmem:[%s1270_s25 + $0x28] sm:$0xff] %vm808_vm3, %v573_v4 }
  0xf6   : > { %846 = vst.msk [vmem:[%s1270_s25 + $0x128] sm:$0xff] %vm808_vm3, %v701_v6 }
  0xf7   : > { %v1051_v7 = vpop.f32.mrb[8].mxu0 }
  0xf8   : > { %v594_v8 = vadd.f32 %v1051_v7, %v1265_v38  ;;  %v1083_v9 = vpop.f32.mrb[8].mxu1  ;;  %v585_v10 = vpop.f32.mrb[9].mxu0 }
  0xf9   : > { %v722_v11 = vadd.f32 %v1083_v9, %v1265_v38  ;;  %v586_v12 = vadd.f32 %v1265_v38, %v585_v10  ;;  %v713_v13 = vpop.f32.mrb[9].mxu1  ;;  %v1052_v14 = vpop.f32.mrb[10].mxu0 }
  0xfa   : > { %819 = vst.msk [vmem:[%s1270_s25 + $0x50] sm:$0xff] %vm808_vm3, %v594_v8  ;;  %v714_v15 = vadd.f32 %v1265_v38, %v713_v13  ;;  %v597_v16 = vadd.f32 %v1052_v14, %v1265_v38  ;;  %v1084_v17 = vpop.f32.mrb[10].mxu1  ;;  %v588_v18 = vpop.f32.mrb[11].mxu0 }
  0xfb   : > { %851 = vst.msk [vmem:[%s1270_s25 + $0x150] sm:$0xff] %vm808_vm3, %v722_v11  ;;  %817 = vst.msk [vmem:[%s1270_s25 + $0x40] sm:$0xff] %vm808_vm3, %v586_v12  ;;  %v725_v19 = vadd.f32 %v1084_v17, %v1265_v38  ;;  %v589_v20 = vadd.f32 %v1265_v38, %v588_v18  ;;  %v716_v21 = vpop.f32.mrb[11].mxu1 }
  0xfc   : > { %849 = vst.msk [vmem:[%s1270_s25 + $0x140] sm:$0xff] %vm808_vm3, %v714_v15  ;;  %820 = vst.msk [vmem:[%s1270_s25 + $0x58] sm:$0xff] %vm808_vm3, %v597_v16  ;;  %v717_v22 = vadd.f32 %v1265_v38, %v716_v21 }
  0xfd   : > { %852 = vst.msk [vmem:[%s1270_s25 + $0x158] sm:$0xff] %vm808_vm3, %v725_v19  ;;  %818 = vst.msk [vmem:[%s1270_s25 + $0x48] sm:$0xff] %vm808_vm3, %v589_v20 }
  0xfe   : > { %850 = vst.msk [vmem:[%s1270_s25 + $0x148] sm:$0xff] %vm808_vm3, %v717_v22 }
  0xff   : > { %v1055_v23 = vpop.f32.mrb[12].mxu0 }
 0x100   : > { %v610_v24 = vadd.f32 %v1055_v23, %v1265_v38  ;;  %v1087_v25 = vpop.f32.mrb[12].mxu1  ;;  %v601_v26 = vpop.f32.mrb[13].mxu0 }
 0x101   : > { %v738_v27 = vadd.f32 %v1087_v25, %v1265_v38  ;;  %v602_v28 = vadd.f32 %v1265_v38, %v601_v26  ;;  %v729_v29 = vpop.f32.mrb[13].mxu1  ;;  %v1056_v30 = vpop.f32.mrb[14].mxu0 }
 0x102   : > { %823 = vst.msk [vmem:[%s1270_s25 + $0x70] sm:$0xff] %vm808_vm3, %v610_v24  ;;  %v730_v31 = vadd.f32 %v1265_v38, %v729_v29  ;;  %v613_v32 = vadd.f32 %v1056_v30, %v1265_v38  ;;  %v1088_v33 = vpop.f32.mrb[14].mxu1  ;;  %v604_v34 = vpop.f32.mrb[15].mxu0 }
 0x103   : > { %855 = vst.msk [vmem:[%s1270_s25 + $0x170] sm:$0xff] %vm808_vm3, %v738_v27  ;;  %821 = vst.msk [vmem:[%s1270_s25 + $0x60] sm:$0xff] %vm808_vm3, %v602_v28  ;;  %v741_v35 = vadd.f32 %v1088_v33, %v1265_v38  ;;  %v605_v36 = vadd.f32 %v1265_v38, %v604_v34  ;;  %v732_v37 = vpop.f32.mrb[15].mxu1 }
 0x104   : > { %853 = vst.msk [vmem:[%s1270_s25 + $0x160] sm:$0xff] %vm808_vm3, %v730_v31  ;;  %824 = vst.msk [vmem:[%s1270_s25 + $0x78] sm:$0xff] %vm808_vm3, %v613_v32  ;;  %v733_v39 = vadd.f32 %v1265_v38, %v732_v37 }
 0x105   : > { %856 = vst.msk [vmem:[%s1270_s25 + $0x178] sm:$0xff] %vm808_vm3, %v741_v35  ;;  %822 = vst.msk [vmem:[%s1270_s25 + $0x68] sm:$0xff] %vm808_vm3, %v605_v36 }
 0x106   : > { %854 = vst.msk [vmem:[%s1270_s25 + $0x168] sm:$0xff] %vm808_vm3, %v733_v39 }
 0x107   : > { %v1059_v40 = vpop.f32.mrb[16].mxu0 }
 0x108   : > { %v626_v41 = vadd.f32 %v1059_v40, %v1265_v38  ;;  %v1091_v42 = vpop.f32.mrb[16].mxu1  ;;  %v617_v43 = vpop.f32.mrb[17].mxu0 }
 0x109   : > { %v754_v44 = vadd.f32 %v1091_v42, %v1265_v38  ;;  %v618_v45 = vadd.f32 %v1265_v38, %v617_v43  ;;  %v745_v46 = vpop.f32.mrb[17].mxu1  ;;  %v1060_v47 = vpop.f32.mrb[18].mxu0 }
 0x10a   : > { %827 = vst.msk [vmem:[%s1270_s25 + $0x90] sm:$0xff] %vm808_vm3, %v626_v41  ;;  %v746_v48 = vadd.f32 %v1265_v38, %v745_v46  ;;  %v629_v49 = vadd.f32 %v1060_v47, %v1265_v38  ;;  %v1092_v50 = vpop.f32.mrb[18].mxu1  ;;  %v620_v51 = vpop.f32.mrb[19].mxu0 }
 0x10b   : > { %859 = vst.msk [vmem:[%s1270_s25 + $0x190] sm:$0xff] %vm808_vm3, %v754_v44  ;;  %825 = vst.msk [vmem:[%s1270_s25 + $0x80] sm:$0xff] %vm808_vm3, %v618_v45  ;;  %v757_v52 = vadd.f32 %v1092_v50, %v1265_v38  ;;  %v621_v53 = vadd.f32 %v1265_v38, %v620_v51  ;;  %v748_v54 = vpop.f32.mrb[19].mxu1 }
 0x10c   : > { %857 = vst.msk [vmem:[%s1270_s25 + $0x180] sm:$0xff] %vm808_vm3, %v746_v48  ;;  %828 = vst.msk [vmem:[%s1270_s25 + $0x98] sm:$0xff] %vm808_vm3, %v629_v49  ;;  %v749_v55 = vadd.f32 %v1265_v38, %v748_v54 }
 0x10d   : > { %860 = vst.msk [vmem:[%s1270_s25 + $0x198] sm:$0xff] %vm808_vm3, %v757_v52  ;;  %826 = vst.msk [vmem:[%s1270_s25 + $0x88] sm:$0xff] %vm808_vm3, %v621_v53 }
 0x10e   : > { %858 = vst.msk [vmem:[%s1270_s25 + $0x188] sm:$0xff] %vm808_vm3, %v749_v55 }
 0x10f   : > { %v1063_v56 = vpop.f32.mrb[20].mxu0 }
 0x110   : > { %v642_v57 = vadd.f32 %v1063_v56, %v1265_v38  ;;  %v1095_v58 = vpop.f32.mrb[20].mxu1  ;;  %v633_v59 = vpop.f32.mrb[21].mxu0 }
 0x111   : > { %v770_v60 = vadd.f32 %v1095_v58, %v1265_v38  ;;  %v634_v61 = vadd.f32 %v1265_v38, %v633_v59  ;;  %v761_v62 = vpop.f32.mrb[21].mxu1  ;;  %v1064_v63 = vpop.f32.mrb[22].mxu0 }
 0x112   : > { %831 = vst.msk [vmem:[%s1270_s25 + $0xb0] sm:$0xff] %vm808_vm3, %v642_v57  ;;  %v762_v0 = vadd.f32 %v1265_v38, %v761_v62  ;;  %v645_v1 = vadd.f32 %v1064_v63, %v1265_v38  ;;  %v1096_v2 = vpop.f32.mrb[22].mxu1  ;;  %v636_v3 = vpop.f32.mrb[23].mxu0 }
 0x113   : > { %863 = vst.msk [vmem:[%s1270_s25 + $0x1b0] sm:$0xff] %vm808_vm3, %v770_v60  ;;  %829 = vst.msk [vmem:[%s1270_s25 + $0xa0] sm:$0xff] %vm808_vm3, %v634_v61  ;;  %v773_v4 = vadd.f32 %v1096_v2, %v1265_v38  ;;  %v637_v5 = vadd.f32 %v1265_v38, %v636_v3  ;;  %v764_v6 = vpop.f32.mrb[23].mxu1 }
 0x114   : > { %861 = vst.msk [vmem:[%s1270_s25 + $0x1a0] sm:$0xff] %vm808_vm3, %v762_v0  ;;  %832 = vst.msk [vmem:[%s1270_s25 + $0xb8] sm:$0xff] %vm808_vm3, %v645_v1  ;;  %v765_v7 = vadd.f32 %v1265_v38, %v764_v6 }
 0x115   : > { %864 = vst.msk [vmem:[%s1270_s25 + $0x1b8] sm:$0xff] %vm808_vm3, %v773_v4  ;;  %830 = vst.msk [vmem:[%s1270_s25 + $0xa8] sm:$0xff] %vm808_vm3, %v637_v5 }
 0x116   : > { %862 = vst.msk [vmem:[%s1270_s25 + $0x1a8] sm:$0xff] %vm808_vm3, %v765_v7 }
 0x117   : > { %v1067_v8 = vpop.f32.mrb[24].mxu0 }
 0x118   : > { %v658_v9 = vadd.f32 %v1067_v8, %v1265_v38  ;;  %v1099_v10 = vpop.f32.mrb[24].mxu1  ;;  %v649_v11 = vpop.f32.mrb[25].mxu0 }
 0x119   : > { %v786_v12 = vadd.f32 %v1099_v10, %v1265_v38  ;;  %v650_v13 = vadd.f32 %v1265_v38, %v649_v11  ;;  %v777_v14 = vpop.f32.mrb[25].mxu1  ;;  %v1068_v15 = vpop.f32.mrb[26].mxu0 }
 0x11a   : > { %835 = vst.msk [vmem:[%s1270_s25 + $0xd0] sm:$0xff] %vm808_vm3, %v658_v9  ;;  %v778_v16 = vadd.f32 %v1265_v38, %v777_v14  ;;  %v661_v17 = vadd.f32 %v1068_v15, %v1265_v38  ;;  %v1100_v18 = vpop.f32.mrb[26].mxu1  ;;  %v652_v19 = vpop.f32.mrb[27].mxu0 }
 0x11b   : > { %867 = vst.msk [vmem:[%s1270_s25 + $0x1d0] sm:$0xff] %vm808_vm3, %v786_v12  ;;  %833 = vst.msk [vmem:[%s1270_s25 + $0xc0] sm:$0xff] %vm808_vm3, %v650_v13  ;;  %v789_v20 = vadd.f32 %v1100_v18, %v1265_v38  ;;  %v653_v21 = vadd.f32 %v1265_v38, %v652_v19  ;;  %v780_v22 = vpop.f32.mrb[27].mxu1 }
 0x11c   : > { %865 = vst.msk [vmem:[%s1270_s25 + $0x1c0] sm:$0xff] %vm808_vm3, %v778_v16  ;;  %836 = vst.msk [vmem:[%s1270_s25 + $0xd8] sm:$0xff] %vm808_vm3, %v661_v17  ;;  %v781_v23 = vadd.f32 %v1265_v38, %v780_v22 }
 0x11d   : > { %868 = vst.msk [vmem:[%s1270_s25 + $0x1d8] sm:$0xff] %vm808_vm3, %v789_v20  ;;  %834 = vst.msk [vmem:[%s1270_s25 + $0xc8] sm:$0xff] %vm808_vm3, %v653_v21 }
 0x11e   : > { %866 = vst.msk [vmem:[%s1270_s25 + $0x1c8] sm:$0xff] %vm808_vm3, %v781_v23 }
 0x11f   : > { %v1071_v24 = vpop.f32.mrb[28].mxu0 }
 0x120   : > { %v674_v25 = vadd.f32 %v1071_v24, %v1265_v38  ;;  %v1103_v26 = vpop.f32.mrb[28].mxu1  ;;  %v665_v27 = vpop.f32.mrb[29].mxu0 }
 0x121   : > { %v802_v28 = vadd.f32 %v1103_v26, %v1265_v38  ;;  %v666_v29 = vadd.f32 %v1265_v38, %v665_v27  ;;  %v793_v30 = vpop.f32.mrb[29].mxu1  ;;  %v1072_v31 = vpop.f32.mrb[30].mxu0 }
 0x122   : > { %839 = vst.msk [vmem:[%s1270_s25 + $0xf0] sm:$0xff] %vm808_vm3, %v674_v25  ;;  %v794_v32 = vadd.f32 %v1265_v38, %v793_v30  ;;  %v677_v33 = vadd.f32 %v1072_v31, %v1265_v38  ;;  %v1104_v34 = vpop.f32.mrb[30].mxu1  ;;  %v668_v35 = vpop.f32.mrb[31].mxu0 }
 0x123   : > { %871 = vst.msk [vmem:[%s1270_s25 + $0x1f0] sm:$0xff] %vm808_vm3, %v802_v28  ;;  %837 = vst.msk [vmem:[%s1270_s25 + $0xe0] sm:$0xff] %vm808_vm3, %v666_v29  ;;  %v805_v36 = vadd.f32 %v1104_v34, %v1265_v38  ;;  %v669_v37 = vadd.f32 %v1265_v38, %v668_v35  ;;  %v796_v39 = vpop.f32.mrb[31].mxu1 }
 0x124   : > { %869 = vst.msk [vmem:[%s1270_s25 + $0x1e0] sm:$0xff] %vm808_vm3, %v794_v32  ;;  %840 = vst.msk [vmem:[%s1270_s25 + $0xf8] sm:$0xff] %vm808_vm3, %v677_v33  ;;  %v797_v40 = vadd.f32 %v1265_v38, %v796_v39 }
 0x125   : > { %872 = vst.msk [vmem:[%s1270_s25 + $0x1f8] sm:$0xff] %vm808_vm3, %v805_v36  ;;  %838 = vst.msk [vmem:[%s1270_s25 + $0xe8] sm:$0xff] %vm808_vm3, %v669_v37 }
 0x126   : > { %870 = vst.msk [vmem:[%s1270_s25 + $0x1e8] sm:$0xff] %vm808_vm3, %v797_v40 }
 0x127 PF: > { %s15_s14 = sadd.s32 1, %s1155_s14  }
 0x128   : > { %p12_p4 = scmp.ge.s32.totalorder %s15_s14, 6  }
 0x12a   :  { %14 = sbr.rel (!%p12_p4) target bundleno = 3 (0x3), region = 62 }

</bundles_post_ra>
